<compile_context>
chip_gen: v7x
topology: tpu7x:2x2x1
jax: 0.10.0
libtpu: 0.0.40
codegen_flags: <defaults>
</compile_context>

<pallas_src>
import functools
import math

import jax
import jax.numpy as jnp
from jax.experimental import pallas as pl
from jax.experimental.pallas import tpu as pltpu


def _round_up(v, m):
    return (v + m - 1) // m * m


def _vmem_limit_bytes():
    """Generation-aware scoped VMEM limit (v7x has only 64 MiB per TensorCore)."""
    cap = 128 * 1024 * 1024
    try:
        info = pltpu.get_tpu_info()
        cap = int(getattr(info, "vmem_capacity_bytes", cap))
    except Exception:
        pass
    return min(cap // 2, 48 * 1024 * 1024)


# ----------------------------------------------------------------------------
# Fused encoder conv stack: conv_in + n_blocks residual blocks, one pallas_call.
# ----------------------------------------------------------------------------
def _make_encoder_kernel(H, W, Ch, Cb, n_blocks):
    def kernel(*refs):
        x_ref = refs[0]
        w_in, b_in = refs[1], refs[2]
        blk = refs[3:3 + 4 * n_blocks]
        out_ref = refs[3 + 4 * n_blocks]
        pad_ref = refs[4 + 4 * n_blocks]

        # Zero the padded slab once per sample; every layer overwrites only the
        # interior, so the 1-pixel halo stays zero (replaces the per-layer XLA pad).
        pad_ref[...] = jnp.zeros_like(pad_ref)

        def conv3x3(x3d, w_ref, b_ref, residual=None):
            # x3d: (H, W, C) f32/bf16.  One K=9C im2col GEMM on the MXU.
            C = x3d.shape[-1]
            pad_ref[1:H + 1, 1:W + 1, :C] = x3d.astype(pad_ref.dtype)
            xpad = pad_ref[...]                                   # (H+2, W+2, Cmax) bf16
            taps = [xpad[dh:dh + H, dw:dw + W, :C]
                    for dh in range(3) for dw in range(3)]
            patches = jnp.concatenate(taps, axis=-1).reshape(H * W, 9 * C)
            acc = jnp.dot(patches, w_ref[...],
                          preferred_element_type=jnp.float32)     # (H*W, Cout) f32
            acc = acc + b_ref[...]
            if residual is not None:
                acc = acc + residual                              # f32 skip connection
            return jnp.maximum(acc, 0.0)

        h = conv3x3(x_ref[0], w_in, b_in)                         # (H*W, Ch) f32
        for i in range(n_blocks):
            w1, b1, w2, b2 = blk[4 * i:4 * i + 4]
            t = conv3x3(h.reshape(H, W, Ch), w1, b1)              # (H*W, Cb)
            h = conv3x3(t.reshape(H, W, Cb), w2, b2, residual=h)  # (H*W, Ch)
        out_ref[...] = h.reshape(out_ref.shape).astype(out_ref.dtype)

    return kernel


def encoder_conv_stack(x_nhwc, p):
    """Fused conv_in + residual blocks.  Returns (N, H*W, n_hidden) bf16."""
    N, H, W, Cin = x_nhwc.shape
    Ch = p["conv_in_w"].shape[-1]
    blocks = p["blocks"]
    n_blocks = len(blocks)
    Cb = blocks[0]["w1"].shape[-1] if n_blocks else Ch
    Cmax = max(Cin, Ch, Cb)

    in_specs = [pl.BlockSpec((1, H, W, Cin), lambda b: (b, 0, 0, 0))]
    args = [x_nhwc]

    def add_resident(a):                                  # VMEM-resident across the grid
        nd = a.ndim
        in_specs.append(pl.BlockSpec(a.shape, lambda b, _nd=nd: (0,) * _nd))
        args.append(a)

    add_resident(p["conv_in_w"])
    add_resident(p["conv_in_b"])
    for blk in blocks:
        add_resident(blk["w1"]); add_resident(blk["b1"])
        add_resident(blk["w2"]); add_resident(blk["b2"])

    vmem_limit = _vmem_limit_bytes()
    w_bytes = sum(int(a.size) * a.dtype.itemsize for a in args[1:])
    slab = (H + 2) * _round_up(W + 2, 16) * _round_up(Cmax, 128) * 2
    live = H * W * (Cin * 4 + 2 * max(Ch, Cb) * 4)        # f32 activations held in-flight
    need = 2 * (H * W * Cin * 4 + H * W * Ch * 2 + w_bytes) + slab + live + (2 << 20)
    if need > vmem_limit:
        # TODO(synk): row-tiled (halo-grown) fallback for large images.
        raise ValueError(f"fused encoder working set ~{need}B exceeds VMEM limit {vmem_limit}B")

    flops = 2 * N * H * W * 9 * Cin * Ch
    for blk in blocks:
        cb = blk["w1"].shape[-1]
        flops += 2 * N * H * W * 9 * (Ch * cb + cb * Ch)
    cost = pl.CostEstimate(flops=int(flops), transcendentals=0,
                           bytes_accessed=int(N * H * W * Cin * 4 + w_bytes
                                              + N * H * W * Ch * 2))

    kernel = _make_encoder_kernel(H, W, Ch, Cb, n_blocks)
    return pl.pallas_call(
        kernel,
        out_shape=jax.ShapeDtypeStruct((N, H * W, Ch), jnp.bfloat16),
        grid=(N,),
        in_specs=in_specs,
        out_specs=pl.BlockSpec((1, H * W, Ch), lambda b: (b, 0, 0)),
        scratch_shapes=[pltpu.VMEM((H + 2, W + 2, Cmax), jnp.bfloat16)],
        compiler_params=pltpu.CompilerParams(
            dimension_semantics=("parallel",),          # feeds both v7x TensorCores
            vmem_limit_bytes=vmem_limit),
        cost_estimate=cost,
    )(*args)


# ----------------------------------------------------------------------------
# Fused dense head: one GEMM producing [mean | log_var], lane-padded to 128.
# ----------------------------------------------------------------------------
def _head_kernel(a_ref, w_ref, b_ref, o_ref):
    acc = jnp.dot(a_ref[...], w_ref[...], preferred_element_type=jnp.float32)
    o_ref[...] = (acc + b_ref[...]).astype(o_ref.dtype)


def encoder_heads(h_flat, w_heads, b_heads):
    """h_flat:(N,K) bf16, w_heads:(K,Lp) bf16, b_heads:(1,Lp) f32 -> (N,Lp) f32."""
    N, K = h_flat.shape
    Lp = w_heads.shape[1]
    cost = pl.CostEstimate(flops=2 * N * K * Lp, transcendentals=0,
                           bytes_accessed=int(N * K * 2 + K * Lp * 2 + Lp * 4 + N * Lp * 4))
    return pl.pallas_call(
        _head_kernel,
        out_shape=jax.ShapeDtypeStruct((N, Lp), jnp.float32),
        grid=(1,),
        in_specs=[pl.BlockSpec((N, K), lambda i: (0, 0)),
                  pl.BlockSpec((K, Lp), lambda i: (0, 0)),
                  pl.BlockSpec((1, Lp), lambda i: (0, 0))],
        out_specs=pl.BlockSpec((N, Lp), lambda i: (0, 0)),
        compiler_params=pltpu.CompilerParams(
            dimension_semantics=("arbitrary",),
            vmem_limit_bytes=_vmem_limit_bytes()),
        cost_estimate=cost,
    )(h_flat.astype(jnp.bfloat16), w_heads, b_heads)


# ----------------------------------------------------------------------------
# Parameters (torch-layout) + one-time prep into kernel layout.
# ----------------------------------------------------------------------------
def init_encoder_params(key, input_shape, output_dim, n_hidden, n_blocks, n_block_hidden):
    C_in, H, W = input_shape
    keys = jax.random.split(key, 3 + 2 * n_blocks)

    def conv_w(k, cout, cin):
        scale = 1.0 / math.sqrt(cin * 9.0)
        return jax.random.normal(k, (cout, cin, 3, 3), jnp.float32) * scale

    def lin_w(k, din, dout):
        scale = 1.0 / math.sqrt(float(din))
        return jax.random.normal(k, (din, dout), jnp.float32) * scale

    params = {
        "conv_in_w": conv_w(keys[0], n_hidden, C_in),
        "conv_in_b": jnp.zeros((n_hidden,), jnp.float32),
        "blocks": [],
        # head weights stored in torch view(N,-1) (C*H*W) row order
        "w_mean": lin_w(keys[1], n_hidden * H * W, output_dim),
        "b_mean": jnp.zeros((output_dim,), jnp.float32),
        "w_logvar": lin_w(keys[2], n_hidden * H * W, output_dim),
        "b_logvar": jnp.zeros((output_dim,), jnp.float32),
    }
    for i in range(n_blocks):
        k1, k2 = keys[3 + 2 * i], keys[3 + 2 * i + 1]
        params["blocks"].append({
            "w1": conv_w(k1, n_block_hidden, n_hidden),
            "b1": jnp.zeros((n_block_hidden,), jnp.float32),
            "w2": conv_w(k2, n_hidden, n_block_hidden),
            "b2": jnp.zeros((n_hidden,), jnp.float32),
        })
    return params


def prepare_params(params, input_shape):
    """Conv weights -> (9*Cin, Cout) bf16 (tap-major); biases -> (1, Cout) f32;
    head weights permuted from torch C*H*W order to NHWC flatten order,
    concatenated [mean | log_var] and zero-padded to 128 lane-dense columns."""
    _, H, W = input_shape

    def conv_pack(w_oihw):
        cout, cin = w_oihw.shape[0], w_oihw.shape[1]
        return (jnp.transpose(w_oihw, (2, 3, 1, 0))          # (3,3,Cin,Cout)
                .reshape(9 * cin, cout).astype(jnp.bfloat16))

    def bias2(b):
        return b.reshape(1, -1).astype(jnp.float32)

    def head_nhwc(w, C):
        L = w.shape[1]
        return jnp.transpose(w.reshape(C, H, W, L), (1, 2, 0, 3)).reshape(H * W * C, L)

    n_hidden = params["conv_in_w"].shape[0]
    L = params["w_mean"].shape[1]
    w_heads = jnp.concatenate([head_nhwc(params["w_mean"], n_hidden),
                               head_nhwc(params["w_logvar"], n_hidden)], axis=1)
    b_heads = jnp.concatenate([params["b_mean"], params["b_logvar"]], axis=0)
    Lp = _round_up(2 * L, 128)
    w_heads = jnp.pad(w_heads, ((0, 0), (0, Lp - 2 * L))).astype(jnp.bfloat16)
    b_heads = jnp.pad(b_heads, (0, Lp - 2 * L)).reshape(1, Lp).astype(jnp.float32)
    return {
        "conv_in_w": conv_pack(params["conv_in_w"]),
        "conv_in_b": bias2(params["conv_in_b"]),
        "blocks": [{"w1": conv_pack(b["w1"]), "b1": bias2(b["b1"]),
                    "w2": conv_pack(b["w2"]), "b2": bias2(b["b2"])}
                   for b in params["blocks"]],
        "w_heads": w_heads,
        "b_heads": b_heads,
    }


# ----------------------------------------------------------------------------
# Forward pass (Pallas) and a pure-JAX reference for validation.
# ----------------------------------------------------------------------------
def encoder_forward(x_nchw, p, output_dim):
    """Returns (mean, log_var), each (N, output_dim) f32."""
    x = jnp.transpose(x_nchw, (0, 2, 3, 1))            # NCHW -> NHWC once, at the input
    h = encoder_conv_stack(x, p)                        # (N, H*W, Ch) bf16, 1 pallas_call
    h_flat = h.reshape(h.shape[0], -1)                  # NHWC flatten; heads pre-permuted
    out = encoder_heads(h_flat, p["w_heads"], p["b_heads"])
    return out[:, :output_dim], out[:, output_dim:2 * output_dim]


def _conv3x3_ref(x, w_packed, b2, residual=None):
    N, H, W, C = x.shape
    Cout = w_packed.shape[-1]
    w = w_packed.astype(jnp.float32).reshape(3, 3, C, Cout)
    xp = jnp.pad(x, ((0, 0), (1, 1), (1, 1), (0, 0)))
    xp = xp.astype(jnp.bfloat16).astype(jnp.float32)     # match bf16 MXU operands
    acc = jnp.zeros((N, H, W, Cout), jnp.float32)
    for dh in range(3):
        for dw in range(3):
            acc = acc + jnp.einsum("nhwc,co->nhwo",
                                   xp[:, dh:dh + H, dw:dw + W, :], w[dh, dw])
    acc = acc + b2.reshape(1, 1, 1, Cout)
    if residual is not None:
        acc = acc + residual
    return jnp.maximum(acc, 0.0)


def encoder_forward_ref(x_nchw, p, output_dim):
    x = jnp.transpose(x_nchw, (0, 2, 3, 1)).astype(jnp.float32)
    h = _conv3x3_ref(x, p["conv_in_w"], p["conv_in_b"])
    for blk in p["blocks"]:
        t = _conv3x3_ref(h, blk["w1"], blk["b1"])
        h = _conv3x3_ref(t, blk["w2"], blk["b2"], residual=h)
    N = h.shape[0]
    hf = h.astype(jnp.bfloat16).astype(jnp.float32).reshape(N, -1)
    out = hf @ p["w_heads"].astype(jnp.float32) + p["b_heads"]
    return out[:, :output_dim], out[:, output_dim:2 * output_dim]


if __name__ == "__main__":
    # Small, module-consistent shapes (NCHW input, torch convention).
    batch = 2
    input_shape = (4, 16, 16)    # (C, H, W)
    output_dim = 16
    n_hidden = 8
    n_blocks = 2
    n_block_hidden = 8

    key = jax.random.PRNGKey(0)
    k_x, k_p = jax.random.split(key)
    x = jax.random.normal(k_x, (batch,) + input_shape, jnp.float32)
    raw_params = init_encoder_params(k_p, input_shape, output_dim, n_hidden,
                                     n_blocks, n_block_hidden)
    p = prepare_params(raw_params, input_shape)

    fwd = jax.jit(functools.partial(encoder_forward, output_dim=output_dim))
    mean, log_var = fwd(x, p)
    jax.block_until_ready((mean, log_var))
    assert mean.shape == (batch, output_dim)
    assert log_var.shape == (batch, output_dim)

    ref = jax.jit(functools.partial(encoder_forward_ref, output_dim=output_dim))
    mean_ref, logvar_ref = ref(x, p)
    jax.block_until_ready((mean_ref, logvar_ref))
    err = max(float(jnp.max(jnp.abs(mean - mean_ref))),
              float(jnp.max(jnp.abs(log_var - logvar_ref))))
    assert err < 5e-2, f"mismatch vs reference: max abs err = {err}"
    print("KERNEL_OK")
</pallas_src>

<mosaic_0001>
module attributes {stable_mosaic.version = 11 : i64} {
  func.func @kernel(%arg0: i32, %arg1: memref<1x16x16x4xf32, #tpu.memory_space<vmem>>, %arg2: memref<36x8xbf16, #tpu.memory_space<vmem>>, %arg3: memref<1x8xf32, #tpu.memory_space<vmem>>, %arg4: memref<72x8xbf16, #tpu.memory_space<vmem>>, %arg5: memref<1x8xf32, #tpu.memory_space<vmem>>, %arg6: memref<72x8xbf16, #tpu.memory_space<vmem>>, %arg7: memref<1x8xf32, #tpu.memory_space<vmem>>, %arg8: memref<72x8xbf16, #tpu.memory_space<vmem>>, %arg9: memref<1x8xf32, #tpu.memory_space<vmem>>, %arg10: memref<72x8xbf16, #tpu.memory_space<vmem>>, %arg11: memref<1x8xf32, #tpu.memory_space<vmem>>, %arg12: memref<1x256x8xbf16, #tpu.memory_space<vmem>>, %arg13: memref<18x18x8xbf16, #tpu.memory_space<vmem>>) attributes {dimension_semantics = [#tpu.dimension_semantics<parallel>], iteration_bounds = array<i64: 2>, scalar_prefetch = 0 : i64, scratch_operands = 1 : i64, tpu.core_type = #tpu.core_type<tc>, window_params = [{transform_indices = @transform_0, window_bounds = array<i64: 1, 16, 16, 4>}, {pipeline_mode = #tpu.pipeline_mode<synchronous>, transform_indices = @transform_1, window_bounds = array<i64: 36, 8>}, {pipeline_mode = #tpu.pipeline_mode<synchronous>, transform_indices = @transform_2, window_bounds = array<i64: 1, 8>}, {pipeline_mode = #tpu.pipeline_mode<synchronous>, transform_indices = @transform_3, window_bounds = array<i64: 72, 8>}, {pipeline_mode = #tpu.pipeline_mode<synchronous>, transform_indices = @transform_4, window_bounds = array<i64: 1, 8>}, {pipeline_mode = #tpu.pipeline_mode<synchronous>, transform_indices = @transform_5, window_bounds = array<i64: 72, 8>}, {pipeline_mode = #tpu.pipeline_mode<synchronous>, transform_indices = @transform_6, window_bounds = array<i64: 1, 8>}, {pipeline_mode = #tpu.pipeline_mode<synchronous>, transform_indices = @transform_7, window_bounds = array<i64: 72, 8>}, {pipeline_mode = #tpu.pipeline_mode<synchronous>, transform_indices = @transform_8, window_bounds = array<i64: 1, 8>}, {pipeline_mode = #tpu.pipeline_mode<synchronous>, transform_indices = @transform_9, window_bounds = array<i64: 72, 8>}, {pipeline_mode = #tpu.pipeline_mode<synchronous>, transform_indices = @transform_10, window_bounds = array<i64: 1, 8>}, {transform_indices = @transform_11, window_bounds = array<i64: 1, 256, 8>}]} {
    %cst = arith.constant 0.000000e+00 : bf16
    %0 = vector.broadcast %cst : bf16 to vector<18x18x8xbf16>
    %c0 = arith.constant 0 : index
    %c0_0 = arith.constant 0 : index
    %c0_1 = arith.constant 0 : index
    %1 = vector.load %arg13[%c0, %c0_0, %c0_1] : memref<18x18x8xbf16, #tpu.memory_space<vmem>>, vector<18x18x8xbf16>
    tpu.vector_store %arg13[%c0, %c0_0, %c0_1], %0 {strides = array<i32>} : memref<18x18x8xbf16, #tpu.memory_space<vmem>>, vector<18x18x8xbf16>,
    %c0_2 = arith.constant 0 : index
    %c0_3 = arith.constant 0 : index
    %c0_4 = arith.constant 0 : index
    %c0_5 = arith.constant 0 : index
    %2 = vector.load %arg1[%c0_2, %c0_3, %c0_4, %c0_5] : memref<1x16x16x4xf32, #tpu.memory_space<vmem>>, vector<1x16x16x4xf32>
    %3 = vector.shape_cast %2 : vector<1x16x16x4xf32> to vector<16x16x4xf32>
    %4 = arith.truncf %3 : vector<16x16x4xf32> to vector<16x16x4xbf16>
    %c1 = arith.constant 1 : index
    %c1_6 = arith.constant 1 : index
    %c0_7 = arith.constant 0 : index
    %5 = vector.load %arg13[%c1, %c1_6, %c0_7] : memref<18x18x8xbf16, #tpu.memory_space<vmem>>, vector<16x16x4xbf16>
    tpu.vector_store %arg13[%c1, %c1_6, %c0_7], %4 {strides = array<i32>} : memref<18x18x8xbf16, #tpu.memory_space<vmem>>, vector<16x16x4xbf16>,
    %c0_8 = arith.constant 0 : index
    %c0_9 = arith.constant 0 : index
    %c0_10 = arith.constant 0 : index
    %6 = vector.load %arg13[%c0_8, %c0_9, %c0_10] : memref<18x18x8xbf16, #tpu.memory_space<vmem>>, vector<18x18x8xbf16>
    %7 = vector.extract_strided_slice %6 {offsets = [0, 0, 0], sizes = [16, 16, 4], strides = [1, 1, 1]} : vector<18x18x8xbf16> to vector<16x16x4xbf16>
    %8 = vector.extract_strided_slice %6 {offsets = [0, 1, 0], sizes = [16, 16, 4], strides = [1, 1, 1]} : vector<18x18x8xbf16> to vector<16x16x4xbf16>
    %9 = vector.extract_strided_slice %6 {offsets = [0, 2, 0], sizes = [16, 16, 4], strides = [1, 1, 1]} : vector<18x18x8xbf16> to vector<16x16x4xbf16>
    %10 = vector.extract_strided_slice %6 {offsets = [1, 0, 0], sizes = [16, 16, 4], strides = [1, 1, 1]} : vector<18x18x8xbf16> to vector<16x16x4xbf16>
    %11 = vector.extract_strided_slice %6 {offsets = [1, 1, 0], sizes = [16, 16, 4], strides = [1, 1, 1]} : vector<18x18x8xbf16> to vector<16x16x4xbf16>
    %12 = vector.extract_strided_slice %6 {offsets = [1, 2, 0], sizes = [16, 16, 4], strides = [1, 1, 1]} : vector<18x18x8xbf16> to vector<16x16x4xbf16>
    %13 = vector.extract_strided_slice %6 {offsets = [2, 0, 0], sizes = [16, 16, 4], strides = [1, 1, 1]} : vector<18x18x8xbf16> to vector<16x16x4xbf16>
    %14 = vector.extract_strided_slice %6 {offsets = [2, 1, 0], sizes = [16, 16, 4], strides = [1, 1, 1]} : vector<18x18x8xbf16> to vector<16x16x4xbf16>
    %15 = vector.extract_strided_slice %6 {offsets = [2, 2, 0], sizes = [16, 16, 4], strides = [1, 1, 1]} : vector<18x18x8xbf16> to vector<16x16x4xbf16>
    %16 = tpu.concatenate %7, %8, %9, %10, %11, %12, %13, %14, %15 in 2 : vector<16x16x4xbf16>, vector<16x16x4xbf16>, vector<16x16x4xbf16>, vector<16x16x4xbf16>, vector<16x16x4xbf16>, vector<16x16x4xbf16>, vector<16x16x4xbf16>, vector<16x16x4xbf16>, vector<16x16x4xbf16> -> vector<16x16x36xbf16>
    %17 = vector.shape_cast %16 : vector<16x16x36xbf16> to vector<256x36xbf16>
    %c0_11 = arith.constant 0 : index
    %c0_12 = arith.constant 0 : index
    %18 = vector.load %arg2[%c0_11, %c0_12] : memref<36x8xbf16, #tpu.memory_space<vmem>>, vector<36x8xbf16>
    %cst_13 = arith.constant dense<0.000000e+00> : vector<256x8xf32>
    %19 = tpu.matmul %17, %18, %cst_13 {dimension_numbers = #tpu.dot_dimension_numbers<[1], [0], [0], [1], [0, 0, 1, 1], [], []>} : vector<256x36xbf16>, vector<36x8xbf16>, vector<256x8xf32> -> vector<256x8xf32>
    %c0_14 = arith.constant 0 : index
    %c0_15 = arith.constant 0 : index
    %20 = vector.load %arg3[%c0_14, %c0_15] : memref<1x8xf32, #tpu.memory_space<vmem>>, vector<1x8xf32>
    %21 = vector.broadcast %20 : vector<1x8xf32> to vector<256x8xf32>
    %22 = arith.addf %19, %21 : vector<256x8xf32>
    %cst_16 = arith.constant 0.000000e+00 : f32
    %23 = vector.broadcast %cst_16 : f32 to vector<256x8xf32>
    %24 = arith.maximumf %22, %23 : vector<256x8xf32>
    %25 = vector.shape_cast %24 : vector<256x8xf32> to vector<16x16x8xf32>
    %26 = arith.truncf %25 : vector<16x16x8xf32> to vector<16x16x8xbf16>
    %c1_17 = arith.constant 1 : index
    %c1_18 = arith.constant 1 : index
    %c0_19 = arith.constant 0 : index
    %27 = vector.load %arg13[%c1_17, %c1_18, %c0_19] : memref<18x18x8xbf16, #tpu.memory_space<vmem>>, vector<16x16x8xbf16>
    tpu.vector_store %arg13[%c1_17, %c1_18, %c0_19], %26 {strides = array<i32>} : memref<18x18x8xbf16, #tpu.memory_space<vmem>>, vector<16x16x8xbf16>,
    %c0_20 = arith.constant 0 : index
    %c0_21 = arith.constant 0 : index
    %c0_22 = arith.constant 0 : index
    %28 = vector.load %arg13[%c0_20, %c0_21, %c0_22] : memref<18x18x8xbf16, #tpu.memory_space<vmem>>, vector<18x18x8xbf16>
    %29 = vector.extract_strided_slice %28 {offsets = [0, 0, 0], sizes = [16, 16, 8], strides = [1, 1, 1]} : vector<18x18x8xbf16> to vector<16x16x8xbf16>
    %30 = vector.extract_strided_slice %28 {offsets = [0, 1, 0], sizes = [16, 16, 8], strides = [1, 1, 1]} : vector<18x18x8xbf16> to vector<16x16x8xbf16>
    %31 = vector.extract_strided_slice %28 {offsets = [0, 2, 0], sizes = [16, 16, 8], strides = [1, 1, 1]} : vector<18x18x8xbf16> to vector<16x16x8xbf16>
    %32 = vector.extract_strided_slice %28 {offsets = [1, 0, 0], sizes = [16, 16, 8], strides = [1, 1, 1]} : vector<18x18x8xbf16> to vector<16x16x8xbf16>
    %33 = vector.extract_strided_slice %28 {offsets = [1, 1, 0], sizes = [16, 16, 8], strides = [1, 1, 1]} : vector<18x18x8xbf16> to vector<16x16x8xbf16>
    %34 = vector.extract_strided_slice %28 {offsets = [1, 2, 0], sizes = [16, 16, 8], strides = [1, 1, 1]} : vector<18x18x8xbf16> to vector<16x16x8xbf16>
    %35 = vector.extract_strided_slice %28 {offsets = [2, 0, 0], sizes = [16, 16, 8], strides = [1, 1, 1]} : vector<18x18x8xbf16> to vector<16x16x8xbf16>
    %36 = vector.extract_strided_slice %28 {offsets = [2, 1, 0], sizes = [16, 16, 8], strides = [1, 1, 1]} : vector<18x18x8xbf16> to vector<16x16x8xbf16>
    %37 = vector.extract_strided_slice %28 {offsets = [2, 2, 0], sizes = [16, 16, 8], strides = [1, 1, 1]} : vector<18x18x8xbf16> to vector<16x16x8xbf16>
    %38 = tpu.concatenate %29, %30, %31, %32, %33, %34, %35, %36, %37 in 2 : vector<16x16x8xbf16>, vector<16x16x8xbf16>, vector<16x16x8xbf16>, vector<16x16x8xbf16>, vector<16x16x8xbf16>, vector<16x16x8xbf16>, vector<16x16x8xbf16>, vector<16x16x8xbf16>, vector<16x16x8xbf16> -> vector<16x16x72xbf16>
    %39 = vector.shape_cast %38 : vector<16x16x72xbf16> to vector<256x72xbf16>
    %c0_23 = arith.constant 0 : index
    %c0_24 = arith.constant 0 : index
    %40 = vector.load %arg4[%c0_23, %c0_24] : memref<72x8xbf16, #tpu.memory_space<vmem>>, vector<72x8xbf16>
    %cst_25 = arith.constant dense<0.000000e+00> : vector<256x8xf32>
    %41 = tpu.matmul %39, %40, %cst_25 {dimension_numbers = #tpu.dot_dimension_numbers<[1], [0], [0], [1], [0, 0, 1, 1], [], []>} : vector<256x72xbf16>, vector<72x8xbf16>, vector<256x8xf32> -> vector<256x8xf32>
    %c0_26 = arith.constant 0 : index
    %c0_27 = arith.constant 0 : index
    %42 = vector.load %arg5[%c0_26, %c0_27] : memref<1x8xf32, #tpu.memory_space<vmem>>, vector<1x8xf32>
    %43 = vector.broadcast %42 : vector<1x8xf32> to vector<256x8xf32>
    %44 = arith.addf %41, %43 : vector<256x8xf32>
    %cst_28 = arith.constant 0.000000e+00 : f32
    %45 = vector.broadcast %cst_28 : f32 to vector<256x8xf32>
    %46 = arith.maximumf %44, %45 : vector<256x8xf32>
    %47 = vector.shape_cast %46 : vector<256x8xf32> to vector<16x16x8xf32>
    %48 = arith.truncf %47 : vector<16x16x8xf32> to vector<16x16x8xbf16>
    %c1_29 = arith.constant 1 : index
    %c1_30 = arith.constant 1 : index
    %c0_31 = arith.constant 0 : index
    %49 = vector.load %arg13[%c1_29, %c1_30, %c0_31] : memref<18x18x8xbf16, #tpu.memory_space<vmem>>, vector<16x16x8xbf16>
    tpu.vector_store %arg13[%c1_29, %c1_30, %c0_31], %48 {strides = array<i32>} : memref<18x18x8xbf16, #tpu.memory_space<vmem>>, vector<16x16x8xbf16>,
    %c0_32 = arith.constant 0 : index
    %c0_33 = arith.constant 0 : index
    %c0_34 = arith.constant 0 : index
    %50 = vector.load %arg13[%c0_32, %c0_33, %c0_34] : memref<18x18x8xbf16, #tpu.memory_space<vmem>>, vector<18x18x8xbf16>
    %51 = vector.extract_strided_slice %50 {offsets = [0, 0, 0], sizes = [16, 16, 8], strides = [1, 1, 1]} : vector<18x18x8xbf16> to vector<16x16x8xbf16>
    %52 = vector.extract_strided_slice %50 {offsets = [0, 1, 0], sizes = [16, 16, 8], strides = [1, 1, 1]} : vector<18x18x8xbf16> to vector<16x16x8xbf16>
    %53 = vector.extract_strided_slice %50 {offsets = [0, 2, 0], sizes = [16, 16, 8], strides = [1, 1, 1]} : vector<18x18x8xbf16> to vector<16x16x8xbf16>
    %54 = vector.extract_strided_slice %50 {offsets = [1, 0, 0], sizes = [16, 16, 8], strides = [1, 1, 1]} : vector<18x18x8xbf16> to vector<16x16x8xbf16>
    %55 = vector.extract_strided_slice %50 {offsets = [1, 1, 0], sizes = [16, 16, 8], strides = [1, 1, 1]} : vector<18x18x8xbf16> to vector<16x16x8xbf16>
    %56 = vector.extract_strided_slice %50 {offsets = [1, 2, 0], sizes = [16, 16, 8], strides = [1, 1, 1]} : vector<18x18x8xbf16> to vector<16x16x8xbf16>
    %57 = vector.extract_strided_slice %50 {offsets = [2, 0, 0], sizes = [16, 16, 8], strides = [1, 1, 1]} : vector<18x18x8xbf16> to vector<16x16x8xbf16>
    %58 = vector.extract_strided_slice %50 {offsets = [2, 1, 0], sizes = [16, 16, 8], strides = [1, 1, 1]} : vector<18x18x8xbf16> to vector<16x16x8xbf16>
    %59 = vector.extract_strided_slice %50 {offsets = [2, 2, 0], sizes = [16, 16, 8], strides = [1, 1, 1]} : vector<18x18x8xbf16> to vector<16x16x8xbf16>
    %60 = tpu.concatenate %51, %52, %53, %54, %55, %56, %57, %58, %59 in 2 : vector<16x16x8xbf16>, vector<16x16x8xbf16>, vector<16x16x8xbf16>, vector<16x16x8xbf16>, vector<16x16x8xbf16>, vector<16x16x8xbf16>, vector<16x16x8xbf16>, vector<16x16x8xbf16>, vector<16x16x8xbf16> -> vector<16x16x72xbf16>
    %61 = vector.shape_cast %60 : vector<16x16x72xbf16> to vector<256x72xbf16>
    %c0_35 = arith.constant 0 : index
    %c0_36 = arith.constant 0 : index
    %62 = vector.load %arg6[%c0_35, %c0_36] : memref<72x8xbf16, #tpu.memory_space<vmem>>, vector<72x8xbf16>
    %cst_37 = arith.constant dense<0.000000e+00> : vector<256x8xf32>
    %63 = tpu.matmul %61, %62, %cst_37 {dimension_numbers = #tpu.dot_dimension_numbers<[1], [0], [0], [1], [0, 0, 1, 1], [], []>} : vector<256x72xbf16>, vector<72x8xbf16>, vector<256x8xf32> -> vector<256x8xf32>
    %c0_38 = arith.constant 0 : index
    %c0_39 = arith.constant 0 : index
    %64 = vector.load %arg7[%c0_38, %c0_39] : memref<1x8xf32, #tpu.memory_space<vmem>>, vector<1x8xf32>
    %65 = vector.broadcast %64 : vector<1x8xf32> to vector<256x8xf32>
    %66 = arith.addf %63, %65 : vector<256x8xf32>
    %67 = arith.addf %66, %24 : vector<256x8xf32>
    %cst_40 = arith.constant 0.000000e+00 : f32
    %68 = vector.broadcast %cst_40 : f32 to vector<256x8xf32>
    %69 = arith.maximumf %67, %68 : vector<256x8xf32>
    %70 = vector.shape_cast %69 : vector<256x8xf32> to vector<16x16x8xf32>
    %71 = arith.truncf %70 : vector<16x16x8xf32> to vector<16x16x8xbf16>
    %c1_41 = arith.constant 1 : index
    %c1_42 = arith.constant 1 : index
    %c0_43 = arith.constant 0 : index
    %72 = vector.load %arg13[%c1_41, %c1_42, %c0_43] : memref<18x18x8xbf16, #tpu.memory_space<vmem>>, vector<16x16x8xbf16>
    tpu.vector_store %arg13[%c1_41, %c1_42, %c0_43], %71 {strides = array<i32>} : memref<18x18x8xbf16, #tpu.memory_space<vmem>>, vector<16x16x8xbf16>,
    %c0_44 = arith.constant 0 : index
    %c0_45 = arith.constant 0 : index
    %c0_46 = arith.constant 0 : index
    %73 = vector.load %arg13[%c0_44, %c0_45, %c0_46] : memref<18x18x8xbf16, #tpu.memory_space<vmem>>, vector<18x18x8xbf16>
    %74 = vector.extract_strided_slice %73 {offsets = [0, 0, 0], sizes = [16, 16, 8], strides = [1, 1, 1]} : vector<18x18x8xbf16> to vector<16x16x8xbf16>
    %75 = vector.extract_strided_slice %73 {offsets = [0, 1, 0], sizes = [16, 16, 8], strides = [1, 1, 1]} : vector<18x18x8xbf16> to vector<16x16x8xbf16>
    %76 = vector.extract_strided_slice %73 {offsets = [0, 2, 0], sizes = [16, 16, 8], strides = [1, 1, 1]} : vector<18x18x8xbf16> to vector<16x16x8xbf16>
    %77 = vector.extract_strided_slice %73 {offsets = [1, 0, 0], sizes = [16, 16, 8], strides = [1, 1, 1]} : vector<18x18x8xbf16> to vector<16x16x8xbf16>
    %78 = vector.extract_strided_slice %73 {offsets = [1, 1, 0], sizes = [16, 16, 8], strides = [1, 1, 1]} : vector<18x18x8xbf16> to vector<16x16x8xbf16>
    %79 = vector.extract_strided_slice %73 {offsets = [1, 2, 0], sizes = [16, 16, 8], strides = [1, 1, 1]} : vector<18x18x8xbf16> to vector<16x16x8xbf16>
    %80 = vector.extract_strided_slice %73 {offsets = [2, 0, 0], sizes = [16, 16, 8], strides = [1, 1, 1]} : vector<18x18x8xbf16> to vector<16x16x8xbf16>
    %81 = vector.extract_strided_slice %73 {offsets = [2, 1, 0], sizes = [16, 16, 8], strides = [1, 1, 1]} : vector<18x18x8xbf16> to vector<16x16x8xbf16>
    %82 = vector.extract_strided_slice %73 {offsets = [2, 2, 0], sizes = [16, 16, 8], strides = [1, 1, 1]} : vector<18x18x8xbf16> to vector<16x16x8xbf16>
    %83 = tpu.concatenate %74, %75, %76, %77, %78, %79, %80, %81, %82 in 2 : vector<16x16x8xbf16>, vector<16x16x8xbf16>, vector<16x16x8xbf16>, vector<16x16x8xbf16>, vector<16x16x8xbf16>, vector<16x16x8xbf16>, vector<16x16x8xbf16>, vector<16x16x8xbf16>, vector<16x16x8xbf16> -> vector<16x16x72xbf16>
    %84 = vector.shape_cast %83 : vector<16x16x72xbf16> to vector<256x72xbf16>
    %c0_47 = arith.constant 0 : index
    %c0_48 = arith.constant 0 : index
    %85 = vector.load %arg8[%c0_47, %c0_48] : memref<72x8xbf16, #tpu.memory_space<vmem>>, vector<72x8xbf16>
    %cst_49 = arith.constant dense<0.000000e+00> : vector<256x8xf32>
    %86 = tpu.matmul %84, %85, %cst_49 {dimension_numbers = #tpu.dot_dimension_numbers<[1], [0], [0], [1], [0, 0, 1, 1], [], []>} : vector<256x72xbf16>, vector<72x8xbf16>, vector<256x8xf32> -> vector<256x8xf32>
    %c0_50 = arith.constant 0 : index
    %c0_51 = arith.constant 0 : index
    %87 = vector.load %arg9[%c0_50, %c0_51] : memref<1x8xf32, #tpu.memory_space<vmem>>, vector<1x8xf32>
    %88 = vector.broadcast %87 : vector<1x8xf32> to vector<256x8xf32>
    %89 = arith.addf %86, %88 : vector<256x8xf32>
    %cst_52 = arith.constant 0.000000e+00 : f32
    %90 = vector.broadcast %cst_52 : f32 to vector<256x8xf32>
    %91 = arith.maximumf %89, %90 : vector<256x8xf32>
    %92 = vector.shape_cast %91 : vector<256x8xf32> to vector<16x16x8xf32>
    %93 = arith.truncf %92 : vector<16x16x8xf32> to vector<16x16x8xbf16>
    %c1_53 = arith.constant 1 : index
    %c1_54 = arith.constant 1 : index
    %c0_55 = arith.constant 0 : index
    %94 = vector.load %arg13[%c1_53, %c1_54, %c0_55] : memref<18x18x8xbf16, #tpu.memory_space<vmem>>, vector<16x16x8xbf16>
    tpu.vector_store %arg13[%c1_53, %c1_54, %c0_55], %93 {strides = array<i32>} : memref<18x18x8xbf16, #tpu.memory_space<vmem>>, vector<16x16x8xbf16>,
    %c0_56 = arith.constant 0 : index
    %c0_57 = arith.constant 0 : index
    %c0_58 = arith.constant 0 : index
    %95 = vector.load %arg13[%c0_56, %c0_57, %c0_58] : memref<18x18x8xbf16, #tpu.memory_space<vmem>>, vector<18x18x8xbf16>
    %96 = vector.extract_strided_slice %95 {offsets = [0, 0, 0], sizes = [16, 16, 8], strides = [1, 1, 1]} : vector<18x18x8xbf16> to vector<16x16x8xbf16>
    %97 = vector.extract_strided_slice %95 {offsets = [0, 1, 0], sizes = [16, 16, 8], strides = [1, 1, 1]} : vector<18x18x8xbf16> to vector<16x16x8xbf16>
    %98 = vector.extract_strided_slice %95 {offsets = [0, 2, 0], sizes = [16, 16, 8], strides = [1, 1, 1]} : vector<18x18x8xbf16> to vector<16x16x8xbf16>
    %99 = vector.extract_strided_slice %95 {offsets = [1, 0, 0], sizes = [16, 16, 8], strides = [1, 1, 1]} : vector<18x18x8xbf16> to vector<16x16x8xbf16>
    %100 = vector.extract_strided_slice %95 {offsets = [1, 1, 0], sizes = [16, 16, 8], strides = [1, 1, 1]} : vector<18x18x8xbf16> to vector<16x16x8xbf16>
    %101 = vector.extract_strided_slice %95 {offsets = [1, 2, 0], sizes = [16, 16, 8], strides = [1, 1, 1]} : vector<18x18x8xbf16> to vector<16x16x8xbf16>
    %102 = vector.extract_strided_slice %95 {offsets = [2, 0, 0], sizes = [16, 16, 8], strides = [1, 1, 1]} : vector<18x18x8xbf16> to vector<16x16x8xbf16>
    %103 = vector.extract_strided_slice %95 {offsets = [2, 1, 0], sizes = [16, 16, 8], strides = [1, 1, 1]} : vector<18x18x8xbf16> to vector<16x16x8xbf16>
    %104 = vector.extract_strided_slice %95 {offsets = [2, 2, 0], sizes = [16, 16, 8], strides = [1, 1, 1]} : vector<18x18x8xbf16> to vector<16x16x8xbf16>
    %105 = tpu.concatenate %96, %97, %98, %99, %100, %101, %102, %103, %104 in 2 : vector<16x16x8xbf16>, vector<16x16x8xbf16>, vector<16x16x8xbf16>, vector<16x16x8xbf16>, vector<16x16x8xbf16>, vector<16x16x8xbf16>, vector<16x16x8xbf16>, vector<16x16x8xbf16>, vector<16x16x8xbf16> -> vector<16x16x72xbf16>
    %106 = vector.shape_cast %105 : vector<16x16x72xbf16> to vector<256x72xbf16>
    %c0_59 = arith.constant 0 : index
    %c0_60 = arith.constant 0 : index
    %107 = vector.load %arg10[%c0_59, %c0_60] : memref<72x8xbf16, #tpu.memory_space<vmem>>, vector<72x8xbf16>
    %cst_61 = arith.constant dense<0.000000e+00> : vector<256x8xf32>
    %108 = tpu.matmul %106, %107, %cst_61 {dimension_numbers = #tpu.dot_dimension_numbers<[1], [0], [0], [1], [0, 0, 1, 1], [], []>} : vector<256x72xbf16>, vector<72x8xbf16>, vector<256x8xf32> -> vector<256x8xf32>
    %c0_62 = arith.constant 0 : index
    %c0_63 = arith.constant 0 : index
    %109 = vector.load %arg11[%c0_62, %c0_63] : memref<1x8xf32, #tpu.memory_space<vmem>>, vector<1x8xf32>
    %110 = vector.broadcast %109 : vector<1x8xf32> to vector<256x8xf32>
    %111 = arith.addf %108, %110 : vector<256x8xf32>
    %112 = arith.addf %111, %69 : vector<256x8xf32>
    %cst_64 = arith.constant 0.000000e+00 : f32
    %113 = vector.broadcast %cst_64 : f32 to vector<256x8xf32>
    %114 = arith.maximumf %112, %113 : vector<256x8xf32>
    %115 = vector.shape_cast %114 : vector<256x8xf32> to vector<1x256x8xf32>
    %116 = arith.truncf %115 : vector<1x256x8xf32> to vector<1x256x8xbf16>
    %c0_65 = arith.constant 0 : index
    %c0_66 = arith.constant 0 : index
    %c0_67 = arith.constant 0 : index
    %117 = vector.load %arg12[%c0_65, %c0_66, %c0_67] : memref<1x256x8xbf16, #tpu.memory_space<vmem>>, vector<1x256x8xbf16>
    tpu.vector_store %arg12[%c0_65, %c0_66, %c0_67], %116 {strides = array<i32>} : memref<1x256x8xbf16, #tpu.memory_space<vmem>>, vector<1x256x8xbf16>,
    return
  }
  func.func @transform_0(%arg0: i32) -> (i32, i32, i32, i32) {
    %c0_i32 = arith.constant 0 : i32
    %c0_i32_0 = arith.constant 0 : i32
    %c0_i32_1 = arith.constant 0 : i32
    %c0_i32_2 = arith.constant 0 : i32
    return %arg0, %c0_i32, %c0_i32_0, %c0_i32_1 : i32, i32, i32, i32
  }
  func.func @transform_1(%arg0: i32) -> (i32, i32) {
    %c0_i32 = arith.constant 0 : i32
    %c0_i32_0 = arith.constant 0 : i32
    %c0_i32_1 = arith.constant 0 : i32
    return %c0_i32, %c0_i32_0 : i32, i32
  }
  func.func @transform_2(%arg0: i32) -> (i32, i32) {
    %c0_i32 = arith.constant 0 : i32
    %c0_i32_0 = arith.constant 0 : i32
    %c0_i32_1 = arith.constant 0 : i32
    return %c0_i32, %c0_i32_0 : i32, i32
  }
  func.func @transform_3(%arg0: i32) -> (i32, i32) {
    %c0_i32 = arith.constant 0 : i32
    %c0_i32_0 = arith.constant 0 : i32
    %c0_i32_1 = arith.constant 0 : i32
    return %c0_i32, %c0_i32_0 : i32, i32
  }
  func.func @transform_4(%arg0: i32) -> (i32, i32) {
    %c0_i32 = arith.constant 0 : i32
    %c0_i32_0 = arith.constant 0 : i32
    %c0_i32_1 = arith.constant 0 : i32
    return %c0_i32, %c0_i32_0 : i32, i32
  }
  func.func @transform_5(%arg0: i32) -> (i32, i32) {
    %c0_i32 = arith.constant 0 : i32
    %c0_i32_0 = arith.constant 0 : i32
    %c0_i32_1 = arith.constant 0 : i32
    return %c0_i32, %c0_i32_0 : i32, i32
  }
  func.func @transform_6(%arg0: i32) -> (i32, i32) {
    %c0_i32 = arith.constant 0 : i32
    %c0_i32_0 = arith.constant 0 : i32
    %c0_i32_1 = arith.constant 0 : i32
    return %c0_i32, %c0_i32_0 : i32, i32
  }
  func.func @transform_7(%arg0: i32) -> (i32, i32) {
    %c0_i32 = arith.constant 0 : i32
    %c0_i32_0 = arith.constant 0 : i32
    %c0_i32_1 = arith.constant 0 : i32
    return %c0_i32, %c0_i32_0 : i32, i32
  }
  func.func @transform_8(%arg0: i32) -> (i32, i32) {
    %c0_i32 = arith.constant 0 : i32
    %c0_i32_0 = arith.constant 0 : i32
    %c0_i32_1 = arith.constant 0 : i32
    return %c0_i32, %c0_i32_0 : i32, i32
  }
  func.func @transform_9(%arg0: i32) -> (i32, i32) {
    %c0_i32 = arith.constant 0 : i32
    %c0_i32_0 = arith.constant 0 : i32
    %c0_i32_1 = arith.constant 0 : i32
    return %c0_i32, %c0_i32_0 : i32, i32
  }
  func.func @transform_10(%arg0: i32) -> (i32, i32) {
    %c0_i32 = arith.constant 0 : i32
    %c0_i32_0 = arith.constant 0 : i32
    %c0_i32_1 = arith.constant 0 : i32
    return %c0_i32, %c0_i32_0 : i32, i32
  }
  func.func @transform_11(%arg0: i32) -> (i32, i32, i32) {
    %c0_i32 = arith.constant 0 : i32
    %c0_i32_0 = arith.constant 0 : i32
    %c0_i32_1 = arith.constant 0 : i32
    return %arg0, %c0_i32, %c0_i32_0 : i32, i32, i32
  }
}

module attributes {stable_mosaic.version = 11 : i64} {
  func.func @_head_kernel(%arg0: i32, %arg1: memref<2x2048xbf16, #tpu.memory_space<vmem>>, %arg2: memref<2048x128xbf16, #tpu.memory_space<vmem>>, %arg3: memref<1x128xf32, #tpu.memory_space<vmem>>, %arg4: memref<2x128xf32, #tpu.memory_space<vmem>>) attributes {dimension_semantics = [#tpu.dimension_semantics<arbitrary>], iteration_bounds = array<i64: 1>, scalar_prefetch = 0 : i64, scratch_operands = 0 : i64, tpu.core_type = #tpu.core_type<tc>, window_params = [{pipeline_mode = #tpu.pipeline_mode<synchronous>, transform_indices = @transform_0, window_bounds = array<i64: 2, 2048>}, {pipeline_mode = #tpu.pipeline_mode<synchronous>, transform_indices = @transform_1, window_bounds = array<i64: 2048, 128>}, {pipeline_mode = #tpu.pipeline_mode<synchronous>, transform_indices = @transform_2, window_bounds = array<i64: 1, 128>}, {pipeline_mode = #tpu.pipeline_mode<synchronous>, transform_indices = @transform_3, window_bounds = array<i64: 2, 128>}]} {
    %c0 = arith.constant 0 : index
    %c0_0 = arith.constant 0 : index
    %0 = vector.load %arg1[%c0, %c0_0] : memref<2x2048xbf16, #tpu.memory_space<vmem>>, vector<2x2048xbf16>
    %c0_1 = arith.constant 0 : index
    %c0_2 = arith.constant 0 : index
    %1 = vector.load %arg2[%c0_1, %c0_2] : memref<2048x128xbf16, #tpu.memory_space<vmem>>, vector<2048x128xbf16>
    %cst = arith.constant dense<0.000000e+00> : vector<2x128xf32>
    %2 = tpu.matmul %0, %1, %cst {dimension_numbers = #tpu.dot_dimension_numbers<[1], [0], [0], [1], [0, 0, 1, 1], [], []>} : vector<2x2048xbf16>, vector<2048x128xbf16>, vector<2x128xf32> -> vector<2x128xf32>
    %c0_3 = arith.constant 0 : index
    %c0_4 = arith.constant 0 : index
    %3 = vector.load %arg3[%c0_3, %c0_4] : memref<1x128xf32, #tpu.memory_space<vmem>>, vector<1x128xf32>
    %4 = vector.broadcast %3 : vector<1x128xf32> to vector<2x128xf32>
    %5 = arith.addf %2, %4 : vector<2x128xf32>
    %c0_5 = arith.constant 0 : index
    %c0_6 = arith.constant 0 : index
    %6 = vector.load %arg4[%c0_5, %c0_6] : memref<2x128xf32, #tpu.memory_space<vmem>>, vector<2x128xf32>
    tpu.vector_store %arg4[%c0_5, %c0_6], %5 {strides = array<i32>} : memref<2x128xf32, #tpu.memory_space<vmem>>, vector<2x128xf32>,
    return
  }
  func.func @transform_0(%arg0: i32) -> (i32, i32) {
    %c0_i32 = arith.constant 0 : i32
    %c0_i32_0 = arith.constant 0 : i32
    %c0_i32_1 = arith.constant 0 : i32
    return %c0_i32, %c0_i32_0 : i32, i32
  }
  func.func @transform_1(%arg0: i32) -> (i32, i32) {
    %c0_i32 = arith.constant 0 : i32
    %c0_i32_0 = arith.constant 0 : i32
    %c0_i32_1 = arith.constant 0 : i32
    return %c0_i32, %c0_i32_0 : i32, i32
  }
  func.func @transform_2(%arg0: i32) -> (i32, i32) {
    %c0_i32 = arith.constant 0 : i32
    %c0_i32_0 = arith.constant 0 : i32
    %c0_i32_1 = arith.constant 0 : i32
    return %c0_i32, %c0_i32_0 : i32, i32
  }
  func.func @transform_3(%arg0: i32) -> (i32, i32) {
    %c0_i32 = arith.constant 0 : i32
    %c0_i32_0 = arith.constant 0 : i32
    %c0_i32_1 = arith.constant 0 : i32
    return %c0_i32, %c0_i32_0 : i32, i32
  }
}

</mosaic_0001>

<bundles_post_ra>
// kernel: encoder_forward.3
= control target key start
LH: loop header
LB: loop body
LE: loop exit
PB: predicated region body
PF: predicated region fallthrough
CT: control target
= control target key end

     0   :  { %v1925_v22 = vmov 1966171168   ;;  %v286_v24 = vlaneseq  ;;  %s2376_s1 = inlined_call_operand.vmem [shape: bf16[2048,128], index: 1, kind: input, shape index: {}]   ;;  %s2377_s0 = inlined_call_operand.vmem [shape: bf16[2,2048], index: 0, kind: input, shape index: {}]   ;;  %s2378_s2 = inlined_call_operand.vmem [shape: f32[1,128], index: 2, kind: input, shape index: {}]   ;;  %s2379_s3 = inlined_call_operand.vmem [shape: f32[2,128], index: 3, kind: output, shape index: {}]  }
   0x1   :  { %v1795_v0 = vld [vmem:[%s2376_s1 + $0x40] sm:$0xff]   ;;  %v1799_v4 = vld [vmem:[%s2376_s1 + $0x48] sm:$0xff]   ;;  %v1803_v8 = vld [vmem:[%s2376_s1 + $0x50] sm:$0xff]   ;;  %v284_v23 = vunpack.c.l.s4 %v1925_v22 }
   0x2   :  { %v1796_v1 = vld [vmem:[%s2376_s1 + $0xc0] sm:$0xff]   ;;  %1618 = vmatprep.subr.bf16.mxu0 %v1795_v0  ;;  %v1800_v5 = vld [vmem:[%s2376_s1 + $0xc8] sm:$0xff]   ;;  %v1804_v9 = vld [vmem:[%s2376_s1 + $0xd0] sm:$0xff]   ;;  %v287_v30 = vshrl.u32 %v286_v24, 7 }
   0x3   :  { %v1797_v2 = vld [vmem:[%s2376_s1] sm:$0xff]   ;;  %1640 = vmatprep.subr.bf16.mxu1 %v1796_v1  ;;  %v1801_v6 = vld [vmem:[%s2376_s1 + $0x8] sm:$0xff]   ;;  %v1805_v10 = vld [vmem:[%s2376_s1 + $0x10] sm:$0xff]   ;;  %v285_v29 = vunpack.c.0.s8 %v284_v23 }
   0x4   :  { %v1798_v3 = vld [vmem:[%s2376_s1 + $0x80] sm:$0xff]   ;;  %1619 = vmatpush3.bf16.msra.mxu0 %v1797_v2  ;;  %v1802_v7 = vld [vmem:[%s2376_s1 + $0x88] sm:$0xff]   ;;  %v1806_v11 = vld [vmem:[%s2376_s1 + $0x90] sm:$0xff]  }
   0x5   :  { %1641 = vmatpush3.bf16.msra.mxu1 %v1798_v3  ;;  %1620 = vmatprep.subr.bf16.mxu0 %v1799_v4  ;;  %v1807_v12 = vld [vmem:[%s2376_s1 + $0x58] sm:$0xff]   ;;  %v1811_v16 = vld [vmem:[%s2376_s1 + $0x60] sm:$0xff]   ;;  %v1815_v20 = vld [vmem:[%s2376_s1 + $0x68] sm:$0xff]   ;;  %v2036_v35 = vsub.s32 %v285_v29, %v287_v30 }
   0x6   :  { %1642 = vmatprep.subr.bf16.mxu1 %v1800_v5  ;;  %v1808_v13 = vld [vmem:[%s2376_s1 + $0xd8] sm:$0xff]   ;;  %v1812_v17 = vld [vmem:[%s2376_s1 + $0xe0] sm:$0xff]   ;;  %v1816_v21 = vld [vmem:[%s2376_s1 + $0xe8] sm:$0xff]  }
   0x7   :  { %v1809_v14 = vld [vmem:[%s2376_s1 + $0x18] sm:$0xff]   ;;  %v1813_v18 = vld [vmem:[%s2376_s1 + $0x20] sm:$0xff]   ;;  %v1817_v25 = vld [vmem:[%s2376_s1 + $0x28] sm:$0xff]  }
   0x8   :  { %1621 = vmatpush3.bf16.msra.mxu0 %v1801_v6  ;;  %v1810_v15 = vld [vmem:[%s2376_s1 + $0x98] sm:$0xff]   ;;  %v1814_v19 = vld [vmem:[%s2376_s1 + $0xa0] sm:$0xff]   ;;  %v1818_v26 = vld [vmem:[%s2376_s1 + $0xa8] sm:$0xff]  }
   0x9   :  { %1643 = vmatpush3.bf16.msra.mxu1 %v1802_v7  ;;  %1622 = vmatprep.subr.bf16.mxu0 %v1803_v8  ;;  %v1819_v27 = vld [vmem:[%s2376_s1 + $0x70] sm:$0xff]   ;;  %v1823_v33 = vld [vmem:[%s2376_s1 + $0x78] sm:$0xff]   ;;  %v15_v38 = vld [vmem:[%s2377_s0] sm:$0xff] }
   0xa   :  { %1644 = vmatprep.subr.bf16.mxu1 %v1804_v9  ;;  %v1820_v28 = vld [vmem:[%s2376_s1 + $0xf0] sm:$0xff]   ;;  %v1824_v34 = vld [vmem:[%s2376_s1 + $0xf8] sm:$0xff]   ;;  %v282_v39 = vcombine.high %v15_v38, %v15_v38  ;;  %v289_v40 = vrot.slane %v15_v38, %v2036_v35  ;;  %v1829_v41 = vld [vmem:[%s2376_s1 + $0x140] sm:$0xff]  }
   0xb   :  { %v1821_v31 = vld [vmem:[%s2376_s1 + $0x30] sm:$0xff]   ;;  %v1825_v36 = vld [vmem:[%s2376_s1 + $0x38] sm:$0xff]   ;;  %v1830_v42 = vld [vmem:[%s2376_s1 + $0x1c0] sm:$0xff]  }
   0xc   :  { %1623 = vmatpush3.bf16.msra.mxu0 %v1805_v10  ;;  %v1822_v32 = vld [vmem:[%s2376_s1 + $0xb0] sm:$0xff]   ;;  %v1826_v37 = vld [vmem:[%s2376_s1 + $0xb8] sm:$0xff]   ;;  %v297_v43 = vcombine.high %v289_v40, %v289_v40  ;;  %v305_v44 = vrot.slane %v289_v40, %v2036_v35  ;;  %v2056_v45 = vrot.slane %v282_v39, %v2036_v35  ;;  %v1831_v47 = vld [vmem:[%s2376_s1 + $0x100] sm:$0xff]  }
   0xd   :  { %1645 = vmatpush3.bf16.msra.mxu1 %v1806_v11  ;;  %1624 = vmatprep.subr.bf16.mxu0 %v1807_v12  ;;  %v1833_v50 = vld [vmem:[%s2376_s1 + $0x148] sm:$0xff]   ;;  %v1832_v52 = vld [vmem:[%s2376_s1 + $0x180] sm:$0xff]   ;;  %v1837_v57 = vld [vmem:[%s2376_s1 + $0x150] sm:$0xff]  }
   0xe   :  { %1646 = vmatprep.subr.bf16.mxu1 %v1808_v13  ;;  %v319_v46 = vrot.slane %v297_v43, %v2036_v35  ;;  %v298_v48 = vcombine.high %v2056_v45, %v2056_v45  ;;  %v327_v49 = vcombine.high %v305_v44, %v305_v44  ;;  %v1834_v54 = vld [vmem:[%s2376_s1 + $0x1c8] sm:$0xff]   ;;  %v1838_v59 = vld [vmem:[%s2376_s1 + $0x1d0] sm:$0xff]   ;;  %v1841_v61 = vld [vmem:[%s2376_s1 + $0x158] sm:$0xff]  }
   0xf   :  { %v1835_v55 = vld [vmem:[%s2376_s1 + $0x108] sm:$0xff]   ;;  %v1839_v60 = vld [vmem:[%s2376_s1 + $0x110] sm:$0xff]   ;;  %v1842_v63 = vld [vmem:[%s2376_s1 + $0x1d8] sm:$0xff]  }
  0x10   :  { %1625 = vmatpush3.bf16.msra.mxu0 %v1809_v14  ;;  %1196 = vmatprep.mubr.bf16.mxu0 %v319_v46  ;;  %v329_v51 = vcombine.high %v319_v46, %v319_v46  ;;  %v326_v53 = vrot.slane %v298_v48, %v2036_v35  ;;  %v1836_v58 = vld [vmem:[%s2376_s1 + $0x188] sm:$0xff]   ;;  %v1840_v62 = vld [vmem:[%s2376_s1 + $0x190] sm:$0xff]   ;;  %v1843_v0 = vld [vmem:[%s2376_s1 + $0x118] sm:$0xff]  }
  0x11   :  { %1647 = vmatpush3.bf16.msra.mxu1 %v1810_v15  ;;  %1626 = vmatprep.subr.bf16.mxu0 %v1811_v16  ;;  %v1845_v1 = vld [vmem:[%s2376_s1 + $0x160] sm:$0xff]   ;;  %v1844_v2 = vld [vmem:[%s2376_s1 + $0x198] sm:$0xff]   ;;  %v2116_v5 = vld [vmem:[%s2377_s0 + $0x8] sm:$0xff] }
  0x12   :  { %1648 = vmatprep.subr.bf16.mxu1 %v1812_v17  ;;  %1236 = vmatprep.mubr.bf16.mxu1 %v329_v51  ;;  %v330_v56 = vcombine.high %v326_v53, %v326_v53  ;;  %v1846_v3 = vld [vmem:[%s2376_s1 + $0x1e0] sm:$0xff]   ;;  %v1849_v6 = vld [vmem:[%s2376_s1 + $0x168] sm:$0xff]   ;;  %v1853_v10 = vld [vmem:[%s2376_s1 + $0x170] sm:$0xff]   ;;  %v2138_v12 = vrot.slane %v2116_v5, %v2036_v35  ;;  %v331_v46 = vcombine.high %v2116_v5, %v2116_v5 }
  0x13   :  { %v1847_v4 = vld [vmem:[%s2376_s1 + $0x120] sm:$0xff]   ;;  %v1850_v8 = vld [vmem:[%s2376_s1 + $0x1e8] sm:$0xff]   ;;  %v1854_v13 = vld [vmem:[%s2376_s1 + $0x1f0] sm:$0xff]  }
  0x14   :  { %1627 = vmatpush3.bf16.msra.mxu0 %v1813_v18  ;;  %v1848_v7 = vld [vmem:[%s2376_s1 + $0x1a0] sm:$0xff]   ;;  %v1851_v9 = vld [vmem:[%s2376_s1 + $0x128] sm:$0xff]   ;;  %v1855_v14 = vld [vmem:[%s2376_s1 + $0x130] sm:$0xff]   ;;  %v346_v17 = vcombine.high %v2138_v12, %v2138_v12 }
  0x15   :  { %1649 = vmatpush3.bf16.msra.mxu1 %v1814_v19  ;;  %1628 = vmatprep.subr.bf16.mxu0 %v1815_v20  ;;  %v1852_v11 = vld [vmem:[%s2376_s1 + $0x1a8] sm:$0xff]   ;;  %v1857_v15 = vld [vmem:[%s2376_s1 + $0x178] sm:$0xff]   ;;  %v1856_v16 = vld [vmem:[%s2376_s1 + $0x1b0] sm:$0xff]   ;;  %v312_v20 = vrot.slane %v2056_v45, %v2036_v35 }
  0x16   :  { %1650 = vmatprep.subr.bf16.mxu1 %v1816_v21  ;;  %v1858_v18 = vld [vmem:[%s2376_s1 + $0x1f8] sm:$0xff]   ;;  %v1861_v21 = vld [vmem:[%s2376_s1 + $0x240] sm:$0xff]   ;;  %v368_v23 = vrot.slane %v346_v17, %v2036_v35  ;;  %v1866_v30 = vld [vmem:[%s2376_s1 + $0x2c8] sm:$0xff]  }
  0x17   :  { %v1859_v19 = vld [vmem:[%s2376_s1 + $0x138] sm:$0xff]   ;;  %v1862_v24 = vld [vmem:[%s2376_s1 + $0x2c0] sm:$0xff]   ;;  %v1872_v38 = vld [vmem:[%s2376_s1 + $0x290] sm:$0xff]  }
  0x18   :  { %1629 = vmatpush3.bf16.msra.mxu0 %v1817_v25  ;;  %v1860_v22 = vld [vmem:[%s2376_s1 + $0x1b8] sm:$0xff]   ;;  %v1863_v25 = vld [vmem:[%s2376_s1 + $0x200] sm:$0xff]   ;;  %v378_v29 = vcombine.high %v368_v23, %v368_v23  ;;  %v1881_v45 = vld [vmem:[%s2376_s1 + $0x268] sm:$0xff]  }
  0x19   :  { %1651 = vmatpush3.bf16.msra.mxu1 %v1818_v26  ;;  %1630 = vmatprep.subr.bf16.mxu0 %v1819_v27  ;;  %v328_v26 = vcombine.high %v312_v20, %v312_v20  ;;  %v1865_v27 = vld [vmem:[%s2376_s1 + $0x248] sm:$0xff]   ;;  %v1874_v39 = vld [vmem:[%s2376_s1 + $0x2d8] sm:$0xff]   ;;  %v1878_v43 = vld [vmem:[%s2376_s1 + $0x2e0] sm:$0xff]  }
  0x1a   :  { %1652 = vmatprep.subr.bf16.mxu1 %v1820_v28  ;;  %v1864_v28 = vld [vmem:[%s2376_s1 + $0x280] sm:$0xff]   ;;  %v1875_v40 = vld [vmem:[%s2376_s1 + $0x218] sm:$0xff]   ;;  %v1882_v48 = vld [vmem:[%s2376_s1 + $0x2e8] sm:$0xff]  }
  0x1b   :  { %v1884_v51 = vld [vmem:[%s2376_s1 + $0x2a8] sm:$0xff]   ;;  %v1908_v17 = vld [vmem:[%s2376_s1 + $0x398] sm:$0xff]  }
  0x1c   :  { %1631 = vmatpush3.bf16.msra.mxu0 %v1821_v31  ;;  %v1867_v31 = vld [vmem:[%s2376_s1 + $0x208] sm:$0xff]  }
  0x1d   :  { %1653 = vmatpush3.bf16.msra.mxu1 %v1822_v32  ;;  %1632 = vmatprep.subr.bf16.mxu0 %v1823_v33  ;;  %v1869_v32 = vld [vmem:[%s2376_s1 + $0x250] sm:$0xff]   ;;  %v1868_v33 = vld [vmem:[%s2376_s1 + $0x288] sm:$0xff]  }
  0x1e   :  { %1654 = vmatprep.subr.bf16.mxu1 %v1824_v34  ;;  %v1870_v34 = vld [vmem:[%s2376_s1 + $0x2d0] sm:$0xff]  }
  0x20   :  { %1633 = vmatpush3.bf16.msra.mxu0 %v1825_v36  ;;  %v1871_v36 = vld [vmem:[%s2376_s1 + $0x210] sm:$0xff]  }
  0x21   :  { %1655 = vmatpush3.bf16.msra.mxu1 %v1826_v37  ;;  %1662 = vmatprep.subr.bf16.mxu0 %v1829_v41  ;;  %v1873_v37 = vld [vmem:[%s2376_s1 + $0x258] sm:$0xff]   ;;  %v1877_v41 = vld [vmem:[%s2376_s1 + $0x260] sm:$0xff]  }
  0x22   :  { %1684 = vmatprep.subr.bf16.mxu1 %v1830_v42  ;;  %v1876_v42 = vld [vmem:[%s2376_s1 + $0x298] sm:$0xff]  }
  0x23   :  { %1197 = vmatmul.mubr.bf16.vlgmr.msra.gmra.mrb[0].mxu0 %v305_v44  ;;  %v1879_v44 = vld [vmem:[%s2376_s1 + $0x220] sm:$0xff]  }
  0x24   :  { %1663 = vmatpush3.bf16.msra.mxu0 %v1831_v47  ;;  %1237 = vmatmul.mubr.bf16.vlgmr.msra.gmra.mrb[0].mxu1 %v327_v49  ;;  %v1880_v47 = vld [vmem:[%s2376_s1 + $0x2a0] sm:$0xff]   ;;  %v1883_v49 = vld [vmem:[%s2376_s1 + $0x228] sm:$0xff]  }
  0x25   :  { %1664 = vmatprep.subr.bf16.mxu0 %v1833_v50  ;;  %1685 = vmatpush3.bf16.msra.mxu1 %v1832_v52  ;;  %v1885_v50 = vld [vmem:[%s2376_s1 + $0x270] sm:$0xff]   ;;  %v2244_v52 = vrot.slane %v331_v46, %v2036_v35 }
  0x26   :  { %1276 = vmatprep.mubr.bf16.mxu0 %v326_v53  ;;  %1686 = vmatprep.subr.bf16.mxu1 %v1834_v54  ;;  %v1886_v53 = vld [vmem:[%s2376_s1 + $0x2f0] sm:$0xff]  }
  0x27   :  { %1316 = vmatprep.mubr.bf16.mxu1 %v330_v56  ;;  %v1887_v54 = vld [vmem:[%s2376_s1 + $0x230] sm:$0xff]  }
  0x28   :  { %1665 = vmatpush3.bf16.msra.mxu0 %v1835_v55  ;;  %v1889_v55 = vld [vmem:[%s2376_s1 + $0x278] sm:$0xff]   ;;  %v1888_v56 = vld [vmem:[%s2376_s1 + $0x2b0] sm:$0xff]  }
  0x29   :  { %1666 = vmatprep.subr.bf16.mxu0 %v1837_v57  ;;  %1687 = vmatpush3.bf16.msra.mxu1 %v1836_v58  ;;  %v347_v57 = vcombine.high %v2244_v52, %v2244_v52  ;;  %v1890_v58 = vld [vmem:[%s2376_s1 + $0x2f8] sm:$0xff]  }
  0x2a   :  { %1688 = vmatprep.subr.bf16.mxu1 %v1838_v59  ;;  %v1891_v59 = vld [vmem:[%s2376_s1 + $0x238] sm:$0xff]  }
  0x2c   :  { %1667 = vmatpush3.bf16.msra.mxu0 %v1839_v60  ;;  %v354_v60 = vrot.slane %v2138_v12, %v2036_v35  ;;  %v1905_v12 = vld [vmem:[%s2376_s1 + $0x358] sm:$0xff]  }
  0x2d   :  { %1668 = vmatprep.subr.bf16.mxu0 %v1841_v61  ;;  %1689 = vmatpush3.bf16.msra.mxu1 %v1840_v62  ;;  %v1893_v61 = vld [vmem:[%s2376_s1 + $0x340] sm:$0xff]   ;;  %v1892_v62 = vld [vmem:[%s2376_s1 + $0x2b8] sm:$0xff]  }
  0x2e   :  { %1690 = vmatprep.subr.bf16.mxu1 %v1842_v63  ;;  %v375_v63 = vrot.slane %v347_v57, %v2036_v35 }
  0x30   :  { %1669 = vmatpush3.bf16.msra.mxu0 %v1843_v0  ;;  %v1894_v0 = vld [vmem:[%s2376_s1 + $0x3c0] sm:$0xff]   ;;  %v379_v5 = vcombine.high %v375_v63, %v375_v63 }
  0x31   :  { %1670 = vmatprep.subr.bf16.mxu0 %v1845_v1  ;;  %1691 = vmatpush3.bf16.msra.mxu1 %v1844_v2  ;;  %v1895_v1 = vld [vmem:[%s2376_s1 + $0x300] sm:$0xff]   ;;  %v376_v2 = vcombine.high %v354_v60, %v354_v60 }
  0x32   :  { %1692 = vmatprep.subr.bf16.mxu1 %v1846_v3  ;;  %v1897_v3 = vld [vmem:[%s2376_s1 + $0x348] sm:$0xff]  }
  0x34   :  { %1671 = vmatpush3.bf16.msra.mxu0 %v1847_v4  ;;  %v1896_v4 = vld [vmem:[%s2376_s1 + $0x380] sm:$0xff]  }
  0x35   :  { %1672 = vmatprep.subr.bf16.mxu0 %v1849_v6  ;;  %1693 = vmatpush3.bf16.msra.mxu1 %v1848_v7  ;;  %v1898_v6 = vld [vmem:[%s2376_s1 + $0x3c8] sm:$0xff]  }
  0x36   :  { %1694 = vmatprep.subr.bf16.mxu1 %v1850_v8  ;;  %v1899_v7 = vld [vmem:[%s2376_s1 + $0x308] sm:$0xff]   ;;  %v1901_v8 = vld [vmem:[%s2376_s1 + $0x350] sm:$0xff]  }
  0x38   :  { %1673 = vmatpush3.bf16.msra.mxu0 %v1851_v9  ;;  %v1900_v9 = vld [vmem:[%s2376_s1 + $0x388] sm:$0xff]  }
  0x39   :  { %1674 = vmatprep.subr.bf16.mxu0 %v1853_v10  ;;  %1695 = vmatpush3.bf16.msra.mxu1 %v1852_v11  ;;  %v1902_v10 = vld [vmem:[%s2376_s1 + $0x3d0] sm:$0xff]  }
  0x3a   :  { %1696 = vmatprep.subr.bf16.mxu1 %v1854_v13  ;;  %v1903_v11 = vld [vmem:[%s2376_s1 + $0x310] sm:$0xff]  }
  0x3b   :  { %v1904_v13 = vld [vmem:[%s2376_s1 + $0x390] sm:$0xff]  }
  0x3c   :  { %1675 = vmatpush3.bf16.msra.mxu0 %v1855_v14  ;;  %v1906_v14 = vld [vmem:[%s2376_s1 + $0x3d8] sm:$0xff]  }
  0x3d   :  { %1676 = vmatprep.subr.bf16.mxu0 %v1857_v15  ;;  %1697 = vmatpush3.bf16.msra.mxu1 %v1856_v16  ;;  %v1907_v15 = vld [vmem:[%s2376_s1 + $0x318] sm:$0xff]   ;;  %v1909_v16 = vld [vmem:[%s2376_s1 + $0x360] sm:$0xff]  }
  0x3e   :  { %1698 = vmatprep.subr.bf16.mxu1 %v1858_v18  ;;  %v1910_v18 = vld [vmem:[%s2376_s1 + $0x3e0] sm:$0xff]  }
  0x40   :  { %1677 = vmatpush3.bf16.msra.mxu0 %v1859_v19  ;;  %v1911_v19 = vld [vmem:[%s2376_s1 + $0x320] sm:$0xff]  }
  0x41   :  { %1706 = vmatprep.subr.bf16.mxu0 %v1861_v21  ;;  %1699 = vmatpush3.bf16.msra.mxu1 %v1860_v22  ;;  %v1912_v21 = vld [vmem:[%s2376_s1 + $0x3a0] sm:$0xff]   ;;  %v1914_v22 = vld [vmem:[%s2376_s1 + $0x3e8] sm:$0xff]  }
  0x42   :  { %1728 = vmatprep.subr.bf16.mxu1 %v1862_v24  ;;  %v1917_v24 = vld [vmem:[%s2376_s1 + $0x370] sm:$0xff]  }
  0x43   :  { %1277 = vmatmul.mubr.bf16.vlgmr.msra.gmra.mrb[4].mxu0 %v312_v20  ;;  %v1913_v20 = vld [vmem:[%s2376_s1 + $0x368] sm:$0xff]  }
  0x44   :  { %1707 = vmatpush3.bf16.msra.mxu0 %v1863_v25  ;;  %1356 = vmatprep.mubr.bf16.mxu0 %v368_v23  ;;  %v1915_v23 = vld [vmem:[%s2376_s1 + $0x328] sm:$0xff]  }
  0x45   :  { %1317 = vmatmul.mubr.bf16.vlgmr.msra.gmra.mrb[4].mxu1 %v328_v26  ;;  %1708 = vmatprep.subr.bf16.mxu0 %v1865_v27  ;;  %v1916_v25 = vld [vmem:[%s2376_s1 + $0x3a8] sm:$0xff]   ;;  %v1918_v26 = vld [vmem:[%s2376_s1 + $0x3f0] sm:$0xff]  }
  0x46   :  { %1729 = vmatpush3.bf16.msra.mxu1 %v1864_v28  ;;  %1396 = vmatprep.mubr.bf16.mxu1 %v378_v29  ;;  %v1919_v27 = vld [vmem:[%s2376_s1 + $0x330] sm:$0xff]   ;;  %v1921_v28 = vld [vmem:[%s2376_s1 + $0x378] sm:$0xff]  }
  0x47   :  { %1730 = vmatprep.subr.bf16.mxu1 %v1866_v30  ;;  %v1920_v29 = vld [vmem:[%s2376_s1 + $0x3b0] sm:$0xff]   ;;  %v1922_v30 = vld [vmem:[%s2376_s1 + $0x3f8] sm:$0xff]  }
  0x48   :  { %1709 = vmatpush3.bf16.msra.mxu0 %v1867_v31  ;;  %v1923_v31 = vld [vmem:[%s2376_s1 + $0x338] sm:$0xff]  }
  0x49   :  { %1710 = vmatprep.subr.bf16.mxu0 %v1869_v32  ;;  %v361_v32 = vrot.slane %v2244_v52, %v2036_v35 }
  0x4a   :  { %1731 = vmatpush3.bf16.msra.mxu1 %v1868_v33  ;;  %v1924_v33 = vld [vmem:[%s2376_s1 + $0x3b8] sm:$0xff]  }
  0x4b   :  { %1732 = vmatprep.subr.bf16.mxu1 %v1870_v34  ;;  %v377_v34 = vcombine.high %v361_v32, %v361_v32 }
  0x4c   :  { %1711 = vmatpush3.bf16.msra.mxu0 %v1871_v36 }
  0x4d   :  { %1712 = vmatprep.subr.bf16.mxu0 %v1873_v37  ;;  %v1489_v37 = vld [vmem:[%s2378_s2] ss:$0 sm:$0xff] }
  0x4e   :  { %1733 = vmatpush3.bf16.msra.mxu1 %v1872_v38 }
  0x4f   :  { %1734 = vmatprep.subr.bf16.mxu1 %v1874_v39 }
  0x50   :  { %1713 = vmatpush3.bf16.msra.mxu0 %v1875_v40 }
  0x51   :  { %1714 = vmatprep.subr.bf16.mxu0 %v1877_v41 }
  0x52   :  { %1735 = vmatpush3.bf16.msra.mxu1 %v1876_v42 }
  0x53   :  { %1736 = vmatprep.subr.bf16.mxu1 %v1878_v43 }
  0x54   :  { %1715 = vmatpush3.bf16.msra.mxu0 %v1879_v44 }
  0x55   :  { %1716 = vmatprep.subr.bf16.mxu0 %v1881_v45 }
  0x56   :  { %1737 = vmatpush3.bf16.msra.mxu1 %v1880_v47 }
  0x57   :  { %1738 = vmatprep.subr.bf16.mxu1 %v1882_v48 }
  0x58   :  { %1717 = vmatpush3.bf16.msra.mxu0 %v1883_v49 }
  0x59   :  { %1718 = vmatprep.subr.bf16.mxu0 %v1885_v50 }
  0x5a   :  { %1739 = vmatpush3.bf16.msra.mxu1 %v1884_v51 }
  0x5b   :  { %1740 = vmatprep.subr.bf16.mxu1 %v1886_v53 }
  0x5c   :  { %1719 = vmatpush3.bf16.msra.mxu0 %v1887_v54 }
  0x5d   :  { %1720 = vmatprep.subr.bf16.mxu0 %v1889_v55 }
  0x5e   :  { %1741 = vmatpush3.bf16.msra.mxu1 %v1888_v56 }
  0x5f   :  { %1742 = vmatprep.subr.bf16.mxu1 %v1890_v58 }
  0x60   :  { %1721 = vmatpush3.bf16.msra.mxu0 %v1891_v59 }
  0x61   :  { %1750 = vmatprep.subr.bf16.mxu0 %v1893_v61 }
  0x62   :  { %1743 = vmatpush3.bf16.msra.mxu1 %v1892_v62 }
  0x63   :  { %1357 = vmatmul.mubr.bf16.vlgmr.msra.gmra.mrb[8].mxu0 %v354_v60  ;;  %1772 = vmatprep.subr.bf16.mxu1 %v1894_v0 }
  0x64   :  { %1751 = vmatpush3.bf16.msra.mxu0 %v1895_v1  ;;  %1436 = vmatprep.mubr.bf16.mxu0 %v375_v63 }
  0x65   :  { %1397 = vmatmul.mubr.bf16.vlgmr.msra.gmra.mrb[8].mxu1 %v376_v2  ;;  %1752 = vmatprep.subr.bf16.mxu0 %v1897_v3 }
  0x66   :  { %1773 = vmatpush3.bf16.msra.mxu1 %v1896_v4  ;;  %1476 = vmatprep.mubr.bf16.mxu1 %v379_v5 }
  0x67   :  { %1774 = vmatprep.subr.bf16.mxu1 %v1898_v6 }
  0x68   :  { %1753 = vmatpush3.bf16.msra.mxu0 %v1899_v7 }
  0x69   :  { %1754 = vmatprep.subr.bf16.mxu0 %v1901_v8 }
  0x6a   :  { %1775 = vmatpush3.bf16.msra.mxu1 %v1900_v9 }
  0x6b   :  { %1776 = vmatprep.subr.bf16.mxu1 %v1902_v10 }
  0x6c   :  { %1755 = vmatpush3.bf16.msra.mxu0 %v1903_v11 }
  0x6d   :  { %1756 = vmatprep.subr.bf16.mxu0 %v1905_v12 }
  0x6e   :  { %1777 = vmatpush3.bf16.msra.mxu1 %v1904_v13 }
  0x6f   :  { %1778 = vmatprep.subr.bf16.mxu1 %v1906_v14 }
  0x70   :  { %1757 = vmatpush3.bf16.msra.mxu0 %v1907_v15 }
  0x71   :  { %1758 = vmatprep.subr.bf16.mxu0 %v1909_v16 }
  0x72   :  { %1779 = vmatpush3.bf16.msra.mxu1 %v1908_v17 }
  0x73   :  { %1780 = vmatprep.subr.bf16.mxu1 %v1910_v18 }
  0x74   :  { %1759 = vmatpush3.bf16.msra.mxu0 %v1911_v19 }
  0x75   :  { %1760 = vmatprep.subr.bf16.mxu0 %v1913_v20 }
  0x76   :  { %1781 = vmatpush3.bf16.msra.mxu1 %v1912_v21 }
  0x77   :  { %1782 = vmatprep.subr.bf16.mxu1 %v1914_v22 }
  0x78   :  { %1761 = vmatpush3.bf16.msra.mxu0 %v1915_v23 }
  0x79   :  { %1762 = vmatprep.subr.bf16.mxu0 %v1917_v24 }
  0x7a   :  { %1783 = vmatpush3.bf16.msra.mxu1 %v1916_v25 }
  0x7b   :  { %1784 = vmatprep.subr.bf16.mxu1 %v1918_v26 }
  0x7c   :  { %1763 = vmatpush3.bf16.msra.mxu0 %v1919_v27 }
  0x7d   :  { %1764 = vmatprep.subr.bf16.mxu0 %v1921_v28 }
  0x7e   :  { %1785 = vmatpush3.bf16.msra.mxu1 %v1920_v29 }
  0x7f   :  { %1786 = vmatprep.subr.bf16.mxu1 %v1922_v30 }
  0x80   :  { %1765 = vmatpush3.bf16.msra.mxu0 %v1923_v31 }
  0x82   :  { %1787 = vmatpush3.bf16.msra.mxu1 %v1924_v33 }
  0x83   :  { %1437 = vmatmul.mubr.bf16.vlgmr.msra.gmra.mrb[12].mxu0 %v361_v32 }
  0x85   :  { %1477 = vmatmul.mubr.bf16.vlgmr.msra.gmra.mrb[12].mxu1 %v377_v34 }
  0xf6   :  { %v1634_v36 = vpop.f32.mrb[0].mxu0 }
  0xf7   :  { %v1635_v38 = vpop.f32.mrb[1].mxu0  ;;  %v1656_v39 = vpop.f32.mrb[0].mxu1 }
  0xf8   :  { %v1636_v40 = vadd.f32 %v1635_v38, %v1634_v36  ;;  %v1637_v35 = vpop.f32.mrb[2].mxu0  ;;  %v1657_v41 = vpop.f32.mrb[1].mxu1 }
  0xf9   :  { %v1638_v42 = vpop.f32.mrb[3].mxu0  ;;  %v1658_v44 = vadd.f32 %v1657_v41, %v1656_v39  ;;  %v1659_v45 = vpop.f32.mrb[2].mxu1 }
  0xfa   :  { %v1199_v43 = vadd.f32 %v1636_v40, %v1489_v37  ;;  %v1660_v46 = vpop.f32.mrb[3].mxu1 }
  0xfc   :  { %v1239_v47 = vadd.f32 %v1658_v44, %v1199_v43 }
 0x116   :  { %v1678_v48 = vpop.f32.mrb[4].mxu0 }
 0x117   :  { %v1679_v49 = vpop.f32.mrb[5].mxu0 }
 0x118   :  { %v1700_v50 = vpop.f32.mrb[4].mxu1  ;;  %v1680_v51 = vadd.f32 %v1679_v49, %v1678_v48  ;;  %v1681_v52 = vpop.f32.mrb[6].mxu0 }
 0x119   :  { %v1701_v53 = vpop.f32.mrb[5].mxu1  ;;  %v1682_v54 = vpop.f32.mrb[7].mxu0 }
 0x11a   :  { %v1279_v55 = vadd.f32 %v1680_v51, %v1239_v47  ;;  %v1702_v56 = vadd.f32 %v1701_v53, %v1700_v50  ;;  %v1703_v57 = vpop.f32.mrb[6].mxu1 }
 0x11b   :  { %v1704_v58 = vpop.f32.mrb[7].mxu1 }
 0x11c   :  { %v1319_v59 = vadd.f32 %v1702_v56, %v1279_v55 }
 0x136   :  { %v1722_v60 = vpop.f32.mrb[8].mxu0 }
 0x137   :  { %v1723_v61 = vpop.f32.mrb[9].mxu0 }
 0x138   :  { %v1744_v62 = vpop.f32.mrb[8].mxu1  ;;  %v1724_v63 = vadd.f32 %v1723_v61, %v1722_v60  ;;  %v1725_v0 = vpop.f32.mrb[10].mxu0 }
 0x139   :  { %v1745_v1 = vpop.f32.mrb[9].mxu1  ;;  %v1726_v2 = vpop.f32.mrb[11].mxu0 }
 0x13a   :  { %v1359_v3 = vadd.f32 %v1724_v63, %v1319_v59  ;;  %v1746_v4 = vadd.f32 %v1745_v1, %v1744_v62  ;;  %v1747_v5 = vpop.f32.mrb[10].mxu1 }
 0x13b   :  { %v1748_v6 = vpop.f32.mrb[11].mxu1 }
 0x13c   :  { %v1399_v7 = vadd.f32 %v1746_v4, %v1359_v3 }
 0x156   :  { %v1766_v8 = vpop.f32.mrb[12].mxu0 }
 0x157   :  { %v1767_v9 = vpop.f32.mrb[13].mxu0 }
 0x158   :  { %v1788_v10 = vpop.f32.mrb[12].mxu1  ;;  %v1768_v11 = vadd.f32 %v1767_v9, %v1766_v8  ;;  %v1769_v12 = vpop.f32.mrb[14].mxu0 }
 0x159   :  { %v1789_v13 = vpop.f32.mrb[13].mxu1  ;;  %v1770_v14 = vpop.f32.mrb[15].mxu0 }
 0x15a   :  { %v1439_v15 = vadd.f32 %v1768_v11, %v1399_v7  ;;  %v1790_v16 = vadd.f32 %v1789_v13, %v1788_v10  ;;  %v1791_v17 = vpop.f32.mrb[14].mxu1 }
 0x15b   :  { %v1792_v18 = vpop.f32.mrb[15].mxu1 }
 0x15c   :  { %v1479_v19 = vadd.f32 %v1790_v16, %v1439_v15 }
 0x15e   :  { %1484 = vst [vmem:[%s2379_s3] sm:$0x3] %v1479_v19 }

// kernel: encoder_forward.2
= control target key start
LH: loop header
LB: loop body
LE: loop exit
PB: predicated region body
PF: predicated region fallthrough
CT: control target
= control target key end

     0   :  { %16 = vsyncpa [#allocation4], 0  ;;  %s15307_s0 = inlined_call_operand.vmem [shape: f32[2,16,16,4], index: 0, kind: input, shape index: {}]   ;;  %s15308_s1 = inlined_call_operand.vmem [shape: bf16[36,8], index: 1, kind: input, shape index: {}]   ;;  %s15309_s2 = inlined_call_operand.vmem [shape: f32[1,8], index: 2, kind: input, shape index: {}]   ;;  %s15310_s3 = inlined_call_operand.vmem [shape: bf16[72,8], index: 3, kind: input, shape index: {}]   ;;  %s15311_s4 = inlined_call_operand.hbm [shape: f32[1,8], index: 4, kind: input, shape index: {}]   ;;  %s15312_s5 = inlined_call_operand.vmem [shape: bf16[72,8], index: 5, kind: input, shape index: {}]   ;;  %s15313_s6 = inlined_call_operand.hbm [shape: f32[1,8], index: 6, kind: input, shape index: {}]   ;;  %s15314_s7 = inlined_call_operand.vmem [shape: bf16[72,8], index: 7, kind: input, shape index: {}]   ;;  %s15315_s8 = inlined_call_operand.vmem [shape: f32[1,8], index: 8, kind: input, shape index: {}]   ;;  %s15316_s9 = inlined_call_operand.vmem [shape: bf16[72,8], index: 9, kind: input, shape index: {}]   ;;  %s15317_s10 = inlined_call_operand.vmem [shape: f32[1,8], index: 10, kind: input, shape index: {}]   ;;  %s15318_s11 = inlined_call_operand.vmem [shape: bf16[2,256,8], index: 11, kind: output, shape index: {}]  }
   0x1   :  { %17 = vsyncpa [#allocation6], 0  ;;  %s11163_s17 = smov 0  }
   0x2 LB: > { %s11169_s18 = sadd.s32 4294967295, %s11086_s17   ;;  %p9716_p0 = scmp.ge.s32.totalorder %s11086_s17, 1  ;;  %s11086_s17 = sphi %s11163_s17, %s23_s17  }
   0x3   : > { %p290_p1 = scmp.lt.s32.totalorder %s11086_s17, 3  ;;  %p15319_p2 = scmp.eq.s32.totalorder %s11169_s18, 0 }
   0x4   : > { %s11088_s20 = smov [#allocation3]   ;;  %s11089_s22 = smov [#allocation5]  }
   0x5   : > { %p11174_p3 = pnand %p9716_p0, %p290_p1  ;;  %s312_s21 = sshll.u32 %s11088_s20, 4  ;;  %s313_s21 = int_to_ptr.vmem [resolvable:$true] %s312_s21 }
   0x6   : > { %s326_s23 = sshll.u32 %s11089_s22, 4  ;;  %s11016_s27 = scalar_lea.hbm %s15311_s4, 16  ;;  %s11186_s23 = int_to_ptr.vmem [resolvable:$true] %s326_s23 }
   0x7   : > { %s15380_s19 = scalar_select %p11174_p3, 1, 0 }
   0x8   : > { %p10732_p4 = pneg %p11174_p3  ;;  %p11017_p6 = scmp.ne.s32.totalorder %s15311_s4, %s11016_s27 }
   0x9   : > { %p11023_p10 = scmp.lt.u32.totalorder %s11016_s27, %s15311_s4 }
   0xa   : > { %p11182_p5 = pnand %p15319_p2, %p10732_p4 }
   0xc   : > { %p11018_p7 = pneg %p11182_p5 }
   0xe   : > { %p11019_p8 = pnand %p11018_p7, %p11017_p6 }
  0x10   : > { %p11020_p9 = pneg %p11019_p8 }
  0x12   : > { %p11025_p11 = pnand %p11023_p10, %p11020_p9 }
  0x14   : > { %11028 = shalt.err (!%p11025_p11)
}
  0x15   : > { %s11029_s13 = scalar_lea.vmem %s313_s21, 16  ;;  %s11036_s14 = scalar_lea.vmem %s313_s21, 32 }
  0x16   : > { %p11030_p12 = scmp.ne.s32.totalorder %s313_s21, %s11029_s13  ;;  %p11037_p1 = scmp.lt.s32.totalorder %s313_s21, %s313_s21 }
  0x17   : > { %p11038_p4 = scmp.lt.s32.totalorder %s11036_s14, %s11029_s13 }
  0x18   : > { %p11032_p13 = pnand %p11030_p12, %p11018_p7 }
  0x19   : > { %p11039_p2 = por %p11038_p4, %p11037_p1 }
  0x1a   : > { %p11033_p0 = pneg %p11032_p13 }
  0x1c   : > { %p11040_p3 = pnand %p11039_p2, %p11033_p0 }
  0x1e   : > { %11043 = shalt.err (!%p11040_p3)
}
  0x1f   : > { %10735 = dma.hbm_to_vmem [thread:$0]  (!%p11182_p5), %s15311_s4, 16, %s313_s21, [#allocation4]  }
  0x20   : > { %s11044_s25 = scalar_lea.hbm %s15313_s6, 16 }
  0x21   : > { %p11045_p6 = scmp.ne.s32.totalorder %s15313_s6, %s11044_s25  ;;  %p11051_p3 = scmp.lt.u32.totalorder %s11044_s25, %s15313_s6 }
  0x23   : > { %p11047_p8 = pnand %p11045_p6, %p11018_p7 }
  0x25   : > { %p11048_p2 = pneg %p11047_p8 }
  0x27   : > { %p11053_p9 = pnand %p11051_p3, %p11048_p2 }
  0x29   : > { %11056 = shalt.err (!%p11053_p9)
}
  0x2a   : > { %s11057_s21 = scalar_lea.vmem %s11186_s23, 16  ;;  %s11064_s30 = scalar_lea.vmem %s11186_s23, 32 }
  0x2b   : > { %p11058_p10 = scmp.ne.s32.totalorder %s11186_s23, %s11057_s21  ;;  %p11065_p13 = scmp.lt.s32.totalorder %s11186_s23, %s11186_s23 }
  0x2c   : > { %p11066_p0 = scmp.lt.s32.totalorder %s11064_s30, %s11057_s21 }
  0x2d   : > { %p11060_p11 = pnand %p11058_p10, %p11018_p7 }
  0x2e   : > { %p11067_p1 = por %p11066_p0, %p11065_p13 }
  0x2f   : > { %p11061_p12 = pneg %p11060_p11 }
  0x31   : > { %p11068_p4 = pnand %p11067_p1, %p11061_p12 }
  0x33   : > { %11071 = shalt.err (!%p11068_p4)
}
  0x34   : > { %10738 = dma.hbm_to_vmem [thread:$0]  (!%p11182_p5), %s15313_s6, 16, %s11186_s23, [#allocation6]  }
  0x35   : > { %p15382_p6 = scmp.ne.s32.totalorder %s15380_s19, 0 }
  0x37   : > { %359 = sbr.rel (%p15382_p6) target bundleno = 2498 (0x9c2), region = 64 }
  0x3e   : > { %p15383_p7 = scmp.eq.s32.totalorder %s11169_s18, 0 }
  0x40   : > { %11077 = dma.done.wait (%p15383_p7), [#allocation4], 16   ;;  %p15384_p8 = pmov %p15383_p7 }
  0x41   : > { %p15385_p2 = pmov %p15383_p7 }
  0x42   : > { %11079 = vsyncadd (%p15384_p8), [#allocation4], 4294967280 }
  0x43   : > { %11081 = dma.done.wait (%p15385_p2), [#allocation6], 16   ;;  %p15386_p3 = pmov %p15385_p2 }
  0x44   : > { %vm15321_vm0 = vcmask 60416   ;;  %vm417_vm1 = vcmask 57344   ;;  %v11090_v0 = vmov 0   ;;  %vm598_vm2 = vsmask.f32 256  ;;  %p403_p5 = scmp.lt.s32.totalorder %s11169_s18, 1 }
  0x45   : > { %11083 = vsyncadd (%p15386_p3), [#allocation6], 4294967280  ;;  %415 = vst.msk [vmem:[#allocation2] sm:$0xf] %vm15321_vm0, %v11090_v0  ;;  %v15387_v1 = vmov 0  ;;  %vm1447_vm6 = vcmask 1046528  }
  0x46   : > { %416 = vst.msk [vmem:[#allocation2 + $0x4] sm:$0xf] %vm15321_vm0, %v11090_v0  ;;  %419 = vst.msk [vmem:[#allocation2 + $0xc] sm:$0xf] %vm15321_vm0, %v11090_v0  ;;  %s15615_s18 = smov (!%p403_p5, %s11169_s18), 1  ;;  %vm922_vm7 = vcmask 27648  }
  0x47   : > { %418 = vst.msk [vmem:[#allocation2 + $0x8] sm:$0x1] %vm417_vm1, %v11090_v0  ;;  %421 = vst.msk [vmem:[#allocation2 + $0x14] sm:$0x1] %vm417_vm1, %v11090_v0  ;;  %vm1222_vm4 = vsmask.f32 7424 }
  0x48   : > { %420 = vst.msk [vmem:[#allocation2 + $0x10] sm:$0xf] %vm15321_vm0, %v11090_v0  ;;  %422 = vst.msk [vmem:[#allocation2 + $0x18] sm:$0xf] %vm15321_vm0, %v11090_v0  ;;  %s10209_s19 = sshll.u32 %s15615_s18, 8  ;;  %vm930_vm9 = vcmask 24576  }
  0x49   : > { %423 = vst.msk [vmem:[#allocation2 + $0x1c] sm:$0xf] %vm15321_vm0, %v11090_v0  ;;  %425 = vst.msk [vmem:[#allocation2 + $0x24] sm:$0xf] %vm15321_vm0, %v11090_v0  ;;  %s11314_s14 = scalar_lea.vmem %s15307_s0, %s10209_s19  ;;  %vm599_vm5 = vsmask.f32 4368 }
  0x4a   : > { %424 = vst.msk [vmem:[#allocation2 + $0x20] sm:$0x1] %vm417_vm1, %v11090_v0  ;;  %427 = vst.msk [vmem:[#allocation2 + $0x2c] sm:$0x1] %vm417_vm1, %v11090_v0  ;;  %v472_v4 = vld [vmem:[%s11314_s14 + $0x10] sm:$0xff]  ;;  %v473_v5 = vld [vmem:[%s11314_s14 + $0x18] sm:$0xff] }
  0x4b   : > { %426 = vst.msk [vmem:[#allocation2 + $0x28] sm:$0xf] %vm15321_vm0, %v11090_v0  ;;  %428 = vst.msk [vmem:[#allocation2 + $0x30] sm:$0xf] %vm15321_vm0, %v11090_v0  ;;  %v10213_v6 = vpack.c.bf16 %v472_v4, %v472_v4  ;;  %vm15322_vm8 = vsmask.f32 7938  ;;  %v10214_v14 = vpack.c.bf16 %v473_v5, %v473_v5 }
  0x4c   : > { %429 = vst.msk [vmem:[#allocation2 + $0x34] sm:$0xf] %vm15321_vm0, %v11090_v0  ;;  %431 = vst.msk [vmem:[#allocation2 + $0x3c] sm:$0xf] %vm15321_vm0, %v11090_v0  ;;  %v470_v7 = vld [vmem:[%s11314_s14] sm:$0xff]  ;;  %v471_v12 = vld [vmem:[%s11314_s14 + $0x8] sm:$0xff] }
  0x4d   : > { %430 = vst.msk [vmem:[#allocation2 + $0x38] sm:$0x1] %vm417_vm1, %v11090_v0  ;;  %433 = vst.msk [vmem:[#allocation2 + $0x44] sm:$0x1] %vm417_vm1, %v11090_v0  ;;  %v10766_v2 = vld [vmem:[#allocation2] sm:$0xff]   ;;  %v619_v15 = vshrl.u32 %v10213_v6, 16  ;;  %v10211_v19 = vpack.c.bf16 %v470_v7, %v470_v7  ;;  %v10212_v20 = vpack.c.bf16 %v471_v12, %v471_v12 }
  0x4e   : > { %432 = vst.msk [vmem:[#allocation2 + $0x40] sm:$0xf] %vm15321_vm0, %v11090_v0  ;;  %434 = vst.msk [vmem:[#allocation2 + $0x48] sm:$0xf] %vm15321_vm0, %v11090_v0  ;;  %v1448_v8 = vrot.slane %v10766_v2, 1  ;;  %v1224_v10 = vshrl.u32 %v10766_v2, 16 }
  0x4f   : > { %435 = vst.msk [vmem:[#allocation2 + $0x4c] sm:$0xf] %vm15321_vm0, %v11090_v0  ;;  %437 = vst.msk [vmem:[#allocation2 + $0x54] sm:$0xf] %vm15321_vm0, %v11090_v0  ;;  %v1226_v11 = vshll.u32 %v10766_v2, 16  ;;  %v622_v16 = vshll.u32 %v10213_v6, 16 }
  0x50   : > { %436 = vst.msk [vmem:[#allocation2 + $0x50] sm:$0x1] %vm417_vm1, %v11090_v0  ;;  %439 = vst.msk [vmem:[#allocation2 + $0x5c] sm:$0x1] %vm417_vm1, %v11090_v0  ;;  %s11091_s15 = smov 8   ;;  %v621_v22 = vrot.slane %v619_v15, 7 }
  0x51   : > { %438 = vst.msk [vmem:[#allocation2 + $0x58] sm:$0xf] %vm15321_vm0, %v11090_v0  ;;  %440 = vst.msk [vmem:[#allocation2 + $0x60] sm:$0xf] %vm15321_vm0, %v11090_v0  ;;  %v1228_v18 = vrot.slane %v1226_v11, 1  ;;  %v627_v23 = vshrl.u32 %v10214_v14, 16 }
  0x52   : > { %441 = vst.msk [vmem:[#allocation2 + $0x64] sm:$0xf] %vm15321_vm0, %v11090_v0  ;;  %443 = vst.msk [vmem:[#allocation2 + $0x6c] sm:$0xf] %vm15321_vm0, %v11090_v0  ;;  %v630_v24 = vshll.u32 %v10214_v14, 16  ;;  %v474_v25 = vld [vmem:[%s11314_s14 + $0x20] sm:$0xff]  ;;  %v624_v33 = vor.u32 %v622_v16, %v621_v22 }
  0x53   : > { %442 = vst.msk [vmem:[#allocation2 + $0x68] sm:$0x1] %vm417_vm1, %v11090_v0  ;;  %445 = vst.msk [vmem:[#allocation2 + $0x74] sm:$0x1] %vm417_vm1, %v11090_v0  ;;  %v1229_v26 = vor.u32 %v1228_v18, %v1224_v10  ;;  %v935_v28 = vld [vmem:[#allocation2 + $0x18] sm:$0xf]  ;;  %v10215_v41 = vpack.c.bf16 %v474_v25, %v474_v25 }
  0x54   : > { %444 = vst.msk [vmem:[#allocation2 + $0x70] sm:$0xf] %vm15321_vm0, %v11090_v0  ;;  %446 = vst.msk [vmem:[#allocation2 + $0x78] sm:$0xf] %vm15321_vm0, %v11090_v0  ;;  %v602_v29 = vshrl.u32 %v10211_v19, 16  ;;  %v605_v30 = vshll.u32 %v10211_v19, 16 }
  0x55   : > { %447 = vst.msk [vmem:[#allocation2 + $0x7c] sm:$0xf] %vm15321_vm0, %v11090_v0  ;;  %449 = vst.msk [vmem:[#allocation2 + $0x84] sm:$0xf] %vm15321_vm0, %v11090_v0  ;;  %v610_v31 = vshrl.u32 %v10212_v20, 16  ;;  %v475_v32 = vld [vmem:[%s11314_s14 + $0x28] sm:$0xff] }
  0x56   : > { %448 = vst.msk [vmem:[#allocation2 + $0x80] sm:$0x1] %vm417_vm1, %v11090_v0  ;;  %451 = vst.msk [vmem:[#allocation2 + $0x8c] sm:$0x1] %vm417_vm1, %v11090_v0  ;;  %v625_v34 = vrot.slane %v621_v22, 4  ;;  %v629_v35 = vrot.slane %v627_v23, 7  ;;  %v10216_v45 = vpack.c.bf16 %v475_v32, %v475_v32 }
  0x57   : > { %450 = vst.msk [vmem:[#allocation2 + $0x88] sm:$0xf] %vm15321_vm0, %v11090_v0  ;;  %452 = vst.msk [vmem:[#allocation2 + $0x90] sm:$0xf] %vm15321_vm0, %v11090_v0  ;;  %v613_v36 = vshll.u32 %v10212_v20, 16  ;;  %v15392_v38 = vmov 0 }
  0x58   : > { %453 = vst.msk [vmem:[#allocation2 + $0x94] sm:$0xf] %vm15321_vm0, %v11090_v0  ;;  %455 = vst.msk [vmem:[#allocation2 + $0x9c] sm:$0xf] %vm15321_vm0, %v11090_v0  ;;  %v604_v39 = vrot.slane %v602_v29, 7  ;;  %v612_v40 = vrot.slane %v610_v31, 7  ;;  %v632_v42 = vor.u32 %v630_v24, %v629_v35 }
  0x59   : > { %454 = vst.msk [vmem:[#allocation2 + $0x98] sm:$0x1] %vm417_vm1, %v11090_v0  ;;  %457 = vst.msk [vmem:[#allocation2 + $0xa4] sm:$0x1] %vm417_vm1, %v11090_v0  ;;  %s11092_s16 = smov 4   ;;  %v634_v46 = vrot.slane %v629_v35, 4 }
  0x5a   : > { %456 = vst.msk [vmem:[#allocation2 + $0xa0] sm:$0xf] %vm15321_vm0, %v11090_v0  ;;  %458 = vst.msk [vmem:[#allocation2 + $0xa8] sm:$0xf] %vm15321_vm0, %v11090_v0  ;;  %v925_v44 = vld [vmem:[#allocation2 + $0xc] sm:$0xf]  ;;  %v607_v47 = vor.u32 %v605_v30, %v604_v39  ;;  %v615_v49 = vor.u32 %v613_v36, %v612_v40 }
  0x5b   : > { %459 = vst.msk [vmem:[#allocation2 + $0xac] sm:$0xf] %vm15321_vm0, %v11090_v0  ;;  %461 = vst.msk [vmem:[#allocation2 + $0xb4] sm:$0xf] %vm15321_vm0, %v11090_v0  ;;  %v608_v48 = vrot.slane %v604_v39, 4  ;;  %v636_v50 = vshrl.u32 %v10215_v41, 16 }
  0x5c   : > { %460 = vst.msk [vmem:[#allocation2 + $0xb0] sm:$0x1] %vm417_vm1, %v11090_v0  ;;  %463 = vst.msk [vmem:[#allocation2 + $0xbc] sm:$0x1] %vm417_vm1, %v11090_v0  ;;  %v939_v51 = vld [vmem:[#allocation2 + $0x20] sm:$0x1] }
  0x5d   : > { %462 = vst.msk [vmem:[#allocation2 + $0xb8] sm:$0xf] %vm15321_vm0, %v11090_v0  ;;  %464 = vst.msk [vmem:[#allocation2 + $0xc0] sm:$0xf] %vm15321_vm0, %v11090_v0  ;;  %v476_v52 = vld [vmem:[%s11314_s14 + $0x30] sm:$0xff]  ;;  %v477_v53 = vld [vmem:[%s11314_s14 + $0x38] sm:$0xff] }
  0x5e   : > { %465 = vst.msk [vmem:[#allocation2 + $0xc4] sm:$0xf] %vm15321_vm0, %v11090_v0  ;;  %467 = vst.msk [vmem:[#allocation2 + $0xcc] sm:$0xf] %vm15321_vm0, %v11090_v0  ;;  %v639_v55 = vshll.u32 %v10215_v41, 16  ;;  %v644_v56 = vshrl.u32 %v10216_v45, 16  ;;  %v10217_v5 = vpack.c.bf16 %v476_v52, %v476_v52  ;;  %v10218_v6 = vpack.c.bf16 %v477_v53, %v477_v53 }
  0x5f   : > { %466 = vst.msk [vmem:[#allocation2 + $0xc8] sm:$0x1] %vm417_vm1, %v11090_v0  ;;  %469 = vst.msk [vmem:[#allocation2 + $0xd4] sm:$0x1] %vm417_vm1, %v11090_v0  ;;  %v647_v57 = vshll.u32 %v10216_v45, 16  ;;  %v478_v60 = vld [vmem:[%s11314_s14 + $0x40] sm:$0xff] }
  0x60   : > { %468 = vst.msk [vmem:[#allocation2 + $0xd0] sm:$0xf] %vm15321_vm0, %v11090_v0  ;;  %vm11302_vm3 = vmand %vm417_vm1, %vm598_vm2  ;;  %v10767_v3 = vld [vmem:[#allocation2 + $0x8] ss:$0 sps:$4 sm:$0x11]   ;;  %v638_v63 = vrot.slane %v636_v50, 7  ;;  %v10219_v11 = vpack.c.bf16 %v478_v60, %v478_v60 }
  0x61   : > { %v15388_v1 = vsel %vm11302_vm3, 4294967295, %v15387_v1  ;;  %v1449_v9 = vrot.slane %v10767_v3, 1  ;;  %v1231_v13 = vshll.u32 %v10767_v3, 16  ;;  %vm11325_vm10 = vmand %vm922_vm7, %vm15322_vm8  ;;  %v932_v59 = vld [vmem:[#allocation2 + $0x14] sm:$0x1]  ;;  %v617_v0 = vrot.slane %v612_v40, 4 }
  0x62   : > { %15389 = vst [vmem:[#allocation9_spill] sm:$0xff] %v15388_v1  ;;  %vm11333_vm11 = vmor %vm598_vm2, %vm599_vm5  ;;  %v936_v43 = vsel %vm11325_vm10, %v624_v33, %v935_v28  ;;  %v926_v62 = vsel %vm11325_vm10, %v607_v47, %v925_v44  ;;  %v646_v2 = vrot.slane %v644_v56, 7  ;;  %v942_v3 = vld [vmem:[#allocation2 + $0x24] sm:$0xf]  ;;  %v641_v7 = vor.u32 %v639_v55, %v638_v63  ;;  %v946_v10 = vld [vmem:[#allocation2 + $0x2c] sm:$0x1] }
  0x63   : > { %v1450_v17 = vsel %vm1447_vm6, %v1448_v8, %v1449_v9  ;;  %v1233_v21 = vrot.slane %v1231_v13, 1  ;;  %v15393_v38 = vsel %vm11333_vm11, 4294967295, %v15392_v38  ;;  %937 = vst [vmem:[#allocation2 + $0x18] sm:$0xf] %v936_v43  ;;  %v633_v54 = vsel %vm11333_vm11, %v625_v34, %v632_v42  ;;  %vm11346_vm12 = vmand %vm930_vm9, %vm598_vm2  ;;  %v479_v16 = vld [vmem:[%s11314_s14 + $0x48] sm:$0xff]  ;;  %s11093_s20 = smov 12  }
  0x64   : > { %1496 = vrot.lane.b32.xlu1 %v1450_v17, %s11091_s15  ;;  %15394 = vst [vmem:[#allocation10_spill] sm:$0xff] %v15393_v38  ;;  %938 = vst.msk [vmem:[#allocation2 + $0x1c] sm:$0xf] %vm922_vm7, %v633_v54  ;;  %v616_v61 = vsel %vm11333_vm11, %v608_v48, %v615_v49  ;;  %v940_v4 = vsel %vm11346_vm12, %v634_v46, %v939_v51  ;;  %v642_v8 = vrot.slane %v638_v63, 4  ;;  %v651_v13 = vrot.slane %v646_v2, 4  ;;  %v481_v42 = vld [vmem:[%s11314_s14 + $0x58] sm:$0xff] }
  0x65   : > { %v1234_v37 = vsel %vm1222_vm4, %v1229_v26, %v1233_v21  ;;  %927 = vst [vmem:[#allocation2 + $0xc] sm:$0xf] %v926_v62  ;;  %929 = vst.msk [vmem:[#allocation2 + $0x10] sm:$0xf] %vm922_vm7, %v616_v61  ;;  %v933_v9 = vsel %vm11346_vm12, %v617_v0, %v932_v59  ;;  %v649_v12 = vor.u32 %v647_v57, %v646_v2  ;;  %v653_v14 = vshrl.u32 %v10217_v5, 16  ;;  %v482_v48 = vld [vmem:[%s11314_s14 + $0x60] sm:$0xff] }
  0x66   : > { %1415 = vrot.lane.b32.xlu0 %v1234_v37, %s11092_s16  ;;  %941 = vst [vmem:[#allocation2 + $0x20] sm:$0x1] %v940_v4  ;;  %934 = vst [vmem:[#allocation2 + $0x14] sm:$0x1] %v933_v9  ;;  %v656_v15 = vshll.u32 %v10217_v5, 16  ;;  %v943_v17 = vsel %vm11325_vm10, %v641_v7, %v942_v3  ;;  %v661_v18 = vshrl.u32 %v10218_v6, 16  ;;  %v947_v21 = vsel %vm11346_vm12, %v651_v13, %v946_v10 }
  0x67   : > { %v664_v19 = vshll.u32 %v10218_v6, 16  ;;  %v650_v20 = vsel %vm11333_vm11, %v642_v8, %v649_v12  ;;  %944 = vst [vmem:[#allocation2 + $0x24] sm:$0xf] %v943_v17  ;;  %v655_v22 = vrot.slane %v653_v14, 7  ;;  %v949_v23 = vld [vmem:[#allocation2 + $0x30] sm:$0xf]  ;;  %v11369_v28 = vpack.c.bf16 %v479_v16, %v479_v16 }
  0x68   : > { %v670_v24 = vshrl.u32 %v10219_v11, 16  ;;  %945 = vst.msk [vmem:[#allocation2 + $0x28] sm:$0xf] %vm922_vm7, %v650_v20  ;;  %948 = vst [vmem:[#allocation2 + $0x2c] sm:$0x1] %v947_v21  ;;  %v663_v25 = vrot.slane %v661_v18, 7  ;;  %v11406_v3 = vpack.c.bf16 %v481_v42, %v481_v42  ;;  %v11412_v7 = vpack.c.bf16 %v482_v48, %v482_v48 }
  0x69   : > { %v953_v26 = vld [vmem:[#allocation2 + $0x38] sm:$0x1]  ;;  %v673_v29 = vshll.u32 %v10219_v11, 16  ;;  %v658_v31 = vor.u32 %v656_v15, %v655_v22  ;;  %v659_v32 = vrot.slane %v655_v22, 4  ;;  %v480_v37 = vld [vmem:[%s11314_s14 + $0x50] sm:$0xff]  ;;  %v678_v47 = vshrl.u32 %v11369_v28, 16 }
  0x6a   : > { %v11373_v33 = vrot.slane %v670_v24, 7  ;;  %v666_v35 = vor.u32 %v664_v19, %v663_v25  ;;  %v668_v36 = vrot.slane %v663_v25, 4  ;;  %v956_v41 = vld [vmem:[#allocation2 + $0x3c] sm:$0xf]  ;;  %v681_v52 = vshll.u32 %v11369_v28, 16  ;;  %s11094_s22 = smov 24  }
  0x6b   : > { %v11371_v30 = vld [vmem:[#allocation2 + $0x18] sm:$0xff]   ;;  %v950_v40 = vsel %vm11325_vm10, %v658_v31, %v949_v23  ;;  %v10221_v62 = vpack.c.bf16 %v480_v37, %v480_v37  ;;  %v10787_v8 = vld [vmem:[%s15308_s1] sm:$0xff]   ;;  %v483_v13 = vld [vmem:[%s11314_s14 + $0x68] sm:$0xff]  ;;  %v680_v18 = vrot.slane %v678_v47, 7  ;;  %s11095_s27 = smov 20   ;;  %s11096_s21 = smov 32  }
  0x6c   : > { %v11375_v34 = vld [vmem:[#allocation2 + $0xc] sm:$0xff]   ;;  %1535 = vrot.lane.b32.xlu1 %v11371_v30, %s11093_s20  ;;  %v667_v44 = vsel %vm11333_vm11, %v659_v32, %v666_v35  ;;  %951 = vst [vmem:[#allocation2 + $0x30] sm:$0xf] %v950_v40  ;;  %v954_v45 = vsel %vm11346_vm12, %v668_v36, %v953_v26  ;;  %v675_v46 = vor.u32 %v673_v29, %v11373_v33  ;;  %v1454_v50 = vrot.slane %v11371_v30, 1  ;;  %v485_v15 = vld [vmem:[%s11314_s14 + $0x78] sm:$0xff]  ;;  %v486_v40 = vld [vmem:[%s11314_s14 + $0x80] sm:$0xff] }
  0x6d   : > { %v10772_v39 = vld [vmem:[#allocation2 + $0x20] ss:$0 sps:$4 sm:$0x11]   ;;  %1533 = vrot.lane.b32.xlu0 %v11375_v34, %s11093_s20  ;;  %v10771_v43 = vld [vmem:[#allocation2 + $0x14] ss:$0 sps:$4 sm:$0x11]   ;;  %10506 = vmatprep.subr.bf16.mxu0 %v10787_v8  ;;  %v683_v25 = vor.u32 %v681_v52, %v680_v18  ;;  %v10226_v35 = vpack.c.bf16 %v485_v15, %v485_v15 }
  0x6e   : > { %v1451_v49 = vrot.slane %v11375_v34, 1  ;;  %v1250_v51 = vshll.u32 %v11371_v30, 16  ;;  %952 = vst.msk [vmem:[#allocation2 + $0x34] sm:$0xf] %vm922_vm7, %v667_v44  ;;  %955 = vst [vmem:[#allocation2 + $0x38] sm:$0x1] %v954_v45  ;;  %v957_v2 = vsel %vm11325_vm10, %v675_v46, %v956_v41  ;;  %10712 = vmatprep.subr.bf16.mxu1 %v10787_v8  ;;  %10507 = vmatpush3.bf16.msra.mxu0 %v10787_v8 }
  0x6f   : > { %v1452_v53 = vrot.slane %v10771_v43, 1  ;;  %v1248_v54 = vshrl.u32 %v11371_v30, 16  ;;  %v1255_v55 = vshll.u32 %v10772_v39, 16  ;;  %v1238_v56 = vshll.u32 %v11375_v34, 16  ;;  %v11399_v57 = vld [vmem:[#allocation2 + $0x24] sm:$0xff]   ;;  %v484_v14 = vld [vmem:[%s11314_s14 + $0x70] sm:$0xff]  ;;  %10715 = vmatpush3.bf16.msra.mxu1 %v10787_v8 }
  0x70   : > { %v1455_v59 = vrot.slane %v10772_v39, 1  ;;  %v1252_v60 = vrot.slane %v1250_v51, 1  ;;  %v1236_v61 = vshrl.u32 %v11375_v34, 16  ;;  %v10773_v63 = vld [vmem:[#allocation2 + $0x2c] ss:$0 sps:$4 sm:$0x11]   ;;  %1654 = vrot.lane.b32.xlu1 %v11399_v57, %s11094_s22  ;;  %v10225_v34 = vpack.c.bf16 %v484_v14, %v484_v14 }
  0x71   : > { %1652 = vrot.lane.b32.xlu0 %v11371_v30, %s11094_s22  ;;  %v1240_v0 = vrot.slane %v1238_v56, 1  ;;  %v1453_v4 = vsel %vm1447_vm6, %v1451_v49, %v1452_v53  ;;  %v1262_v5 = vshll.u32 %v11399_v57, 16  ;;  %v1243_v6 = vshll.u32 %v10771_v43, 16  ;;  %958 = vst [vmem:[#allocation2 + $0x3c] sm:$0xf] %v957_v2  ;;  %v10789_v30 = vld [vmem:[%s15308_s1 + $0x8] sm:$0xff]  }
  0x72   : > { %v1253_v9 = vor.u32 %v1252_v60, %v1248_v54  ;;  %v1257_v10 = vrot.slane %v1255_v55, 1  ;;  %v1457_v11 = vrot.slane %v11399_v57, 1  ;;  %v676_v12 = vrot.slane %v11373_v33, 4  ;;  %v960_v28 = vld [vmem:[#allocation2 + $0x44] sm:$0x1]  ;;  %10508 = vmatprep.subr.bf16.mxu0 %v10789_v30  ;;  %10713 = vmatprep.subr.bf16.mxu1 %v10789_v30  ;;  %s11097_s30 = smov 16  }
  0x73   : > { %v1458_v16 = vrot.slane %v10773_v63, 1  ;;  %v1260_v17 = vshrl.u32 %v11399_v57, 16  ;;  %v687_v19 = vshrl.u32 %v10221_v62, 16  ;;  %v11425_v20 = vsel %vm1447_vm6, %v1454_v50, %v1455_v59  ;;  %v963_v32 = vld [vmem:[#allocation2 + $0x48] sm:$0xf]  ;;  %10509 = vmatpush3.bf16.msra.mxu0 %v10789_v30  ;;  %10716 = vmatpush3.bf16.msra.mxu1 %v10789_v30  ;;  %s11098_s12 = smov 28  }
  0x74   : > { %v1264_v21 = vrot.slane %v1262_v5, 1  ;;  %v1267_v22 = vshll.u32 %v10773_v63, 16  ;;  %v1241_v23 = vor.u32 %v1240_v0, %v1236_v61  ;;  %1498 = vrot.lane.b32.xlu1 %v1453_v4, %s11091_s15  ;;  %v1245_v24 = vrot.slane %v1243_v6, 1  ;;  %v967_v50 = vld [vmem:[#allocation2 + $0x50] sm:$0x1]  ;;  %s11102_s25 = smov 56  }
  0x75   : > { %1615 = vrot.lane.b32.xlu0 %v1453_v4, %s11095_s27  ;;  %v685_v26 = vrot.slane %v680_v18, 4  ;;  %v689_v29 = vrot.slane %v687_v19, 7  ;;  %v690_v31 = vshll.u32 %v10221_v62, 16  ;;  %v10224_v33 = vpack.c.bf16 %v483_v13, %v483_v13  ;;  %v970_v59 = vld [vmem:[#allocation2 + $0x54] sm:$0xf] }
  0x76   : > { %v11432_v36 = vsel %vm1222_vm4, %v1253_v9, %v1257_v10  ;;  %v11435_v37 = vsel %vm1447_vm6, %v1457_v11, %v1458_v16  ;;  %v684_v39 = vsel %vm11333_vm11, %v676_v12, %v683_v25  ;;  %v1265_v41 = vor.u32 %v1264_v21, %v1260_v17  ;;  %v974_v5 = vld [vmem:[#allocation2 + $0x5c] sm:$0x1]  ;;  %v977_v19 = vld [vmem:[#allocation2 + $0x60] sm:$0xf]  ;;  %v10973_v27 = vld [vmem:[#allocation2 + $0x30] sm:$0xff]  }
  0x77   : > { %v1269_v42 = vrot.slane %v1267_v22, 1  ;;  %959 = vst.msk [vmem:[#allocation2 + $0x40] sm:$0xf] %vm922_vm7, %v684_v39  ;;  %v961_v43 = vsel %vm11346_vm12, %v685_v26, %v960_v28  ;;  %v692_v44 = vor.u32 %v690_v31, %v689_v29  ;;  %v1246_v45 = vsel %vm1222_vm4, %v1241_v23, %v1245_v24  ;;  %v981_v22 = vld [vmem:[#allocation2 + $0x68] sm:$0x1]  ;;  %v11476_v24 = vld [vmem:[#allocation2 + $0x30] sm:$0xff]  }
  0x78   : > { %1617 = vrot.lane.b32.xlu1 %v11425_v20, %s11095_s27  ;;  %962 = vst [vmem:[#allocation2 + $0x44] sm:$0x1] %v961_v43  ;;  %v693_v46 = vrot.slane %v689_v29, 4  ;;  %v695_v47 = vshrl.u32 %v11406_v3, 16  ;;  %v698_v48 = vshll.u32 %v11406_v3, 16  ;;  %v704_v51 = vshrl.u32 %v11412_v7, 16 }
  0x79   : > { %1734 = vrot.lane.b32.xlu0 %v11425_v20, %s11096_s21  ;;  %v964_v49 = vsel %vm11325_vm10, %v692_v44, %v963_v32  ;;  %v707_v52 = vshll.u32 %v11412_v7, 16  ;;  %v11454_v53 = vpack.c.bf16 %v486_v40, %v486_v40  ;;  %v712_v55 = vshrl.u32 %v10224_v33, 16  ;;  %v487_v23 = vld [vmem:[%s11314_s14 + $0x88] sm:$0xff]  ;;  %v10775_v32 = vld [vmem:[#allocation2 + $0x38] ss:$0 sps:$4 sm:$0x11]  }
  0x7a   : > { %v697_v54 = vrot.slane %v695_v47, 7  ;;  %965 = vst [vmem:[#allocation2 + $0x48] sm:$0xf] %v964_v49  ;;  %v715_v56 = vshll.u32 %v10224_v33, 16  ;;  %v721_v60 = vshrl.u32 %v10225_v34, 16  ;;  %v11459_v61 = vsel %vm1222_vm4, %v1265_v41, %v1269_v42  ;;  %v489_v49 = vld [vmem:[%s11314_s14 + $0x98] sm:$0xff] }
  0x7b   : > { %v706_v62 = vrot.slane %v704_v51, 7  ;;  %v724_v63 = vshll.u32 %v10225_v34, 16  ;;  %v729_v0 = vshrl.u32 %v10226_v35, 16  ;;  %v714_v4 = vrot.slane %v712_v55, 7  ;;  %v984_v40 = vld [vmem:[#allocation2 + $0x6c] sm:$0xf] }
  0x7c   : > { %1582 = vrot.lane.b32.xlu1 %v11432_v36, %s11097_s30  ;;  %v700_v2 = vor.u32 %v698_v48, %v697_v54  ;;  %v702_v3 = vrot.slane %v697_v54, 4  ;;  %v723_v6 = vrot.slane %v721_v60, 7  ;;  %v732_v10 = vshll.u32 %v10226_v35, 16 }
  0x7d   : > { %1736 = vrot.lane.b32.xlu0 %v11435_v37, %s11096_s21  ;;  %v709_v7 = vor.u32 %v707_v52, %v706_v62  ;;  %v710_v8 = vrot.slane %v706_v62, 4  ;;  %v731_v9 = vrot.slane %v729_v0, 7  ;;  %v717_v13 = vor.u32 %v715_v56, %v714_v4  ;;  %v490_v0 = vld [vmem:[%s11314_s14 + $0xa0] sm:$0xff] }
  0x7e   : > { %v701_v11 = vsel %vm11333_vm11, %v693_v46, %v700_v2  ;;  %v968_v12 = vsel %vm11346_vm12, %v702_v3, %v967_v50  ;;  %v719_v14 = vrot.slane %v714_v4, 4  ;;  %v726_v16 = vor.u32 %v724_v63, %v723_v6  ;;  %v11506_v50 = vld [vmem:[#allocation2 + $0x3c] sm:$0xff]   ;;  %v10790_v63 = vld [vmem:[%s15308_s1 + $0x10] ss:$0 sps:$4 sm:$0x33]  }
  0x7f   : > { %966 = vst.msk [vmem:[#allocation2 + $0x4c] sm:$0xf] %vm922_vm7, %v701_v11  ;;  %969 = vst [vmem:[#allocation2 + $0x50] sm:$0x1] %v968_v12  ;;  %v971_v15 = vsel %vm11325_vm10, %v709_v7, %v970_v59  ;;  %v727_v17 = vrot.slane %v723_v6, 4  ;;  %v734_v18 = vor.u32 %v732_v10, %v731_v9  ;;  %v718_v21 = vsel %vm11333_vm11, %v710_v8, %v717_v13  ;;  %v10974_v58 = vld [vmem:[#allocation2 + $0x3c] sm:$0xff]  }
  0x80   : > { %1701 = vrot.lane.b32.xlu1 %v11459_v61, %s11098_s12  ;;  %972 = vst [vmem:[#allocation2 + $0x54] sm:$0xf] %v971_v15  ;;  %973 = vst.msk [vmem:[#allocation2 + $0x58] sm:$0xf] %vm922_vm7, %v718_v21  ;;  %v975_v25 = vsel %vm11346_vm12, %v719_v14, %v974_v5  ;;  %v978_v28 = vsel %vm11325_vm10, %v726_v16, %v977_v19  ;;  %v736_v29 = vrot.slane %v731_v9, 4  ;;  %v738_v31 = vshrl.u32 %v11454_v53, 16 }
  0x81   : > { %1417 = vrot.lane.b32.xlu0 %v1246_v45, %s11092_s16  ;;  %v735_v26 = vsel %vm11333_vm11, %v727_v17, %v734_v18  ;;  %976 = vst [vmem:[#allocation2 + $0x5c] sm:$0x1] %v975_v25  ;;  %979 = vst [vmem:[#allocation2 + $0x60] sm:$0xf] %v978_v28  ;;  %v10228_v30 = vpack.c.bf16 %v487_v23, %v487_v23  ;;  %v741_v34 = vshll.u32 %v11454_v53, 16  ;;  %v1274_v35 = vshll.u32 %v11476_v24, 16 }
  0x82   : > { %980 = vst.msk [vmem:[#allocation2 + $0x64] sm:$0xf] %vm922_vm7, %v735_v26  ;;  %v982_v33 = vsel %vm11346_vm12, %v736_v29, %v981_v22  ;;  %v740_v39 = vrot.slane %v738_v31, 7  ;;  %v1272_v43 = vshrl.u32 %v11476_v24, 16  ;;  %v1279_v44 = vshll.u32 %v10775_v32, 16  ;;  %v491_v5 = vld [vmem:[%s11314_s14 + $0xa8] sm:$0xff] }
  0x83   : > { %983 = vst [vmem:[#allocation2 + $0x68] sm:$0x1] %v982_v33  ;;  %v746_v42 = vshrl.u32 %v10228_v30, 16  ;;  %v1276_v46 = vrot.slane %v1274_v35, 1  ;;  %v749_v47 = vshll.u32 %v10228_v30, 16  ;;  %v1461_v53 = vrot.slane %v10775_v32, 1 }
  0x84   : > { %1419 = vrot.lane.b32.xlu1 %v11432_v36, %s11092_s16  ;;  %v743_v41 = vor.u32 %v741_v34, %v740_v39  ;;  %v744_v51 = vrot.slane %v740_v39, 4  ;;  %v11510_v54 = vld [vmem:[#allocation2 + $0x44] ss:$0 sps:$4 sm:$0x11]   ;;  %v1281_v59 = vrot.slane %v1279_v44, 1  ;;  %v10230_v62 = vpack.c.bf16 %v489_v49, %v489_v49  ;;  %v493_v14 = vld [vmem:[%s11314_s14 + $0xb8] sm:$0xff] }
  0x85   : > { %1580 = vrot.lane.b32.xlu0 %v1246_v45, %s11097_s30  ;;  %v488_v45 = vld [vmem:[%s11314_s14 + $0x90] sm:$0xff]  ;;  %v748_v52 = vrot.slane %v746_v42, 7  ;;  %v1277_v56 = vor.u32 %v1276_v46, %v1272_v43  ;;  %v1284_v2 = vshrl.u32 %v11506_v50, 16  ;;  %v1286_v3 = vshll.u32 %v11506_v50, 16  ;;  %v991_v18 = vld [vmem:[#allocation2 + $0x78] sm:$0xf] }
  0x86   : > { %v985_v48 = vsel %vm11325_vm10, %v743_v41, %v984_v40  ;;  %v10229_v55 = vpack.c.bf16 %v488_v45, %v488_v45  ;;  %v1291_v6 = vshll.u32 %v11510_v54, 16  ;;  %v763_v12 = vshrl.u32 %v10230_v62, 16  ;;  %v995_v28 = vld [vmem:[#allocation2 + $0x80] sm:$0x1]  ;;  %v998_v44 = vld [vmem:[#allocation2 + $0x84] sm:$0xf] }
  0x87   : > { %986 = vst [vmem:[#allocation2 + $0x6c] sm:$0xf] %v985_v48  ;;  %v751_v60 = vor.u32 %v749_v47, %v748_v52  ;;  %v753_v7 = vrot.slane %v748_v52, 4  ;;  %v11529_v10 = vsel %vm1222_vm4, %v1277_v56, %v1281_v59  ;;  %v10231_v13 = vpack.c.bf16 %v490_v0, %v490_v0  ;;  %v1005_v0 = vld [vmem:[#allocation2 + $0x90] sm:$0xf] }
  0x88   : > { %1421 = vrot.lane.b32.xlu1 %v11459_v61, %s11092_s16  ;;  %v755_v8 = vshrl.u32 %v10229_v55, 16  ;;  %v758_v9 = vshll.u32 %v10229_v55, 16  ;;  %v766_v17 = vshll.u32 %v10230_v62, 16  ;;  %v10232_v19 = vpack.c.bf16 %v491_v5, %v491_v5 }
  0x89   : > { %1699 = vrot.lane.b32.xlu0 %v11432_v36, %s11098_s12  ;;  %v1460_v36 = vrot.slane %v11476_v24, 1  ;;  %v752_v4 = vsel %vm11333_vm11, %v744_v51, %v751_v60  ;;  %v1288_v21 = vrot.slane %v1286_v3, 1  ;;  %v765_v22 = vrot.slane %v763_v12, 7  ;;  %v495_v60 = vld [vmem:[%s11314_s14 + $0xc8] sm:$0xff] }
  0x8a   : > { %987 = vst.msk [vmem:[#allocation2 + $0x70] sm:$0xf] %vm922_vm7, %v752_v4  ;;  %v757_v16 = vrot.slane %v755_v8, 7  ;;  %vm2090_vm13 = vcmask 1041408   ;;  %v10234_v30 = vpack.c.bf16 %v493_v14, %v493_v14  ;;  %v772_v33 = vshrl.u32 %v10231_v13, 16 }
  0x8b   : > { %v11532_v11 = vsel %vm1447_vm6, %v1460_v36, %v1461_v53  ;;  %10718 = vmatprep.subr.msk.bf16.mxu0 %vm2090_vm13, %v10790_v63  ;;  %v2092_v29 = vsel %vm2090_vm13, %v10790_v63, 0  ;;  %v768_v31 = vor.u32 %v766_v17, %v765_v22  ;;  %v770_v32 = vrot.slane %v765_v22, 4  ;;  %10719 = vmatprep.subr.msk.bf16.mxu1 %vm2090_vm13, %v10790_v63  ;;  %v1002_v53 = vld [vmem:[#allocation2 + $0x8c] sm:$0x1]  ;;  %v1009_v4 = vld [vmem:[#allocation2 + $0x98] sm:$0x1] }
  0x8c   : > { %1502 = vrot.lane.b32.xlu1 %v11435_v37, %s11091_s15  ;;  %v760_v25 = vor.u32 %v758_v9, %v757_v16  ;;  %v761_v26 = vrot.slane %v757_v16, 4  ;;  %10511 = vmatpush3.bf16.msra.mxu0 %v2092_v29  ;;  %v775_v34 = vshll.u32 %v10231_v13, 16  ;;  %v780_v35 = vshrl.u32 %v10232_v19, 16  ;;  %v11575_v17 = vld [vmem:[#allocation2 + $0x48] sm:$0xff]   ;;  %v1012_v22 = vld [vmem:[#allocation2 + $0x9c] sm:$0xf] }
  0x8d   : > { %1500 = vrot.lane.b32.xlu0 %v11425_v20, %s11091_s15  ;;  %v988_v20 = vld [vmem:[#allocation2 + $0x74] sm:$0x1]  ;;  %v783_v39 = vshll.u32 %v10232_v19, 16  ;;  %10717 = vmatpush3.bf16.msra.mxu1 %v2092_v29  ;;  %v996_v41 = vsel %vm11346_vm12, %v770_v32, %v995_v28  ;;  %v774_v42 = vrot.slane %v772_v33, 7  ;;  %v797_v46 = vshrl.u32 %v10234_v30, 16 }
  0x8e   : > { %v989_v15 = vsel %vm11346_vm12, %v753_v7, %v988_v20  ;;  %v769_v40 = vsel %vm11333_vm11, %v761_v26, %v768_v31  ;;  %997 = vst [vmem:[#allocation2 + $0x80] sm:$0x1] %v996_v41  ;;  %v782_v43 = vrot.slane %v780_v35, 7  ;;  %v1289_v47 = vor.u32 %v1288_v21, %v1284_v2  ;;  %v10779_v29 = vld [vmem:[#allocation2 + $0x50] ss:$0 sps:$4 sm:$0x11]  }
  0x8f   : > { %990 = vst [vmem:[#allocation2 + $0x74] sm:$0x1] %v989_v15  ;;  %994 = vst.msk [vmem:[#allocation2 + $0x7c] sm:$0xf] %vm922_vm7, %v769_v40  ;;  %v1293_v48 = vrot.slane %v1291_v6, 1  ;;  %v777_v49 = vor.u32 %v775_v34, %v774_v42  ;;  %v778_v51 = vrot.slane %v774_v42, 4  ;;  %v10236_v8 = vpack.c.bf16 %v495_v60, %v495_v60 }
  0x90   : > { %1539 = vrot.lane.b32.xlu1 %v11476_v24, %s11093_s20  ;;  %v785_v52 = vor.u32 %v783_v39, %v782_v43  ;;  %v787_v56 = vrot.slane %v782_v43, 4  ;;  %v799_v63 = vrot.slane %v797_v46, 7  ;;  %v800_v6 = vshll.u32 %v10234_v30, 16  ;;  %v1016_v33 = vld [vmem:[#allocation2 + $0xa4] sm:$0x1]  ;;  %v11599_v43 = vld [vmem:[#allocation2 + $0x54] sm:$0xff]  }
  0x91   : > { %1537 = vrot.lane.b32.xlu0 %v11399_v57, %s11093_s20  ;;  %v492_v57 = vld [vmem:[%s11314_s14 + $0xb0] sm:$0xff]  ;;  %v999_v55 = vsel %vm11325_vm10, %v777_v49, %v998_v44  ;;  %v1294_v2 = vsel %vm1222_vm4, %v1289_v47, %v1293_v48  ;;  %v1463_v9 = vrot.slane %v11506_v50, 1  ;;  %v1464_v13 = vrot.slane %v11510_v54, 1  ;;  %v10783_v60 = vld [vmem:[#allocation2 + $0x68] ss:$0 sps:$4 sm:$0x11]  }
  0x92   : > { %v10233_v23 = vpack.c.bf16 %v492_v57, %v492_v57  ;;  %v786_v20 = vsel %vm11333_vm11, %v778_v51, %v785_v52  ;;  %1000 = vst [vmem:[#allocation2 + $0x84] sm:$0xf] %v999_v55  ;;  %v804_v7 = vrot.slane %v799_v63, 4  ;;  %v802_v14 = vor.u32 %v800_v6, %v799_v63 }
  0x93   : > { %1001 = vst.msk [vmem:[#allocation2 + $0x88] sm:$0xf] %vm922_vm7, %v786_v20  ;;  %v814_v21 = vshrl.u32 %v10236_v8, 16  ;;  %v1298_v30 = vshll.u32 %v11575_v17, 16  ;;  %v1303_v39 = vshll.u32 %v10779_v29, 16  ;;  %v1466_v44 = vrot.slane %v11575_v17, 1 }
  0x94   : > { %1586 = vrot.lane.b32.xlu1 %v11529_v10, %s11097_s30  ;;  %v789_v45 = vshrl.u32 %v10233_v23, 16  ;;  %v792_v36 = vshll.u32 %v10233_v23, 16  ;;  %v1010_v15 = vsel %vm11346_vm12, %v804_v7, %v1009_v4  ;;  %v817_v23 = vshll.u32 %v10236_v8, 16 }
  0x95   : > { %1584 = vrot.lane.b32.xlu0 %v11459_v61, %s11097_s30  ;;  %v992_v61 = vsel %vm11325_vm10, %v760_v25, %v991_v18  ;;  %1011 = vst [vmem:[#allocation2 + $0x98] sm:$0x1] %v1010_v15  ;;  %v1465_v25 = vsel %vm1447_vm6, %v1463_v9, %v1464_v13  ;;  %v816_v28 = vrot.slane %v814_v21, 7  ;;  %v1300_v35 = vrot.slane %v1298_v30, 1 }
  0x96   : > { %993 = vst [vmem:[#allocation2 + $0x78] sm:$0xf] %v992_v61  ;;  %v791_v59 = vrot.slane %v789_v45, 7  ;;  %v1305_v42 = vrot.slane %v1303_v39, 1  ;;  %v1467_v45 = vrot.slane %v10779_v29, 1  ;;  %v1308_v47 = vshrl.u32 %v11599_v43, 16 }
  0x97   : > { %v819_v32 = vor.u32 %v817_v23, %v816_v28  ;;  %v821_v34 = vrot.slane %v816_v28, 4  ;;  %v1473_v6 = vrot.slane %v10783_v60, 1  ;;  %v10785_v7 = vld [vmem:[#allocation2 + $0x74] ss:$0 sps:$4 sm:$0x11]   ;;  %vm1766_vm14 = vcmask 31744  }
  0x98   : > { %1621 = vrot.lane.b32.xlu1 %v11532_v11, %s11095_s27  ;;  %v794_v3 = vor.u32 %v792_v36, %v791_v59  ;;  %v795_v5 = vrot.slane %v791_v59, 4  ;;  %v1468_v48 = vsel %vm1447_vm6, %v1466_v44, %v1467_v45  ;;  %v1339_v13 = vshll.u32 %v10785_v7, 16 }
  0x99   : > { %1619 = vrot.lane.b32.xlu0 %v11435_v37, %s11095_s27  ;;  %v494_v37 = vld [vmem:[%s11314_s14 + $0xc0] sm:$0xff]  ;;  %v1017_v40 = vsel %vm11346_vm12, %v821_v34, %v1016_v33  ;;  %v1476_v23 = vrot.slane %v10785_v7, 1  ;;  %vm1799_vm15 = vcmask 64512   ;;  %vm1832_vm1 = vcmask 97280  }
  0x9a   : > { %v10235_v62 = vpack.c.bf16 %v494_v37, %v494_v37  ;;  %v1006_v57 = vsel %vm11325_vm10, %v794_v3, %v1005_v0  ;;  %v803_v19 = vsel %vm11333_vm11, %v795_v5, %v802_v14  ;;  %1018 = vst [vmem:[#allocation2 + $0xa4] sm:$0x1] %v1017_v40  ;;  %v10781_v37 = vld [vmem:[#allocation2 + $0x5c] ss:$0 sps:$4 sm:$0x11]   ;;  %v1327_v0 = vshll.u32 %v10783_v60, 16 }
  0x9b   : > { %1007 = vst [vmem:[#allocation2 + $0x90] sm:$0xf] %v1006_v57  ;;  %1008 = vst.msk [vmem:[#allocation2 + $0x94] sm:$0xf] %vm922_vm7, %v803_v19  ;;  %v1315_v49 = vshll.u32 %v10781_v37, 16  ;;  %v1470_v55 = vrot.slane %v10781_v37, 1 }
  0x9c   : > { %1658 = vrot.lane.b32.xlu1 %v11506_v50, %s11094_s22  ;;  %v806_v12 = vshrl.u32 %v10235_v62, 16  ;;  %v809_v16 = vshll.u32 %v10235_v62, 16  ;;  %v11633_v3 = vld [vmem:[#allocation2 + $0x6c] sm:$0xff]   ;;  %v11669_v44 = vld [vmem:[#allocation2 + $0x84] sm:$0xff]   ;;  %vm1865_vm2 = vcmask 130048   ;;  %vm1898_vm5 = vcmask 162816  }
  0x9d   : > { %1656 = vrot.lane.b32.xlu0 %v11476_v24, %s11094_s22  ;;  %v1003_v24 = vsel %vm11346_vm12, %v787_v56, %v1002_v53  ;;  %v1317_v51 = vrot.slane %v1315_v49, 1  ;;  %v1469_v53 = vrot.slane %v11599_v43, 1  ;;  %v11622_v56 = vld [vmem:[#allocation2 + $0x60] sm:$0xff]   ;;  %v1334_v8 = vshll.u32 %v11633_v3, 16 }
  0x9e   : > { %1004 = vst [vmem:[#allocation2 + $0x8c] sm:$0x1] %v1003_v24  ;;  %v808_v18 = vrot.slane %v806_v12, 7  ;;  %v1322_v62 = vshll.u32 %v11622_v56, 16  ;;  %v1320_v20 = vshrl.u32 %v11622_v56, 16  ;;  %v1329_v24 = vrot.slane %v1327_v0, 1 }
  0x9f   : > { %v1471_v59 = vsel %vm1447_vm6, %v1469_v53, %v1470_v55  ;;  %v1472_v5 = vrot.slane %v11622_v56, 1  ;;  %v1332_v57 = vshrl.u32 %v11633_v3, 16  ;;  %v1336_v12 = vrot.slane %v1334_v8, 1 }
  0xa0   : > { %1705 = vrot.lane.b32.xlu1 %v1294_v2, %s11098_s12  ;;  %v811_v54 = vor.u32 %v809_v16, %v808_v18  ;;  %v812_v26 = vrot.slane %v808_v18, 4  ;;  %v1324_v63 = vrot.slane %v1322_v62, 1  ;;  %v1341_v18 = vrot.slane %v1339_v13, 1 }
  0xa1   : > { %1703 = vrot.lane.b32.xlu0 %v11529_v10, %s11098_s12  ;;  %v1474_v9 = vsel %vm1447_vm6, %v1472_v5, %v1473_v6  ;;  %v1337_v16 = vor.u32 %v1336_v12, %v1332_v57  ;;  %vm1931_vm9 = vcmask 195584   ;;  %vm1964_vm13 = vcmask 228352  }
  0xa2   : > { %v1013_v31 = vsel %vm11325_vm10, %v811_v54, %v1012_v22  ;;  %v820_v61 = vsel %vm11333_vm11, %v812_v26, %v819_v32  ;;  %v1475_v54 = vrot.slane %v11633_v3, 1  ;;  %v11658_v26 = vld [vmem:[#allocation2 + $0x78] sm:$0xff]   ;;  %vm1997_vm0 = vcmask 261120  }
  0xa3   : > { %1014 = vst [vmem:[#allocation2 + $0x9c] sm:$0xf] %v1013_v31  ;;  %1015 = vst.msk [vmem:[#allocation2 + $0xa0] sm:$0xf] %vm922_vm7, %v820_v61  ;;  %v1342_v22 = vsel %vm1222_vm4, %v1337_v16, %v1341_v18  ;;  %v1346_v32 = vshll.u32 %v11658_v26, 16  ;;  %vm2057_vm8 = vcmask 293888  }
  0xa4   : > { %1423 = vrot.lane.b32.xlu1 %v11529_v10, %s11092_s16  ;;  %v1296_v10 = vshrl.u32 %v11575_v17, 16  ;;  %v1477_v29 = vsel %vm1447_vm6, %v1475_v54, %v1476_v23  ;;  %v10788_v31 = vld [vmem:[#allocation2 + $0x80] ss:$0 sps:$4 sm:$0x11]  }
  0xa5   : > { %1738 = vrot.lane.b32.xlu0 %v11532_v11, %s11096_s21  ;;  %v1348_v61 = vrot.slane %v1346_v32, 1  ;;  %v1479_v37 = vrot.slane %v10788_v31, 1  ;;  %v10792_v49 = vld [vmem:[#allocation2 + $0x8c] ss:$0 sps:$4 sm:$0x11]  }
  0xa6   : > { %v1301_v41 = vor.u32 %v1300_v35, %v1296_v10  ;;  %v1344_v10 = vshrl.u32 %v11658_v26, 16  ;;  %v1351_v35 = vshll.u32 %v10788_v31, 16 }
  0xa8   : > { %1425 = vrot.lane.b32.xlu1 %v1294_v2, %s11092_s16  ;;  %v1306_v46 = vsel %vm1222_vm4, %v1301_v41, %v1305_v42  ;;  %v1349_v41 = vor.u32 %v1348_v61, %v1344_v10  ;;  %v1353_v42 = vrot.slane %v1351_v35, 1 }
  0xa9   : > { %1740 = vrot.lane.b32.xlu0 %v1465_v25, %s11096_s21 }
  0xac   : > { %1506 = vrot.lane.b32.xlu1 %v1465_v25, %s11091_s15 }
  0xad   : > { %1504 = vrot.lane.b32.xlu0 %v11532_v11, %s11091_s15  ;;  %v1310_v11 = vshll.u32 %v11599_v43, 16 }
  0xb0   : > { %1543 = vrot.lane.b32.xlu1 %v11575_v17, %s11093_s20 }
  0xb1   : > { %1541 = vrot.lane.b32.xlu0 %v11506_v50, %s11093_s20  ;;  %v1312_v50 = vrot.slane %v1310_v11, 1  ;;  %v10969_v11 = vld [vmem:[#allocation2] sm:$0xff]  }
  0xb3   : > { %v1313_v36 = vor.u32 %v1312_v50, %v1308_v47  ;;  %v1354_v50 = vsel %vm1222_vm4, %v1349_v41, %v1353_v42 }
  0xb4   : > { %1590 = vrot.lane.b32.xlu1 %v1306_v46, %s11097_s30 }
  0xb5   : > { %1588 = vrot.lane.b32.xlu0 %v1294_v2, %s11097_s30  ;;  %v1318_v52 = vsel %vm1222_vm4, %v1313_v36, %v1317_v51  ;;  %v1325_v2 = vor.u32 %v1324_v63, %v1320_v20  ;;  %v1358_v36 = vshll.u32 %v11669_v44, 16  ;;  %v1356_v20 = vshrl.u32 %v11669_v44, 16 }
  0xb7   : > { %v1330_v4 = vsel %vm1222_vm4, %v1325_v2, %v1329_v24  ;;  %v1360_v24 = vrot.slane %v1358_v36, 1 }
  0xb8   : > { %1625 = vrot.lane.b32.xlu1 %v1468_v48, %s11095_s27 }
  0xb9   : > { %1623 = vrot.lane.b32.xlu0 %v1465_v25, %s11095_s27 }
  0xbc   : > { %1662 = vrot.lane.b32.xlu1 %v11599_v43, %s11094_s22 }
  0xbd   : > { %1660 = vrot.lane.b32.xlu0 %v11575_v17, %s11094_s22 }
  0xc0   : > { %1709 = vrot.lane.b32.xlu1 %v1318_v52, %s11098_s12 }
  0xc1   : > { %1707 = vrot.lane.b32.xlu0 %v1306_v46, %s11098_s12 }
  0xc4   : > { %1427 = vrot.lane.b32.xlu1 %v1306_v46, %s11092_s16  ;;  %v1478_v46 = vrot.slane %v11658_v26, 1 }
  0xc5   : > { %1742 = vrot.lane.b32.xlu0 %v1468_v48, %s11096_s21 }
  0xc6   : > { %v1480_v62 = vsel %vm1447_vm6, %v1478_v46, %v1479_v37  ;;  %v497_v46 = vld [vmem:[%s11314_s14 + $0xd8] sm:$0xff] }
  0xc8   : > { %1429 = vrot.lane.b32.xlu1 %v1318_v52, %s11092_s16 }
  0xc9   : > { %1744 = vrot.lane.b32.xlu0 %v1471_v59, %s11096_s21 }
  0xcc   : > { %1510 = vrot.lane.b32.xlu1 %v1471_v59, %s11091_s15 }
  0xcd   : > { %1508 = vrot.lane.b32.xlu0 %v1468_v48, %s11091_s15 }
  0xd0   : > { %1547 = vrot.lane.b32.xlu1 %v11622_v56, %s11093_s20 }
  0xd1   : > { %1545 = vrot.lane.b32.xlu0 %v11599_v43, %s11093_s20 }
  0xd4   : > { %1594 = vrot.lane.b32.xlu1 %v1330_v4, %s11097_s30 }
  0xd5   : > { %1592 = vrot.lane.b32.xlu0 %v1318_v52, %s11097_s30  ;;  %v10970_v52 = vld [vmem:[#allocation2 + $0xc] sm:$0xff]  }
  0xd6   : > { %v1497_v14 = vpop.permute.xlu1 %1496 }
  0xd8   : > { %v1416_v15 = vpop.permute.xlu0 %1415  ;;  %1629 = vrot.lane.b32.xlu1 %v1474_v9, %s11095_s27 }
  0xd9   : > { %1627 = vrot.lane.b32.xlu0 %v1471_v59, %s11095_s27  ;;  %v1768_v47 = vsel %vm1766_vm14, %v10969_v11, %v1416_v15  ;;  %v10238_v11 = vpack.c.bf16 %v497_v46, %v497_v46 }
  0xda   : > { %v1801_v59 = vsel %vm1799_vm15, %v1768_v47, %v1497_v14  ;;  %v1361_v14 = vor.u32 %v1360_v24, %v1356_v20 }
  0xdc   : > { %1666 = vrot.lane.b32.xlu1 %v11633_v3, %s11094_s22 }
  0xdd   : > { %1664 = vrot.lane.b32.xlu0 %v11622_v56, %s11094_s22 }
  0xde   : > { %v1536_v19 = vpop.permute.xlu1 %1535 }
  0xdf   : > { %v1534_v21 = vpop.permute.xlu0 %1533 }
  0xe0   : > { %1713 = vrot.lane.b32.xlu1 %v1342_v22, %s11098_s12  ;;  %v1834_v63 = vsel %vm1832_vm1, %v1801_v59, %v1534_v21 }
  0xe1   : > { %1711 = vrot.lane.b32.xlu0 %v1330_v4, %s11098_s12 }
  0xe2   : > { %v1655_v28 = vpop.permute.xlu1 %1654 }
  0xe3   : > { %v11656_v25 = vpop.permute.xlu0 %1652 }
  0xe4   : > { %1431 = vrot.lane.b32.xlu1 %v1330_v4, %s11092_s16  ;;  %v1363_v4 = vshll.u32 %v10792_v49, 16 }
  0xe5   : > { %1746 = vrot.lane.b32.xlu0 %v1474_v9, %s11096_s21 }
  0xe6   : > { %v1499_v33 = vpop.permute.xlu1 %1498  ;;  %v1365_v15 = vrot.slane %v1363_v4, 1 }
  0xe7   : > { %v1616_v30 = vpop.permute.xlu0 %1615 }
  0xe8   : > { %1433 = vrot.lane.b32.xlu1 %v1342_v22, %s11092_s16  ;;  %v11708_v54 = vsel %vm1222_vm4, %v1361_v14, %v1365_v15 }
  0xe9   : > { %1748 = vrot.lane.b32.xlu0 %v1477_v29, %s11096_s21 }
  0xea   : > { %v1618_v39 = vpop.permute.xlu1 %1617 }
  0xeb   : > { %v1735_v34 = vpop.permute.xlu0 %1734 }
  0xec   : > { %1514 = vrot.lane.b32.xlu1 %v1477_v29, %s11091_s15 }
  0xed   : > { %1512 = vrot.lane.b32.xlu0 %v1474_v9, %s11091_s15 }
  0xee   : > { %v1583_v45 = vpop.permute.xlu1 %1582 }
  0xef   : > { %v1737_v40 = vpop.permute.xlu0 %1736 }
  0xf0   : > { %1551 = vrot.lane.b32.xlu1 %v11658_v26, %s11093_s20 }
  0xf1   : > { %1549 = vrot.lane.b32.xlu0 %v11633_v3, %s11093_s20 }
  0xf2   : > { %v1702_v51 = vpop.permute.xlu1 %1701 }
  0xf3   : > { %v1418_v48 = vpop.permute.xlu0 %1417 }
  0xf4   : > { %v1770_v53 = vsel %vm1766_vm14, %v10970_v52, %v1418_v48  ;;  %1598 = vrot.lane.b32.xlu1 %v1354_v50, %s11097_s30 }
  0xf5   : > { %v1803_v55 = vsel %vm1799_vm15, %v1770_v53, %v1499_v33  ;;  %1596 = vrot.lane.b32.xlu0 %v1342_v22, %s11097_s30  ;;  %v10794_v33 = vld [vmem:[#allocation2 + $0x98] ss:$0 sps:$4 sm:$0x11]   ;;  %v831_v53 = vshrl.u32 %v10238_v11, 16 }
  0xf6   : > { %v1836_v60 = vsel %vm1832_vm1, %v1803_v55, %v1536_v19  ;;  %v1420_v5 = vpop.permute.xlu1 %1419 }
  0xf7   : > { %v1869_v0 = vsel %vm1865_vm2, %v1836_v60, %v1583_v45  ;;  %v1581_v2 = vpop.permute.xlu0 %1580  ;;  %v496_v45 = vld [vmem:[%s11314_s14 + $0xd0] sm:$0xff]  ;;  %v1485_v60 = vrot.slane %v10794_v33, 1 }
  0xf8   : > { %v1867_v6 = vsel %vm1865_vm2, %v1834_v63, %v1581_v2  ;;  %v1902_v7 = vsel %vm1898_vm5, %v1869_v0, %v1618_v39  ;;  %1633 = vrot.lane.b32.xlu1 %v1480_v62, %s11095_s27  ;;  %v10237_v37 = vpack.c.bf16 %v496_v45, %v496_v45  ;;  %v833_v2 = vrot.slane %v831_v53, 7 }
  0xf9   : > { %v1900_v8 = vsel %vm1898_vm5, %v1867_v6, %v1616_v30  ;;  %1631 = vrot.lane.b32.xlu0 %v1477_v29, %s11095_s27  ;;  %v1935_v9 = vsel %vm1931_vm9, %v1902_v7, %v1655_v28  ;;  %v1482_v28 = vrot.slane %v10792_v49, 1  ;;  %v11714_v29 = vld [vmem:[#allocation2 + $0x90] sm:$0xff]   ;;  %v834_v6 = vshll.u32 %v10238_v11, 16  ;;  %v499_v11 = vld [vmem:[%s11314_s14 + $0xe8] sm:$0xff] }
  0xfa   : > { %v1933_v57 = vsel %vm1931_vm9, %v1900_v8, %v11656_v25  ;;  %v1968_v13 = vsel %vm1964_vm13, %v1935_v9, %v1702_v51  ;;  %v1422_v16 = vpop.permute.xlu1 %1421  ;;  %v1481_v25 = vrot.slane %v11669_v44, 1  ;;  %v1368_v35 = vshrl.u32 %v11714_v29, 16  ;;  %v11739_v51 = vld [vmem:[#allocation2 + $0x9c] sm:$0xff]  }
  0xfb   : > { %v1700_v12 = vpop.permute.xlu0 %1699  ;;  %v2001_v21 = vsel %vm1997_vm0, %v1968_v13, %v1737_v40  ;;  %v1375_v40 = vshll.u32 %v10794_v33, 16  ;;  %v823_v52 = vshrl.u32 %v10237_v37, 16  ;;  %v1484_v59 = vrot.slane %v11714_v29, 1  ;;  %v1023_v33 = vld [vmem:[#allocation2 + $0xb0] sm:$0x1] }
  0xfc   : > { %v1966_v18 = vsel %vm1964_vm13, %v1933_v57, %v1700_v12  ;;  %1670 = vrot.lane.b32.xlu1 %v11669_v44, %s11094_s22  ;;  %v11720_v32 = vsel %vm1447_vm6, %v1481_v25, %v1482_v28  ;;  %v826_v0 = vshll.u32 %v10237_v37, 16  ;;  %v1382_v9 = vshll.u32 %v11739_v51, 16  ;;  %v498_v37 = vld [vmem:[%s11314_s14 + $0xe0] sm:$0xff] }
  0xfd   : > { %1668 = vrot.lane.b32.xlu0 %v11658_v26, %s11094_s22  ;;  %v1999_v19 = vsel %vm1997_vm0, %v1966_v18, %v1735_v34  ;;  %v1370_v34 = vshll.u32 %v11714_v29, 16  ;;  %v1377_v48 = vrot.slane %v1375_v40, 1  ;;  %v825_v63 = vrot.slane %v823_v52, 7  ;;  %v1019_v18 = vld [vmem:[#allocation2 + $0xa8] sm:$0xf] }
  0xfe   : > { %10512 = vmatprep.mubr.msk.bf16.mxu0 %vm2057_vm8, %v1999_v19  ;;  %v1503_v23 = vpop.permute.xlu1 %1502  ;;  %v838_v25 = vrot.slane %v833_v2, 4 }
  0xff   : > { %10513 = vmatmul.mubr.msk.bf16.vlgmr.msra.gmra.mrb[0].mxu0 %vm2057_vm8, %v2001_v21  ;;  %v1501_v22 = vpop.permute.xlu0 %1500  ;;  %v1372_v39 = vrot.slane %v1370_v34, 1  ;;  %v828_v57 = vor.u32 %v826_v0, %v825_v63  ;;  %v829_v12 = vrot.slane %v825_v63, 4  ;;  %v11761_v21 = vsel %vm1447_vm6, %v1484_v59, %v1485_v60 }
 0x100   : > { %1717 = vrot.lane.b32.xlu1 %v11708_v54, %s11098_s12  ;;  %v1024_v40 = vsel %vm11346_vm12, %v838_v25, %v1023_v33 }
 0x101   : > { %1715 = vrot.lane.b32.xlu0 %v1354_v50, %s11098_s12  ;;  %v1373_v47 = vor.u32 %v1372_v39, %v1368_v35  ;;  %v1384_v39 = vrot.slane %v1382_v9, 1  ;;  %1025 = vst [vmem:[#allocation2 + $0xb0] sm:$0x1] %v1024_v40 }
 0x102   : > { %v11716_v31 = vpop.permute.xlu1 %1539 }
 0x103   : > { %v1538_v30 = vpop.permute.xlu0 %1537  ;;  %v11749_v4 = vsel %vm1222_vm4, %v1373_v47, %v1377_v48  ;;  %v10239_v47 = vpack.c.bf16 %v498_v37, %v498_v37  ;;  %v10240_v48 = vpack.c.bf16 %v499_v11, %v499_v11 }
 0x104   : > { %1435 = vrot.lane.b32.xlu1 %v1354_v50, %s11092_s16  ;;  %v10971_v50 = vld [vmem:[#allocation2 + $0x18] sm:$0xff]  }
 0x105   : > { %1750 = vrot.lane.b32.xlu0 %v1480_v62, %s11096_s21  ;;  %v1772_v49 = vsel %vm1766_vm14, %v10971_v50, %v1420_v5  ;;  %v11751_v5 = vld [vmem:[#allocation2 + $0xa4] ss:$0 sps:$4 sm:$0x11]   ;;  %v840_v53 = vshrl.u32 %v10239_v47, 16  ;;  %v851_v63 = vshll.u32 %v10240_v48, 16 }
 0x106   : > { %v11724_v61 = vpop.permute.xlu1 %1586  ;;  %v1805_v24 = vsel %vm1799_vm15, %v1772_v49, %v1501_v22  ;;  %v1020_v22 = vsel %vm11325_vm10, %v828_v57, %v1019_v18  ;;  %v501_v57 = vld [vmem:[%s11314_s14 + $0xf8] sm:$0xff] }
 0x107   : > { %v1585_v10 = vpop.permute.xlu0 %1584  ;;  %v1838_v7 = vsel %vm1832_vm1, %v1805_v24, %v1538_v30  ;;  %v1387_v30 = vshll.u32 %v11751_v5, 16  ;;  %1021 = vst [vmem:[#allocation2 + $0xa8] sm:$0xf] %v1020_v22 }
 0x108   : > { %1437 = vrot.lane.b32.xlu1 %v11708_v54, %s11092_s16  ;;  %v1871_v14 = vsel %vm1865_vm2, %v1838_v7, %v1585_v10  ;;  %v1026_v7 = vld [vmem:[#allocation2 + $0xb4] sm:$0xf] }
 0x109   : > { %1752 = vrot.lane.b32.xlu0 %v11720_v32, %s11096_s21  ;;  %v1389_v50 = vrot.slane %v1387_v30, 1 }
 0x10a   : > { %v11731_v42 = vpop.permute.xlu1 %1621 }
 0x10b   : > { %v1620_v41 = vpop.permute.xlu0 %1619 }
 0x10c   : > { %1518 = vrot.lane.b32.xlu1 %v11720_v32, %s11091_s15  ;;  %v1904_v19 = vsel %vm1898_vm5, %v1871_v14, %v1620_v41  ;;  %v1030_v14 = vld [vmem:[#allocation2 + $0xbc] sm:$0x1] }
 0x10d   : > { %1516 = vrot.lane.b32.xlu0 %v1480_v62, %s11091_s15  ;;  %v10972_v62 = vld [vmem:[#allocation2 + $0x24] sm:$0xff]  }
 0x10e   : > { %v1659_v55 = vpop.permute.xlu1 %1658  ;;  %v1774_v20 = vsel %vm1766_vm14, %v10972_v62, %v1422_v16  ;;  %v836_v16 = vor.u32 %v834_v6, %v833_v2 }
 0x10f   : > { %v1657_v36 = vpop.permute.xlu0 %1656  ;;  %v1807_v13 = vsel %vm1799_vm15, %v1774_v20, %v1503_v23  ;;  %v1380_v23 = vshrl.u32 %v11739_v51, 16  ;;  %v500_v20 = vld [vmem:[%s11314_s14 + $0xf0] sm:$0xff]  ;;  %s11099_s14 = smov 48  }
 0x110   : > { %1555 = vrot.lane.b32.xlu1 %v11714_v29, %s11093_s20  ;;  %v1937_v28 = vsel %vm1931_vm9, %v1904_v19, %v1657_v36  ;;  %v1840_v34 = vsel %vm1832_vm1, %v1807_v13, %v11716_v31  ;;  %v10242_v19 = vpack.c.bf16 %v501_v57, %v501_v57 }
 0x111   : > { %1553 = vrot.lane.b32.xlu0 %v11669_v44, %s11093_s20  ;;  %v1873_v41 = vsel %vm1865_vm2, %v1840_v34, %v11724_v61  ;;  %v1385_v52 = vor.u32 %v1384_v39, %v1380_v23  ;;  %v1033_v39 = vld [vmem:[#allocation2 + $0xc0] sm:$0xf] }
 0x112   : > { %v1706_v15 = vpop.permute.xlu1 %1705  ;;  %v1906_v31 = vsel %vm1898_vm5, %v1873_v41, %v11731_v42  ;;  %v848_v42 = vshrl.u32 %v10240_v48, 16  ;;  %v865_v34 = vshrl.u32 %v10242_v19, 16  ;;  %v10798_v41 = vld [vmem:[#allocation2 + $0xb0] ss:$0 sps:$4 sm:$0x11]  }
 0x113   : > { %v1704_v8 = vpop.permute.xlu0 %1703  ;;  %v1939_v61 = vsel %vm1931_vm9, %v1906_v31, %v1659_v55  ;;  %v843_v55 = vshll.u32 %v10239_v47, 16  ;;  %v11806_v2 = vsel %vm1222_vm4, %v1385_v52, %v1389_v50  ;;  %v1037_v48 = vld [vmem:[#allocation2 + $0xc8] sm:$0x1] }
 0x114   : > { %1602 = vrot.lane.b32.xlu1 %v11749_v4, %s11097_s30  ;;  %v1970_v10 = vsel %vm1964_vm13, %v1937_v28, %v1704_v8  ;;  %v1972_v49 = vsel %vm1964_vm13, %v1939_v61, %v1706_v15  ;;  %v850_v62 = vrot.slane %v848_v42, 7  ;;  %v10241_v8 = vpack.c.bf16 %v500_v20, %v500_v20 }
 0x115   : > { %1600 = vrot.lane.b32.xlu0 %v11708_v54, %s11097_s30  ;;  %v837_v54 = vsel %vm11333_vm11, %v829_v12, %v836_v16  ;;  %v1487_v12 = vrot.slane %v11739_v51, 1  ;;  %v1488_v15 = vrot.slane %v11751_v5, 1  ;;  %v867_v31 = vrot.slane %v865_v34, 7 }
 0x116   : > { %1022 = vst.msk [vmem:[#allocation2 + $0xac] sm:$0xf] %vm922_vm7, %v837_v54  ;;  %v11780_v45 = vpop.permute.xlu1 %1423  ;;  %v853_v13 = vor.u32 %v851_v63, %v850_v62  ;;  %v855_v18 = vrot.slane %v850_v62, 4  ;;  %v857_v23 = vshrl.u32 %v10241_v8, 16  ;;  %v860_v5 = vshll.u32 %v10241_v8, 16 }
 0x117   : > { %v1739_v35 = vpop.permute.xlu0 %1738  ;;  %v1491_v8 = vrot.slane %v10798_v41, 1 }
 0x118   : > { %v2003_v46 = vsel %vm1997_vm0, %v1970_v10, %v1739_v35  ;;  %1637 = vrot.lane.b32.xlu1 %v11761_v21, %s11095_s27  ;;  %v1031_v54 = vsel %vm11346_vm12, %v855_v18, %v1030_v14  ;;  %v859_v33 = vrot.slane %v857_v23, 7  ;;  %v868_v10 = vshll.u32 %v10242_v19, 16 }
 0x119   : > { %10516 = vmatprep.mubr.msk.bf16.mxu0 %vm2057_vm8, %v2003_v46  ;;  %1635 = vrot.lane.b32.xlu0 %v11720_v32, %s11095_s27  ;;  %v842_v32 = vrot.slane %v840_v53, 7  ;;  %1032 = vst [vmem:[#allocation2 + $0xbc] sm:$0x1] %v1031_v54  ;;  %v11829_v35 = vsel %vm1447_vm6, %v1487_v12, %v1488_v15  ;;  %v1399_v53 = vshll.u32 %v10798_v41, 16 }
 0x11a   : > { %v11794_v59 = vpop.permute.xlu1 %1425  ;;  %v862_v37 = vor.u32 %v860_v5, %v859_v33  ;;  %v863_v11 = vrot.slane %v859_v33, 4  ;;  %v870_v61 = vor.u32 %v868_v10, %v867_v31 }
 0x11b   : > { %v1741_v36 = vpop.permute.xlu0 %1740  ;;  %v845_v24 = vor.u32 %v843_v55, %v842_v32  ;;  %v846_v6 = vrot.slane %v842_v32, 4  ;;  %v1776_v55 = vsel %vm1766_vm14, %v10973_v27, %v11780_v45  ;;  %v1401_v63 = vrot.slane %v1399_v53, 1 }
 0x11c   : > { %v2005_v60 = vsel %vm1997_vm0, %v1972_v49, %v1741_v36  ;;  %1674 = vrot.lane.b32.xlu1 %v11739_v51, %s11094_s22  ;;  %v1034_v50 = vsel %vm11325_vm10, %v862_v37, %v1033_v39  ;;  %v872_v49 = vrot.slane %v867_v31, 4  ;;  %v871_v42 = vsel %vm11333_vm11, %v863_v11, %v870_v61 }
 0x11d   : > { %10517 = vmatmul.mubr.msk.bf16.gmra.mrb[4].mxu0 %vm2057_vm8, %v2005_v60  ;;  %1672 = vrot.lane.b32.xlu0 %v11714_v29, %s11094_s22  ;;  %v1027_v16 = vsel %vm11325_vm10, %v845_v24, %v1026_v7  ;;  %v11819_v25 = vld [vmem:[#allocation2 + $0xa8] sm:$0xff]   ;;  %v854_v28 = vsel %vm11333_vm11, %v846_v6, %v853_v13  ;;  %1035 = vst [vmem:[#allocation2 + $0xc0] sm:$0xf] %v1034_v50  ;;  %1036 = vst.msk [vmem:[#allocation2 + $0xc4] sm:$0xf] %vm922_vm7, %v871_v42  ;;  %vm15402_vm10 = vcmask 60416  }
 0x11e   : > { %v11808_v9 = vpop.permute.xlu1 %1506  ;;  %1028 = vst [vmem:[#allocation2 + $0xb4] sm:$0xf] %v1027_v16  ;;  %1029 = vst.msk [vmem:[#allocation2 + $0xb8] sm:$0xf] %vm922_vm7, %v854_v28  ;;  %v1394_v46 = vshll.u32 %v11819_v25, 16  ;;  %v1038_v60 = vsel %vm11346_vm12, %v872_v49, %v1037_v48  ;;  %v1778_v6 = vsel %vm1766_vm14, %v10974_v58, %v11794_v59  ;;  %v1490_v45 = vrot.slane %v11819_v25, 1 }
 0x11f   : > { %v11803_v0 = vpop.permute.xlu0 %1504  ;;  %1039 = vst [vmem:[#allocation2 + $0xc8] sm:$0x1] %v1038_v60  ;;  %v1811_v12 = vsel %vm1799_vm15, %v1778_v6, %v11808_v9  ;;  %v11908_v58 = vld [vmem:[#allocation2 + $0xcc] sm:$0xff]   ;;  %vm15401_vm7 = vsmask.f32 7938 }
 0x120   : > { %1721 = vrot.lane.b32.xlu1 %v11806_v2, %s11098_s12  ;;  %v1396_v52 = vrot.slane %v1394_v46, 1  ;;  %v10800_v57 = vld [vmem:[#allocation2 + $0xbc] ss:$0 sps:$4 sm:$0x11]   ;;  %v1492_v9 = vsel %vm1447_vm6, %v1490_v45, %v1491_v8  ;;  %vm12065_vm12 = vmand %vm15402_vm10, %vm15401_vm7 }
 0x121   : > { %1719 = vrot.lane.b32.xlu0 %v11749_v4, %s11098_s12  ;;  %v1411_v33 = vshll.u32 %v10800_v57, 16  ;;  %v1494_v50 = vrot.slane %v10800_v57, 1 }
 0x122   : > { %v1544_v30 = vpop.permute.xlu1 %1543 }
 0x123   : > { %v1542_v22 = vpop.permute.xlu0 %1541  ;;  %v1844_v19 = vsel %vm1832_vm1, %v1811_v12, %v1544_v30  ;;  %v1413_v37 = vrot.slane %v1411_v33, 1 }
 0x124   : > { %1439 = vrot.lane.b32.xlu1 %v11749_v4, %s11092_s16  ;;  %v1392_v4 = vshrl.u32 %v11819_v25, 16 }
 0x125   : > { %1754 = vrot.lane.b32.xlu0 %v11761_v21, %s11096_s21  ;;  %v11852_v24 = vld [vmem:[#allocation2 + $0xb4] sm:$0xff]  }
 0x126   : > { %v1591_v47 = vpop.permute.xlu1 %1590  ;;  %v1397_v20 = vor.u32 %v1396_v52, %v1392_v4  ;;  %v1406_v15 = vshll.u32 %v11852_v24, 16  ;;  %v1404_v54 = vshrl.u32 %v11852_v24, 16  ;;  %v1493_v61 = vrot.slane %v11852_v24, 1  ;;  %v11897_v4 = vld [vmem:[#allocation2 + $0xc0] sm:$0xff]  }
 0x127   : > { %v1589_v40 = vpop.permute.xlu0 %1588  ;;  %v1877_v34 = vsel %vm1865_vm2, %v1844_v19, %v1591_v47  ;;  %v10802_v42 = vld [vmem:[#allocation2 + $0xc8] ss:$0 sps:$4 sm:$0x11]   ;;  %v1571_v60 = vshll.u32 %v11897_v4, 16 }
 0x128   : > { %1441 = vrot.lane.b32.xlu1 %v11806_v2, %s11092_s16  ;;  %v1402_v14 = vsel %vm1222_vm4, %v1397_v20, %v1401_v63  ;;  %v1408_v5 = vrot.slane %v1406_v15, 1  ;;  %v1495_v52 = vsel %vm1447_vm6, %v1493_v61, %v1494_v50  ;;  %v1576_v20 = vshll.u32 %v10802_v42, 16  ;;  %v10806_v61 = vld [vmem:[#allocation2 + $0x8] ss:$0 sps:$4 sm:$0x11]  }
 0x129   : > { %1756 = vrot.lane.b32.xlu0 %v11829_v35, %s11096_s21 }
 0x12a   : > { %v1626_v32 = vpop.permute.xlu1 %1625  ;;  %v1409_v46 = vor.u32 %v1408_v5, %v1404_v54  ;;  %v1578_v45 = vrot.slane %v1576_v20, 1 }
 0x12b   : > { %v1624_v36 = vpop.permute.xlu0 %1623  ;;  %v1910_v30 = vsel %vm1898_vm5, %v1877_v34, %v1626_v32 }
 0x12c   : > { %1522 = vrot.lane.b32.xlu1 %v11829_v35, %s11091_s15  ;;  %v1414_v47 = vsel %vm1222_vm4, %v1409_v46, %v1413_v37 }
 0x12d   : > { %1520 = vrot.lane.b32.xlu0 %v11761_v21, %s11091_s15  ;;  %v1809_v21 = vsel %vm1799_vm15, %v1776_v55, %v11803_v0  ;;  %v1569_v55 = vshrl.u32 %v11897_v4, 16 }
 0x12e   : > { %v1663_v7 = vpop.permute.xlu1 %1662  ;;  %v1842_v13 = vsel %vm1832_vm1, %v1809_v21, %v1542_v22 }
 0x12f   : > { %v1661_v62 = vpop.permute.xlu0 %1660  ;;  %v1875_v16 = vsel %vm1865_vm2, %v1842_v13, %v1589_v40  ;;  %v1943_v39 = vsel %vm1931_vm9, %v1910_v30, %v1663_v7  ;;  %v10804_v13 = vld [vmem:[#allocation2 + $0xd4] ss:$0 sps:$4 sm:$0x11]  }
 0x130   : > { %1559 = vrot.lane.b32.xlu1 %v11819_v25, %s11093_s20  ;;  %v1908_v18 = vsel %vm1898_vm5, %v1875_v16, %v1624_v36  ;;  %v1612_v16 = vrot.slane %v11897_v4, 1  ;;  %v1695_v54 = vshll.u32 %v10804_v13, 16 }
 0x131   : > { %1557 = vrot.lane.b32.xlu0 %v11739_v51, %s11093_s20  ;;  %v1941_v28 = vsel %vm1931_vm9, %v1908_v18, %v1661_v62  ;;  %v1573_v62 = vrot.slane %v1571_v60, 1 }
 0x132   : > { %v1710_v0 = vpop.permute.xlu1 %1709  ;;  %v1697_v37 = vrot.slane %v1695_v54, 1 }
 0x133   : > { %v1708_v59 = vpop.permute.xlu0 %1707  ;;  %v1976_v40 = vsel %vm1964_vm13, %v1943_v39, %v1710_v0  ;;  %v1574_v21 = vor.u32 %v1573_v62, %v1569_v55  ;;  %v1613_v0 = vrot.slane %v10802_v42, 1 }
 0x134   : > { %1606 = vrot.lane.b32.xlu1 %v1402_v14, %s11097_s30  ;;  %v1974_v22 = vsel %vm1964_vm13, %v1941_v28, %v1708_v59  ;;  %v1690_v59 = vshll.u32 %v11908_v58, 16 }
 0x135   : > { %1604 = vrot.lane.b32.xlu0 %v11806_v2, %s11097_s30  ;;  %v1579_v15 = vsel %vm1222_vm4, %v1574_v21, %v1578_v45 }
 0x136   : > { %v1428_v10 = vpop.permute.xlu1 %1427 }
 0x137   : > { %v1743_v23 = vpop.permute.xlu0 %1742  ;;  %v1780_v6 = vsel %vm1766_vm14, %v11575_v17, %v1428_v10  ;;  %v1614_v10 = vsel %vm1447_vm6, %v1612_v16, %v1613_v0 }
 0x138   : > { %v2007_v2 = vsel %vm1997_vm0, %v1974_v22, %v1743_v23  ;;  %1641 = vrot.lane.b32.xlu1 %v1492_v9, %s11095_s27  ;;  %v1688_v22 = vshrl.u32 %v11908_v58, 16  ;;  %v1692_v23 = vrot.slane %v1690_v59, 1 }
 0x139   : > { %10520 = vmatprep.mubr.msk.bf16.mxu0 %vm2057_vm8, %v2007_v2  ;;  %1639 = vrot.lane.b32.xlu0 %v11829_v35, %s11095_s27 }
 0x13a   : > { %v1430_v11 = vpop.permute.xlu1 %1429  ;;  %v1693_v46 = vor.u32 %v1692_v23, %v1688_v22 }
 0x13b   : > { %v1745_v41 = vpop.permute.xlu0 %1744  ;;  %v1782_v57 = vsel %vm1766_vm14, %v11599_v43, %v1430_v11 }
 0x13c   : > { %v2009_v31 = vsel %vm1997_vm0, %v1976_v40, %v1745_v41  ;;  %1678 = vrot.lane.b32.xlu1 %v11852_v24, %s11094_s22 }
 0x13d   : > { %10521 = vmatmul.mubr.msk.bf16.gmra.mrb[8].mxu0 %vm2057_vm8, %v2009_v31  ;;  %1676 = vrot.lane.b32.xlu0 %v11819_v25, %s11094_s22 }
 0x13e   : > { %v1511_v48 = vpop.permute.xlu1 %1510 }
 0x13f   : > { %v1509_v35 = vpop.permute.xlu0 %1508  ;;  %v1815_v43 = vsel %vm1799_vm15, %v1782_v57, %v1511_v48 }
 0x140   : > { %1725 = vrot.lane.b32.xlu1 %v1414_v47, %s11098_s12  ;;  %v1813_v12 = vsel %vm1799_vm15, %v1780_v6, %v1509_v35  ;;  %v10805_v35 = vld [vmem:[#allocation2] sm:$0xff]  }
 0x141   : > { %1723 = vrot.lane.b32.xlu0 %v1402_v14, %s11098_s12  ;;  %v3004_v50 = vshll.u32 %v10805_v35, 16  ;;  %v3002_v42 = vshrl.u32 %v10805_v35, 16  ;;  %v3225_v6 = vrot.slane %v10805_v35, 1 }
 0x142   : > { %v1548_v36 = vpop.permute.xlu1 %1547 }
 0x143   : > { %v1546_v49 = vpop.permute.xlu0 %1545  ;;  %v1848_v5 = vsel %vm1832_vm1, %v1815_v43, %v1548_v36  ;;  %v1731_v36 = vrot.slane %v11908_v58, 1  ;;  %v3006_v60 = vrot.slane %v3004_v50, 1 }
 0x144   : > { %1443 = vrot.lane.b32.xlu1 %v1402_v14, %s11092_s16  ;;  %v1846_v17 = vsel %vm1832_vm1, %v1813_v12, %v1546_v49  ;;  %v1698_v49 = vsel %vm1222_vm4, %v1693_v46, %v1697_v37 }
 0x145   : > { %1758 = vrot.lane.b32.xlu0 %v1492_v9, %s11096_s21 }
 0x146   : > { %v1595_v32 = vpop.permute.xlu1 %1594 }
 0x147   : > { %v1593_v53 = vpop.permute.xlu0 %1592  ;;  %v1881_v2 = vsel %vm1865_vm2, %v1848_v5, %v1595_v32  ;;  %v3009_v32 = vshll.u32 %v10806_v61, 16 }
 0x148   : > { %1445 = vrot.lane.b32.xlu1 %v1414_v47, %s11092_s16  ;;  %v1879_v18 = vsel %vm1865_vm2, %v1846_v17, %v1593_v53  ;;  %v1732_v53 = vrot.slane %v10804_v13, 1  ;;  %s11100_s16 = smov 64  }
 0x149   : > { %1760 = vrot.lane.b32.xlu0 %v1495_v52, %s11096_s21  ;;  %v3011_v55 = vrot.slane %v3009_v32, 1 }
 0x14a   : > { %v1630_v63 = vpop.permute.xlu1 %1629  ;;  %v1733_v20 = vsel %vm1447_vm6, %v1731_v36, %v1732_v53 }
 0x14b   : > { %v1628_v27 = vpop.permute.xlu0 %1627  ;;  %v1914_v40 = vsel %vm1898_vm5, %v1881_v2, %v1630_v63 }
 0x14c   : > { %1526 = vrot.lane.b32.xlu1 %v1495_v52, %s11091_s15  ;;  %v1912_v28 = vsel %vm1898_vm5, %v1879_v18, %v1628_v27 }
 0x14d   : > { %1524 = vrot.lane.b32.xlu0 %v1492_v9, %s11091_s15 }
 0x14e   : > { %v1667_v8 = vpop.permute.xlu1 %1666 }
 0x14f   : > { %v1665_v7 = vpop.permute.xlu0 %1664  ;;  %v1947_v41 = vsel %vm1931_vm9, %v1914_v40, %v1667_v8 }
 0x150   : > { %1563 = vrot.lane.b32.xlu1 %v11897_v4, %s11093_s20  ;;  %v1945_v9 = vsel %vm1931_vm9, %v1912_v28, %v1665_v7  ;;  %v3226_v7 = vrot.slane %v10806_v61, 1 }
 0x151   : > { %1561 = vrot.lane.b32.xlu0 %v11852_v24, %s11093_s20  ;;  %s11101_s20 = smov 40  }
 0x152   : > { %v1714_v19 = vpop.permute.xlu1 %1713  ;;  %v3227_v8 = vsel %vm1447_vm6, %v3225_v6, %v3226_v7 }
 0x153   : > { %v1712_v14 = vpop.permute.xlu0 %1711  ;;  %v1980_v11 = vsel %vm1964_vm13, %v1947_v41, %v1714_v19 }
 0x154   : > { %1610 = vrot.lane.b32.xlu1 %v1579_v15, %s11097_s30  ;;  %v1978_v33 = vsel %vm1964_vm13, %v1945_v9, %v1712_v14 }
 0x155   : > { %1608 = vrot.lane.b32.xlu0 %v1414_v47, %s11097_s30 }
 0x156   : > { %v1432_v30 = vpop.permute.xlu1 %1431 }
 0x157   : > { %v1747_v34 = vpop.permute.xlu0 %1746  ;;  %v1784_v13 = vsel %vm1766_vm14, %v11622_v56, %v1432_v30 }
 0x158   : > { %v2011_v39 = vsel %vm1997_vm0, %v1978_v33, %v1747_v34  ;;  %1645 = vrot.lane.b32.xlu1 %v1614_v10, %s11095_s27 }
 0x159   : > { %10524 = vmatprep.mubr.msk.bf16.mxu0 %vm2057_vm8, %v2011_v39  ;;  %1643 = vrot.lane.b32.xlu0 %v1495_v52, %s11095_s27 }
 0x15a   : > { %v1434_v47 = vpop.permute.xlu1 %1433 }
 0x15b   : > { %v1749_v31 = vpop.permute.xlu0 %1748  ;;  %v1786_v14 = vsel %vm1766_vm14, %v11633_v3, %v1434_v47 }
 0x15c   : > { %v2013_v48 = vsel %vm1997_vm0, %v1980_v11, %v1749_v31  ;;  %1682 = vrot.lane.b32.xlu1 %v11908_v58, %s11094_s22 }
 0x15d   : > { %10525 = vmatmul.mubr.msk.bf16.gmra.mrb[12].mxu0 %vm2057_vm8, %v2013_v48  ;;  %1680 = vrot.lane.b32.xlu0 %v11897_v4, %s11094_s22  ;;  %v3007_v4 = vor.u32 %v3006_v60, %v3002_v42 }
 0x15e   : > { %v1515_v27 = vpop.permute.xlu1 %1514 }
 0x15f   : > { %v1513_v52 = vpop.permute.xlu0 %1512  ;;  %v3012_v58 = vsel %vm1222_vm4, %v3007_v4, %v3011_v55  ;;  %v1819_v43 = vsel %vm1799_vm15, %v1786_v14, %v1515_v27 }
 0x160   : > { %1729 = vrot.lane.b32.xlu1 %v1698_v49, %s11098_s12 }
 0x161   : > { %1727 = vrot.lane.b32.xlu0 %v1579_v15, %s11098_s12  ;;  %v1817_v15 = vsel %vm1799_vm15, %v1784_v13, %v1513_v52 }
 0x162   : > { %v1552_v63 = vpop.permute.xlu1 %1551 }
 0x163   : > { %v1550_v62 = vpop.permute.xlu0 %1549  ;;  %v1852_v56 = vsel %vm1832_vm1, %v1819_v43, %v1552_v63 }
 0x164   : > { %1764 = vrot.lane.b32.xlu1 %v1733_v20, %s11096_s21  ;;  %v1850_v16 = vsel %vm1832_vm1, %v1817_v15, %v1550_v62 }
 0x165   : > { %1762 = vrot.lane.b32.xlu0 %v1614_v10, %s11096_s21 }
 0x166   : > { %v1599_v45 = vpop.permute.xlu1 %1598 }
 0x167   : > { %v1597_v21 = vpop.permute.xlu0 %1596  ;;  %v1885_v3 = vsel %vm1865_vm2, %v1852_v56, %v1599_v45 }
 0x168   : > { %v1883_v18 = vsel %vm1865_vm2, %v1850_v16, %v1597_v21 }
 0x169   : > { %3193 = vrot.lane.b32.xlu0 %v3012_v58, %s11091_s15 }
 0x16a   : > { %v1634_v12 = vpop.permute.xlu1 %1633 }
 0x16b   : > { %v1632_v57 = vpop.permute.xlu0 %1631  ;;  %v1918_v33 = vsel %vm1898_vm5, %v1885_v3, %v1634_v12 }
 0x16c   : > { %v1916_v28 = vsel %vm1898_vm5, %v1883_v18, %v1632_v57 }
 0x16d   : > { %3273 = vrot.lane.b32.xlu0 %v3227_v8, %s11097_s30 }
 0x16e   : > { %v1671_v17 = vpop.permute.xlu1 %1670 }
 0x16f   : > { %v1669_v59 = vpop.permute.xlu0 %1668  ;;  %v1951_v34 = vsel %vm1931_vm9, %v1918_v33, %v1671_v17 }
 0x170   : > { %v1949_v9 = vsel %vm1931_vm9, %v1916_v28, %v1669_v59 }
 0x172   : > { %v1718_v19 = vpop.permute.xlu1 %1717 }
 0x173   : > { %v1716_v0 = vpop.permute.xlu0 %1715  ;;  %v1984_v10 = vsel %vm1964_vm13, %v1951_v34, %v1718_v19 }
 0x174   : > { %v1982_v22 = vsel %vm1964_vm13, %v1949_v9, %v1716_v0 }
 0x176   : > { %v1436_v5 = vpop.permute.xlu1 %1435 }
 0x177   : > { %v1751_v23 = vpop.permute.xlu0 %1750  ;;  %v1788_v46 = vsel %vm1766_vm14, %v11658_v26, %v1436_v5 }
 0x178   : > { %v2015_v54 = vsel %vm1997_vm0, %v1982_v22, %v1751_v23 }
 0x179   : > { %10528 = vmatprep.mubr.msk.bf16.mxu1 %vm2057_vm8, %v2015_v54 }
 0x17a   : > { %v1438_v39 = vpop.permute.xlu1 %1437 }
 0x17b   : > { %v1753_v2 = vpop.permute.xlu0 %1752  ;;  %v1790_v35 = vsel %vm1766_vm14, %v11669_v44, %v1438_v39 }
 0x17c   : > { %v2017_v30 = vsel %vm1997_vm0, %v1984_v10, %v1753_v2 }
 0x17d   : > { %10529 = vmatmul.mubr.msk.bf16.vlgmr.msra.gmra.mrb[0].mxu1 %vm2057_vm8, %v2017_v30 }
 0x17e   : > { %v1519_v41 = vpop.permute.xlu1 %1518 }
 0x17f   : > { %v1517_v40 = vpop.permute.xlu0 %1516  ;;  %v1823_v50 = vsel %vm1799_vm15, %v1790_v35, %v1519_v41 }
 0x180   : > { %v1821_v31 = vsel %vm1799_vm15, %v1788_v46, %v1517_v40 }
 0x182   : > { %v1556_v11 = vpop.permute.xlu1 %1555 }
 0x183   : > { %v1554_v37 = vpop.permute.xlu0 %1553  ;;  %v1856_v53 = vsel %vm1832_vm1, %v1823_v50, %v1556_v11 }
 0x184   : > { %v1854_v61 = vsel %vm1832_vm1, %v1821_v31, %v1554_v37 }
 0x186   : > { %v1603_v48 = vpop.permute.xlu1 %1602 }
 0x187   : > { %v1601_v47 = vpop.permute.xlu0 %1600  ;;  %v1889_v60 = vsel %vm1865_vm2, %v1856_v53, %v1603_v48 }
 0x188   : > { %v1887_v36 = vsel %vm1865_vm2, %v1854_v61, %v1601_v47 }
 0x18a   : > { %v1638_v52 = vpop.permute.xlu1 %1637 }
 0x18b   : > { %v1636_v49 = vpop.permute.xlu0 %1635  ;;  %v1922_v27 = vsel %vm1898_vm5, %v1889_v60, %v1638_v52 }
 0x18c   : > { %v1920_v26 = vsel %vm1898_vm5, %v1887_v36, %v1636_v49 }
 0x18e   : > { %v1675_v32 = vpop.permute.xlu1 %1674 }
 0x18f   : > { %v1673_v42 = vpop.permute.xlu0 %1672  ;;  %v1955_v20 = vsel %vm1931_vm9, %v1922_v27, %v1675_v32  ;;  %v12032_v27 = vld [vmem:[%s15309_s2] ss:$0 sm:$0xff] }
 0x190   : > { %v1953_v44 = vsel %vm1931_vm9, %v1920_v26, %v1673_v42 }
 0x192   : > { %v1722_v55 = vpop.permute.xlu1 %1721 }
 0x193   : > { %v1720_v4 = vpop.permute.xlu0 %1719  ;;  %v1988_v7 = vsel %vm1964_vm13, %v1955_v20, %v1722_v55 }
 0x194   : > { %v1986_v62 = vsel %vm1964_vm13, %v1953_v44, %v1720_v4 }
 0x196   : > { %v1440_v6 = vpop.permute.xlu1 %1439 }
 0x197   : > { %v1755_v63 = vpop.permute.xlu0 %1754  ;;  %v1792_v13 = vsel %vm1766_vm14, %v11714_v29, %v1440_v6 }
 0x198   : > { %v2019_v58 = vsel %vm1997_vm0, %v1986_v62, %v1755_v63 }
 0x199   : > { %10532 = vmatprep.mubr.msk.bf16.mxu1 %vm2057_vm8, %v2019_v58 }
 0x19a   : > { %v1442_v8 = vpop.permute.xlu1 %1441 }
 0x19b   : > { %v1757_v21 = vpop.permute.xlu0 %1756  ;;  %v1794_v15 = vsel %vm1766_vm14, %v11739_v51, %v1442_v8 }
 0x19c   : > { %v2021_v45 = vsel %vm1997_vm0, %v1988_v7, %v1757_v21 }
 0x19d   : > { %10533 = vmatmul.mubr.msk.bf16.gmra.mrb[4].mxu1 %vm2057_vm8, %v2021_v45 }
 0x19e   : > { %v1523_v12 = vpop.permute.xlu1 %1522 }
 0x19f   : > { %v1521_v57 = vpop.permute.xlu0 %1520  ;;  %v1827_v18 = vsel %vm1799_vm15, %v1794_v15, %v1523_v12 }
 0x1a0   : > { %v1825_v14 = vsel %vm1799_vm15, %v1792_v13, %v1521_v57 }
 0x1a2   : > { %v1560_v17 = vpop.permute.xlu1 %1559 }
 0x1a3   : > { %v1558_v59 = vpop.permute.xlu0 %1557  ;;  %v1860_v56 = vsel %vm1832_vm1, %v1827_v18, %v1560_v17 }
 0x1a4   : > { %v1858_v43 = vsel %vm1832_vm1, %v1825_v14, %v1558_v59 }
 0x1a6   : > { %v1607_v0 = vpop.permute.xlu1 %1606 }
 0x1a7   : > { %v1605_v16 = vpop.permute.xlu0 %1604  ;;  %v1893_v23 = vsel %vm1865_vm2, %v1860_v56, %v1607_v0 }
 0x1a8   : > { %v1891_v28 = vsel %vm1865_vm2, %v1858_v43, %v1605_v16 }
 0x1aa   : > { %v1642_v9 = vpop.permute.xlu1 %1641 }
 0x1ab   : > { %v1640_v19 = vpop.permute.xlu0 %1639  ;;  %v1926_v54 = vsel %vm1898_vm5, %v1893_v23, %v1642_v9 }
 0x1ac   : > { %v1924_v29 = vsel %vm1898_vm5, %v1891_v28, %v1640_v19 }
 0x1ae   : > { %v1679_v3 = vpop.permute.xlu1 %1678 }
 0x1af   : > { %v1677_v22 = vpop.permute.xlu0 %1676  ;;  %v1959_v10 = vsel %vm1931_vm9, %v1926_v54, %v1679_v3 }
 0x1b0   : > { %v1957_v51 = vsel %vm1931_vm9, %v1924_v29, %v1677_v22 }
 0x1b2   : > { %v1726_v33 = vpop.permute.xlu1 %1725 }
 0x1b3   : > { %v1724_v5 = vpop.permute.xlu0 %1723  ;;  %v1992_v40 = vsel %vm1964_vm13, %v1959_v10, %v1726_v33  ;;  %v15403_v33 = vmov 0 }
 0x1b4   : > { %v1990_v34 = vsel %vm1964_vm13, %v1957_v51, %v1724_v5  ;;  %v15404_v33 = vsel %vm12065_vm12, 4294967295, %v15403_v33 }
 0x1b5   : > { %15405 = vst [vmem:[#allocation15_spill] sm:$0xff] %v15404_v33 }
 0x1b6   : > { %v1444_v39 = vpop.permute.xlu1 %1443 }
 0x1b7   : > { %v1759_v2 = vpop.permute.xlu0 %1758  ;;  %v1796_v35 = vsel %vm1766_vm14, %v11819_v25, %v1444_v39 }
 0x1b8   : > { %v2023_v30 = vsel %vm1997_vm0, %v1990_v34, %v1759_v2  ;;  %v2714_v34 = vld [vmem:[#allocation2 + $0x18] sm:$0xf] }
 0x1b9   : > { %10536 = vmatprep.mubr.msk.bf16.mxu1 %vm2057_vm8, %v2023_v30 }
 0x1ba   : > { %v1446_v37 = vpop.permute.xlu1 %1445 }
 0x1bb   : > { %v1761_v41 = vpop.permute.xlu0 %1760  ;;  %v1798_v48 = vsel %vm1766_vm14, %v11852_v24, %v1446_v37 }
 0x1bc   : > { %v2025_v46 = vsel %vm1997_vm0, %v1992_v40, %v1761_v41  ;;  %v2705_v40 = vld [vmem:[#allocation2 + $0xc] sm:$0xf] }
 0x1bd   : > { %10537 = vmatmul.mubr.msk.bf16.gmra.mrb[8].mxu1 %vm2057_vm8, %v2025_v46 }
 0x1be   : > { %v1527_v31 = vpop.permute.xlu1 %1526 }
 0x1bf   : > { %v1525_v11 = vpop.permute.xlu0 %1524  ;;  %v1831_v49 = vsel %vm1799_vm15, %v1798_v48, %v1527_v31 }
 0x1c0   : > { %v1829_v50 = vsel %vm1799_vm15, %v1796_v35, %v1525_v11  ;;  %v2718_v11 = vld [vmem:[#allocation2 + $0x20] sm:$0x1] }
 0x1c2   : > { %v1564_v61 = vpop.permute.xlu1 %1563 }
 0x1c3   : > { %v1562_v47 = vpop.permute.xlu0 %1561  ;;  %v1864_v26 = vsel %vm1832_vm1, %v1831_v49, %v1564_v61  ;;  %v2711_v49 = vld [vmem:[#allocation2 + $0x14] sm:$0x1] }
 0x1c4   : > { %v1862_v53 = vsel %vm1832_vm1, %v1829_v50, %v1562_v47 }
 0x1c6   : > { %v1611_v52 = vpop.permute.xlu1 %1610 }
 0x1c7   : > { %v1609_v36 = vpop.permute.xlu0 %1608  ;;  %v1897_v25 = vsel %vm1865_vm2, %v1864_v26, %v1611_v52 }
 0x1c8   : > { %v1895_v60 = vsel %vm1865_vm2, %v1862_v53, %v1609_v36 }
 0x1ca   : > { %v1646_v32 = vpop.permute.xlu1 %1645 }
 0x1cb   : > { %v1644_v42 = vpop.permute.xlu0 %1643  ;;  %v1930_v4 = vsel %vm1898_vm5, %v1897_v25, %v1646_v32 }
 0x1cc   : > { %v1928_v44 = vsel %vm1898_vm5, %v1895_v60, %v1644_v42 }
 0x1ce   : > { %v1683_v55 = vpop.permute.xlu1 %1682 }
 0x1cf   : > { %v1681_v24 = vpop.permute.xlu0 %1680  ;;  %v1963_v6 = vsel %vm1931_vm9, %v1930_v4, %v1683_v55 }
 0x1d0   : > { %v1961_v20 = vsel %vm1931_vm9, %v1928_v44, %v1681_v24 }
 0x1d2   : > { %v10514_v62 = vpop.f32.mrb[0].mxu0  ;;  %v1730_v8 = vpop.permute.xlu1 %1729 }
 0x1d3   : > { %v2137_v63 = vadd.f32 %v10514_v62, %v12032_v27  ;;  %v2128_v58 = vpop.f32.mrb[1].mxu0  ;;  %v1728_v7 = vpop.permute.xlu0 %1727  ;;  %v1996_v15 = vsel %vm1964_vm13, %v1963_v6, %v1730_v8 }
 0x1d4   : > { %v2129_v21 = vadd.f32 %v12032_v27, %v2128_v58  ;;  %v10515_v45 = vpop.f32.mrb[2].mxu0  ;;  %v1994_v59 = vsel %vm1964_vm13, %v1961_v20, %v1728_v7 }
 0x1d5   : > { %v12039_v57 = vmax.f32 %v2137_v63, 0.0  ;;  %v2140_v12 = vadd.f32 %v10515_v45, %v12032_v27  ;;  %v2131_v13 = vpop.f32.mrb[3].mxu0 }
 0x1d6   : > { %v12043_v17 = vmax.f32 %v2129_v21, 0.0  ;;  %v2132_v14 = vadd.f32 %v12032_v27, %v2131_v13  ;;  %v1765_v9 = vpop.permute.xlu1 %1764 }
 0x1d7   : > { %15397 = vst [vmem:[#allocation11_spill] sm:$0xff] %v12039_v57  ;;  %v10245_v16 = vpack.c.bf16 %v12039_v57, %v12039_v57  ;;  %v12049_v0 = vmax.f32 %v2140_v12, 0.0  ;;  %v1763_v43 = vpop.permute.xlu0 %1762  ;;  %v2029_v22 = vsel %vm1997_vm0, %v1996_v15, %v1765_v9 }
 0x1d8   : > { %15398 = vst [vmem:[#allocation12_spill] sm:$0xff] %v12043_v17  ;;  %v10243_v18 = vpack.c.bf16 %v12043_v17, %v12043_v17  ;;  %v12053_v19 = vmax.f32 %v2132_v14, 0.0  ;;  %v2027_v28 = vsel %vm1997_vm0, %v1994_v59, %v1763_v43 }
 0x1d9   : > { %15399 = vst [vmem:[#allocation13_spill] sm:$0xff] %v12049_v0  ;;  %v2401_v56 = vshrl.u32 %v10245_v16, 16  ;;  %v10246_v29 = vpack.c.bf16 %v12049_v0, %v12049_v0  ;;  %10540 = vmatprep.mubr.msk.bf16.mxu1 %vm2057_vm8, %v2027_v28  ;;  %v2404_v54 = vshll.u32 %v10245_v16, 16 }
 0x1da   : > { %15400 = vst [vmem:[#allocation14_spill] sm:$0xff] %v12053_v19  ;;  %v2384_v23 = vshrl.u32 %v10243_v18, 16  ;;  %v10244_v3 = vpack.c.bf16 %v12053_v19, %v12053_v19  ;;  %10541 = vmatmul.mubr.msk.bf16.gmra.mrb[12].mxu1 %vm2057_vm8, %v2029_v22  ;;  %v2387_v2 = vshll.u32 %v10243_v18, 16  ;;  %vm15406_vm8 = vmmov %vm15402_vm10 }
 0x1db   : > { %v2403_v51 = vrot.slane %v2401_v56, 7  ;;  %v2409_v5 = vshrl.u32 %v10246_v29, 16  ;;  %v2412_v46 = vshll.u32 %v10246_v29, 16  ;;  %vm15407_vm14 = vmmov %vm15406_vm8  ;;  %v2728_v56 = vld [vmem:[#allocation2 + $0x30] sm:$0xf] }
 0x1dc   : > { %v2386_v10 = vrot.slane %v2384_v23, 7  ;;  %v2392_v30 = vshrl.u32 %v10244_v3, 16  ;;  %v2395_v35 = vshll.u32 %v10244_v3, 16  ;;  %vm15412_vm1 = vmmov %vm15406_vm8 }
 0x1dd   : > { %v2406_v39 = vor.u32 %v2404_v54, %v2403_v51  ;;  %v2411_v41 = vrot.slane %v2409_v5, 7  ;;  %v2407_v47 = vrot.slane %v2403_v51, 4  ;;  %v2721_v51 = vld [vmem:[#allocation2 + $0x24] sm:$0xf]  ;;  %vm15413_vm5 = vmmov %vm15412_vm1 }
 0x1de   : > { %v2389_v37 = vor.u32 %v2387_v2, %v2386_v10  ;;  %v2394_v31 = vrot.slane %v2392_v30, 7  ;;  %v2390_v36 = vrot.slane %v2386_v10, 4  ;;  %v2732_v10 = vld [vmem:[#allocation2 + $0x38] sm:$0x1]  ;;  %vm15418_vm13 = vmmov %vm15412_vm1 }
 0x1df   : > { %v2715_v48 = vsel %vm12065_vm12, %v2406_v39, %v2714_v34  ;;  %v2414_v61 = vor.u32 %v2412_v46, %v2411_v41  ;;  %v2416_v50 = vrot.slane %v2411_v41, 4  ;;  %vm15419_vm7 = vmmov %vm15412_vm1 }
 0x1e0   : > { %2716 = vst [vmem:[#allocation2 + $0x18] sm:$0xf] %v2715_v48  ;;  %v2706_v52 = vsel %vm12065_vm12, %v2389_v37, %v2705_v40  ;;  %v2397_v53 = vor.u32 %v2395_v35, %v2394_v31  ;;  %v2399_v26 = vrot.slane %v2394_v31, 4  ;;  %v2725_v37 = vld [vmem:[#allocation2 + $0x2c] sm:$0x1]  ;;  %vm15424_vm10 = vmmov %vm15412_vm1 }
 0x1e1   : > { %2707 = vst [vmem:[#allocation2 + $0xc] sm:$0xf] %v2706_v52  ;;  %v2415_v42 = vsel %vm11333_vm11, %v2407_v47, %v2414_v61  ;;  %v2719_v60 = vsel %vm11302_vm3, %v2416_v50, %v2718_v11 }
 0x1e2   : > { %2717 = vst.msk [vmem:[#allocation2 + $0x1c] sm:$0xf] %vm15406_vm8, %v2415_v42  ;;  %2720 = vst [vmem:[#allocation2 + $0x20] sm:$0x1] %v2719_v60  ;;  %v2398_v32 = vsel %vm11333_vm11, %v2390_v36, %v2397_v53  ;;  %v2712_v25 = vsel %vm11302_vm3, %v2399_v26, %v2711_v49 }
 0x1e3   : > { %2708 = vst.msk [vmem:[#allocation2 + $0x10] sm:$0xf] %vm15407_vm14, %v2398_v32  ;;  %2713 = vst [vmem:[#allocation2 + $0x14] sm:$0x1] %v2712_v25 }
 0x1e4   : > { %vm15425_vm8 = vmmov %vm15412_vm1 }
 0x1e5   : > { %vm15430_vm14 = vmmov %vm15412_vm1 }
 0x1e9   : > { %v12083_v44 = vld [vmem:[#allocation2 + $0x18] sm:$0xff]  }
 0x1ea   : > { %3312 = vrot.lane.b32.xlu1 %v12083_v44, %s11094_s22  ;;  %3429 = vrot.lane.b32.xlu0 %v12083_v44, %s11099_s14  ;;  %v12089_v24 = vld [vmem:[#allocation2 + $0xc] sm:$0xff]  }
 0x1ee   : > { %3310 = vrot.lane.b32.xlu0 %v12089_v24, %s11094_s22 }
 0x1f0   : > { %v10518_v4 = vpop.f32.mrb[4].mxu0 }
 0x1f1   : > { %v2153_v55 = vadd.f32 %v10518_v4, %v12032_v27  ;;  %v2144_v62 = vpop.f32.mrb[5].mxu0 }
 0x1f2   : > { %v2145_v20 = vadd.f32 %v12032_v27, %v2144_v62  ;;  %v10519_v63 = vpop.f32.mrb[6].mxu0 }
 0x1f3   : > { %v12095_v58 = vmax.f32 %v2153_v55, 0.0  ;;  %v2156_v6 = vadd.f32 %v10519_v63, %v12032_v27  ;;  %v2147_v7 = vpop.f32.mrb[7].mxu0 }
 0x1f4   : > { %v12098_v21 = vmax.f32 %v2145_v20, 0.0  ;;  %v2148_v45 = vadd.f32 %v12032_v27, %v2147_v7 }
 0x1f5   : > { %15408 = vst [vmem:[#allocation16_spill] sm:$0xff] %v12095_v58  ;;  %v10249_v8 = vpack.c.bf16 %v12095_v58, %v12095_v58  ;;  %v12103_v12 = vmax.f32 %v2156_v6, 0.0 }
 0x1f6   : > { %15409 = vst [vmem:[#allocation17_spill] sm:$0xff] %v12098_v21  ;;  %v10247_v13 = vpack.c.bf16 %v12098_v21, %v12098_v21  ;;  %v12107_v59 = vmax.f32 %v2148_v45, 0.0 }
 0x1f7   : > { %15410 = vst [vmem:[#allocation18_spill] sm:$0xff] %v12103_v12  ;;  %v2435_v14 = vshrl.u32 %v10249_v8, 16  ;;  %v10250_v15 = vpack.c.bf16 %v12103_v12, %v12103_v12  ;;  %v2438_v28 = vshll.u32 %v10249_v8, 16 }
 0x1f8   : > { %15411 = vst [vmem:[#allocation19_spill] sm:$0xff] %v12107_v59  ;;  %v2418_v16 = vshrl.u32 %v10247_v13, 16  ;;  %v10248_v43 = vpack.c.bf16 %v12107_v59, %v12107_v59  ;;  %v2421_v22 = vshll.u32 %v10247_v13, 16 }
 0x1f9   : > { %v2437_v18 = vrot.slane %v2435_v14, 7  ;;  %v2443_v9 = vshrl.u32 %v10250_v15, 16  ;;  %v2446_v5 = vshll.u32 %v10250_v15, 16 }
 0x1fa   : > { %v2420_v29 = vrot.slane %v2418_v16, 7  ;;  %v2426_v23 = vshrl.u32 %v10248_v43, 16  ;;  %v2429_v30 = vshll.u32 %v10248_v43, 16  ;;  %v2742_v43 = vld [vmem:[#allocation2 + $0x48] sm:$0xf] }
 0x1fb   : > { %v2440_v3 = vor.u32 %v2438_v28, %v2437_v18  ;;  %v2445_v54 = vrot.slane %v2443_v9, 7  ;;  %v2441_v39 = vrot.slane %v2437_v18, 4 }
 0x1fc   : > { %v2423_v34 = vor.u32 %v2421_v22, %v2420_v29  ;;  %v2428_v2 = vrot.slane %v2426_v23, 7  ;;  %v2424_v11 = vrot.slane %v2420_v29, 4  ;;  %v2735_v29 = vld [vmem:[#allocation2 + $0x3c] sm:$0xf] }
 0x1fd   : > { %v2729_v40 = vsel %vm12065_vm12, %v2440_v3, %v2728_v56  ;;  %v2448_v41 = vor.u32 %v2446_v5, %v2445_v54  ;;  %v2450_v46 = vrot.slane %v2445_v54, 4 }
 0x1fe   : > { %2730 = vst [vmem:[#allocation2 + $0x30] sm:$0xf] %v2729_v40  ;;  %v2722_v31 = vsel %vm12065_vm12, %v2423_v34, %v2721_v51  ;;  %v2431_v35 = vor.u32 %v2429_v30, %v2428_v2  ;;  %v2433_v47 = vrot.slane %v2428_v2, 4  ;;  %v2746_v51 = vld [vmem:[#allocation2 + $0x50] sm:$0x1] }
 0x1ff   : > { %2723 = vst [vmem:[#allocation2 + $0x24] sm:$0xf] %v2722_v31  ;;  %v2449_v48 = vsel %vm11333_vm11, %v2441_v39, %v2448_v41  ;;  %v2733_v61 = vsel %vm11302_vm3, %v2450_v46, %v2732_v10  ;;  %v2739_v39 = vld [vmem:[#allocation2 + $0x44] sm:$0x1] }
 0x200   : > { %2731 = vst.msk [vmem:[#allocation2 + $0x34] sm:$0xf] %vm15412_vm1, %v2449_v48  ;;  %2734 = vst [vmem:[#allocation2 + $0x38] sm:$0x1] %v2733_v61  ;;  %v2432_v50 = vsel %vm11333_vm11, %v2424_v11, %v2431_v35  ;;  %v2726_v49 = vsel %vm11302_vm3, %v2433_v47, %v2725_v37 }
 0x201   : > { %2724 = vst.msk [vmem:[#allocation2 + $0x28] sm:$0xf] %vm15413_vm5, %v2432_v50  ;;  %2727 = vst [vmem:[#allocation2 + $0x2c] sm:$0x1] %v2726_v49 }
 0x202   : > { %vm15435_vm5 = vmmov %vm15412_vm1 }
 0x210   : > { %v10522_v36 = vpop.f32.mrb[8].mxu0 }
 0x211   : > { %v2169_v52 = vadd.f32 %v10522_v36, %v12032_v27  ;;  %v2160_v53 = vpop.f32.mrb[9].mxu0 }
 0x212   : > { %v2161_v26 = vadd.f32 %v12032_v27, %v2160_v53  ;;  %v10523_v42 = vpop.f32.mrb[10].mxu0 }
 0x213   : > { %v12129_v60 = vmax.f32 %v2169_v52, 0.0  ;;  %v2172_v32 = vadd.f32 %v10523_v42, %v12032_v27  ;;  %v2163_v25 = vpop.f32.mrb[11].mxu0 }
 0x214   : > { %v12132_v4 = vmax.f32 %v2161_v26, 0.0  ;;  %v2164_v55 = vadd.f32 %v12032_v27, %v2163_v25 }
 0x215   : > { %15414 = vst [vmem:[#allocation20_spill] sm:$0xff] %v12129_v60  ;;  %v10253_v62 = vpack.c.bf16 %v12129_v60, %v12129_v60  ;;  %v12137_v20 = vmax.f32 %v2172_v32, 0.0 }
 0x216   : > { %15415 = vst [vmem:[#allocation21_spill] sm:$0xff] %v12132_v4  ;;  %v10251_v63 = vpack.c.bf16 %v12132_v4, %v12132_v4  ;;  %v12141_v6 = vmax.f32 %v2164_v55, 0.0 }
 0x217   : > { %15416 = vst [vmem:[#allocation22_spill] sm:$0xff] %v12137_v20  ;;  %v2469_v7 = vshrl.u32 %v10253_v62, 16  ;;  %v10254_v45 = vpack.c.bf16 %v12137_v20, %v12137_v20  ;;  %v2472_v15 = vshll.u32 %v10253_v62, 16 }
 0x218   : > { %15417 = vst [vmem:[#allocation23_spill] sm:$0xff] %v12141_v6  ;;  %v2452_v8 = vshrl.u32 %v10251_v63, 16  ;;  %v10252_v13 = vpack.c.bf16 %v12141_v6, %v12141_v6  ;;  %v2455_v28 = vshll.u32 %v10251_v63, 16 }
 0x219   : > { %v2471_v14 = vrot.slane %v2469_v7, 7  ;;  %v2477_v16 = vshrl.u32 %v10254_v45, 16  ;;  %v2480_v23 = vshll.u32 %v10254_v45, 16 }
 0x21a   : > { %v2454_v18 = vrot.slane %v2452_v8, 7  ;;  %v2460_v9 = vshrl.u32 %v10252_v13, 16  ;;  %v2463_v5 = vshll.u32 %v10252_v13, 16 }
 0x21b   : > { %v2474_v56 = vor.u32 %v2472_v15, %v2471_v14  ;;  %v2479_v22 = vrot.slane %v2477_v16, 7  ;;  %v2475_v34 = vrot.slane %v2471_v14, 4 }
 0x21c   : > { %v2457_v3 = vor.u32 %v2455_v28, %v2454_v18  ;;  %v2462_v54 = vrot.slane %v2460_v9, 7  ;;  %v2458_v40 = vrot.slane %v2454_v18, 4 }
 0x21d   : > { %v2743_v10 = vsel %vm12065_vm12, %v2474_v56, %v2742_v43  ;;  %v2482_v2 = vor.u32 %v2480_v23, %v2479_v22  ;;  %v2484_v30 = vrot.slane %v2479_v22, 4  ;;  %v2756_v43 = vld [vmem:[#allocation2 + $0x60] sm:$0xf] }
 0x21e   : > { %2744 = vst [vmem:[#allocation2 + $0x48] sm:$0xf] %v2743_v10  ;;  %v2736_v41 = vsel %vm12065_vm12, %v2457_v3, %v2735_v29  ;;  %v2465_v46 = vor.u32 %v2463_v5, %v2462_v54  ;;  %v2467_v37 = vrot.slane %v2462_v54, 4  ;;  %v2749_v29 = vld [vmem:[#allocation2 + $0x54] sm:$0xf] }
 0x21f   : > { %2737 = vst [vmem:[#allocation2 + $0x3c] sm:$0xf] %v2736_v41  ;;  %v2483_v11 = vsel %vm11333_vm11, %v2475_v34, %v2482_v2  ;;  %v2747_v31 = vsel %vm11302_vm3, %v2484_v30, %v2746_v51  ;;  %v2760_v51 = vld [vmem:[#allocation2 + $0x68] sm:$0x1] }
 0x220   : > { %2745 = vst.msk [vmem:[#allocation2 + $0x4c] sm:$0xf] %vm15418_vm13, %v2483_v11  ;;  %2748 = vst [vmem:[#allocation2 + $0x50] sm:$0x1] %v2747_v31  ;;  %v2466_v35 = vsel %vm11333_vm11, %v2458_v40, %v2465_v46  ;;  %v2740_v47 = vsel %vm11302_vm3, %v2467_v37, %v2739_v39  ;;  %v2753_v39 = vld [vmem:[#allocation2 + $0x5c] sm:$0x1] }
 0x221   : > { %2738 = vst.msk [vmem:[#allocation2 + $0x40] sm:$0xf] %vm15419_vm7, %v2466_v35  ;;  %2741 = vst [vmem:[#allocation2 + $0x44] sm:$0x1] %v2740_v47 }
 0x222   : > { %vm15436_vm13 = vmmov %vm15412_vm1 }
 0x223   : > { %vm15441_vm7 = vmmov %vm15412_vm1 }
 0x230   : > { %v10526_v48 = vpop.f32.mrb[12].mxu0 }
 0x231   : > { %v2185_v61 = vadd.f32 %v10526_v48, %v12032_v27  ;;  %v2176_v50 = vpop.f32.mrb[13].mxu0 }
 0x232   : > { %v2177_v49 = vadd.f32 %v12032_v27, %v2176_v50  ;;  %v10527_v36 = vpop.f32.mrb[14].mxu0 }
 0x233   : > { %v12163_v52 = vmax.f32 %v2185_v61, 0.0  ;;  %v2188_v53 = vadd.f32 %v10527_v36, %v12032_v27  ;;  %v2179_v26 = vpop.f32.mrb[15].mxu0 }
 0x234   : > { %v12166_v42 = vmax.f32 %v2177_v49, 0.0  ;;  %v2180_v32 = vadd.f32 %v12032_v27, %v2179_v26 }
 0x235   : > { %15420 = vst [vmem:[#allocation24_spill] sm:$0xff] %v12163_v52  ;;  %v10257_v25 = vpack.c.bf16 %v12163_v52, %v12163_v52  ;;  %v12171_v55 = vmax.f32 %v2188_v53, 0.0 }
 0x236   : > { %15421 = vst [vmem:[#allocation25_spill] sm:$0xff] %v12166_v42  ;;  %v10255_v62 = vpack.c.bf16 %v12166_v42, %v12166_v42  ;;  %v12175_v63 = vmax.f32 %v2180_v32, 0.0  ;;  %v10976_v42 = vld [vmem:[#allocation2] sm:$0xff]  }
 0x237   : > { %15422 = vst [vmem:[#allocation26_spill] sm:$0xff] %v12171_v55  ;;  %v2503_v7 = vshrl.u32 %v10257_v25, 16  ;;  %v10258_v45 = vpack.c.bf16 %v12171_v55, %v12171_v55  ;;  %v2506_v15 = vshll.u32 %v10257_v25, 16 }
 0x238   : > { %15423 = vst [vmem:[#allocation27_spill] sm:$0xff] %v12175_v63  ;;  %v2486_v8 = vshrl.u32 %v10255_v62, 16  ;;  %v10256_v13 = vpack.c.bf16 %v12175_v63, %v12175_v63  ;;  %v2489_v28 = vshll.u32 %v10255_v62, 16 }
 0x239   : > { %v2505_v14 = vrot.slane %v2503_v7, 7  ;;  %v2511_v16 = vshrl.u32 %v10258_v45, 16  ;;  %v2514_v23 = vshll.u32 %v10258_v45, 16 }
 0x23a   : > { %v2488_v18 = vrot.slane %v2486_v8, 7  ;;  %v2494_v9 = vshrl.u32 %v10256_v13, 16  ;;  %v2497_v5 = vshll.u32 %v10256_v13, 16 }
 0x23b   : > { %v2508_v56 = vor.u32 %v2506_v15, %v2505_v14  ;;  %v2513_v22 = vrot.slane %v2511_v16, 7  ;;  %v2509_v34 = vrot.slane %v2505_v14, 4 }
 0x23c   : > { %v2491_v3 = vor.u32 %v2489_v28, %v2488_v18  ;;  %v2496_v54 = vrot.slane %v2494_v9, 7  ;;  %v2492_v40 = vrot.slane %v2488_v18, 4 }
 0x23d   : > { %v2757_v10 = vsel %vm12065_vm12, %v2508_v56, %v2756_v43  ;;  %v2516_v2 = vor.u32 %v2514_v23, %v2513_v22  ;;  %v2518_v30 = vrot.slane %v2513_v22, 4  ;;  %v2770_v56 = vld [vmem:[#allocation2 + $0x78] sm:$0xf] }
 0x23e   : > { %2758 = vst [vmem:[#allocation2 + $0x60] sm:$0xf] %v2757_v10  ;;  %v2750_v41 = vsel %vm12065_vm12, %v2491_v3, %v2749_v29  ;;  %v2499_v46 = vor.u32 %v2497_v5, %v2496_v54  ;;  %v2501_v37 = vrot.slane %v2496_v54, 4  ;;  %v2774_v10 = vld [vmem:[#allocation2 + $0x80] sm:$0x1] }
 0x23f   : > { %2751 = vst [vmem:[#allocation2 + $0x54] sm:$0xf] %v2750_v41  ;;  %v2517_v11 = vsel %vm11333_vm11, %v2509_v34, %v2516_v2  ;;  %v2761_v31 = vsel %vm11302_vm3, %v2518_v30, %v2760_v51  ;;  %v2763_v51 = vld [vmem:[#allocation2 + $0x6c] sm:$0xf] }
 0x240   : > { %2759 = vst.msk [vmem:[#allocation2 + $0x64] sm:$0xf] %vm15424_vm10, %v2517_v11  ;;  %2762 = vst [vmem:[#allocation2 + $0x68] sm:$0x1] %v2761_v31  ;;  %v2500_v35 = vsel %vm11333_vm11, %v2492_v40, %v2499_v46  ;;  %v2754_v47 = vsel %vm11302_vm3, %v2501_v37, %v2753_v39  ;;  %v2767_v37 = vld [vmem:[#allocation2 + $0x74] sm:$0x1] }
 0x241   : > { %2752 = vst.msk [vmem:[#allocation2 + $0x58] sm:$0xf] %vm15425_vm8, %v2500_v35  ;;  %2755 = vst [vmem:[#allocation2 + $0x5c] sm:$0x1] %v2754_v47  ;;  %vm3879_vm8 = vcmask 1043456  }
 0x242   : > { %vm15442_vm10 = vmmov %vm15412_vm1 }
 0x250   : > { %v10530_v48 = vpop.f32.mrb[0].mxu1 }
 0x251   : > { %v2201_v61 = vadd.f32 %v10530_v48, %v12032_v27  ;;  %v2192_v50 = vpop.f32.mrb[1].mxu1 }
 0x252   : > { %v2193_v49 = vadd.f32 %v12032_v27, %v2192_v50  ;;  %v10531_v36 = vpop.f32.mrb[2].mxu1 }
 0x253   : > { %v12197_v53 = vmax.f32 %v2201_v61, 0.0  ;;  %v2204_v26 = vadd.f32 %v10531_v36, %v12032_v27  ;;  %v2195_v32 = vpop.f32.mrb[3].mxu1 }
 0x254   : > { %v12200_v25 = vmax.f32 %v2193_v49, 0.0  ;;  %v2196_v62 = vadd.f32 %v12032_v27, %v2195_v32 }
 0x255   : > { %15426 = vst [vmem:[#allocation28_spill] sm:$0xff] %v12197_v53  ;;  %v10261_v7 = vpack.c.bf16 %v12197_v53, %v12197_v53  ;;  %v12205_v45 = vmax.f32 %v2204_v26, 0.0  ;;  %v12231_v26 = vld [vmem:[#allocation2 + $0x20] ss:$0 sps:$4 sm:$0x11]  }
 0x256   : > { %15427 = vst [vmem:[#allocation29_spill] sm:$0xff] %v12200_v25  ;;  %v10259_v8 = vpack.c.bf16 %v12200_v25, %v12200_v25  ;;  %v12209_v13 = vmax.f32 %v2196_v62, 0.0  ;;  %v12239_v62 = vld [vmem:[#allocation2 + $0x14] ss:$0 sps:$4 sm:$0x11]  }
 0x257   : > { %15428 = vst [vmem:[#allocation30_spill] sm:$0xff] %v12205_v45  ;;  %v2537_v14 = vshrl.u32 %v10261_v7, 16  ;;  %v10262_v15 = vpack.c.bf16 %v12205_v45, %v12205_v45  ;;  %v2540_v28 = vshll.u32 %v10261_v7, 16  ;;  %v3231_v7 = vrot.slane %v12083_v44, 1 }
 0x258   : > { %15429 = vst [vmem:[#allocation31_spill] sm:$0xff] %v12209_v13  ;;  %v2520_v16 = vshrl.u32 %v10259_v8, 16  ;;  %v10260_v43 = vpack.c.bf16 %v12209_v13, %v12209_v13  ;;  %v2523_v22 = vshll.u32 %v10259_v8, 16  ;;  %v3232_v8 = vrot.slane %v12231_v26, 1 }
 0x259   : > { %v2539_v18 = vrot.slane %v2537_v14, 7  ;;  %v2545_v9 = vshrl.u32 %v10262_v15, 16  ;;  %v2548_v5 = vshll.u32 %v10262_v15, 16  ;;  %v3228_v14 = vrot.slane %v12089_v24, 1 }
 0x25a   : > { %v2522_v29 = vrot.slane %v2520_v16, 7  ;;  %v2528_v23 = vshrl.u32 %v10260_v43, 16  ;;  %v2531_v30 = vshll.u32 %v10260_v43, 16  ;;  %v3229_v15 = vrot.slane %v12239_v62, 1 }
 0x25b   : > { %v2542_v3 = vor.u32 %v2540_v28, %v2539_v18  ;;  %v2547_v54 = vrot.slane %v2545_v9, 7  ;;  %v2543_v39 = vrot.slane %v2539_v18, 4  ;;  %v3233_v16 = vsel %vm1447_vm6, %v3231_v7, %v3232_v8 }
 0x25c   : > { %v2525_v34 = vor.u32 %v2523_v22, %v2522_v29  ;;  %v2530_v2 = vrot.slane %v2528_v23, 7  ;;  %v2526_v11 = vrot.slane %v2522_v29, 4  ;;  %v3028_v22 = vshll.u32 %v12083_v44, 16 }
 0x25d   : > { %v2771_v40 = vsel %vm12065_vm12, %v2542_v3, %v2770_v56  ;;  %v2550_v41 = vor.u32 %v2548_v5, %v2547_v54  ;;  %v2552_v46 = vrot.slane %v2547_v54, 4 }
 0x25e   : > { %2772 = vst [vmem:[#allocation2 + $0x78] sm:$0xf] %v2771_v40  ;;  %v2764_v31 = vsel %vm12065_vm12, %v2525_v34, %v2763_v51  ;;  %v2533_v35 = vor.u32 %v2531_v30, %v2530_v2  ;;  %v2535_v47 = vrot.slane %v2530_v2, 4  ;;  %v3230_v51 = vsel %vm1447_vm6, %v3228_v14, %v3229_v15 }
 0x25f   : > { %2765 = vst [vmem:[#allocation2 + $0x6c] sm:$0xf] %v2764_v31  ;;  %v2551_v48 = vsel %vm11333_vm11, %v2543_v39, %v2550_v41  ;;  %v2775_v61 = vsel %vm11302_vm3, %v2552_v46, %v2774_v10  ;;  %v3026_v41 = vshrl.u32 %v12083_v44, 16  ;;  %v3030_v31 = vrot.slane %v3028_v22, 1 }
 0x260   : > { %2773 = vst.msk [vmem:[#allocation2 + $0x7c] sm:$0xf] %vm15430_vm14, %v2551_v48  ;;  %2776 = vst [vmem:[#allocation2 + $0x80] sm:$0x1] %v2775_v61  ;;  %v2534_v50 = vsel %vm11333_vm11, %v2526_v11, %v2533_v35  ;;  %v2768_v49 = vsel %vm11302_vm3, %v2535_v47, %v2767_v37 }
 0x261   : > { %2766 = vst.msk [vmem:[#allocation2 + $0x70] sm:$0xf] %vm15412_vm1, %v2534_v50  ;;  %2769 = vst [vmem:[#allocation2 + $0x74] sm:$0x1] %v2768_v49 }
 0x262   : > { %vm15447_vm14 = vmmov %vm15412_vm1 }
 0x267   : > { %v12229_v36 = vld [vmem:[#allocation2 + $0x78] sm:$0xff]   ;;  %v12250_v18 = vld [vmem:[#allocation2 + $0x80] ss:$0 sps:$4 sm:$0x11]  }
 0x268   : > { %3445 = vrot.lane.b32.xlu0 %v12229_v36, %s11099_s14  ;;  %3328 = vrot.lane.b32.xlu1 %v12229_v36, %s11094_s22  ;;  %v12237_v32 = vld [vmem:[#allocation2 + $0x6c] sm:$0xff]   ;;  %v12261_v5 = vld [vmem:[#allocation2 + $0x74] ss:$0 sps:$4 sm:$0x11]   ;;  %v3255_v2 = vrot.slane %v12229_v36, 1  ;;  %v3256_v30 = vrot.slane %v12250_v18, 1 }
 0x269   : > { %v3252_v11 = vrot.slane %v12237_v32, 1  ;;  %v3253_v61 = vrot.slane %v12261_v5, 1 }
 0x26a   : > { %v3257_v7 = vsel %vm1447_vm6, %v3255_v2, %v3256_v30  ;;  %v3031_v2 = vor.u32 %v3030_v31, %v3026_v41 }
 0x26c   : > { %3326 = vrot.lane.b32.xlu0 %v12237_v32, %s11094_s22  ;;  %3443 = vrot.lane.b32.xlu1 %v12237_v32, %s11099_s14 }
 0x270   : > { %v10534_v43 = vpop.f32.mrb[4].mxu1  ;;  %3511 = vrot.lane.b32.xlu0 %v3233_v16, %s11100_s16  ;;  %3394 = vrot.lane.b32.xlu1 %v3233_v16, %s11101_s20 }
 0x271   : > { %v2217_v28 = vadd.f32 %v10534_v43, %v12032_v27  ;;  %v2208_v9 = vpop.f32.mrb[5].mxu1  ;;  %v2784_v43 = vld [vmem:[#allocation2 + $0x90] sm:$0xf] }
 0x272   : > { %v2209_v56 = vadd.f32 %v12032_v27, %v2208_v9  ;;  %v10535_v29 = vpop.f32.mrb[6].mxu1 }
 0x273   : > { %v12257_v23 = vmax.f32 %v2217_v28, 0.0  ;;  %v2220_v3 = vadd.f32 %v10535_v29, %v12032_v27  ;;  %v2211_v54 = vpop.f32.mrb[7].mxu1  ;;  %v3016_v29 = vshll.u32 %v12089_v24, 16 }
 0x274   : > { %v12263_v34 = vmax.f32 %v2209_v56, 0.0  ;;  %v2212_v10 = vadd.f32 %v12032_v27, %v2211_v54  ;;  %3277 = vrot.lane.b32.xlu0 %v3233_v16, %s11097_s30  ;;  %3275 = vrot.lane.b32.xlu1 %v3230_v51, %s11097_s30  ;;  %v3033_v16 = vshll.u32 %v12231_v26, 16  ;;  %v2777_v54 = vld [vmem:[#allocation2 + $0x84] sm:$0xf] }
 0x275   : > { %15431 = vst [vmem:[#allocation32_spill] sm:$0xff] %v12257_v23  ;;  %v10265_v39 = vpack.c.bf16 %v12257_v23, %v12257_v23  ;;  %v12270_v40 = vmax.f32 %v2220_v3, 0.0 }
 0x276   : > { %15432 = vst [vmem:[#allocation33_spill] sm:$0xff] %v12263_v34  ;;  %v10263_v46 = vpack.c.bf16 %v12263_v34, %v12263_v34  ;;  %v12277_v37 = vmax.f32 %v2212_v10, 0.0 }
 0x277   : > { %15433 = vst [vmem:[#allocation34_spill] sm:$0xff] %v12270_v40  ;;  %v2571_v35 = vshrl.u32 %v10265_v39, 16  ;;  %v2574_v47 = vshll.u32 %v10265_v39, 16  ;;  %v10266_v48 = vpack.c.bf16 %v12270_v40, %v12270_v40 }
 0x278   : > { %15434 = vst [vmem:[#allocation35_spill] sm:$0xff] %v12277_v37  ;;  %v2554_v50 = vshrl.u32 %v10263_v46, 16  ;;  %v2557_v49 = vshll.u32 %v10263_v46, 16  ;;  %v10264_v44 = vpack.c.bf16 %v12277_v37, %v12277_v37  ;;  %3392 = vrot.lane.b32.xlu0 %v3230_v51, %s11101_s20  ;;  %3410 = vrot.lane.b32.xlu1 %v3257_v7, %s11101_s20  ;;  %v2788_v46 = vld [vmem:[#allocation2 + $0x98] sm:$0x1]  ;;  %v3254_v51 = vsel %vm1447_vm6, %v3252_v11, %v3253_v61 }
 0x279   : > { %v2573_v8 = vrot.slane %v2571_v35, 7  ;;  %v2579_v14 = vshrl.u32 %v10266_v48, 16  ;;  %v2582_v15 = vshll.u32 %v10266_v48, 16  ;;  %v2781_v37 = vld [vmem:[#allocation2 + $0x8c] sm:$0x1] }
 0x27a   : > { %v2556_v28 = vrot.slane %v2554_v50, 7  ;;  %v2562_v9 = vshrl.u32 %v10264_v44, 16  ;;  %v2565_v56 = vshll.u32 %v10264_v44, 16 }
 0x27b   : > { %v2576_v22 = vor.u32 %v2574_v47, %v2573_v8  ;;  %v2577_v3 = vrot.slane %v2573_v8, 4  ;;  %v2581_v10 = vrot.slane %v2579_v14, 7 }
 0x27c   : > { %v2559_v30 = vor.u32 %v2557_v49, %v2556_v28  ;;  %v2560_v39 = vrot.slane %v2556_v28, 4  ;;  %v2564_v35 = vrot.slane %v2562_v9, 7  ;;  %3527 = vrot.lane.b32.xlu0 %v3257_v7, %s11100_s16  ;;  %3291 = vrot.lane.b32.xlu1 %v3254_v51, %s11097_s30  ;;  %v3035_v49 = vrot.slane %v3033_v16, 1 }
 0x27d   : > { %v2785_v26 = vsel %vm12065_vm12, %v2576_v22, %v2784_v43  ;;  %v2584_v48 = vor.u32 %v2582_v15, %v2581_v10  ;;  %v2586_v50 = vrot.slane %v2581_v10, 4  ;;  %v3018_v15 = vrot.slane %v3016_v29, 1 }
 0x27e   : > { %2786 = vst [vmem:[#allocation2 + $0x90] sm:$0xf] %v2785_v26  ;;  %v2778_v41 = vsel %vm12065_vm12, %v2559_v30, %v2777_v54  ;;  %v2567_v31 = vor.u32 %v2565_v56, %v2564_v35  ;;  %v2569_v47 = vrot.slane %v2564_v35, 4  ;;  %v3036_v14 = vsel %vm1222_vm4, %v3031_v2, %v3035_v49 }
 0x27f   : > { %2779 = vst [vmem:[#allocation2 + $0x84] sm:$0xf] %v2778_v41  ;;  %v2585_v11 = vsel %vm11333_vm11, %v2577_v3, %v2584_v48  ;;  %v2789_v61 = vsel %vm11302_vm3, %v2586_v50, %v2788_v46  ;;  %v3014_v16 = vshrl.u32 %v12089_v24, 16  ;;  %v3021_v43 = vshll.u32 %v12239_v62, 16  ;;  %v12320_v62 = vld [vmem:[#allocation2 + $0x30] sm:$0xff]  }
 0x280   : > { %2787 = vst.msk [vmem:[#allocation2 + $0x94] sm:$0xf] %vm15435_vm5, %v2585_v11  ;;  %2790 = vst [vmem:[#allocation2 + $0x98] sm:$0x1] %v2789_v61  ;;  %v2568_v44 = vsel %vm11333_vm11, %v2560_v39, %v2567_v31  ;;  %v2782_v8 = vsel %vm11302_vm3, %v2569_v47, %v2781_v37  ;;  %3293 = vrot.lane.b32.xlu0 %v3257_v7, %s11097_s30  ;;  %3359 = vrot.lane.b32.xlu1 %v3036_v14, %s11096_s21  ;;  %v3124_v9 = vshll.u32 %v12229_v36, 16  ;;  %vm3704_vm5 = vcmask 392192  }
 0x281   : > { %2780 = vst.msk [vmem:[#allocation2 + $0x88] sm:$0xf] %vm15436_vm13, %v2568_v44  ;;  %2783 = vst [vmem:[#allocation2 + $0x8c] sm:$0x1] %v2782_v8  ;;  %v3019_v28 = vor.u32 %v3018_v15, %v3014_v16  ;;  %v3023_v37 = vrot.slane %v3021_v43, 1  ;;  %v3122_v7 = vshrl.u32 %v12229_v36, 16 }
 0x282   : > { %v3126_v29 = vrot.slane %v3124_v9, 1  ;;  %v3129_v24 = vshll.u32 %v12250_v18, 16  ;;  %v3112_v10 = vshll.u32 %v12237_v32, 16  ;;  %v3110_v47 = vshrl.u32 %v12237_v32, 16 }
 0x283   : > { %v3024_v56 = vsel %vm1222_vm4, %v3019_v28, %v3023_v37  ;;  %v3117_v49 = vshll.u32 %v12261_v5, 16  ;;  %vm3671_vm13 = vcmask 326656  }
 0x284   : > { %3197 = vrot.lane.b32.xlu1 %v3036_v14, %s11091_s15  ;;  %3525 = vrot.lane.b32.xlu0 %v3254_v51, %s11100_s16  ;;  %v3127_v22 = vor.u32 %v3126_v29, %v3122_v7  ;;  %v3131_v3 = vrot.slane %v3129_v24, 1  ;;  %v3114_v26 = vrot.slane %v3112_v10, 1  ;;  %v2791_v10 = vld [vmem:[#allocation2 + $0x9c] sm:$0xf] }
 0x285   : > { %v3119_v37 = vrot.slane %v3117_v49, 1 }
 0x286   : > { %v3132_v54 = vsel %vm1222_vm4, %v3127_v22, %v3131_v3  ;;  %v3115_v15 = vor.u32 %v3114_v26, %v3110_v47 }
 0x288   : > { %3195 = vrot.lane.b32.xlu1 %v3024_v56, %s11091_s15  ;;  %3408 = vrot.lane.b32.xlu0 %v3254_v51, %s11101_s20 }
 0x28c   : > { %3316 = vrot.lane.b32.xlu1 %v12320_v62, %s11094_s22  ;;  %3476 = vrot.lane.b32.xlu0 %v3036_v14, %s11102_s25 }
 0x290   : > { %v10538_v2 = vpop.f32.mrb[8].mxu1  ;;  %3375 = vrot.lane.b32.xlu1 %v3132_v54, %s11096_s21  ;;  %3357 = vrot.lane.b32.xlu0 %v3024_v56, %s11096_s21  ;;  %v2798_v56 = vld [vmem:[#allocation2 + $0xa8] sm:$0xf] }
 0x291   : > { %v2233_v36 = vadd.f32 %v10538_v2, %v12032_v27  ;;  %v2224_v18 = vpop.f32.mrb[9].mxu1 }
 0x292   : > { %v2225_v30 = vadd.f32 %v12032_v27, %v2224_v18  ;;  %v10539_v39 = vpop.f32.mrb[10].mxu1 }
 0x293   : > { %v12331_v46 = vmax.f32 %v2233_v36, 0.0  ;;  %v2236_v35 = vadd.f32 %v10539_v39, %v12032_v27  ;;  %v2227_v51 = vpop.f32.mrb[11].mxu1  ;;  %v3120_v36 = vsel %vm1222_vm4, %v3115_v15, %v3119_v37  ;;  %v2802_v39 = vld [vmem:[#allocation2 + $0xb0] sm:$0x1] }
 0x294   : > { %v12334_v48 = vmax.f32 %v2225_v30, 0.0  ;;  %v2228_v50 = vadd.f32 %v12032_v27, %v2227_v51  ;;  %3213 = vrot.lane.b32.xlu1 %v3132_v54, %s11091_s15  ;;  %3433 = vrot.lane.b32.xlu0 %v12320_v62, %s11099_s14  ;;  %v12350_v27 = vld [vmem:[#allocation2 + $0x24] sm:$0xff]   ;;  %v12397_v37 = vld [vmem:[#allocation2 + $0x2c] ss:$0 sps:$4 sm:$0x11]  }
 0x295   : > { %15437 = vst [vmem:[#allocation36_spill] sm:$0xff] %v12331_v46  ;;  %v10269_v41 = vpack.c.bf16 %v12331_v46, %v12331_v46  ;;  %v12342_v31 = vmax.f32 %v2236_v35, 0.0 }
 0x296   : > { %15438 = vst [vmem:[#allocation37_spill] sm:$0xff] %v12334_v48  ;;  %v10267_v11 = vpack.c.bf16 %v12334_v48, %v12334_v48  ;;  %v12348_v61 = vmax.f32 %v2228_v50, 0.0  ;;  %v2795_v50 = vld [vmem:[#allocation2 + $0xa4] sm:$0x1] }
 0x297   : > { %15439 = vst [vmem:[#allocation38_spill] sm:$0xff] %v12342_v31  ;;  %v2605_v44 = vshrl.u32 %v10269_v41, 16  ;;  %v2608_v8 = vshll.u32 %v10269_v41, 16  ;;  %v10270_v14 = vpack.c.bf16 %v12342_v31, %v12342_v31 }
 0x298   : > { %15440 = vst [vmem:[#allocation39_spill] sm:$0xff] %v12348_v61  ;;  %v2588_v16 = vshrl.u32 %v10267_v11, 16  ;;  %v2591_v43 = vshll.u32 %v10267_v11, 16  ;;  %v10268_v32 = vpack.c.bf16 %v12348_v61, %v12348_v61  ;;  %3431 = vrot.lane.b32.xlu1 %v12350_v27, %s11099_s14  ;;  %3492 = vrot.lane.b32.xlu0 %v3132_v54, %s11102_s25 }
 0x299   : > { %v2607_v5 = vrot.slane %v2605_v44, 7  ;;  %v2613_v28 = vshrl.u32 %v10270_v14, 16  ;;  %v2616_v9 = vshll.u32 %v10270_v14, 16 }
 0x29a   : > { %v2590_v29 = vrot.slane %v2588_v16, 7  ;;  %v2596_v7 = vshrl.u32 %v10268_v32, 16  ;;  %v2599_v24 = vshll.u32 %v10268_v32, 16  ;;  %v10833_v16 = vld [vmem:[%s15310_s3] sm:$0xff]  }
 0x29b   : > { %v2610_v22 = vor.u32 %v2608_v8, %v2607_v5  ;;  %v2611_v3 = vrot.slane %v2607_v5, 4  ;;  %v2615_v2 = vrot.slane %v2613_v28, 7  ;;  %v12371_v8 = vld [vmem:[#allocation2 + $0x38] ss:$0 sps:$4 sm:$0x11]   ;;  %v12386_v32 = vld [vmem:[#allocation2 + $0x84] sm:$0xff]   ;;  %10544 = vmatprep.subr.bf16.mxu1 %v10833_v16 }
 0x29c   : > { %v2593_v18 = vor.u32 %v2591_v43, %v2590_v29  ;;  %v2594_v30 = vrot.slane %v2590_v29, 4  ;;  %v2598_v35 = vrot.slane %v2596_v7, 7  ;;  %3314 = vrot.lane.b32.xlu0 %v12350_v27, %s11094_s22  ;;  %3490 = vrot.lane.b32.xlu1 %v3120_v36, %s11102_s25  ;;  %v12384_v43 = vld [vmem:[#allocation2 + $0x90] sm:$0xff]   ;;  %v3237_v5 = vrot.slane %v12320_v62, 1 }
 0x29d   : > { %v2799_v54 = vsel %vm12065_vm12, %v2610_v22, %v2798_v56  ;;  %v2618_v51 = vor.u32 %v2616_v9, %v2615_v2  ;;  %v2620_v26 = vrot.slane %v2615_v2, 4  ;;  %v3238_v28 = vrot.slane %v12371_v8, 1  ;;  %10545 = vmatpush3.bf16.msra.mxu1 %v10833_v16  ;;  %v10834_v9 = vld [vmem:[%s15310_s3 + $0x8] sm:$0xff]   ;;  %v10835_v29 = vld [vmem:[%s15310_s3 + $0x10] sm:$0xff]   ;;  %v10837_v2 = vld [vmem:[%s15310_s3 + $0x18] sm:$0xff]  }
 0x29e   : > { %2800 = vst [vmem:[#allocation2 + $0xa8] sm:$0xf] %v2799_v54  ;;  %v2792_v41 = vsel %vm12065_vm12, %v2593_v18, %v2791_v10  ;;  %v2601_v47 = vor.u32 %v2599_v24, %v2598_v35  ;;  %v2603_v49 = vrot.slane %v2598_v35, 4  ;;  %10546 = vmatprep.subr.bf16.mxu1 %v10834_v9  ;;  %v3234_v7 = vrot.slane %v12350_v27, 1 }
 0x29f   : > { %2793 = vst [vmem:[#allocation2 + $0x9c] sm:$0xf] %v2792_v41  ;;  %v2619_v11 = vsel %vm11333_vm11, %v2611_v3, %v2618_v51  ;;  %v2803_v44 = vsel %vm11302_vm3, %v2620_v26, %v2802_v39  ;;  %v3239_v56 = vsel %vm1447_vm6, %v3237_v5, %v3238_v28  ;;  %v3235_v24 = vrot.slane %v12397_v37, 1  ;;  %v12409_v3 = vld [vmem:[#allocation2 + $0x8c] ss:$0 sps:$4 sm:$0x11]  }
 0x2a0   : > { %2801 = vst.msk [vmem:[#allocation2 + $0xac] sm:$0xf] %vm15441_vm7, %v2619_v11  ;;  %2804 = vst [vmem:[#allocation2 + $0xb0] sm:$0x1] %v2803_v44  ;;  %v2602_v14 = vsel %vm11333_vm11, %v2594_v30, %v2601_v47  ;;  %v2796_v15 = vsel %vm11302_vm3, %v2603_v49, %v2795_v50  ;;  %3373 = vrot.lane.b32.xlu0 %v3120_v36, %s11096_s21  ;;  %3211 = vrot.lane.b32.xlu1 %v3120_v36, %s11091_s15  ;;  %v3052_v22 = vshll.u32 %v12320_v62, 16  ;;  %vm3737_vm7 = vcmask 457728  }
 0x2a1   : > { %2794 = vst.msk [vmem:[#allocation2 + $0xa0] sm:$0xf] %vm15442_vm10, %v2602_v14  ;;  %2797 = vst [vmem:[#allocation2 + $0xa4] sm:$0x1] %v2796_v15  ;;  %10547 = vmatpush3.bf16.msra.mxu1 %v10834_v9  ;;  %v10975_v36 = vld [vmem:[%s15309_s2] ss:$0 sm:$0xff]  ;;  %v3236_v39 = vsel %vm1447_vm6, %v3234_v7, %v3235_v24 }
 0x2a2   : > { %10548 = vmatprep.subr.bf16.mxu1 %v10835_v29  ;;  %v3054_v35 = vrot.slane %v3052_v22, 1  ;;  %v3258_v26 = vrot.slane %v12386_v32, 1  ;;  %v3259_v50 = vrot.slane %v12409_v3, 1  ;;  %v3050_v11 = vshrl.u32 %v12320_v62, 16  ;;  %v10839_v15 = vld [vmem:[%s15310_s3 + $0x20] ss:$0 sps:$4 sm:$0xff]  }
 0x2a3   : > { %v3057_v16 = vshll.u32 %v12371_v8, 16  ;;  %v3040_v5 = vshll.u32 %v12350_v27, 16  ;;  %v3881_v24 = vsel %vm3879_vm8, %v10839_v15, 0  ;;  %vm3770_vm10 = vcmask 523264  }
 0x2a4   : > { %3332 = vrot.lane.b32.xlu1 %v12384_v43, %s11094_s22  ;;  %3330 = vrot.lane.b32.xlu0 %v12386_v32, %s11094_s22  ;;  %v12445_v22 = vsel %vm1447_vm6, %v3258_v26, %v3259_v50 }
 0x2a5   : > { %10549 = vmatpush3.bf16.msra.mxu1 %v10835_v29  ;;  %v3042_v50 = vrot.slane %v3040_v5, 1  ;;  %v2816_v5 = vld [vmem:[#allocation2 + $0xc8] sm:$0x1] }
 0x2a6   : > { %10550 = vmatprep.subr.bf16.mxu1 %v10837_v2 }
 0x2a8   : > { %3515 = vrot.lane.b32.xlu0 %v3239_v56, %s11100_s16  ;;  %3447 = vrot.lane.b32.xlu1 %v12386_v32, %s11099_s14 }
 0x2a9   : > { %10551 = vmatpush3.bf16.msra.mxu1 %v10837_v2 }
 0x2aa   : > { %10720 = vmatprep.subr.msk.bf16.mxu1 %vm3879_vm8, %v10839_v15 }
 0x2ac   : > { %3281 = vrot.lane.b32.xlu0 %v3239_v56, %s11097_s30  ;;  %3398 = vrot.lane.b32.xlu1 %v3239_v56, %s11101_s20  ;;  %v3055_v56 = vor.u32 %v3054_v35, %v3050_v11  ;;  %v3059_v35 = vrot.slane %v3057_v16, 1  ;;  %v3038_v16 = vshrl.u32 %v12350_v27, 16 }
 0x2ad   : > { %v10542_v10 = vpop.f32.mrb[12].mxu1  ;;  %10553 = vmatpush3.bf16.msra.mxu1 %v3881_v24  ;;  %v2805_v24 = vld [vmem:[#allocation2 + $0xb4] sm:$0xf] }
 0x2ae   : > { %v2249_v18 = vadd.f32 %v10975_v36, %v10542_v10  ;;  %v2240_v30 = vpop.f32.mrb[13].mxu1  ;;  %v3060_v15 = vsel %vm1222_vm4, %v3055_v56, %v3059_v35  ;;  %v2809_v35 = vld [vmem:[#allocation2 + $0xbc] sm:$0x1] }
 0x2af   : > { %v2241_v54 = vadd.f32 %v10975_v36, %v2240_v30  ;;  %v10543_v51 = vpop.f32.mrb[14].mxu1 }
 0x2b0   : > { %v12422_v41 = vmax.f32 %v2249_v18, 0.0  ;;  %v2252_v47 = vadd.f32 %v10975_v36, %v10543_v51  ;;  %v2243_v49 = vpop.f32.mrb[15].mxu1  ;;  %3513 = vrot.lane.b32.xlu0 %v3236_v39, %s11100_s16  ;;  %3279 = vrot.lane.b32.xlu1 %v3236_v39, %s11097_s30 }
 0x2b1   : > { %v12427_v44 = vmax.f32 %v2241_v54, 0.0  ;;  %v2244_v14 = vadd.f32 %v10975_v36, %v2243_v49 }
 0x2b2   : > { %15443 = vst [vmem:[#allocation40_spill] sm:$0xff] %v12422_v41  ;;  %v10273_v28 = vpack.c.bf16 %v12422_v41, %v12422_v41  ;;  %v12436_v9 = vmax.f32 %v2252_v47, 0.0  ;;  %v2812_v47 = vld [vmem:[#allocation2 + $0xc0] sm:$0xf] }
 0x2b3   : > { %15444 = vst [vmem:[#allocation41_spill] sm:$0xff] %v12427_v44  ;;  %v10271_v29 = vpack.c.bf16 %v12427_v44, %v12427_v44  ;;  %v12440_v7 = vmax.f32 %v2244_v14, 0.0  ;;  %v3043_v44 = vor.u32 %v3042_v50, %v3038_v16  ;;  %v3141_v16 = vshll.u32 %v12409_v3, 16 }
 0x2b4   : > { %15445 = vst [vmem:[#allocation42_spill] sm:$0xff] %v12436_v9  ;;  %v2639_v8 = vshrl.u32 %v10273_v28, 16  ;;  %v2642_v10 = vshll.u32 %v10273_v28, 16  ;;  %v10274_v2 = vpack.c.bf16 %v12436_v9, %v12436_v9  ;;  %3396 = vrot.lane.b32.xlu0 %v3236_v39, %s11101_s20  ;;  %3295 = vrot.lane.b32.xlu1 %v12445_v22, %s11097_s30 }
 0x2b5   : > { %15446 = vst [vmem:[#allocation43_spill] sm:$0xff] %v12440_v7  ;;  %v2622_v36 = vshrl.u32 %v10271_v29, 16  ;;  %v2625_v18 = vshll.u32 %v10271_v29, 16  ;;  %v10272_v30 = vpack.c.bf16 %v12440_v7, %v12440_v7 }
 0x2b6   : > { %v2641_v54 = vrot.slane %v2639_v8, 7  ;;  %v2647_v51 = vshrl.u32 %v10274_v2, 16  ;;  %v2650_v26 = vshll.u32 %v10274_v2, 16 }
 0x2b7   : > { %v2624_v49 = vrot.slane %v2622_v36, 7  ;;  %v2630_v11 = vshrl.u32 %v10272_v30, 16  ;;  %v2633_v14 = vshll.u32 %v10272_v30, 16  ;;  %v3045_v36 = vshll.u32 %v12397_v37, 16 }
 0x2b8   : > { %v2644_v39 = vor.u32 %v2642_v10, %v2641_v54  ;;  %v2645_v28 = vrot.slane %v2641_v54, 4  ;;  %v2649_v9 = vrot.slane %v2647_v51, 7  ;;  %3363 = vrot.lane.b32.xlu1 %v3060_v15, %s11096_s21  ;;  %3529 = vrot.lane.b32.xlu0 %v12445_v22, %s11100_s16 }
 0x2b9   : > { %v2627_v29 = vor.u32 %v2625_v18, %v2624_v49  ;;  %v2628_v8 = vrot.slane %v2624_v49, 4  ;;  %v2632_v2 = vrot.slane %v2630_v11, 7  ;;  %v3047_v50 = vrot.slane %v3045_v36, 1  ;;  %v12479_v49 = vld [vmem:[#allocation2 + $0x48] sm:$0xff]  }
 0x2ba   : > { %v2813_v56 = vsel %vm12065_vm12, %v2644_v39, %v2812_v47  ;;  %v2652_v10 = vor.u32 %v2650_v26, %v2649_v9  ;;  %v2654_v30 = vrot.slane %v2649_v9, 4  ;;  %v10824_v11 = vld [vmem:[#allocation2 + $0x50] ss:$0 sps:$4 sm:$0x11]  }
 0x2bb   : > { %2814 = vst [vmem:[#allocation2 + $0xc0] sm:$0xf] %v2813_v56  ;;  %v2806_v54 = vsel %vm12065_vm12, %v2627_v29, %v2805_v24  ;;  %v2635_v51 = vor.u32 %v2633_v14, %v2632_v2  ;;  %v2637_v7 = vrot.slane %v2632_v2, 4  ;;  %v3048_v47 = vsel %vm1222_vm4, %v3043_v44, %v3047_v50  ;;  %v10825_v36 = vld [vmem:[#allocation2 + $0x44] ss:$0 sps:$4 sm:$0x11]  }
 0x2bc   : > { %2807 = vst [vmem:[#allocation2 + $0xb4] sm:$0xf] %v2806_v54  ;;  %v2653_v18 = vsel %vm11333_vm11, %v2645_v28, %v2652_v10  ;;  %v2817_v37 = vsel %vm11302_vm3, %v2654_v30, %v2816_v5  ;;  %3201 = vrot.lane.b32.xlu1 %v3060_v15, %s11091_s15  ;;  %3480 = vrot.lane.b32.xlu0 %v3060_v15, %s11102_s25  ;;  %v3136_v14 = vshll.u32 %v12386_v32, 16  ;;  %v12482_v15 = vpop.permute.xlu0 %3193  ;;  %v3243_v44 = vrot.slane %v12479_v49, 1 }
 0x2bd   : > { %2815 = vst.msk [vmem:[#allocation2 + $0xc4] sm:$0xf] %vm15447_vm14, %v2653_v18  ;;  %2818 = vst [vmem:[#allocation2 + $0xc8] sm:$0x1] %v2817_v37  ;;  %v2636_v9 = vsel %vm11333_vm11, %v2628_v8, %v2635_v51  ;;  %v2810_v26 = vsel %vm11302_vm3, %v2637_v7, %v2809_v35  ;;  %v12487_v7 = vld [vmem:[#allocation2 + $0x3c] sm:$0xff]   ;;  %v3244_v39 = vrot.slane %v10824_v11, 1 }
 0x2be   : > { %2808 = vst.msk [vmem:[#allocation2 + $0xb8] sm:$0xf] %vm15412_vm1, %v2636_v9  ;;  %2811 = vst [vmem:[#allocation2 + $0xbc] sm:$0x1] %v2810_v26  ;;  %v3134_v28 = vshrl.u32 %v12386_v32, 16  ;;  %v3138_v24 = vrot.slane %v3136_v14, 1  ;;  %v12518_v26 = vpop.permute.xlu1 %3312 }
 0x2bf   : > { %v3245_v8 = vsel %vm1447_vm6, %v3243_v44, %v3244_v39  ;;  %v3143_v2 = vrot.slane %v3141_v16, 1  ;;  %v3240_v56 = vrot.slane %v12487_v7, 1  ;;  %v3241_v10 = vrot.slane %v10825_v36, 1 }
 0x2c0   : > { %3478 = vrot.lane.b32.xlu1 %v3048_v47, %s11102_s25  ;;  %3361 = vrot.lane.b32.xlu0 %v3048_v47, %s11096_s21  ;;  %v12496_v29 = vpop.permute.xlu0 %3273  ;;  %v3139_v5 = vor.u32 %v3138_v24, %v3134_v28  ;;  %v3076_v30 = vshll.u32 %v12479_v49, 16  ;;  %v3064_v18 = vshll.u32 %v12487_v7, 16  ;;  %v3074_v37 = vshrl.u32 %v12479_v49, 16 }
 0x2c1   : > { %v3242_v54 = vsel %vm1447_vm6, %v3240_v56, %v3241_v10  ;;  %v3081_v9 = vshll.u32 %v10824_v11, 16  ;;  %v3062_v39 = vshrl.u32 %v12487_v7, 16  ;;  %v3069_v28 = vshll.u32 %v10825_v36, 16 }
 0x2c2   : > { %v12503_v3 = vsel %vm1222_vm4, %v3139_v5, %v3143_v2  ;;  %v3078_v51 = vrot.slane %v3076_v30, 1  ;;  %v3066_v14 = vrot.slane %v3064_v18, 1  ;;  %v10828_v18 = vld [vmem:[#allocation2 + $0x68] ss:$0 sps:$4 sm:$0x11]   ;;  %vm15363_vm14 = vcmask 588800  }
 0x2c3   : > { %v3083_v44 = vrot.slane %v3081_v9, 1  ;;  %v3071_v2 = vrot.slane %v3069_v28, 1  ;;  %v12552_v9 = vld [vmem:[#allocation2 + $0x54] sm:$0xff]   ;;  %v3105_v34 = vshll.u32 %v10828_v18, 16 }
 0x2c4   : > { %3199 = vrot.lane.b32.xlu1 %v3048_v47, %s11091_s15  ;;  %3437 = vrot.lane.b32.xlu0 %v12479_v49, %s11099_s14  ;;  %v12507_v35 = vpop.permute.xlu0 %3429  ;;  %v3079_v47 = vor.u32 %v3078_v51, %v3074_v37  ;;  %v3067_v5 = vor.u32 %v3066_v14, %v3062_v39  ;;  %v12543_v51 = vld [vmem:[#allocation2 + $0x60] sm:$0xff]   ;;  %v3250_v14 = vrot.slane %v10828_v18, 1  ;;  %v3246_v41 = vrot.slane %v12552_v9, 1 }
 0x2c5   : > { %v3100_v31 = vshll.u32 %v12543_v51, 16  ;;  %v3088_v46 = vshll.u32 %v12552_v9, 16  ;;  %v3098_v40 = vshrl.u32 %v12543_v51, 16  ;;  %v12694_v19 = vld [vmem:[#allocation2 + $0xb4] sm:$0xff]  }
 0x2c6   : > { %v3084_v11 = vsel %vm1222_vm4, %v3079_v47, %v3083_v44  ;;  %v3249_v47 = vrot.slane %v12543_v51, 1  ;;  %v3182_v57 = vshrl.u32 %v12694_v19, 16 }
 0x2c7   : > { %v3102_v48 = vrot.slane %v3100_v31, 1  ;;  %v3090_v25 = vrot.slane %v3088_v46, 1  ;;  %v3107_v31 = vrot.slane %v3105_v34, 1 }
 0x2c8   : > { %3320 = vrot.lane.b32.xlu1 %v12479_v49, %s11094_s22  ;;  %3318 = vrot.lane.b32.xlu0 %v12487_v7, %s11094_s22  ;;  %v12520_v50 = vpop.permute.xlu0 %3310  ;;  %v3251_v28 = vsel %vm1447_vm6, %v3249_v47, %v3250_v14 }
 0x2c9   : > { %v3103_v45 = vor.u32 %v3102_v48, %v3098_v40  ;;  %v3544_v40 = vsel %vm1799_vm15, %v10976_v42, %v12482_v15 }
 0x2cb   : > { %v3108_v18 = vsel %vm1222_vm4, %v3103_v45, %v3107_v31 }
 0x2cc   : > { %3435 = vrot.lane.b32.xlu1 %v12487_v7, %s11099_s14  ;;  %3519 = vrot.lane.b32.xlu0 %v3245_v8, %s11100_s16 }
 0x2d0   : > { %3285 = vrot.lane.b32.xlu0 %v3245_v8, %s11097_s30  ;;  %3494 = vrot.lane.b32.xlu1 %v12503_v3, %s11102_s25 }
 0x2d4   : > { %3517 = vrot.lane.b32.xlu0 %v3242_v54, %s11100_s16  ;;  %3215 = vrot.lane.b32.xlu1 %v12503_v3, %s11091_s15 }
 0x2d8   : > { %3400 = vrot.lane.b32.xlu0 %v3242_v54, %s11101_s20  ;;  %3402 = vrot.lane.b32.xlu1 %v3245_v8, %s11101_s20  ;;  %v3072_v8 = vsel %vm1222_vm4, %v3067_v5, %v3071_v2 }
 0x2da   : > { %v12525_v24 = vpop.permute.xlu1 %3328  ;;  %v12527_v16 = vpop.permute.xlu0 %3445 }
 0x2dc   : > { %3484 = vrot.lane.b32.xlu0 %v3084_v11, %s11102_s25  ;;  %3283 = vrot.lane.b32.xlu1 %v3242_v54, %s11097_s30 }
 0x2de   : > { %v12532_v56 = vpop.permute.xlu1 %3443  ;;  %v12534_v10 = vpop.permute.xlu0 %3326 }
 0x2e0   : > { %3367 = vrot.lane.b32.xlu1 %v3084_v11, %s11096_s21  ;;  %3365 = vrot.lane.b32.xlu0 %v3072_v8, %s11096_s21 }
 0x2e2   : > { %v12539_v36 = vpop.permute.xlu1 %3394  ;;  %v12541_v30 = vpop.permute.xlu0 %3511 }
 0x2e4   : > { %3205 = vrot.lane.b32.xlu1 %v3084_v11, %s11091_s15  ;;  %3441 = vrot.lane.b32.xlu0 %v12543_v51, %s11099_s14  ;;  %v10829_v11 = vld [vmem:[#allocation2 + $0x5c] ss:$0 sps:$4 sm:$0x11]  }
 0x2e5   : > { %v3247_v61 = vrot.slane %v10829_v11, 1 }
 0x2e6   : > { %v12548_v54 = vpop.permute.xlu1 %3275  ;;  %v12550_v37 = vpop.permute.xlu0 %3277 }
 0x2e8   : > { %3482 = vrot.lane.b32.xlu1 %v3072_v8, %s11102_s25  ;;  %3322 = vrot.lane.b32.xlu0 %v12552_v9, %s11094_s22 }
 0x2ea   : > { %v12558_v44 = vpop.permute.xlu1 %3410  ;;  %v3393_v39 = vpop.permute.xlu0 %3392 }
 0x2ec   : > { %3203 = vrot.lane.b32.xlu1 %v3072_v8, %s11091_s15  ;;  %3523 = vrot.lane.b32.xlu0 %v3251_v28, %s11100_s16  ;;  %v3248_v8 = vsel %vm1447_vm6, %v3246_v41, %v3247_v61  ;;  %v3086_v61 = vshrl.u32 %v12552_v9, 16  ;;  %v3093_v41 = vshll.u32 %v10829_v11, 16 }
 0x2ee   : > { %v12563_v5 = vpop.permute.xlu1 %3291  ;;  %v12565_v2 = vpop.permute.xlu0 %3527  ;;  %v3091_v55 = vor.u32 %v3090_v25, %v3086_v61  ;;  %v3095_v46 = vrot.slane %v3093_v41, 1 }
 0x2f0   : > { %3324 = vrot.lane.b32.xlu1 %v12543_v51, %s11094_s22  ;;  %3289 = vrot.lane.b32.xlu0 %v3251_v28, %s11097_s30  ;;  %v3096_v11 = vsel %vm1222_vm4, %v3091_v55, %v3095_v46 }
 0x2f2   : > { %v12572_v47 = vpop.permute.xlu1 %3359  ;;  %v12574_v14 = vpop.permute.xlu0 %3293 }
 0x2f4   : > { %3439 = vrot.lane.b32.xlu1 %v12552_v9, %s11099_s14  ;;  %3521 = vrot.lane.b32.xlu0 %v3248_v8, %s11100_s16 }
 0x2f6   : > { %v12582_v23 = vpop.permute.xlu1 %3197  ;;  %v12584_v13 = vpop.permute.xlu0 %3525 }
 0x2f8   : > { %3406 = vrot.lane.b32.xlu1 %v3251_v28, %s11101_s20  ;;  %3404 = vrot.lane.b32.xlu0 %v3248_v8, %s11101_s20  ;;  %v3576_v28 = vsel %vm1865_vm2, %v3544_v40, %v12496_v29  ;;  %v3148_v29 = vshll.u32 %v12384_v43, 16 }
 0x2f9   : > { %v3608_v42 = vsel %vm1931_vm9, %v3576_v28, %v12520_v50 }
 0x2fa   : > { %v12589_v53 = vpop.permute.xlu1 %3195  ;;  %v12591_v63 = vpop.permute.xlu0 %3408 }
 0x2fc   : > { %3287 = vrot.lane.b32.xlu1 %v3248_v8, %s11097_s30  ;;  %3488 = vrot.lane.b32.xlu0 %v3108_v18, %s11102_s25  ;;  %v10830_v8 = vld [vmem:[#allocation2 + $0x98] ss:$0 sps:$4 sm:$0x11]  }
 0x2fd   : > { %v3153_v46 = vshll.u32 %v10830_v8, 16 }
 0x2fe   : > { %v12598_v34 = vpop.permute.xlu1 %3316  ;;  %v3477_v48 = vpop.permute.xlu0 %3476 }
 0x300   : > { %3371 = vrot.lane.b32.xlu1 %v3108_v18, %s11096_s21  ;;  %3369 = vrot.lane.b32.xlu0 %v3096_v11, %s11096_s21 }
 0x302   : > { %v12607_v25 = vpop.permute.xlu1 %3375  ;;  %v3358_v45 = vpop.permute.xlu0 %3357 }
 0x303   : > { %v3640_v15 = vsel %vm1997_vm0, %v3608_v42, %v3358_v45  ;;  %v3155_v42 = vrot.slane %v3153_v46, 1 }
 0x304   : > { %v3673_v55 = vsel %vm3671_vm13, %v3640_v15, %v3393_v39  ;;  %3209 = vrot.lane.b32.xlu1 %v3108_v18, %s11091_s15  ;;  %3377 = vrot.lane.b32.xlu0 %v12503_v3, %s11096_s21  ;;  %v3146_v39 = vshrl.u32 %v12384_v43, 16  ;;  %v3150_v18 = vrot.slane %v3148_v29, 1  ;;  %v12629_v3 = vld [vmem:[#allocation2 + $0x9c] sm:$0xff]  }
 0x305   : > { %v3706_v50 = vsel %vm3704_vm5, %v3673_v55, %v12507_v35  ;;  %15448 = vst [vmem:[#allocation44_spill] sm:$0xff] %v12629_v3  ;;  %v3160_v45 = vshll.u32 %v12629_v3, 16  ;;  %v3261_v55 = vrot.slane %v12384_v43, 1 }
 0x306   : > { %v12617_v31 = vpop.permute.xlu1 %3213  ;;  %v12619_v61 = vpop.permute.xlu0 %3433  ;;  %v3739_v41 = vsel %vm3737_vm7, %v3706_v50, %v3477_v48  ;;  %v3151_v28 = vor.u32 %v3150_v18, %v3146_v39  ;;  %v3262_v50 = vrot.slane %v10830_v8, 1 }
 0x307   : > { %v3772_v40 = vsel %vm3770_vm10, %v3739_v41, %v12541_v30  ;;  %v10832_v30 = vld [vmem:[#allocation2 + $0xa4] ss:$0 sps:$4 sm:$0x11]   ;;  %v3162_v39 = vrot.slane %v3160_v45, 1 }
 0x308   : > { %3486 = vrot.lane.b32.xlu1 %v3096_v11, %s11102_s25  ;;  %3412 = vrot.lane.b32.xlu0 %v12445_v22, %s11101_s20  ;;  %v3156_v29 = vsel %vm1222_vm4, %v3151_v28, %v3155_v42  ;;  %v3265_v41 = vrot.slane %v10832_v30, 1  ;;  %v3165_v18 = vshll.u32 %v10832_v30, 16  ;;  %v3263_v28 = vsel %vm1447_vm6, %v3261_v55, %v3262_v50  ;;  %v12671_v50 = vld [vmem:[#allocation2 + $0xa8] sm:$0xff]  }
 0x309   : > { %10554 = vmatprep.mubr.msk.bf16.mxu1 %vm15363_vm14, %v3772_v40  ;;  %v3158_v40 = vshrl.u32 %v12629_v3, 16  ;;  %15449 = vst [vmem:[#allocation45_spill] sm:$0xff] %v12671_v50  ;;  %v3170_v4 = vshrl.u32 %v12671_v50, 16 }
 0x30a   : > { %v12631_v35 = vpop.permute.xlu1 %3431  ;;  %v12633_v48 = vpop.permute.xlu0 %3492  ;;  %v3167_v42 = vrot.slane %v3165_v18, 1 }
 0x30b   : > { %v3163_v8 = vor.u32 %v3162_v39, %v3158_v40  ;;  %v10838_v40 = vld [vmem:[#allocation2 + $0xb0] ss:$0 sps:$4 sm:$0x11]   ;;  %v3172_v39 = vshll.u32 %v12671_v50, 16 }
 0x30c   : > { %3207 = vrot.lane.b32.xlu1 %v3096_v11, %s11091_s15  ;;  %3449 = vrot.lane.b32.xlu0 %v12384_v43, %s11099_s14  ;;  %v3264_v11 = vrot.slane %v12629_v3, 1  ;;  %v3177_v60 = vshll.u32 %v10838_v40, 16 }
 0x30d   : > { %v3168_v30 = vsel %vm1222_vm4, %v3163_v8, %v3167_v42 }
 0x30e   : > { %v12639_v15 = vpop.permute.xlu1 %3490  ;;  %v12641_v22 = vpop.permute.xlu0 %3314  ;;  %v3266_v43 = vsel %vm1447_vm6, %v3264_v11, %v3265_v41 }
 0x310   : > { %3379 = vrot.lane.b32.xlu1 %v3156_v29, %s11096_s21  ;;  %3496 = vrot.lane.b32.xlu0 %v3156_v29, %s11102_s25 }
 0x312   : > { %v12649_v46 = vpop.permute.xlu1 %3211  ;;  %v12651_v52 = vpop.permute.xlu0 %3373 }
 0x314   : > { %3414 = vrot.lane.b32.xlu1 %v3263_v28, %s11101_s20  ;;  %3531 = vrot.lane.b32.xlu0 %v3263_v28, %s11100_s16 }
 0x316   : > { %v12657_v6 = vpop.permute.xlu1 %3332  ;;  %v12659_v20 = vpop.permute.xlu0 %3330 }
 0x318   : > { %3451 = vrot.lane.b32.xlu1 %v12629_v3, %s11099_s14  ;;  %3533 = vrot.lane.b32.xlu0 %v3266_v43, %s11100_s16 }
 0x31a   : > { %v12665_v45 = vpop.permute.xlu1 %3447  ;;  %v12667_v55 = vpop.permute.xlu0 %3515 }
 0x31c   : > { %3498 = vrot.lane.b32.xlu1 %v3168_v30, %s11102_s25  ;;  %3297 = vrot.lane.b32.xlu0 %v3263_v28, %s11097_s30  ;;  %v10977_v28 = vld [vmem:[#allocation2 + $0xc] sm:$0xff]  }
 0x31d   : > { %v3546_v42 = vsel %vm1799_vm15, %v10977_v28, %v12589_v53  ;;  %v3184_v28 = vshll.u32 %v12694_v19, 16 }
 0x31e   : > { %v12673_v11 = vpop.permute.xlu1 %3398  ;;  %v12675_v41 = vpop.permute.xlu0 %3281  ;;  %v3578_v21 = vsel %vm1865_vm2, %v3546_v42, %v12548_v54  ;;  %v3267_v54 = vrot.slane %v12671_v50, 1  ;;  %v10978_v42 = vld [vmem:[#allocation2 + $0x18] sm:$0xff]  }
 0x320   : > { %3217 = vrot.lane.b32.xlu1 %v3156_v29, %s11091_s15  ;;  %3334 = vrot.lane.b32.xlu0 %v12629_v3, %s11094_s22  ;;  %v3174_v29 = vrot.slane %v3172_v39, 1  ;;  %v3610_v39 = vsel %vm1931_vm9, %v3578_v21, %v12518_v26 }
 0x321   : > { %v3642_v21 = vsel %vm1997_vm0, %v3610_v39, %v12572_v47  ;;  %v3186_v39 = vrot.slane %v3184_v28, 1 }
 0x322   : > { %v12681_v18 = vpop.permute.xlu1 %3279  ;;  %v3514_v8 = vpop.permute.xlu0 %3513  ;;  %v3175_v58 = vor.u32 %v3174_v29, %v3170_v4  ;;  %v10841_v4 = vld [vmem:[#allocation2 + $0xbc] ss:$0 sps:$4 sm:$0x11]   ;;  %v3548_v29 = vsel %vm1799_vm15, %v10978_v42, %v12582_v23  ;;  %v3675_v23 = vsel %vm3671_vm13, %v3642_v21, %v12539_v36 }
 0x323   : > { %v3580_v47 = vsel %vm1865_vm2, %v3548_v29, %v12550_v37  ;;  %v3189_v42 = vshll.u32 %v10841_v4, 16  ;;  %v3708_v1 = vsel %vm3704_vm5, %v3675_v23, %v12631_v35 }
 0x324   : > { %3219 = vrot.lane.b32.xlu1 %v3168_v30, %s11091_s15  ;;  %3381 = vrot.lane.b32.xlu0 %v3168_v30, %s11096_s21  ;;  %v3179_v30 = vrot.slane %v3177_v60, 1  ;;  %v3612_v38 = vsel %vm1931_vm9, %v3580_v47, %v12641_v22  ;;  %v3187_v22 = vor.u32 %v3186_v39, %v3182_v57 }
 0x326   : > { %v12688_v59 = vpop.permute.xlu1 %3295  ;;  %v3397_v12 = vpop.permute.xlu0 %3396  ;;  %v3180_v60 = vsel %vm1222_vm4, %v3175_v58, %v3179_v30  ;;  %v3270_v58 = vrot.slane %v12694_v19, 1  ;;  %v3271_v30 = vrot.slane %v10841_v4, 1  ;;  %v3191_v4 = vrot.slane %v3189_v42, 1  ;;  %v10844_v42 = vld [vmem:[#allocation2 + $0xcc] sm:$0xff]  }
 0x328   : > { %3299 = vrot.lane.b32.xlu1 %v3266_v43, %s11097_s30  ;;  %3416 = vrot.lane.b32.xlu0 %v3266_v43, %s11101_s20  ;;  %v3268_v43 = vrot.slane %v10838_v40, 1  ;;  %v3272_v35 = vsel %vm1447_vm6, %v3270_v58, %v3271_v30 }
 0x32a   : > { %v12696_v0 = vpop.permute.xlu1 %3363  ;;  %v12698_v53 = vpop.permute.xlu0 %3529  ;;  %v3269_v40 = vsel %vm1447_vm6, %v3267_v54, %v3268_v43 }
 0x32c   : > { %3336 = vrot.lane.b32.xlu1 %v12671_v50, %s11094_s22  ;;  %3453 = vrot.lane.b32.xlu0 %v12671_v50, %s11099_s14 }
 0x32e   : > { %v12713_v26 = vpop.permute.xlu1 %3201  ;;  %v3481_v17 = vpop.permute.xlu0 %3480 }
 0x330   : > { %3383 = vrot.lane.b32.xlu1 %v3180_v60, %s11096_s21  ;;  %3500 = vrot.lane.b32.xlu0 %v3180_v60, %s11102_s25 }
 0x332   : > { %v3479_v54 = vpop.permute.xlu1 %3478  ;;  %v3362_v43 = vpop.permute.xlu0 %3361 }
 0x333   : > { %v3741_v33 = vsel %vm3737_vm7, %v3708_v1, %v3479_v54  ;;  %v3644_v50 = vsel %vm1997_vm0, %v3612_v38, %v3362_v43 }
 0x334   : > { %v3774_v3 = vsel %vm3770_vm10, %v3741_v33, %v3514_v8  ;;  %v3677_v36 = vsel %vm3671_vm13, %v3644_v50, %v3397_v12  ;;  %3418 = vrot.lane.b32.xlu1 %v3269_v40, %s11101_s20  ;;  %3535 = vrot.lane.b32.xlu0 %v3269_v40, %s11100_s16  ;;  %v3192_v12 = vsel %vm1222_vm4, %v3187_v22, %v3191_v4 }
 0x335   : > { %v3710_v37 = vsel %vm3704_vm5, %v3677_v36, %v12619_v61  ;;  %10555 = vmatmul.mubr.msk.bf16.vlgmr.msra.gmra.mrb[16].mxu1 %vm15363_vm14, %v3774_v3 }
 0x336   : > { %v3200_v1 = vpop.permute.xlu1 %3199  ;;  %v12738_v28 = vpop.permute.xlu0 %3437  ;;  %v3743_v38 = vsel %vm3737_vm7, %v3710_v37, %v3481_v17  ;;  %v10842_v17 = vld [vmem:[#allocation2 + $0xc0] sm:$0xff]  }
 0x337   : > { %v3776_v33 = vsel %vm3770_vm10, %v3743_v38, %v12667_v55  ;;  %v10843_v55 = vld [vmem:[#allocation2 + $0xc8] ss:$0 sps:$4 sm:$0x11]   ;;  %v3348_v8 = vshll.u32 %v10842_v17, 16  ;;  %v3389_v36 = vrot.slane %v10842_v17, 1  ;;  %v3550_v22 = vsel %vm1799_vm15, %v12350_v27, %v3200_v1 }
 0x338   : > { %3455 = vrot.lane.b32.xlu1 %v12694_v19, %s11099_s14  ;;  %3537 = vrot.lane.b32.xlu0 %v3272_v35, %s11100_s16  ;;  %v3353_v30 = vshll.u32 %v10843_v55, 16  ;;  %v3390_v37 = vrot.slane %v10843_v55, 1  ;;  %v10845_v38 = vld [vmem:[#allocation2 + $0xd4] ss:$0 sps:$4 sm:$0x11]   ;;  %v3465_v1 = vshrl.u32 %v10844_v42, 16 }
 0x339   : > { %10558 = vmatprep.mubr.msk.bf16.mxu1 %vm15363_vm14, %v3776_v33  ;;  %v3350_v58 = vrot.slane %v3348_v8, 1  ;;  %v3467_v33 = vshll.u32 %v10844_v42, 16 }
 0x33a   : > { %v12748_v61 = vpop.permute.xlu1 %3320  ;;  %v3319_v57 = vpop.permute.xlu0 %3318  ;;  %v3355_v39 = vrot.slane %v3353_v30, 1 }
 0x33b   : > { %v3469_v55 = vrot.slane %v3467_v33, 1  ;;  %v3508_v33 = vrot.slane %v10844_v42, 1 }
 0x33c   : > { %3502 = vrot.lane.b32.xlu1 %v3192_v12, %s11102_s25  ;;  %3301 = vrot.lane.b32.xlu0 %v3269_v40, %s11097_s30  ;;  %v3346_v40 = vshrl.u32 %v10842_v17, 16 }
 0x33e   : > { %v3436_v3 = vpop.permute.xlu1 %3435  ;;  %v12752_v50 = vpop.permute.xlu0 %3519 }
 0x340   : > { %3221 = vrot.lane.b32.xlu1 %v3180_v60, %s11091_s15  ;;  %3338 = vrot.lane.b32.xlu0 %v12694_v19, %s11094_s22  ;;  %v3351_v60 = vor.u32 %v3350_v58, %v3346_v40  ;;  %v3582_v40 = vsel %vm1865_vm2, %v3550_v22, %v12681_v18  ;;  %v3472_v58 = vshll.u32 %v10845_v38, 16 }
 0x342   : > { %v12757_v29 = vpop.permute.xlu1 %3494  ;;  %v12759_v21 = vpop.permute.xlu0 %3285  ;;  %v3356_v4 = vsel %vm1222_vm4, %v3351_v60, %v3355_v39  ;;  %v3614_v60 = vsel %vm1931_vm9, %v3582_v40, %v12598_v34 }
 0x344   : > { %3223 = vrot.lane.b32.xlu1 %v3192_v12, %s11091_s15  ;;  %3385 = vrot.lane.b32.xlu0 %v3192_v12, %s11096_s21 }
 0x346   : > { %v12763_v23 = vpop.permute.xlu1 %3215  ;;  %v3518_v47 = vpop.permute.xlu0 %3517 }
 0x348   : > { %3303 = vrot.lane.b32.xlu1 %v3272_v35, %s11097_s30  ;;  %3420 = vrot.lane.b32.xlu0 %v3272_v35, %s11101_s20  ;;  %v3552_v35 = vsel %vm1799_vm15, %v12320_v62, %v12713_v26 }
 0x349   : > { %v3584_v27 = vsel %vm1865_vm2, %v3552_v35, %v12675_v41  ;;  %v3474_v41 = vrot.slane %v3472_v58, 1  ;;  %v3509_v35 = vrot.slane %v10845_v38, 1 }
 0x34a   : > { %v12767_v54 = vpop.permute.xlu1 %3402  ;;  %v3401_v43 = vpop.permute.xlu0 %3400  ;;  %v3616_v30 = vsel %vm1931_vm9, %v3584_v27, %v3319_v57 }
 0x34c   : > { %3340 = vrot.lane.b32.xlu1 %v10842_v17, %s11094_s22  ;;  %3457 = vrot.lane.b32.xlu0 %v10842_v17, %s11099_s14  ;;  %v3391_v17 = vsel %vm1447_vm6, %v3389_v36, %v3390_v37  ;;  %v3470_v36 = vor.u32 %v3469_v55, %v3465_v1  ;;  %v3646_v37 = vsel %vm1997_vm0, %v3614_v60, %v12696_v0 }
 0x34d   : > { %v3679_v34 = vsel %vm3671_vm13, %v3646_v37, %v12673_v11 }
 0x34e   : > { %v3284_v12 = vpop.permute.xlu1 %3283  ;;  %v3485_v8 = vpop.permute.xlu0 %3484  ;;  %v3712_v40 = vsel %vm3704_vm5, %v3679_v34, %v3436_v3 }
 0x350   : > { %3387 = vrot.lane.b32.xlu1 %v3356_v4, %s11096_s21  ;;  %3504 = vrot.lane.b32.xlu0 %v3356_v4, %s11102_s25 }
 0x352   : > { %v3368_v62 = vpop.permute.xlu1 %3367  ;;  %v3366_v26 = vpop.permute.xlu0 %3365 }
 0x353   : > { %v3648_v18 = vsel %vm1997_vm0, %v3616_v30, %v3366_v26 }
 0x354   : > { %v3681_v39 = vsel %vm3671_vm13, %v3648_v18, %v3401_v43  ;;  %3422 = vrot.lane.b32.xlu1 %v3391_v17, %s11101_s20  ;;  %3539 = vrot.lane.b32.xlu0 %v3391_v17, %s11100_s16  ;;  %v3475_v43 = vsel %vm1222_vm4, %v3470_v36, %v3474_v41 }
 0x355   : > { %v3714_v4 = vsel %vm3704_vm5, %v3681_v39, %v12738_v28 }
 0x356   : > { %v3206_v22 = vpop.permute.xlu1 %3205  ;;  %v3442_v57 = vpop.permute.xlu0 %3441  ;;  %v3747_v0 = vsel %vm3737_vm7, %v3714_v4, %v3485_v8 }
 0x357   : > { %v3780_v11 = vsel %vm3770_vm10, %v3747_v0, %v12752_v50  ;;  %v3556_v50 = vsel %vm1799_vm15, %v12479_v49, %v3206_v22 }
 0x358   : > { %3459 = vrot.lane.b32.xlu1 %v10844_v42, %s11099_s14  ;;  %v3510_v42 = vsel %vm1447_vm6, %v3508_v33, %v3509_v35  ;;  %v3588_v41 = vsel %vm1865_vm2, %v3556_v50, %v12759_v21 }
 0x35a   : > { %v3483_v17 = vpop.permute.xlu1 %3482  ;;  %v3323_v27 = vpop.permute.xlu0 %3322 }
 0x35b   : > { %v3745_v1 = vsel %vm3737_vm7, %v3712_v40, %v3483_v17  ;;  %v3620_v37 = vsel %vm1931_vm9, %v3588_v41, %v3323_v27 }
 0x35c   : > { %3506 = vrot.lane.b32.xlu1 %v3475_v43, %s11102_s25  ;;  %v3778_v28 = vsel %vm3770_vm10, %v3745_v1, %v3518_v47 }
 0x35d   : > { %10559 = vmatmul.mubr.msk.bf16.gmra.mrb[20].mxu1 %vm15363_vm14, %v3778_v28 }
 0x35e   : > { %v3204_v38 = vpop.permute.xlu1 %3203  ;;  %10562 = vmatprep.mubr.msk.bf16.mxu1 %vm15363_vm14, %v3780_v11  ;;  %v3524_v3 = vpop.permute.xlu0 %3523  ;;  %v10979_v11 = vld [vmem:[#allocation2 + $0x6c] sm:$0xff]  }
 0x35f   : > { %v3554_v47 = vsel %vm1799_vm15, %v12487_v7, %v3204_v38 }
 0x360   : > { %3541 = vrot.lane.b32.xlu1 %v3510_v42, %s11100_s16  ;;  %v3586_v36 = vsel %vm1865_vm2, %v3554_v47, %v3284_v12 }
 0x361   : > { %v3618_v43 = vsel %vm1931_vm9, %v3586_v36, %v12748_v61 }
 0x362   : > { %v3325_v8 = vpop.permute.xlu1 %3324  ;;  %v3290_v55 = vpop.permute.xlu0 %3289  ;;  %v3650_v49 = vsel %vm1997_vm0, %v3618_v43, %v3368_v62 }
 0x363   : > { %v3683_v17 = vsel %vm3671_vm13, %v3650_v49, %v12767_v54  ;;  %v3562_v54 = vsel %vm1799_vm15, %v10979_v11, %v12649_v46 }
 0x366   : > { %v3440_v58 = vpop.permute.xlu1 %3439  ;;  %v3522_v30 = vpop.permute.xlu0 %3521 }
 0x367   : > { %v3716_v27 = vsel %vm3704_vm5, %v3683_v17, %v3440_v58  ;;  %v3594_v58 = vsel %vm1865_vm2, %v3562_v54, %v12563_v5  ;;  %v10847_v17 = vld [vmem:[#allocation2 + $0x8] ss:$0 sps:$4 sm:$0x11]  }
 0x36a   : > { %v3407_v26 = vpop.permute.xlu1 %3406  ;;  %v3405_v60 = vpop.permute.xlu0 %3404 }
 0x36e   : > { %v3288_v18 = vpop.permute.xlu1 %3287  ;;  %v3489_v39 = vpop.permute.xlu0 %3488 }
 0x372   : > { %v3372_v4 = vpop.permute.xlu1 %3371  ;;  %v3370_v34 = vpop.permute.xlu0 %3369 }
 0x373   : > { %v3652_v33 = vsel %vm1997_vm0, %v3620_v37, %v3370_v34 }
 0x374   : > { %v3685_v7 = vsel %vm3671_vm13, %v3652_v33, %v3405_v60 }
 0x375   : > { %v3718_v12 = vsel %vm3704_vm5, %v3685_v7, %v3442_v57 }
 0x376   : > { %v3210_v22 = vpop.permute.xlu1 %3209  ;;  %v3378_v35 = vpop.permute.xlu0 %3377  ;;  %v3751_v62 = vsel %vm3737_vm7, %v3718_v12, %v3489_v39 }
 0x377   : > { %v3560_v21 = vsel %vm1799_vm15, %v12543_v51, %v3210_v22 }
 0x378   : > { %v3592_v40 = vsel %vm1865_vm2, %v3560_v21, %v3290_v55 }
 0x379   : > { %v3624_v61 = vsel %vm1931_vm9, %v3592_v40, %v12534_v10  ;;  %v3784_v10 = vsel %vm3770_vm10, %v3751_v62, %v3524_v3  ;;  %v10981_v62 = vld [vmem:[#allocation2 + $0x90] sm:$0xff]  }
 0x37a   : > { %v3487_v0 = vpop.permute.xlu1 %3486  ;;  %v3413_v1 = vpop.permute.xlu0 %3412  ;;  %v3656_v57 = vsel %vm1997_vm0, %v3624_v61, %v12651_v52 }
 0x37b   : > { %v3749_v28 = vsel %vm3737_vm7, %v3716_v27, %v3487_v0  ;;  %v3689_v55 = vsel %vm3671_vm13, %v3656_v57, %v12591_v63  ;;  %v3626_v63 = vsel %vm1931_vm9, %v3594_v58, %v12525_v24 }
 0x37c   : > { %v3782_v51 = vsel %vm3770_vm10, %v3749_v28, %v3522_v30  ;;  %v3722_v3 = vsel %vm3704_vm5, %v3689_v55, %v12527_v16  ;;  %v3658_v36 = vsel %vm1997_vm0, %v3626_v63, %v12607_v25  ;;  %v3566_v25 = vsel %vm1799_vm15, %v12386_v32, %v12763_v23  ;;  %v10848_v28 = vld [vmem:[#allocation2 + $0xcc] sm:$0xff]  }
 0x37d   : > { %10563 = vmatmul.mubr.msk.bf16.gmra.mrb[24].mxu1 %vm15363_vm14, %v3782_v51  ;;  %v3755_v5 = vsel %vm3737_vm7, %v3722_v3, %v12633_v48  ;;  %5244 = vrot.lane.b32.xlu1 %v10848_v28, %s11099_s14 }
 0x37e   : > { %v3208_v42 = vpop.permute.xlu1 %3207  ;;  %10566 = vmatprep.mubr.msk.bf16.mxu1 %vm15363_vm14, %v3784_v10  ;;  %v3450_v38 = vpop.permute.xlu0 %3449 }
 0x37f   : > { %v3558_v52 = vsel %vm1799_vm15, %v12552_v9, %v3208_v42 }
 0x380   : > { %v3590_v30 = vsel %vm1865_vm2, %v3558_v52, %v3288_v18  ;;  %v10980_v18 = vld [vmem:[#allocation2 + $0x78] sm:$0xff]  }
 0x381   : > { %v3622_v46 = vsel %vm1931_vm9, %v3590_v30, %v3325_v8  ;;  %v3564_v16 = vsel %vm1799_vm15, %v10980_v18, %v12617_v31  ;;  %v3691_v31 = vsel %vm3671_vm13, %v3658_v36, %v12558_v44  ;;  %v3598_v44 = vsel %vm1865_vm2, %v3566_v25, %v12688_v59 }
 0x382   : > { %v3654_v60 = vsel %vm1997_vm0, %v3622_v46, %v3372_v4  ;;  %v3380_v47 = vpop.permute.xlu1 %3379  ;;  %v3497_v50 = vpop.permute.xlu0 %3496  ;;  %v3596_v48 = vsel %vm1865_vm2, %v3564_v16, %v12574_v14  ;;  %v3630_v33 = vsel %vm1931_vm9, %v3598_v44, %v12657_v6  ;;  %v15450_v16 = vld [vmem:[#allocation44_spill] sm:$0xff] }
 0x383   : > { %v3687_v39 = vsel %vm3671_vm13, %v3654_v60, %v3407_v26  ;;  %v3662_v59 = vsel %vm1997_vm0, %v3630_v33, %v3380_v47 }
 0x384   : > { %v3720_v9 = vsel %vm3704_vm5, %v3687_v39, %v12532_v56  ;;  %v3788_v56 = vsel %vm3770_vm10, %v3755_v5, %v12565_v2 }
 0x385   : > { %v3753_v8 = vsel %vm3737_vm7, %v3720_v9, %v12639_v15  ;;  %v3724_v15 = vsel %vm3704_vm5, %v3691_v31, %v12665_v45 }
 0x386   : > { %v3415_v41 = vpop.permute.xlu1 %3414  ;;  %v3532_v24 = vpop.permute.xlu0 %3531  ;;  %v3786_v26 = vsel %vm3770_vm10, %v3753_v8, %v12584_v13  ;;  %v3628_v13 = vsel %vm1931_vm9, %v3596_v48, %v12659_v20  ;;  %v3757_v4 = vsel %vm3737_vm7, %v3724_v15, %v12757_v29 }
 0x387   : > { %10567 = vmatmul.mubr.msk.bf16.gmra.mrb[28].mxu1 %vm15363_vm14, %v3786_v26  ;;  %v3660_v14 = vsel %vm1997_vm0, %v3628_v13, %v3378_v35  ;;  %v3790_v45 = vsel %vm3770_vm10, %v3757_v4, %v12698_v53  ;;  %v3695_v7 = vsel %vm3671_vm13, %v3662_v59, %v3415_v41  ;;  %v10846_v53 = vld [vmem:[#allocation2] sm:$0xff]  }
 0x388   : > { %10570 = vmatprep.mubr.msk.bf16.mxu1 %vm15363_vm14, %v3788_v56  ;;  %v3693_v34 = vsel %vm3671_vm13, %v3660_v14, %v3413_v1  ;;  %v4789_v61 = vshll.u32 %v10846_v53, 16  ;;  %v4787_v27 = vshrl.u32 %v10846_v53, 16  ;;  %v4794_v1 = vshll.u32 %v10847_v17, 16 }
 0x389   : > { %v3726_v32 = vsel %vm3704_vm5, %v3693_v34, %v3450_v38  ;;  %v5010_v42 = vrot.slane %v10846_v53, 1  ;;  %v5011_v38 = vrot.slane %v10847_v17, 1 }
 0x38a   : > { %v3452_v37 = vpop.permute.xlu1 %3451  ;;  %v3534_v2 = vpop.permute.xlu0 %3533  ;;  %v3759_v23 = vsel %vm3737_vm7, %v3726_v32, %v3497_v50  ;;  %v4791_v0 = vrot.slane %v4789_v61, 1  ;;  %v4796_v10 = vrot.slane %v4794_v1, 1  ;;  %v15451_v32 = vld [vmem:[#allocation45_spill] sm:$0xff] }
 0x38b   : > { %v3792_v29 = vsel %vm3770_vm10, %v3759_v23, %v3532_v24  ;;  %v3728_v49 = vsel %vm3704_vm5, %v3695_v7, %v3452_v37  ;;  %v5012_v46 = vsel %vm1447_vm6, %v5010_v42, %v5011_v38 }
 0x38c   : > { %v4792_v54 = vor.u32 %v4791_v0, %v4787_v27 }
 0x38e   : > { %v3499_v20 = vpop.permute.xlu1 %3498  ;;  %v3298_v43 = vpop.permute.xlu0 %3297  ;;  %v4797_v55 = vsel %vm1222_vm4, %v4792_v54, %v4796_v10  ;;  %v12948_v10 = vld [vmem:[#allocation3] ss:$0 sm:$0xff] }
 0x38f   : > { %10571 = vmatmul.mubr.msk.bf16.gmra.mrb[32].mxu1 %vm15363_vm14, %v3790_v45  ;;  %v3761_v12 = vsel %vm3737_vm7, %v3728_v49, %v3499_v20  ;;  %4978 = vrot.lane.b32.xlu0 %v4797_v55, %s11091_s15 }
 0x390   : > { %10574 = vmatprep.mubr.msk.bf16.mxu1 %vm15363_vm14, %v3792_v29  ;;  %v3794_v6 = vsel %vm3770_vm10, %v3761_v12, %v3534_v2 }
 0x392   : > { %v3218_v22 = vpop.permute.xlu1 %3217  ;;  %v3335_v35 = vpop.permute.xlu0 %3334 }
 0x393   : > { %v3568_v57 = vsel %vm1799_vm15, %v10981_v62, %v3218_v22  ;;  %5058 = vrot.lane.b32.xlu0 %v5012_v46, %s11097_s30 }
 0x394   : > { %v3600_v52 = vsel %vm1865_vm2, %v3568_v57, %v3298_v43 }
 0x395   : > { %v3632_v3 = vsel %vm1931_vm9, %v3600_v52, %v3335_v35 }
 0x396   : > { %v3220_v21 = vpop.permute.xlu1 %3219  ;;  %v3382_v40 = vpop.permute.xlu0 %3381 }
 0x397   : > { %10575 = vmatmul.mubr.msk.bf16.gmra.mrb[36].mxu1 %vm15363_vm14, %v3794_v6  ;;  %v3664_v50 = vsel %vm1997_vm0, %v3632_v3, %v3382_v40  ;;  %v3570_v36 = vsel %vm1799_vm15, %v15450_v16, %v3220_v21 }
 0x39a   : > { %v3300_v51 = vpop.permute.xlu1 %3299  ;;  %v3417_v11 = vpop.permute.xlu0 %3416 }
 0x39b   : > { %v3697_v63 = vsel %vm3671_vm13, %v3664_v50, %v3417_v11  ;;  %v3602_v41 = vsel %vm1865_vm2, %v3570_v36, %v3300_v51 }
 0x39e   : > { %v3337_v58 = vpop.permute.xlu1 %3336  ;;  %v3454_v30 = vpop.permute.xlu0 %3453 }
 0x39f   : > { %v3730_v39 = vsel %vm3704_vm5, %v3697_v63, %v3454_v30  ;;  %v3634_v56 = vsel %vm1931_vm9, %v3602_v41, %v3337_v58 }
 0x3a2   : > { %v3384_v60 = vpop.permute.xlu1 %3383  ;;  %v3501_v47 = vpop.permute.xlu0 %3500 }
 0x3a3   : > { %v3763_v9 = vsel %vm3737_vm7, %v3730_v39, %v3501_v47  ;;  %v3666_v48 = vsel %vm1997_vm0, %v3634_v56, %v3384_v60 }
 0x3a6   : > { %v3419_v5 = vpop.permute.xlu1 %3418  ;;  %v3536_v8 = vpop.permute.xlu0 %3535 }
 0x3a7   : > { %v3796_v18 = vsel %vm3770_vm10, %v3763_v9, %v3536_v8  ;;  %v3699_v31 = vsel %vm3671_vm13, %v3666_v48, %v3419_v5 }
 0x3a8   : > { %10578 = vmatprep.mubr.msk.bf16.mxu1 %vm15363_vm14, %v3796_v18 }
 0x3aa   : > { %v3456_v24 = vpop.permute.xlu1 %3455  ;;  %v3538_v26 = vpop.permute.xlu0 %3537 }
 0x3ab   : > { %v3732_v25 = vsel %vm3704_vm5, %v3699_v31, %v3456_v24 }
 0x3ae   : > { %v3503_v13 = vpop.permute.xlu1 %3502  ;;  %v3302_v15 = vpop.permute.xlu0 %3301 }
 0x3af   : > { %v3765_v37 = vsel %vm3737_vm7, %v3732_v25, %v3503_v13  ;;  %v4499_v13 = vld [vmem:[#allocation2 + $0x18] sm:$0xf] }
 0x3b0   : > { %v3798_v2 = vsel %vm3770_vm10, %v3765_v37, %v3538_v26 }
 0x3b1   : > { %10579 = vmatmul.mubr.msk.bf16.gmra.mrb[40].mxu1 %vm15363_vm14, %v3798_v2 }
 0x3b2   : > { %v3222_v4 = vpop.permute.xlu1 %3221  ;;  %v3339_v14 = vpop.permute.xlu0 %3338 }
 0x3b3   : > { %v3572_v23 = vsel %vm1799_vm15, %v15451_v32, %v3222_v4 }
 0x3b4   : > { %v3604_v45 = vsel %vm1865_vm2, %v3572_v23, %v3302_v15 }
 0x3b5   : > { %v3636_v59 = vsel %vm1931_vm9, %v3604_v45, %v3339_v14  ;;  %v4503_v45 = vld [vmem:[#allocation2 + $0x20] sm:$0x1] }
 0x3b6   : > { %v3224_v44 = vpop.permute.xlu1 %3223  ;;  %v3386_v34 = vpop.permute.xlu0 %3385 }
 0x3b7   : > { %v3668_v22 = vsel %vm1997_vm0, %v3636_v59, %v3386_v34  ;;  %v3574_v61 = vsel %vm1799_vm15, %v12694_v19, %v3224_v44  ;;  %v4492_v34 = vld [vmem:[#allocation2 + $0xc] sm:$0xf] }
 0x3ba   : > { %v3304_v20 = vpop.permute.xlu1 %3303  ;;  %v3421_v43 = vpop.permute.xlu0 %3420 }
 0x3bb   : > { %v3701_v35 = vsel %vm3671_vm13, %v3668_v22, %v3421_v43  ;;  %v3606_v27 = vsel %vm1865_vm2, %v3574_v61, %v3304_v20 }
 0x3be   : > { %v3341_v33 = vpop.permute.xlu1 %3340  ;;  %v3458_v29 = vpop.permute.xlu0 %3457 }
 0x3bf   : > { %v3734_v12 = vsel %vm3704_vm5, %v3701_v35, %v3458_v29  ;;  %v3638_v0 = vsel %vm1931_vm9, %v3606_v27, %v3341_v33  ;;  %v4496_v35 = vld [vmem:[#allocation2 + $0x14] sm:$0x1] }
 0x3c2   : > { %v3388_v7 = vpop.permute.xlu1 %3387  ;;  %v3505_v49 = vpop.permute.xlu0 %3504 }
 0x3c3   : > { %v3767_v53 = vsel %vm3737_vm7, %v3734_v12, %v3505_v49  ;;  %v3670_v62 = vsel %vm1997_vm0, %v3638_v0, %v3388_v7 }
 0x3c6   : > { %v3423_v21 = vpop.permute.xlu1 %3422  ;;  %v3540_v40 = vpop.permute.xlu0 %3539 }
 0x3c7   : > { %v3800_v6 = vsel %vm3770_vm10, %v3767_v53, %v3540_v40  ;;  %v3703_v57 = vsel %vm3671_vm13, %v3670_v62, %v3423_v21 }
 0x3c8   : > { %10582 = vmatprep.mubr.msk.bf16.mxu1 %vm15363_vm14, %v3800_v6 }
 0x3ca   : > { %v3460_v17 = vpop.permute.xlu1 %3459 }
 0x3cb   : > { %v3736_v28 = vsel %vm3704_vm5, %v3703_v57, %v3460_v17 }
 0x3ce   : > { %v3507_v1 = vpop.permute.xlu1 %3506 }
 0x3cf   : > { %v3769_v51 = vsel %vm3737_vm7, %v3736_v28, %v3507_v1 }
 0x3d2   : > { %v3542_v11 = vpop.permute.xlu1 %3541 }
 0x3d3   : > { %v3802_v54 = vsel %vm3770_vm10, %v3769_v51, %v3542_v11 }
 0x3d4   : > { %10583 = vmatmul.mubr.msk.bf16.gmra.mrb[44].mxu1 %vm15363_vm14, %v3802_v54  ;;  %vm15455_vm14 = vmmov %vm15412_vm1 }
 0x408   : > { %v10556_v19 = vpop.f32.mrb[16].mxu1 }
 0x409   : > { %v3926_v42 = vadd.f32 %v10556_v19, %v12948_v10  ;;  %v3917_v38 = vpop.f32.mrb[17].mxu1 }
 0x40a   : > { %v3918_v55 = vadd.f32 %v12948_v10, %v3917_v38  ;;  %v10557_v52 = vpop.f32.mrb[18].mxu1 }
 0x40b   : > { %v4046_v58 = vmax.f32 %v3926_v42, 0.0  ;;  %v3929_v30 = vadd.f32 %v10557_v52, %v12948_v10  ;;  %v3920_v46 = vpop.f32.mrb[19].mxu1 }
 0x40c   : > { %v4044_v3 = vmax.f32 %v3918_v55, 0.0  ;;  %v3921_v60 = vadd.f32 %v12948_v10, %v3920_v46 }
 0x40d   : > { %v10277_v47 = vpack.c.bf16 %v4046_v58, %v4046_v58  ;;  %v4047_v50 = vmax.f32 %v3929_v30, 0.0 }
 0x40e   : > { %v10275_v63 = vpack.c.bf16 %v4044_v3, %v4044_v3  ;;  %v4045_v39 = vmax.f32 %v3921_v60, 0.0 }
 0x40f   : > { %v4190_v9 = vshrl.u32 %v10277_v47, 16  ;;  %v10278_v5 = vpack.c.bf16 %v4047_v50, %v4047_v50  ;;  %v4193_v36 = vshll.u32 %v10277_v47, 16 }
 0x410   : > { %v4173_v8 = vshrl.u32 %v10275_v63, 16  ;;  %v10276_v18 = vpack.c.bf16 %v4045_v39, %v4045_v39  ;;  %v4176_v26 = vshll.u32 %v10275_v63, 16 }
 0x411   : > { %v4192_v16 = vrot.slane %v4190_v9, 7  ;;  %v4198_v41 = vshrl.u32 %v10278_v5, 16  ;;  %v4201_v25 = vshll.u32 %v10278_v5, 16 }
 0x412   : > { %v4175_v24 = vrot.slane %v4173_v8, 7  ;;  %v4181_v56 = vshrl.u32 %v10276_v18, 16  ;;  %v4184_v2 = vshll.u32 %v10276_v18, 16 }
 0x413   : > { %v4195_v48 = vor.u32 %v4193_v36, %v4192_v16  ;;  %v4200_v31 = vrot.slane %v4198_v41, 7  ;;  %v4196_v4 = vrot.slane %v4192_v16, 4 }
 0x414   : > { %v4178_v15 = vor.u32 %v4176_v26, %v4175_v24  ;;  %v4183_v37 = vrot.slane %v4181_v56, 7  ;;  %v4179_v20 = vrot.slane %v4175_v24, 4 }
 0x415   : > { %v4500_v44 = vsel %vm12065_vm12, %v4195_v48, %v4499_v13  ;;  %v4203_v32 = vor.u32 %v4201_v25, %v4200_v31  ;;  %v4205_v23 = vrot.slane %v4200_v31, 4 }
 0x416   : > { %4501 = vst [vmem:[#allocation2 + $0x18] sm:$0xf] %v4500_v44  ;;  %v4493_v43 = vsel %vm12065_vm12, %v4178_v15, %v4492_v34  ;;  %v4186_v33 = vor.u32 %v4184_v2, %v4183_v37  ;;  %v4188_v29 = vrot.slane %v4183_v37, 4 }
 0x417   : > { %4494 = vst [vmem:[#allocation2 + $0xc] sm:$0xf] %v4493_v43  ;;  %v4204_v7 = vsel %vm11333_vm11, %v4196_v4, %v4203_v32  ;;  %v4504_v22 = vsel %vm11302_vm3, %v4205_v23, %v4503_v45  ;;  %v4513_v43 = vld [vmem:[#allocation2 + $0x30] sm:$0xf] }
 0x418   : > { %4502 = vst.msk [vmem:[#allocation2 + $0x1c] sm:$0xf] %vm15412_vm1, %v4204_v7  ;;  %4505 = vst [vmem:[#allocation2 + $0x20] sm:$0x1] %v4504_v22  ;;  %v4187_v12 = vsel %vm11333_vm11, %v4179_v20, %v4186_v33  ;;  %v4497_v53 = vsel %vm11302_vm3, %v4188_v29, %v4496_v35  ;;  %v4506_v35 = vld [vmem:[#allocation2 + $0x24] sm:$0xf] }
 0x419   : > { %4495 = vst.msk [vmem:[#allocation2 + $0x10] sm:$0xf] %vm15455_vm14, %v4187_v12  ;;  %4498 = vst [vmem:[#allocation2 + $0x14] sm:$0x1] %v4497_v53 }
 0x41a   : > { %vm15456_vm14 = vmmov %vm15412_vm1 }
 0x41f   : > { %v10849_v21 = vld [vmem:[#allocation2 + $0x18] sm:$0xff]   ;;  %v10850_v40 = vld [vmem:[#allocation2 + $0x20] ss:$0 sps:$4 sm:$0x11]  }
 0x420   : > { %v10851_v6 = vld [vmem:[#allocation2 + $0xc] sm:$0xff]   ;;  %5214 = vrot.lane.b32.xlu0 %v10849_v21, %s11099_s14  ;;  %5097 = vrot.lane.b32.xlu1 %v10849_v21, %s11094_s22  ;;  %v5016_v17 = vrot.slane %v10849_v21, 1  ;;  %v10852_v61 = vld [vmem:[#allocation2 + $0x14] ss:$0 sps:$4 sm:$0x11]   ;;  %v5017_v27 = vrot.slane %v10850_v40, 1 }
 0x421   : > { %v4813_v0 = vshll.u32 %v10849_v21, 16  ;;  %v5013_v62 = vrot.slane %v10851_v6, 1  ;;  %v5014_v57 = vrot.slane %v10852_v61, 1  ;;  %v4811_v51 = vshrl.u32 %v10849_v21, 16 }
 0x422   : > { %v5018_v1 = vsel %vm1447_vm6, %v5016_v17, %v5017_v27  ;;  %v4818_v11 = vshll.u32 %v10850_v40, 16  ;;  %v4801_v42 = vshll.u32 %v10851_v6, 16  ;;  %v4799_v58 = vshrl.u32 %v10851_v6, 16 }
 0x423   : > { %v4815_v28 = vrot.slane %v4813_v0, 1  ;;  %v5015_v54 = vsel %vm1447_vm6, %v5013_v62, %v5014_v57  ;;  %v4806_v30 = vshll.u32 %v10852_v61, 16 }
 0x424   : > { %5179 = vrot.lane.b32.xlu1 %v5018_v1, %s11101_s20  ;;  %5095 = vrot.lane.b32.xlu0 %v10851_v6, %s11094_s22  ;;  %v4820_v38 = vrot.slane %v4818_v11, 1  ;;  %v4803_v52 = vrot.slane %v4801_v42, 1  ;;  %v4517_v6 = vld [vmem:[#allocation2 + $0x38] sm:$0x1] }
 0x425   : > { %v4816_v19 = vor.u32 %v4815_v28, %v4811_v51  ;;  %v4808_v39 = vrot.slane %v4806_v30, 1  ;;  %v10869_v28 = vld [vmem:[%s15312_s5] sm:$0xff]  }
 0x426   : > { %v4804_v3 = vor.u32 %v4803_v52, %v4799_v58  ;;  %10586 = vmatprep.subr.bf16.mxu0 %v10869_v28  ;;  %v10870_v58 = vld [vmem:[%s15312_s5 + $0x8] sm:$0xff]  }
 0x427   : > { %v4821_v55 = vsel %vm1222_vm4, %v4816_v19, %v4820_v38  ;;  %10587 = vmatpush3.bf16.msra.mxu0 %v10869_v28 }
 0x428   : > { %5296 = vrot.lane.b32.xlu0 %v5018_v1, %s11100_s16  ;;  %5060 = vrot.lane.b32.xlu1 %v5015_v54, %s11097_s30  ;;  %v4809_v36 = vsel %vm1222_vm4, %v4804_v3, %v4808_v39 }
 0x429   : > { %10588 = vmatprep.subr.bf16.mxu0 %v10870_v58 }
 0x42b   : > { %10589 = vmatpush3.bf16.msra.mxu0 %v10870_v58 }
 0x42c   : > { %5062 = vrot.lane.b32.xlu0 %v5018_v1, %s11097_s30  ;;  %5144 = vrot.lane.b32.xlu1 %v4821_v55, %s11096_s21  ;;  %v4510_v1 = vld [vmem:[#allocation2 + $0x2c] sm:$0x1] }
 0x430   : > { %v10560_v46 = vpop.f32.mrb[20].mxu1  ;;  %5177 = vrot.lane.b32.xlu0 %v5015_v54, %s11101_s20  ;;  %4982 = vrot.lane.b32.xlu1 %v4821_v55, %s11091_s15 }
 0x431   : > { %v3942_v60 = vadd.f32 %v10560_v46, %v12948_v10  ;;  %v3933_v47 = vpop.f32.mrb[21].mxu1 }
 0x432   : > { %v3934_v50 = vadd.f32 %v12948_v10, %v3933_v47  ;;  %v10561_v63 = vpop.f32.mrb[22].mxu1 }
 0x433   : > { %v4050_v9 = vmax.f32 %v3942_v60, 0.0  ;;  %v3945_v5 = vadd.f32 %v10561_v63, %v12948_v10  ;;  %v3936_v8 = vpop.f32.mrb[23].mxu1 }
 0x434   : > { %v4048_v18 = vmax.f32 %v3934_v50, 0.0  ;;  %v3937_v16 = vadd.f32 %v12948_v10, %v3936_v8  ;;  %5261 = vrot.lane.b32.xlu0 %v4821_v55, %s11102_s25  ;;  %4980 = vrot.lane.b32.xlu1 %v4809_v36, %s11091_s15 }
 0x435   : > { %v10281_v41 = vpack.c.bf16 %v4050_v9, %v4050_v9  ;;  %v4051_v24 = vmax.f32 %v3945_v5, 0.0 }
 0x436   : > { %v10279_v26 = vpack.c.bf16 %v4048_v18, %v4048_v18  ;;  %v4049_v56 = vmax.f32 %v3937_v16, 0.0 }
 0x437   : > { %v4224_v48 = vshrl.u32 %v10281_v41, 16  ;;  %v10282_v31 = vpack.c.bf16 %v4051_v24, %v4051_v24  ;;  %v4227_v37 = vshll.u32 %v10281_v41, 16 }
 0x438   : > { %v4207_v25 = vshrl.u32 %v10279_v26, 16  ;;  %v10280_v13 = vpack.c.bf16 %v4049_v56, %v4049_v56  ;;  %5142 = vrot.lane.b32.xlu0 %v4809_v36, %s11096_s21  ;;  %v4210_v44 = vshll.u32 %v10279_v26, 16 }
 0x439   : > { %v4226_v15 = vrot.slane %v4224_v48, 7  ;;  %v4232_v2 = vshrl.u32 %v10282_v31, 16  ;;  %v4235_v20 = vshll.u32 %v10282_v31, 16 }
 0x43a   : > { %v4209_v4 = vrot.slane %v4207_v25, 7  ;;  %v4215_v34 = vshrl.u32 %v10280_v13, 16  ;;  %v4218_v29 = vshll.u32 %v10280_v13, 16 }
 0x43b   : > { %v4229_v32 = vor.u32 %v4227_v37, %v4226_v15  ;;  %v4234_v23 = vrot.slane %v4232_v2, 7  ;;  %v4230_v7 = vrot.slane %v4226_v15, 4  ;;  %v10872_v15 = vld [vmem:[%s15312_s5 + $0x10] sm:$0xff]  }
 0x43c   : > { %v4212_v45 = vor.u32 %v4210_v44, %v4209_v4  ;;  %v4217_v33 = vrot.slane %v4215_v34, 7  ;;  %v4213_v21 = vrot.slane %v4209_v4, 4  ;;  %10590 = vmatprep.subr.bf16.mxu0 %v10872_v15 }
 0x43d   : > { %v4514_v22 = vsel %vm12065_vm12, %v4229_v32, %v4513_v43  ;;  %v4237_v12 = vor.u32 %v4235_v20, %v4234_v23  ;;  %v4239_v53 = vrot.slane %v4234_v23, 4  ;;  %10591 = vmatpush3.bf16.msra.mxu0 %v10872_v15 }
 0x43e   : > { %4515 = vst [vmem:[#allocation2 + $0x30] sm:$0xf] %v4514_v22  ;;  %v4507_v40 = vsel %vm12065_vm12, %v4212_v45, %v4506_v35  ;;  %v4220_v17 = vor.u32 %v4218_v29, %v4217_v33  ;;  %v4222_v61 = vrot.slane %v4217_v33, 4 }
 0x43f   : > { %4508 = vst [vmem:[#allocation2 + $0x24] sm:$0xf] %v4507_v40  ;;  %v4238_v27 = vsel %vm11333_vm11, %v4230_v7, %v4237_v12  ;;  %v4518_v0 = vsel %vm11302_vm3, %v4239_v53, %v4517_v6  ;;  %v10874_v7 = vld [vmem:[%s15312_s5 + $0x18] sm:$0xff]  }
 0x440   : > { %4516 = vst.msk [vmem:[#allocation2 + $0x34] sm:$0xf] %vm15456_vm14, %v4238_v27  ;;  %4519 = vst [vmem:[#allocation2 + $0x38] sm:$0x1] %v4518_v0  ;;  %v4221_v62 = vsel %vm11333_vm11, %v4213_v21, %v4220_v17  ;;  %v4511_v57 = vsel %vm11302_vm3, %v4222_v61, %v4510_v1  ;;  %10592 = vmatprep.subr.bf16.mxu0 %v10874_v7  ;;  %v4527_v1 = vld [vmem:[#allocation2 + $0x48] sm:$0xf] }
 0x441   : > { %4509 = vst.msk [vmem:[#allocation2 + $0x28] sm:$0xf] %vm15412_vm1, %v4221_v62  ;;  %4512 = vst [vmem:[#allocation2 + $0x2c] sm:$0x1] %v4511_v57  ;;  %10593 = vmatpush3.bf16.msra.mxu0 %v10874_v7 }
 0x442   : > { %vm15457_vm14 = vmmov %vm15412_vm1 }
 0x447   : > { %v10853_v51 = vld [vmem:[#allocation2 + $0x30] sm:$0xff]   ;;  %v10855_v54 = vld [vmem:[#allocation2 + $0x38] ss:$0 sps:$4 sm:$0x11]  }
 0x448   : > { %v10854_v11 = vld [vmem:[#allocation2 + $0x24] sm:$0xff]   ;;  %5218 = vrot.lane.b32.xlu0 %v10853_v51, %s11099_s14  ;;  %5101 = vrot.lane.b32.xlu1 %v10853_v51, %s11094_s22  ;;  %v10856_v19 = vld [vmem:[#allocation2 + $0x2c] ss:$0 sps:$4 sm:$0x11]   ;;  %v5022_v42 = vrot.slane %v10853_v51, 1  ;;  %v5023_v38 = vrot.slane %v10855_v54, 1 }
 0x449   : > { %v4837_v55 = vshll.u32 %v10853_v51, 16  ;;  %v4825_v52 = vshll.u32 %v10854_v11, 16  ;;  %v5019_v30 = vrot.slane %v10854_v11, 1  ;;  %v5020_v46 = vrot.slane %v10856_v19, 1 }
 0x44a   : > { %v5024_v60 = vsel %vm1447_vm6, %v5022_v42, %v5023_v38  ;;  %v4835_v9 = vshrl.u32 %v10853_v51, 16  ;;  %v4842_v18 = vshll.u32 %v10855_v54, 16  ;;  %v4823_v16 = vshrl.u32 %v10854_v11, 16  ;;  %v10876_v38 = vld [vmem:[%s15312_s5 + $0x20] ss:$0 sps:$4 sm:$0xff]  }
 0x44b   : > { %v4839_v47 = vrot.slane %v4837_v55, 1  ;;  %v4827_v50 = vrot.slane %v4825_v52, 1  ;;  %v4830_v36 = vshll.u32 %v10856_v19, 16  ;;  %v5021_v56 = vsel %vm1447_vm6, %v5019_v30, %v5020_v46  ;;  %v4520_v52 = vld [vmem:[#allocation2 + $0x3c] sm:$0xf]  ;;  %10721 = vmatprep.subr.msk.bf16.mxu0 %vm3879_vm8, %v10876_v38 }
 0x44c   : > { %5099 = vrot.lane.b32.xlu0 %v10854_v11, %s11094_s22  ;;  %5216 = vrot.lane.b32.xlu1 %v10854_v11, %s11099_s14  ;;  %v4844_v34 = vrot.slane %v4842_v18, 1 }
 0x44d   : > { %v4840_v25 = vor.u32 %v4839_v47, %v4835_v9  ;;  %v4828_v13 = vor.u32 %v4827_v50, %v4823_v16  ;;  %v4832_v32 = vrot.slane %v4830_v36, 1  ;;  %v4531_v47 = vld [vmem:[#allocation2 + $0x50] sm:$0x1] }
 0x44f   : > { %v4845_v33 = vsel %vm1222_vm4, %v4840_v25, %v4844_v34  ;;  %v13028_v29 = vsel %vm1222_vm4, %v4828_v13, %v4832_v32  ;;  %v4541_v32 = vld [vmem:[#allocation2 + $0x60] sm:$0xf] }
 0x450   : > { %v10564_v3 = vpop.f32.mrb[24].mxu1  ;;  %5300 = vrot.lane.b32.xlu0 %v5024_v60, %s11100_s16  ;;  %5183 = vrot.lane.b32.xlu1 %v5024_v60, %s11101_s20 }
 0x451   : > { %v3958_v63 = vadd.f32 %v10564_v3, %v12948_v10  ;;  %v3949_v39 = vpop.f32.mrb[25].mxu1 }
 0x452   : > { %v3950_v5 = vadd.f32 %v12948_v10, %v3949_v39  ;;  %v10565_v8 = vpop.f32.mrb[26].mxu1 }
 0x453   : > { %v4054_v41 = vmax.f32 %v3958_v63, 0.0  ;;  %v3961_v24 = vadd.f32 %v10565_v8, %v12948_v10  ;;  %v3952_v26 = vpop.f32.mrb[27].mxu1  ;;  %v4524_v8 = vld [vmem:[#allocation2 + $0x44] sm:$0x1] }
 0x454   : > { %v4052_v48 = vmax.f32 %v3950_v5, 0.0  ;;  %v3953_v31 = vadd.f32 %v12948_v10, %v3952_v26  ;;  %5066 = vrot.lane.b32.xlu0 %v5024_v60, %s11097_s30  ;;  %5064 = vrot.lane.b32.xlu1 %v5021_v56, %s11097_s30 }
 0x455   : > { %v10285_v37 = vpack.c.bf16 %v4054_v41, %v4054_v41  ;;  %v4055_v2 = vmax.f32 %v3961_v24, 0.0 }
 0x456   : > { %v10283_v4 = vpack.c.bf16 %v4052_v48, %v4052_v48  ;;  %v4053_v44 = vmax.f32 %v3953_v31, 0.0  ;;  %v5660_v31 = vsel %vm3879_vm8, %v10876_v38, 0 }
 0x457   : > { %v4258_v23 = vshrl.u32 %v10285_v37, 16  ;;  %v10286_v20 = vpack.c.bf16 %v4055_v2, %v4055_v2  ;;  %v4261_v35 = vshll.u32 %v10285_v37, 16  ;;  %10595 = vmatpush3.bf16.msra.mxu0 %v5660_v31 }
 0x458   : > { %v4241_v43 = vshrl.u32 %v10283_v4, 16  ;;  %v10284_v45 = vpack.c.bf16 %v4053_v44, %v4053_v44  ;;  %v4244_v12 = vshll.u32 %v10283_v4, 16  ;;  %5148 = vrot.lane.b32.xlu1 %v4845_v33, %s11096_s21  ;;  %5298 = vrot.lane.b32.xlu0 %v5021_v56, %s11100_s16 }
 0x459   : > { %v4260_v22 = vrot.slane %v4258_v23, 7  ;;  %v4266_v53 = vshrl.u32 %v10286_v20, 16  ;;  %v4269_v40 = vshll.u32 %v10286_v20, 16 }
 0x45a   : > { %v4243_v21 = vrot.slane %v4241_v43, 7  ;;  %v4249_v6 = vshrl.u32 %v10284_v45, 16  ;;  %v4252_v17 = vshll.u32 %v10284_v45, 16  ;;  %v10568_v61 = vpop.f32.mrb[28].mxu1 }
 0x45b   : > { %v4263_v27 = vor.u32 %v4261_v35, %v4260_v22  ;;  %v4264_v0 = vrot.slane %v4260_v22, 4  ;;  %v4268_v62 = vrot.slane %v4266_v53, 7  ;;  %v3974_v57 = vadd.f32 %v10568_v61, %v12948_v10  ;;  %v3965_v28 = vpop.f32.mrb[29].mxu1  ;;  %v4534_v35 = vld [vmem:[#allocation2 + $0x54] sm:$0xf] }
 0x45c   : > { %v4246_v51 = vor.u32 %v4244_v12, %v4243_v21  ;;  %v4247_v11 = vrot.slane %v4243_v21, 4  ;;  %v4251_v54 = vrot.slane %v4249_v6, 7  ;;  %v3966_v19 = vadd.f32 %v12948_v10, %v3965_v28  ;;  %v10569_v42 = vpop.f32.mrb[30].mxu1  ;;  %4986 = vrot.lane.b32.xlu1 %v4845_v33, %s11091_s15  ;;  %5181 = vrot.lane.b32.xlu0 %v5021_v56, %s11101_s20 }
 0x45d   : > { %v4528_v55 = vsel %vm12065_vm12, %v4263_v27, %v4527_v1  ;;  %v4271_v58 = vor.u32 %v4269_v40, %v4268_v62  ;;  %v4273_v30 = vrot.slane %v4268_v62, 4  ;;  %v4058_v46 = vmax.f32 %v3974_v57, 0.0  ;;  %v3968_v3 = vpop.f32.mrb[31].mxu1 }
 0x45e   : > { %4529 = vst [vmem:[#allocation2 + $0x48] sm:$0xf] %v4528_v55  ;;  %v4521_v60 = vsel %vm12065_vm12, %v4246_v51, %v4520_v52  ;;  %v4254_v50 = vor.u32 %v4252_v17, %v4251_v54  ;;  %v4256_v63 = vrot.slane %v4251_v54, 4  ;;  %v4056_v39 = vmax.f32 %v3966_v19, 0.0  ;;  %v4545_v55 = vld [vmem:[#allocation2 + $0x68] sm:$0x1] }
 0x45f   : > { %4522 = vst [vmem:[#allocation2 + $0x3c] sm:$0xf] %v4521_v60  ;;  %v4272_v9 = vsel %vm11333_vm11, %v4264_v0, %v4271_v58  ;;  %v4532_v5 = vsel %vm11302_vm3, %v4273_v30, %v4531_v47  ;;  %v10289_v18 = vpack.c.bf16 %v4058_v46, %v4058_v46  ;;  %v3977_v16 = vadd.f32 %v10569_v42, %v12948_v10 }
 0x460   : > { %4530 = vst.msk [vmem:[#allocation2 + $0x4c] sm:$0xf] %vm15457_vm14, %v4272_v9  ;;  %4533 = vst [vmem:[#allocation2 + $0x50] sm:$0x1] %v4532_v5  ;;  %v4255_v36 = vsel %vm11333_vm11, %v4247_v11, %v4254_v50  ;;  %v4525_v41 = vsel %vm11302_vm3, %v4256_v63, %v4524_v8  ;;  %v10287_v24 = vpack.c.bf16 %v4056_v39, %v4056_v39  ;;  %5265 = vrot.lane.b32.xlu0 %v4845_v33, %s11102_s25  ;;  %v4538_v50 = vld [vmem:[#allocation2 + $0x5c] sm:$0x1] }
 0x461   : > { %v3969_v26 = vadd.f32 %v12948_v10, %v3968_v3  ;;  %4523 = vst.msk [vmem:[#allocation2 + $0x40] sm:$0xf] %vm15412_vm1, %v4255_v36  ;;  %4526 = vst [vmem:[#allocation2 + $0x44] sm:$0x1] %v4525_v41  ;;  %v4292_v56 = vshrl.u32 %v10289_v18, 16  ;;  %v4059_v48 = vmax.f32 %v3977_v16, 0.0  ;;  %5263 = vrot.lane.b32.xlu1 %v13028_v29, %s11102_s25 }
 0x462   : > { %v4275_v25 = vshrl.u32 %v10287_v24, 16  ;;  %v10572_v15 = vpop.f32.mrb[32].mxu1  ;;  %v4295_v2 = vshll.u32 %v10289_v18, 16  ;;  %v4278_v20 = vshll.u32 %v10287_v24, 16  ;;  %vm15458_vm14 = vmmov %vm15412_vm1 }
 0x463   : > { %v4057_v13 = vmax.f32 %v3969_v26, 0.0  ;;  %v4294_v37 = vrot.slane %v4292_v56, 7  ;;  %v10290_v4 = vpack.c.bf16 %v4059_v48, %v4059_v48  ;;  %v3990_v44 = vadd.f32 %v10572_v15, %v12948_v10  ;;  %v3981_v34 = vpop.f32.mrb[33].mxu1 }
 0x464   : > { %v4277_v23 = vrot.slane %v4275_v25, 7  ;;  %v3982_v45 = vadd.f32 %v12948_v10, %v3981_v34  ;;  %v10573_v33 = vpop.f32.mrb[34].mxu1  ;;  %5146 = vrot.lane.b32.xlu0 %v13028_v29, %s11096_s21  ;;  %v4555_v25 = vld [vmem:[#allocation2 + $0x78] sm:$0xf] }
 0x465   : > { %v10288_v43 = vpack.c.bf16 %v4057_v13, %v4057_v13  ;;  %v4297_v7 = vor.u32 %v4295_v2, %v4294_v37  ;;  %v4298_v22 = vrot.slane %v4294_v37, 4  ;;  %v4300_v12 = vshrl.u32 %v10290_v4, 16  ;;  %v3984_v21 = vpop.f32.mrb[35].mxu1  ;;  %4984 = vrot.lane.b32.xlu1 %v13028_v29, %s11091_s15 }
 0x466   : > { %v4303_v53 = vshll.u32 %v10290_v4, 16  ;;  %v4280_v40 = vor.u32 %v4278_v20, %v4277_v23  ;;  %v4281_v6 = vrot.slane %v4277_v23, 4  ;;  %v4062_v1 = vmax.f32 %v3990_v44, 0.0 }
 0x467   : > { %v4283_v17 = vshrl.u32 %v10288_v43, 16  ;;  %v4286_v61 = vshll.u32 %v10288_v43, 16  ;;  %v4542_v27 = vsel %vm12065_vm12, %v4297_v7, %v4541_v32  ;;  %v4302_v0 = vrot.slane %v4300_v12, 7  ;;  %v13071_v57 = vld [vmem:[#allocation2 + $0x48] sm:$0xff]  }
 0x468   : > { %v4060_v62 = vmax.f32 %v3982_v45, 0.0  ;;  %4543 = vst [vmem:[#allocation2 + $0x60] sm:$0xf] %v4542_v27  ;;  %v4535_v28 = vsel %vm12065_vm12, %v4280_v40, %v4534_v35  ;;  %v3993_v11 = vadd.f32 %v10573_v33, %v12948_v10  ;;  %v3985_v29 = vadd.f32 %v12948_v10, %v3984_v21  ;;  %5222 = vrot.lane.b32.xlu0 %v13071_v57, %s11099_s14  ;;  %v13085_v5 = vld [vmem:[#allocation2 + $0x3c] sm:$0xff]   ;;  %v4548_v7 = vld [vmem:[#allocation2 + $0x6c] sm:$0xf] }
 0x469   : > { %v4285_v51 = vrot.slane %v4283_v17, 7  ;;  %4536 = vst [vmem:[#allocation2 + $0x54] sm:$0xf] %v4535_v28  ;;  %v4305_v54 = vor.u32 %v4303_v53, %v4302_v0  ;;  %v4307_v19 = vrot.slane %v4302_v0, 4  ;;  %v10293_v42 = vpack.c.bf16 %v4062_v1, %v4062_v1  ;;  %5105 = vrot.lane.b32.xlu1 %v13071_v57, %s11094_s22  ;;  %v4559_v21 = vld [vmem:[#allocation2 + $0x80] sm:$0x1] }
 0x46a   : > { %v10291_v38 = vpack.c.bf16 %v4060_v62, %v4060_v62  ;;  %v4063_v30 = vmax.f32 %v3993_v11, 0.0  ;;  %v4061_v46 = vmax.f32 %v3985_v29, 0.0  ;;  %v10576_v3 = vpop.f32.mrb[36].mxu1 }
 0x46b   : > { %v4288_v52 = vor.u32 %v4286_v61, %v4285_v51  ;;  %v4290_v58 = vrot.slane %v4285_v51, 4  ;;  %v4306_v60 = vsel %vm11333_vm11, %v4298_v22, %v4305_v54  ;;  %v4546_v47 = vsel %vm11302_vm3, %v4307_v19, %v4545_v55  ;;  %v3997_v9 = vpop.f32.mrb[37].mxu1  ;;  %v13105_v61 = vld [vmem:[#allocation2 + $0x50] ss:$0 sps:$4 sm:$0x11]  }
 0x46c   : > { %v4326_v63 = vshrl.u32 %v10293_v42, 16  ;;  %v4329_v39 = vshll.u32 %v10293_v42, 16  ;;  %4544 = vst.msk [vmem:[#allocation2 + $0x64] sm:$0xf] %vm15458_vm14, %v4306_v60  ;;  %4547 = vst [vmem:[#allocation2 + $0x68] sm:$0x1] %v4546_v47  ;;  %v10294_v26 = vpack.c.bf16 %v4063_v30, %v4063_v30  ;;  %v10292_v56 = vpack.c.bf16 %v4061_v46, %v4061_v46  ;;  %5103 = vrot.lane.b32.xlu0 %v13085_v5, %s11094_s22 }
 0x46d   : > { %v4289_v8 = vsel %vm11333_vm11, %v4281_v6, %v4288_v52  ;;  %v4539_v18 = vsel %vm11302_vm3, %v4290_v58, %v4538_v50  ;;  %v4309_v16 = vshrl.u32 %v10291_v38, 16  ;;  %v4312_v36 = vshll.u32 %v10291_v38, 16  ;;  %v10577_v41 = vpop.f32.mrb[38].mxu1  ;;  %5220 = vrot.lane.b32.xlu1 %v13085_v5, %s11099_s14  ;;  %v4552_v42 = vld [vmem:[#allocation2 + $0x74] sm:$0x1]  ;;  %vm15459_vm14 = vmmov %vm15412_vm1 }
 0x46e   : > { %4537 = vst.msk [vmem:[#allocation2 + $0x58] sm:$0xf] %vm15412_vm1, %v4289_v8  ;;  %4540 = vst [vmem:[#allocation2 + $0x5c] sm:$0x1] %v4539_v18  ;;  %v4328_v24 = vrot.slane %v4326_v63, 7  ;;  %v4006_v48 = vadd.f32 %v10576_v3, %v12948_v10  ;;  %v4000_v31 = vpop.f32.mrb[39].mxu1  ;;  %v3998_v15 = vadd.f32 %v12948_v10, %v3997_v9  ;;  %v4009_v37 = vadd.f32 %v10577_v41, %v12948_v10 }
 0x46f   : > { %v4311_v13 = vrot.slane %v4309_v16, 7  ;;  %v4001_v2 = vadd.f32 %v12948_v10, %v4000_v31  ;;  %v4334_v34 = vshrl.u32 %v10294_v26, 16  ;;  %v4337_v32 = vshll.u32 %v10294_v26, 16  ;;  %v13116_v3 = vld [vmem:[#allocation2 + $0x44] ss:$0 sps:$4 sm:$0x11]  }
 0x470   : > { %v4331_v4 = vor.u32 %v4329_v39, %v4328_v24  ;;  %v4332_v44 = vrot.slane %v4328_v24, 4  ;;  %v4317_v43 = vshrl.u32 %v10292_v56, 16  ;;  %v4320_v45 = vshll.u32 %v10292_v56, 16  ;;  %v4569_v26 = vld [vmem:[#allocation2 + $0x90] sm:$0xf] }
 0x471   : > { %v4314_v23 = vor.u32 %v4312_v36, %v4311_v13  ;;  %v4315_v20 = vrot.slane %v4311_v13, 4  ;;  %v4336_v22 = vrot.slane %v4334_v34, 7  ;;  %v4066_v35 = vmax.f32 %v4006_v48, 0.0  ;;  %v4573_v34 = vld [vmem:[#allocation2 + $0x98] sm:$0x1] }
 0x472   : > { %v4556_v33 = vsel %vm12065_vm12, %v4331_v4, %v4555_v25  ;;  %v4064_v12 = vmax.f32 %v3998_v15, 0.0  ;;  %v4319_v40 = vrot.slane %v4317_v43, 7  ;;  %v4067_v6 = vmax.f32 %v4009_v37, 0.0  ;;  %v4562_v15 = vld [vmem:[#allocation2 + $0x84] sm:$0xf] }
 0x473   : > { %4557 = vst [vmem:[#allocation2 + $0x78] sm:$0xf] %v4556_v33  ;;  %v4549_v53 = vsel %vm12065_vm12, %v4314_v23, %v4548_v7  ;;  %v4065_v17 = vmax.f32 %v4001_v2, 0.0  ;;  %v4339_v27 = vor.u32 %v4337_v32, %v4336_v22  ;;  %v4341_v0 = vrot.slane %v4336_v22, 4  ;;  %v4566_v23 = vld [vmem:[#allocation2 + $0x8c] sm:$0x1] }
 0x474   : > { %4550 = vst [vmem:[#allocation2 + $0x6c] sm:$0xf] %v4549_v53  ;;  %v10297_v1 = vpack.c.bf16 %v4066_v35, %v4066_v35  ;;  %v10295_v62 = vpack.c.bf16 %v4064_v12, %v4064_v12  ;;  %v4322_v28 = vor.u32 %v4320_v45, %v4319_v40  ;;  %v4324_v51 = vrot.slane %v4319_v40, 4 }
 0x475   : > { %v10298_v11 = vpack.c.bf16 %v4067_v6, %v4067_v6  ;;  %v10296_v29 = vpack.c.bf16 %v4065_v17, %v4065_v17  ;;  %v4340_v54 = vsel %vm11333_vm11, %v4332_v44, %v4339_v27  ;;  %v4560_v19 = vsel %vm11302_vm3, %v4341_v0, %v4559_v21 }
 0x476   : > { %v4360_v38 = vshrl.u32 %v10297_v1, 16  ;;  %v4363_v55 = vshll.u32 %v10297_v1, 16  ;;  %4558 = vst.msk [vmem:[#allocation2 + $0x7c] sm:$0xf] %vm15459_vm14, %v4340_v54  ;;  %4561 = vst [vmem:[#allocation2 + $0x80] sm:$0x1] %v4560_v19  ;;  %v4323_v52 = vsel %vm11333_vm11, %v4315_v20, %v4322_v28  ;;  %v4553_v58 = vsel %vm11302_vm3, %v4324_v51, %v4552_v42 }
 0x477   : > { %v4343_v30 = vshrl.u32 %v10295_v62, 16  ;;  %v4346_v46 = vshll.u32 %v10295_v62, 16  ;;  %4551 = vst.msk [vmem:[#allocation2 + $0x70] sm:$0xf] %vm15412_vm1, %v4323_v52  ;;  %4554 = vst [vmem:[#allocation2 + $0x74] sm:$0x1] %v4553_v58 }
 0x478   : > { %v4362_v60 = vrot.slane %v4360_v38, 7  ;;  %v4368_v47 = vshrl.u32 %v10298_v11, 16  ;;  %v4371_v50 = vshll.u32 %v10298_v11, 16  ;;  %v4351_v63 = vshrl.u32 %v10296_v29, 16  ;;  %vm15460_vm14 = vmmov %vm15412_vm1  ;;  %v13156_v38 = vpop.permute.xlu0 %4978 }
 0x479   : > { %v4345_v39 = vrot.slane %v4343_v30, 7  ;;  %v4354_v9 = vshll.u32 %v10296_v29, 16  ;;  %v5028_v8 = vrot.slane %v13071_v57, 1  ;;  %v5029_v18 = vrot.slane %v13105_v61, 1 }
 0x47a   : > { %v4365_v16 = vor.u32 %v4363_v55, %v4362_v60  ;;  %v4366_v36 = vrot.slane %v4362_v60, 4  ;;  %v4370_v41 = vrot.slane %v4368_v47, 7  ;;  %v4353_v24 = vrot.slane %v4351_v63, 7 }
 0x47b   : > { %v4348_v56 = vor.u32 %v4346_v46, %v4345_v39  ;;  %v4349_v48 = vrot.slane %v4345_v39, 4  ;;  %v5030_v31 = vsel %vm1447_vm6, %v5028_v8, %v5029_v18  ;;  %v5025_v25 = vrot.slane %v13085_v5, 1 }
 0x47c   : > { %v4570_v13 = vsel %vm12065_vm12, %v4365_v16, %v4569_v26  ;;  %v4373_v37 = vor.u32 %v4371_v50, %v4370_v41  ;;  %v4375_v2 = vrot.slane %v4370_v41, 4  ;;  %v4356_v4 = vor.u32 %v4354_v9, %v4353_v24  ;;  %5304 = vrot.lane.b32.xlu0 %v5030_v31, %s11100_s16  ;;  %5187 = vrot.lane.b32.xlu1 %v5030_v31, %s11101_s20  ;;  %v13163_v16 = vpop.permute.xlu0 %5058 }
 0x47d   : > { %4571 = vst [vmem:[#allocation2 + $0x90] sm:$0xf] %v4570_v13  ;;  %v4563_v44 = vsel %vm12065_vm12, %v4348_v56, %v4562_v15  ;;  %v4358_v32 = vrot.slane %v4353_v24, 4  ;;  %v5026_v20 = vrot.slane %v13116_v3, 1  ;;  %v4861_v7 = vshll.u32 %v13071_v57, 16 }
 0x47e   : > { %4564 = vst [vmem:[#allocation2 + $0x84] sm:$0xf] %v4563_v44  ;;  %v4374_v43 = vsel %vm11333_vm11, %v4366_v36, %v4373_v37  ;;  %v4574_v45 = vsel %vm11302_vm3, %v4375_v2, %v4573_v34  ;;  %v4357_v33 = vsel %vm11333_vm11, %v4349_v48, %v4356_v4  ;;  %v4866_v12 = vshll.u32 %v13105_v61, 16  ;;  %v4583_v48 = vld [vmem:[#allocation2 + $0xa8] sm:$0xf] }
 0x47f   : > { %4572 = vst.msk [vmem:[#allocation2 + $0x94] sm:$0xf] %vm15460_vm14, %v4374_v43  ;;  %4575 = vst [vmem:[#allocation2 + $0x98] sm:$0x1] %v4574_v45  ;;  %v4567_v22 = vsel %vm11302_vm3, %v4358_v32, %v4566_v23  ;;  %v5027_v35 = vsel %vm1447_vm6, %v5025_v25, %v5026_v20  ;;  %v4859_v53 = vshrl.u32 %v13071_v57, 16  ;;  %v4863_v21 = vrot.slane %v4861_v7, 1 }
 0x480   : > { %4565 = vst.msk [vmem:[#allocation2 + $0x88] sm:$0xf] %vm15412_vm1, %v4357_v33  ;;  %4568 = vst [vmem:[#allocation2 + $0x8c] sm:$0x1] %v4567_v22  ;;  %5070 = vrot.lane.b32.xlu0 %v5030_v31, %s11097_s30  ;;  %5068 = vrot.lane.b32.xlu1 %v5027_v35, %s11097_s30  ;;  %v4849_v40 = vshll.u32 %v13085_v5, 16  ;;  %v4868_v17 = vrot.slane %v4866_v12, 1  ;;  %v13179_v12 = vpop.permute.xlu1 %5244 }
 0x481   : > { %v4864_v6 = vor.u32 %v4863_v21, %v4859_v53  ;;  %v4847_v1 = vshrl.u32 %v13085_v5, 16  ;;  %v4854_v62 = vshll.u32 %v13116_v3, 16  ;;  %v4576_v25 = vld [vmem:[#allocation2 + $0x9c] sm:$0xf]  ;;  %v4587_v34 = vld [vmem:[#allocation2 + $0xb0] sm:$0x1]  ;;  %vm15461_vm14 = vmmov %vm15412_vm1 }
 0x482   : > { %v4851_v0 = vrot.slane %v4849_v40, 1  ;;  %v13169_v32 = vld [vmem:[#allocation2 + $0x60] sm:$0xff]   ;;  %v10863_v33 = vld [vmem:[#allocation2 + $0x68] ss:$0 sps:$4 sm:$0x11]  }
 0x483   : > { %v4869_v27 = vsel %vm1222_vm4, %v4864_v6, %v4868_v17  ;;  %v4856_v52 = vrot.slane %v4854_v62, 1  ;;  %v13191_v6 = vld [vmem:[#allocation2 + $0x54] sm:$0xff]   ;;  %v5034_v17 = vrot.slane %v13169_v32, 1 }
 0x484   : > { %5302 = vrot.lane.b32.xlu0 %v5027_v35, %s11100_s16  ;;  %5152 = vrot.lane.b32.xlu1 %v4869_v27, %s11096_s21  ;;  %v10580_v61 = vpop.f32.mrb[40].mxu1  ;;  %v4852_v29 = vor.u32 %v4851_v0, %v4847_v1  ;;  %v10864_v0 = vld [vmem:[#allocation2 + $0x5c] ss:$0 sps:$4 sm:$0x11]   ;;  %v4885_v1 = vshll.u32 %v13169_v32, 16 }
 0x485   : > { %v4022_v28 = vadd.f32 %v10580_v61, %v12948_v10  ;;  %v4013_v57 = vpop.f32.mrb[41].mxu1 }
 0x486   : > { %v4014_v51 = vadd.f32 %v12948_v10, %v4013_v57  ;;  %v10581_v11 = vpop.f32.mrb[42].mxu1  ;;  %v4857_v60 = vsel %vm1222_vm4, %v4852_v29, %v4856_v52  ;;  %v5031_v57 = vrot.slane %v13191_v6, 1 }
 0x487   : > { %v4070_v54 = vmax.f32 %v4022_v28, 0.0  ;;  %v4025_v19 = vadd.f32 %v10581_v11, %v12948_v10  ;;  %v4016_v42 = vpop.f32.mrb[43].mxu1  ;;  %v4887_v11 = vrot.slane %v4885_v1, 1 }
 0x488   : > { %5185 = vrot.lane.b32.xlu0 %v5027_v35, %s11101_s20  ;;  %4990 = vrot.lane.b32.xlu1 %v4869_v27, %s11091_s15  ;;  %v4068_v5 = vmax.f32 %v4014_v51, 0.0  ;;  %v4017_v55 = vadd.f32 %v12948_v10, %v4016_v42  ;;  %v4580_v35 = vld [vmem:[#allocation2 + $0xa4] sm:$0x1]  ;;  %v5032_v51 = vrot.slane %v10864_v0, 1 }
 0x489   : > { %v10301_v58 = vpack.c.bf16 %v4070_v54, %v4070_v54  ;;  %v4071_v30 = vmax.f32 %v4025_v19, 0.0  ;;  %v4883_v54 = vshrl.u32 %v13169_v32, 16  ;;  %v4890_v19 = vshll.u32 %v10863_v33, 16 }
 0x48a   : > { %v10299_v46 = vpack.c.bf16 %v4068_v5, %v4068_v5  ;;  %v4069_v3 = vmax.f32 %v4017_v55, 0.0  ;;  %v5033_v42 = vsel %vm1447_vm6, %v5031_v57, %v5032_v51  ;;  %v13243_v51 = vld [vmem:[#allocation2 + $0x78] sm:$0xff]  }
 0x48b   : > { %v4394_v47 = vshrl.u32 %v10301_v58, 16  ;;  %v10302_v50 = vpack.c.bf16 %v4071_v30, %v4071_v30  ;;  %v4397_v8 = vshll.u32 %v10301_v58, 16  ;;  %v4888_v55 = vor.u32 %v4887_v11, %v4883_v54 }
 0x48c   : > { %5269 = vrot.lane.b32.xlu0 %v4869_v27, %s11102_s25  ;;  %5267 = vrot.lane.b32.xlu1 %v4857_v60, %s11102_s25  ;;  %v4377_v63 = vshrl.u32 %v10299_v46, 16  ;;  %v10300_v39 = vpack.c.bf16 %v4069_v3, %v4069_v3  ;;  %v4380_v36 = vshll.u32 %v10299_v46, 16  ;;  %v5035_v27 = vrot.slane %v10863_v33, 1 }
 0x48d   : > { %v4396_v9 = vrot.slane %v4394_v47, 7  ;;  %v4402_v18 = vshrl.u32 %v10302_v50, 16  ;;  %v4405_v56 = vshll.u32 %v10302_v50, 16  ;;  %v4873_v58 = vshll.u32 %v13191_v6, 16 }
 0x48e   : > { %v4379_v10 = vrot.slane %v4377_v63, 7  ;;  %v4385_v41 = vshrl.u32 %v10300_v39, 16  ;;  %v4388_v15 = vshll.u32 %v10300_v39, 16  ;;  %v5036_v28 = vsel %vm1447_vm6, %v5034_v17, %v5035_v27  ;;  %v10982_v39 = vld [vmem:[#allocation2] sm:$0xff]  }
 0x48f   : > { %v4399_v24 = vor.u32 %v4397_v8, %v4396_v9  ;;  %v4404_v26 = vrot.slane %v4402_v18, 7  ;;  %v4400_v37 = vrot.slane %v4396_v9, 4  ;;  %v4892_v30 = vrot.slane %v4890_v19, 1 }
 0x490   : > { %5150 = vrot.lane.b32.xlu0 %v4857_v60, %s11096_s21  ;;  %v4382_v31 = vor.u32 %v4380_v36, %v4379_v10  ;;  %4988 = vrot.lane.b32.xlu1 %v4857_v60, %s11091_s15  ;;  %v4387_v13 = vrot.slane %v4385_v41, 7  ;;  %v4383_v23 = vrot.slane %v4379_v10, 4  ;;  %v4875_v3 = vrot.slane %v4873_v58, 1  ;;  %v10983_v10 = vld [vmem:[#allocation3] ss:$0 sm:$0xff] }
 0x491   : > { %v4584_v2 = vsel %vm12065_vm12, %v4399_v24, %v4583_v48  ;;  %v4407_v4 = vor.u32 %v4405_v56, %v4404_v26  ;;  %v4409_v44 = vrot.slane %v4404_v26, 4  ;;  %v4893_v46 = vsel %vm1222_vm4, %v4888_v55, %v4892_v30  ;;  %v10867_v55 = vld [vmem:[#allocation2 + $0x80] ss:$0 sps:$4 sm:$0x11]  }
 0x492   : > { %4585 = vst [vmem:[#allocation2 + $0xa8] sm:$0xf] %v4584_v2  ;;  %v4577_v20 = vsel %vm12065_vm12, %v4382_v31, %v4576_v25  ;;  %v4390_v43 = vor.u32 %v4388_v15, %v4387_v13  ;;  %v4392_v45 = vrot.slane %v4387_v13, 4  ;;  %v13181_v53 = vpop.permute.xlu0 %5214  ;;  %v13199_v62 = vpop.permute.xlu1 %5097  ;;  %v4871_v50 = vshrl.u32 %v13191_v6, 16  ;;  %v4597_v58 = vld [vmem:[#allocation2 + $0xc0] sm:$0xf] }
 0x493   : > { %4578 = vst [vmem:[#allocation2 + $0x9c] sm:$0xf] %v4577_v20  ;;  %v4408_v7 = vsel %vm11333_vm11, %v4400_v37, %v4407_v4  ;;  %v4588_v22 = vsel %vm11302_vm3, %v4409_v44, %v4587_v34  ;;  %v4878_v63 = vshll.u32 %v10864_v0, 16  ;;  %v5329_v9 = vsel %vm1799_vm15, %v10982_v39, %v13156_v38 }
 0x494   : > { %5226 = vrot.lane.b32.xlu0 %v13169_v32, %s11099_s14  ;;  %4586 = vst.msk [vmem:[#allocation2 + $0xac] sm:$0xf] %vm15461_vm14, %v4408_v7  ;;  %4589 = vst [vmem:[#allocation2 + $0xb0] sm:$0x1] %v4588_v22  ;;  %v4391_v21 = vsel %vm11333_vm11, %v4383_v23, %v4390_v43  ;;  %v4581_v40 = vsel %vm11302_vm3, %v4392_v45, %v4580_v35  ;;  %5109 = vrot.lane.b32.xlu1 %v13169_v32, %s11094_s22  ;;  %vm15462_vm14 = vcmask 588800  }
 0x495   : > { %4579 = vst.msk [vmem:[#allocation2 + $0xa0] sm:$0xf] %vm15412_vm1, %v4391_v21  ;;  %4582 = vst [vmem:[#allocation2 + $0xa4] sm:$0x1] %v4581_v40  ;;  %v4876_v8 = vor.u32 %v4875_v3, %v4871_v50  ;;  %v5361_v26 = vsel %vm1865_vm2, %v5329_v9, %v13163_v16  ;;  %v4880_v56 = vrot.slane %v4878_v63, 1 }
 0x496   : > { %v5096_v61 = vpop.permute.xlu0 %5095  ;;  %v13210_v5 = vpop.permute.xlu1 %5179  ;;  %v4590_v63 = vld [vmem:[#allocation2 + $0xb4] sm:$0xf] }
 0x497   : > { %v4881_v37 = vsel %vm1222_vm4, %v4876_v8, %v4880_v56  ;;  %v5393_v44 = vsel %vm1931_vm9, %v5361_v26, %v5096_v61  ;;  %v4594_v56 = vld [vmem:[#allocation2 + $0xbc] sm:$0x1] }
 0x498   : > { %5107 = vrot.lane.b32.xlu0 %v13191_v6, %s11094_s22  ;;  %5224 = vrot.lane.b32.xlu1 %v13191_v6, %s11099_s14 }
 0x49a   : > { %v13204_v29 = vpop.permute.xlu0 %5296  ;;  %v13219_v47 = vpop.permute.xlu1 %5060 }
 0x49c   : > { %5308 = vrot.lane.b32.xlu0 %v5036_v28, %s11100_s16  ;;  %5191 = vrot.lane.b32.xlu1 %v5036_v28, %s11101_s20 }
 0x49e   : > { %v13212_v52 = vpop.permute.xlu0 %5062  ;;  %v13228_v38 = vpop.permute.xlu1 %5144 }
 0x4a0   : > { %5074 = vrot.lane.b32.xlu0 %v5036_v28, %s11097_s30  ;;  %5072 = vrot.lane.b32.xlu1 %v5033_v42, %s11097_s30 }
 0x4a2   : > { %v5178_v60 = vpop.permute.xlu0 %5177  ;;  %v13241_v1 = vpop.permute.xlu1 %4982 }
 0x4a4   : > { %5306 = vrot.lane.b32.xlu0 %v5033_v42, %s11100_s16  ;;  %5156 = vrot.lane.b32.xlu1 %v4893_v46, %s11096_s21 }
 0x4a6   : > { %v5262_v24 = vpop.permute.xlu0 %5261 }
 0x4a7   : > { %v10584_v18 = vpop.f32.mrb[44].mxu1 }
 0x4a8   : > { %5189 = vrot.lane.b32.xlu0 %v5033_v42, %s11101_s20  ;;  %4994 = vrot.lane.b32.xlu1 %v4893_v46, %s11091_s15  ;;  %v4038_v36 = vadd.f32 %v10983_v10, %v10584_v18  ;;  %v4029_v41 = vpop.f32.mrb[45].mxu1  ;;  %v4601_v18 = vld [vmem:[#allocation2 + $0xc8] sm:$0x1] }
 0x4a9   : > { %v4030_v48 = vadd.f32 %v10983_v10, %v4029_v41  ;;  %v10585_v31 = vpop.f32.mrb[46].mxu1  ;;  %v13256_v41 = vld [vmem:[#allocation2 + $0x6c] sm:$0xff]  }
 0x4aa   : > { %v4074_v25 = vmax.f32 %v4038_v36, 0.0  ;;  %v4041_v13 = vadd.f32 %v10983_v10, %v10585_v31  ;;  %v4032_v15 = vpop.f32.mrb[47].mxu1  ;;  %v5143_v23 = vpop.permute.xlu0 %5142  ;;  %v5041_v31 = vrot.slane %v10867_v55, 1 }
 0x4ab   : > { %v4072_v2 = vmax.f32 %v4030_v48, 0.0  ;;  %v4033_v4 = vadd.f32 %v10983_v10, %v4032_v15  ;;  %v5425_v45 = vsel %vm1997_vm0, %v5393_v44, %v5143_v23  ;;  %v5040_v48 = vrot.slane %v13243_v51, 1 }
 0x4ac   : > { %5273 = vrot.lane.b32.xlu0 %v4893_v46, %s11102_s25  ;;  %5271 = vrot.lane.b32.xlu1 %v4881_v37, %s11102_s25  ;;  %v10305_v34 = vpack.c.bf16 %v4074_v25, %v4074_v25  ;;  %v4075_v16 = vmax.f32 %v4041_v13, 0.0  ;;  %v5457_v22 = vsel %vm3671_vm13, %v5425_v45, %v5178_v60  ;;  %v4981_v25 = vpop.permute.xlu1 %4980  ;;  %v5037_v44 = vrot.slane %v13256_v41, 1 }
 0x4ad   : > { %v10303_v20 = vpack.c.bf16 %v4072_v2, %v4072_v2  ;;  %v4073_v43 = vmax.f32 %v4033_v4, 0.0  ;;  %v5489_v40 = vsel %vm3704_vm5, %v5457_v22, %v13181_v53  ;;  %v4909_v2 = vshll.u32 %v13243_v51, 16 }
 0x4ae   : > { %v4428_v33 = vshrl.u32 %v10305_v34, 16  ;;  %v10306_v7 = vpack.c.bf16 %v4075_v16, %v4075_v16  ;;  %v4431_v27 = vshll.u32 %v10305_v34, 16  ;;  %v5521_v61 = vsel %vm3737_vm7, %v5489_v40, %v5262_v24 }
 0x4af   : > { %v4411_v35 = vshrl.u32 %v10303_v20, 16  ;;  %v10304_v21 = vpack.c.bf16 %v4073_v43, %v4073_v43  ;;  %v4414_v57 = vshll.u32 %v10303_v20, 16  ;;  %v5553_v54 = vsel %vm3770_vm10, %v5521_v61, %v13204_v29 }
 0x4b0   : > { %5154 = vrot.lane.b32.xlu0 %v4881_v37, %s11096_s21  ;;  %4992 = vrot.lane.b32.xlu1 %v4881_v37, %s11091_s15  ;;  %v4430_v17 = vrot.slane %v4428_v33, 7  ;;  %v4436_v0 = vshrl.u32 %v10306_v7, 16  ;;  %v4439_v53 = vshll.u32 %v10306_v7, 16  ;;  %v10868_v37 = vld [vmem:[#allocation2 + $0x74] ss:$0 sps:$4 sm:$0x11]   ;;  %v5042_v4 = vsel %vm1447_vm6, %v5040_v48, %v5041_v31 }
 0x4b1   : > { %v4413_v28 = vrot.slane %v4411_v35, 7  ;;  %v4419_v11 = vshrl.u32 %v10304_v21, 16  ;;  %10596 = vmatprep.mubr.msk.bf16.mxu0 %vm15462_vm14, %v5553_v54  ;;  %v4422_v3 = vshll.u32 %v10304_v21, 16  ;;  %vm15463_vm14 = vmmov %vm15412_vm1  ;;  %v5038_v34 = vrot.slane %v10868_v37, 1 }
 0x4b2   : > { %v4433_v19 = vor.u32 %v4431_v27, %v4430_v17  ;;  %v4438_v42 = vrot.slane %v4436_v0, 7  ;;  %v4434_v60 = vrot.slane %v4430_v17, 4  ;;  %v4911_v16 = vrot.slane %v4909_v2, 1  ;;  %v10877_v31 = vld [vmem:[#allocation2 + $0x8c] ss:$0 sps:$4 sm:$0x11]  }
 0x4b3   : > { %v4416_v30 = vor.u32 %v4414_v57, %v4413_v28  ;;  %v4421_v46 = vrot.slane %v4419_v11, 7  ;;  %v4417_v9 = vrot.slane %v4413_v28, 4  ;;  %v4907_v43 = vshrl.u32 %v13243_v51, 16  ;;  %v10984_v11 = vld [vmem:[#allocation2 + $0xc] sm:$0xff]  }
 0x4b4   : > { %5230 = vrot.lane.b32.xlu0 %v13243_v51, %s11099_s14  ;;  %v4598_v50 = vsel %vm12065_vm12, %v4433_v19, %v4597_v58  ;;  %v4441_v39 = vor.u32 %v4439_v53, %v4438_v42  ;;  %v4443_v29 = vrot.slane %v4438_v42, 4  ;;  %5113 = vrot.lane.b32.xlu1 %v13243_v51, %s11094_s22  ;;  %v4914_v45 = vshll.u32 %v10867_v55, 16 }
 0x4b5   : > { %4599 = vst [vmem:[#allocation2 + $0xc0] sm:$0xf] %v4598_v50  ;;  %v4591_v8 = vsel %vm12065_vm12, %v4416_v30, %v4590_v63  ;;  %v4424_v10 = vor.u32 %v4422_v3, %v4421_v46  ;;  %v4426_v36 = vrot.slane %v4421_v46, 4  ;;  %v5039_v33 = vsel %vm1447_vm6, %v5037_v44, %v5038_v34 }
 0x4b6   : > { %4592 = vst [vmem:[#allocation2 + $0xb4] sm:$0xf] %v4591_v8  ;;  %v4442_v24 = vsel %vm11333_vm11, %v4434_v60, %v4441_v39  ;;  %v4602_v26 = vsel %vm11302_vm3, %v4443_v29, %v4601_v18  ;;  %v4912_v7 = vor.u32 %v4911_v16, %v4907_v43  ;;  %v4897_v21 = vshll.u32 %v13256_v41, 16  ;;  %v13315_v39 = vld [vmem:[#allocation2 + $0x90] sm:$0xff]   ;;  %v10985_v8 = vld [vmem:[#allocation2 + $0x18] sm:$0xff]  }
 0x4b7   : > { %4600 = vst.msk [vmem:[#allocation2 + $0xc4] sm:$0xf] %vm15412_vm1, %v4442_v24  ;;  %4603 = vst [vmem:[#allocation2 + $0xc8] sm:$0x1] %v4602_v26  ;;  %v4425_v13 = vsel %vm11333_vm11, %v4417_v9, %v4424_v10  ;;  %v4595_v15 = vsel %vm11302_vm3, %v4426_v36, %v4594_v56  ;;  %v4916_v40 = vrot.slane %v4914_v45, 1  ;;  %v4895_v28 = vshrl.u32 %v13256_v41, 16 }
 0x4b8   : > { %5111 = vrot.lane.b32.xlu0 %v13256_v41, %s11094_s22  ;;  %4593 = vst.msk [vmem:[#allocation2 + $0xb8] sm:$0xf] %vm15463_vm14, %v4425_v13  ;;  %4596 = vst [vmem:[#allocation2 + $0xbc] sm:$0x1] %v4595_v15  ;;  %5228 = vrot.lane.b32.xlu1 %v13256_v41, %s11099_s14  ;;  %v4899_v27 = vrot.slane %v4897_v21, 1  ;;  %v4902_v57 = vshll.u32 %v10868_v37, 16  ;;  %v5331_v54 = vsel %vm1799_vm15, %v10984_v11, %v4981_v25 }
 0x4b9   : > { %v4917_v17 = vsel %vm1222_vm4, %v4912_v7, %v4916_v40  ;;  %v5363_v55 = vsel %vm1865_vm2, %v5331_v54, %v13219_v47  ;;  %v10875_v9 = vld [vmem:[#allocation2 + $0x98] ss:$0 sps:$4 sm:$0x11]   ;;  %v13327_v24 = vld [vmem:[#allocation2 + $0x84] sm:$0xff]   ;;  %vm15464_vm1 = vcmask 588800   ;;  %v4933_v13 = vshll.u32 %v13315_v39, 16 }
 0x4ba   : > { %v13277_v23 = vpop.permute.xlu1 %5101  ;;  %v13279_v20 = vpop.permute.xlu0 %5218  ;;  %v4900_v19 = vor.u32 %v4899_v27, %v4895_v28  ;;  %v4904_v58 = vrot.slane %v4902_v57, 1  ;;  %v5395_v60 = vsel %vm1931_vm9, %v5363_v55, %v13199_v62  ;;  %v5333_v62 = vsel %vm1799_vm15, %v10985_v8, %v13241_v1  ;;  %vm15465_vm14 = vmmov %vm15464_vm1  ;;  %v10880_v8 = vld [vmem:[#allocation2 + $0xb0] ss:$0 sps:$4 sm:$0x11]  }
 0x4bb   : > { %v5427_v50 = vsel %vm1997_vm0, %v5395_v60, %v13228_v38  ;;  %v5365_v26 = vsel %vm1865_vm2, %v5333_v62, %v13212_v52  ;;  %v5046_v1 = vrot.slane %v13315_v39, 1  ;;  %v5047_v56 = vrot.slane %v10875_v9, 1  ;;  %v10986_v60 = vld [vmem:[#allocation2 + $0x24] sm:$0xff]  }
 0x4bc   : > { %5312 = vrot.lane.b32.xlu0 %v5042_v4, %s11100_s16  ;;  %5195 = vrot.lane.b32.xlu1 %v5042_v4, %s11101_s20  ;;  %v4905_v30 = vsel %vm1222_vm4, %v4900_v19, %v4904_v58  ;;  %v5459_v29 = vsel %vm3671_vm13, %v5427_v50, %v13210_v5  ;;  %v5044_v44 = vrot.slane %v10877_v31, 1  ;;  %v4935_v16 = vrot.slane %v4933_v13, 1 }
 0x4bd   : > { %v5048_v37 = vsel %vm1447_vm6, %v5046_v1, %v5047_v56  ;;  %v4938_v7 = vshll.u32 %v10875_v9, 16  ;;  %v4919_v28 = vshrl.u32 %v13327_v24, 16  ;;  %v4926_v57 = vshll.u32 %v10877_v31, 16  ;;  %v13380_v9 = vld [vmem:[#allocation2 + $0xa8] sm:$0xff]  }
 0x4be   : > { %v5217_v22 = vpop.permute.xlu1 %5216  ;;  %v5100_v35 = vpop.permute.xlu0 %5099  ;;  %v10881_v1 = vld [vmem:[#allocation2 + $0xa4] ss:$0 sps:$4 sm:$0x11]  }
 0x4bf   : > { %v5491_v18 = vsel %vm3704_vm5, %v5459_v29, %v5217_v22  ;;  %v5397_v48 = vsel %vm1931_vm9, %v5365_v26, %v5100_v35  ;;  %v4921_v35 = vshll.u32 %v13327_v24, 16  ;;  %v4940_v21 = vrot.slane %v4938_v7, 1 }
 0x4c0   : > { %5078 = vrot.lane.b32.xlu0 %v5042_v4, %s11097_s30  ;;  %5076 = vrot.lane.b32.xlu1 %v5039_v33, %s11097_s30  ;;  %v5043_v4 = vrot.slane %v13327_v24, 1  ;;  %v4928_v55 = vrot.slane %v4926_v57, 1  ;;  %v5050_v13 = vrot.slane %v10881_v1, 1 }
 0x4c2   : > { %v13289_v0 = vpop.permute.xlu1 %5183  ;;  %v5301_v61 = vpop.permute.xlu0 %5300 }
 0x4c4   : > { %5310 = vrot.lane.b32.xlu0 %v5039_v33, %s11100_s16  ;;  %5160 = vrot.lane.b32.xlu1 %v4917_v17, %s11096_s21 }
 0x4c6   : > { %v13295_v42 = vpop.permute.xlu1 %5064  ;;  %v13297_v53 = vpop.permute.xlu0 %5066 }
 0x4c8   : > { %5193 = vrot.lane.b32.xlu0 %v5039_v33, %s11101_s20  ;;  %4998 = vrot.lane.b32.xlu1 %v4917_v17, %s11091_s15  ;;  %v4931_v33 = vshrl.u32 %v13315_v39, 16 }
 0x4ca   : > { %v13304_v46 = vpop.permute.xlu1 %5148  ;;  %v5299_v3 = vpop.permute.xlu0 %5298  ;;  %v4936_v22 = vor.u32 %v4935_v16, %v4931_v33 }
 0x4cc   : > { %5277 = vrot.lane.b32.xlu0 %v4917_v17, %s11102_s25  ;;  %5275 = vrot.lane.b32.xlu1 %v4905_v30, %s11102_s25  ;;  %v4941_v27 = vsel %vm1222_vm4, %v4936_v22, %v4940_v21 }
 0x4ce   : > { %v13312_v63 = vpop.permute.xlu1 %4986  ;;  %v5182_v47 = vpop.permute.xlu0 %5181 }
 0x4d0   : > { %5158 = vrot.lane.b32.xlu0 %v4905_v30, %s11096_s21  ;;  %4996 = vrot.lane.b32.xlu1 %v4905_v30, %s11091_s15 }
 0x4d2   : > { %v5266_v10 = vpop.permute.xlu0 %5265 }
 0x4d3   : > { %v5264_v38 = vpop.permute.xlu1 %5263 }
 0x4d4   : > { %5234 = vrot.lane.b32.xlu0 %v13315_v39, %s11099_s14  ;;  %5117 = vrot.lane.b32.xlu1 %v13315_v39, %s11094_s22  ;;  %v5523_v36 = vsel %vm3737_vm7, %v5491_v18, %v5264_v38  ;;  %v13388_v38 = vld [vmem:[#allocation2 + $0x9c] sm:$0xff]  }
 0x4d5   : > { %v5555_v5 = vsel %vm3770_vm10, %v5523_v36, %v5299_v3  ;;  %v5052_v36 = vrot.slane %v13380_v9, 1  ;;  %v4945_v7 = vshll.u32 %v13388_v38, 16 }
 0x4d6   : > { %10597 = vmatmul.mubr.msk.bf16.vlgmr.msra.gmra.mrb[16].mxu0 %vm15464_vm1, %v5555_v5  ;;  %v5147_v25 = vpop.permute.xlu0 %5146  ;;  %v5053_v5 = vrot.slane %v10880_v8, 1 }
 0x4d7   : > { %v5429_v15 = vsel %vm1997_vm0, %v5397_v48, %v5147_v25  ;;  %v4985_v34 = vpop.permute.xlu1 %4984 }
 0x4d8   : > { %5115 = vrot.lane.b32.xlu0 %v13327_v24, %s11094_s22  ;;  %5232 = vrot.lane.b32.xlu1 %v13327_v24, %s11099_s14  ;;  %v5461_v52 = vsel %vm3671_vm13, %v5429_v15, %v5182_v47  ;;  %v5335_v50 = vsel %vm1799_vm15, %v10986_v60, %v4985_v34  ;;  %v5054_v25 = vsel %vm1447_vm6, %v5052_v36, %v5053_v5 }
 0x4d9   : > { %v5493_v2 = vsel %vm3704_vm5, %v5461_v52, %v13279_v20  ;;  %v5045_v20 = vsel %vm1447_vm6, %v5043_v4, %v5044_v44  ;;  %v5367_v62 = vsel %vm1865_vm2, %v5335_v50, %v13295_v42  ;;  %v4957_v42 = vshll.u32 %v13380_v9, 16  ;;  %v10987_v52 = vld [vmem:[#allocation2 + $0x30] sm:$0xff]  }
 0x4da   : > { %v5525_v43 = vsel %vm3737_vm7, %v5493_v2, %v5266_v10  ;;  %v13358_v17 = vpop.permute.xlu0 %5222  ;;  %v5399_v26 = vsel %vm1931_vm9, %v5367_v62, %v13277_v23  ;;  %v5049_v23 = vrot.slane %v13388_v38, 1  ;;  %v4955_v4 = vshrl.u32 %v13380_v9, 16 }
 0x4db   : > { %v5557_v45 = vsel %vm3770_vm10, %v5525_v43, %v5301_v61  ;;  %v13356_v40 = vpop.permute.xlu1 %5105  ;;  %v4923_v61 = vrot.slane %v4921_v35, 1  ;;  %v5431_v48 = vsel %vm1997_vm0, %v5399_v26, %v13304_v46  ;;  %v4959_v15 = vrot.slane %v4957_v42, 1  ;;  %v10882_v42 = vld [vmem:[#allocation2 + $0xc0] sm:$0xff]  }
 0x4dc   : > { %5316 = vrot.lane.b32.xlu0 %v5048_v37, %s11100_s16  ;;  %5199 = vrot.lane.b32.xlu1 %v5048_v37, %s11101_s20  ;;  %v5463_v2 = vsel %vm3671_vm13, %v5431_v48, %v13289_v0  ;;  %v4962_v44 = vshll.u32 %v10880_v8, 16  ;;  %v13456_v48 = vld [vmem:[#allocation2 + $0xb4] sm:$0xff]  }
 0x4dd   : > { %10600 = vmatprep.mubr.msk.bf16.mxu0 %vm15465_vm14, %v5557_v45  ;;  %v4924_v19 = vor.u32 %v4923_v61, %v4919_v28  ;;  %v5051_v45 = vsel %vm1447_vm6, %v5049_v23, %v5050_v13  ;;  %v4960_v33 = vor.u32 %v4959_v15, %v4955_v4  ;;  %vm15466_vm14 = vmmov %vm15464_vm1  ;;  %v10884_v23 = vld [vmem:[#allocation2 + $0xc8] ss:$0 sps:$4 sm:$0x11]  }
 0x4de   : > { %v5104_v54 = vpop.permute.xlu0 %5103  ;;  %v4964_v35 = vrot.slane %v4962_v44, 1  ;;  %v5174_v44 = vrot.slane %v10882_v42, 1 }
 0x4df   : > { %v5221_v11 = vpop.permute.xlu1 %5220  ;;  %v4929_v58 = vsel %vm1222_vm4, %v4924_v19, %v4928_v55  ;;  %v4943_v19 = vshrl.u32 %v13388_v38, 16  ;;  %v4950_v55 = vshll.u32 %v10881_v1, 16 }
 0x4e0   : > { %5082 = vrot.lane.b32.xlu0 %v5048_v37, %s11097_s30  ;;  %5080 = vrot.lane.b32.xlu1 %v5045_v20, %s11097_s30  ;;  %v5337_v37 = vsel %vm1799_vm15, %v10987_v52, %v13312_v63  ;;  %v5495_v34 = vsel %vm3704_vm5, %v5463_v2, %v5221_v11  ;;  %v4965_v28 = vsel %vm1222_vm4, %v4960_v33, %v4964_v35 }
 0x4e1   : > { %v5369_v63 = vsel %vm1865_vm2, %v5337_v37, %v13297_v53  ;;  %v4947_v53 = vrot.slane %v4945_v7, 1  ;;  %v4952_v8 = vrot.slane %v4950_v55, 1  ;;  %v5055_v37 = vrot.slane %v13456_v48, 1 }
 0x4e2   : > { %v4969_v7 = vshll.u32 %v13456_v48, 16 }
 0x4e3   : > { %v4948_v50 = vor.u32 %v4947_v53, %v4943_v19 }
 0x4e4   : > { %5314 = vrot.lane.b32.xlu0 %v5045_v20, %s11100_s16  ;;  %5164 = vrot.lane.b32.xlu1 %v4941_v27, %s11096_s21 }
 0x4e8   : > { %5197 = vrot.lane.b32.xlu0 %v5045_v20, %s11101_s20  ;;  %5002 = vrot.lane.b32.xlu1 %v4941_v27, %s11091_s15  ;;  %v5401_v20 = vsel %vm1931_vm9, %v5369_v63, %v5104_v54  ;;  %v5131_v63 = vshrl.u32 %v10882_v42, 16 }
 0x4ec   : > { %5281 = vrot.lane.b32.xlu0 %v4941_v27, %s11102_s25  ;;  %5279 = vrot.lane.b32.xlu1 %v4929_v58, %s11102_s25 }
 0x4ee   : > { %v13369_v30 = vpop.permute.xlu1 %5187  ;;  %v13371_v3 = vpop.permute.xlu0 %5304 }
 0x4f0   : > { %5162 = vrot.lane.b32.xlu0 %v4929_v58, %s11096_s21  ;;  %5000 = vrot.lane.b32.xlu1 %v4929_v58, %s11091_s15 }
 0x4f2   : > { %v13376_v47 = vpop.permute.xlu1 %5068  ;;  %v13378_v29 = vpop.permute.xlu0 %5070 }
 0x4f4   : > { %5238 = vrot.lane.b32.xlu0 %v13380_v9, %s11099_s14  ;;  %5121 = vrot.lane.b32.xlu1 %v13380_v9, %s11094_s22 }
 0x4f6   : > { %v5303_v18 = vpop.permute.xlu0 %5302  ;;  %v13390_v10 = vpop.permute.xlu1 %5152 }
 0x4f8   : > { %5119 = vrot.lane.b32.xlu0 %v13388_v38, %s11094_s22  ;;  %5236 = vrot.lane.b32.xlu1 %v13388_v38, %s11099_s14 }
 0x4fa   : > { %v5186_v56 = vpop.permute.xlu0 %5185  ;;  %v13402_v31 = vpop.permute.xlu1 %4990 }
 0x4fc   : > { %5320 = vrot.lane.b32.xlu0 %v5054_v25, %s11100_s16  ;;  %5203 = vrot.lane.b32.xlu1 %v5054_v25, %s11101_s20 }
 0x4fe   : > { %v5270_v46 = vpop.permute.xlu0 %5269  ;;  %v5268_v16 = vpop.permute.xlu1 %5267 }
 0x4ff   : > { %v5527_v43 = vsel %vm3737_vm7, %v5495_v34, %v5268_v16  ;;  %v5175_v34 = vrot.slane %v10884_v23, 1 }
 0x500   : > { %5086 = vrot.lane.b32.xlu0 %v5054_v25, %s11097_s30  ;;  %5084 = vrot.lane.b32.xlu1 %v5051_v45, %s11097_s30  ;;  %v5559_v0 = vsel %vm3770_vm10, %v5527_v43, %v5303_v18  ;;  %v4953_v18 = vsel %vm1222_vm4, %v4948_v50, %v4952_v8  ;;  %v10885_v25 = vld [vmem:[#allocation2 + $0xbc] ss:$0 sps:$4 sm:$0x11]   ;;  %v10886_v50 = vld [vmem:[#allocation2 + $0xd4] ss:$0 sps:$4 sm:$0x11]  }
 0x501   : > { %10601 = vmatmul.mubr.msk.bf16.gmra.mrb[20].mxu0 %vm15464_vm1, %v5559_v0  ;;  %v5056_v2 = vrot.slane %v10885_v25, 1  ;;  %v5138_v0 = vshll.u32 %v10884_v23, 16  ;;  %v4974_v19 = vshll.u32 %v10885_v25, 16  ;;  %v10990_v8 = vld [vmem:[#allocation2 + $0xcc] sm:$0xff]  }
 0x502   : > { %v5151_v22 = vpop.permute.xlu0 %5150  ;;  %v4989_v21 = vpop.permute.xlu1 %4988 }
 0x503   : > { %v5433_v27 = vsel %vm1997_vm0, %v5401_v20, %v5151_v22  ;;  %v10989_v20 = vld [vmem:[#allocation2 + $0x48] sm:$0xff]  }
 0x504   : > { %v5465_v61 = vsel %vm3671_vm13, %v5433_v27, %v5186_v56  ;;  %5318 = vrot.lane.b32.xlu0 %v5051_v45, %s11100_s16  ;;  %5168 = vrot.lane.b32.xlu1 %v4965_v28, %s11096_s21  ;;  %v5341_v22 = vsel %vm1799_vm15, %v10989_v20, %v13402_v31 }
 0x505   : > { %v5497_v57 = vsel %vm3704_vm5, %v5465_v61, %v13358_v17 }
 0x506   : > { %v13431_v11 = vpop.permute.xlu0 %5226  ;;  %v5529_v54 = vsel %vm3737_vm7, %v5497_v57, %v5270_v46  ;;  %v13435_v58 = vpop.permute.xlu1 %5109  ;;  %v5133_v46 = vshll.u32 %v10882_v42, 16  ;;  %v4967_v57 = vshrl.u32 %v13456_v48, 16 }
 0x507   : > { %v5561_v60 = vsel %vm3770_vm10, %v5529_v54, %v13371_v3  ;;  %v10988_v3 = vld [vmem:[#allocation2 + $0x3c] sm:$0xff]   ;;  %v5373_v54 = vsel %vm1865_vm2, %v5341_v22, %v13378_v29 }
 0x508   : > { %5201 = vrot.lane.b32.xlu0 %v5051_v45, %s11101_s20  ;;  %10604 = vmatprep.mubr.msk.bf16.mxu0 %vm15466_vm14, %v5561_v60  ;;  %v5339_v26 = vsel %vm1799_vm15, %v10988_v3, %v4989_v21  ;;  %v5057_v45 = vsel %vm1447_vm6, %v5055_v37, %v5056_v2  ;;  %v5135_v33 = vrot.slane %v5133_v46, 1  ;;  %v5257_v2 = vshll.u32 %v10886_v50, 16  ;;  %vm15467_vm14 = vmmov %vm15464_vm1 }
 0x509   : > { %5006 = vrot.lane.b32.xlu1 %v4965_v28, %s11091_s15  ;;  %v5371_v13 = vsel %vm1865_vm2, %v5339_v26, %v13376_v47 }
 0x50a   : > { %v5108_v17 = vpop.permute.xlu0 %5107  ;;  %v5225_v62 = vpop.permute.xlu1 %5224  ;;  %v5403_v4 = vsel %vm1931_vm9, %v5371_v13, %v13356_v40  ;;  %v5176_v40 = vsel %vm1447_vm6, %v5174_v44, %v5175_v34  ;;  %v5136_v61 = vor.u32 %v5135_v33, %v5131_v63  ;;  %v5294_v63 = vrot.slane %v10886_v50, 1 }
 0x50b   : > { %v5435_v16 = vsel %vm1997_vm0, %v5403_v4, %v13390_v10  ;;  %v5405_v55 = vsel %vm1931_vm9, %v5373_v54, %v5108_v17  ;;  %v4976_v17 = vrot.slane %v4974_v19, 1  ;;  %v10889_v54 = vld [vmem:[#allocation2 + $0xcc] sm:$0xff]  }
 0x50c   : > { %5285 = vrot.lane.b32.xlu0 %v4965_v28, %s11102_s25  ;;  %v5467_v10 = vsel %vm3671_vm13, %v5435_v16, %v13369_v30  ;;  %v4971_v28 = vrot.slane %v4969_v7, 1  ;;  %v5140_v30 = vrot.slane %v5138_v0, 1  ;;  %v5293_v7 = vrot.slane %v10990_v8, 1 }
 0x50d   : > { %5283 = vrot.lane.b32.xlu1 %v4953_v18, %s11102_s25  ;;  %v5499_v21 = vsel %vm3704_vm5, %v5467_v10, %v5225_v62  ;;  %v5252_v62 = vshll.u32 %v10990_v8, 16 }
 0x50e   : > { %v13445_v36 = vpop.permute.xlu0 %5308  ;;  %v13447_v5 = vpop.permute.xlu1 %5191  ;;  %v5141_v26 = vsel %vm1222_vm4, %v5136_v61, %v5140_v30  ;;  %v4972_v29 = vor.u32 %v4971_v28, %v4967_v57  ;;  %v5295_v22 = vsel %vm1447_vm6, %v5293_v7, %v5294_v63  ;;  %v10888_v57 = vld [vmem:[#allocation2 + $0x8] ss:$0 sps:$4 sm:$0x11]  }
 0x50f   : > { %v5254_v37 = vrot.slane %v5252_v62, 1  ;;  %v6605_v50 = vshll.u32 %v10888_v57, 16 }
 0x510   : > { %5166 = vrot.lane.b32.xlu0 %v4953_v18, %s11096_s21  ;;  %v4977_v4 = vsel %vm1222_vm4, %v4972_v29, %v4976_v17 }
 0x511   : > { %5004 = vrot.lane.b32.xlu1 %v4953_v18, %s11091_s15 }
 0x512   : > { %v13452_v1 = vpop.permute.xlu0 %5074  ;;  %v13454_v56 = vpop.permute.xlu1 %5072 }
 0x514   : > { %5242 = vrot.lane.b32.xlu0 %v10882_v42, %s11099_s14 }
 0x515   : > { %5125 = vrot.lane.b32.xlu1 %v10882_v42, %s11094_s22 }
 0x516   : > { %v5307_v15 = vpop.permute.xlu0 %5306  ;;  %v13462_v52 = vpop.permute.xlu1 %5156 }
 0x518   : > { %5123 = vrot.lane.b32.xlu0 %v13456_v48, %s11094_s22 }
 0x519   : > { %5240 = vrot.lane.b32.xlu1 %v13456_v48, %s11099_s14 }
 0x51a   : > { %v5190_v47 = vpop.permute.xlu0 %5189  ;;  %v13473_v43 = vpop.permute.xlu1 %4994 }
 0x51c   : > { %5322 = vrot.lane.b32.xlu0 %v5057_v45, %s11100_s16 }
 0x51d   : > { %5207 = vrot.lane.b32.xlu1 %v5176_v40, %s11101_s20 }
 0x51e   : > { %v5274_v35 = vpop.permute.xlu0 %5273  ;;  %v5272_v27 = vpop.permute.xlu1 %5271 }
 0x51f   : > { %v5531_v53 = vsel %vm3737_vm7, %v5499_v21, %v5272_v27 }
 0x520   : > { %5205 = vrot.lane.b32.xlu0 %v5057_v45, %s11101_s20  ;;  %v5563_v31 = vsel %vm3770_vm10, %v5531_v53, %v5307_v15  ;;  %v5250_v15 = vshrl.u32 %v10990_v8, 16  ;;  %v10887_v53 = vld [vmem:[#allocation2] sm:$0xff]  }
 0x521   : > { %5088 = vrot.lane.b32.xlu1 %v5057_v45, %s11097_s30  ;;  %10605 = vmatmul.mubr.msk.bf16.gmra.mrb[24].mxu0 %vm15464_vm1, %v5563_v31  ;;  %v5345_v31 = vsel %vm1799_vm15, %v13169_v32, %v13473_v43  ;;  %v6607_v43 = vrot.slane %v6605_v50, 1 }
 0x522   : > { %v5155_v60 = vpop.permute.xlu0 %5154  ;;  %v4993_v18 = vpop.permute.xlu1 %4992  ;;  %v5255_v34 = vor.u32 %v5254_v37, %v5250_v15  ;;  %v5377_v8 = vsel %vm1865_vm2, %v5345_v31, %v13452_v1 }
 0x523   : > { %v5437_v3 = vsel %vm1997_vm0, %v5405_v55, %v5155_v60  ;;  %v5343_v0 = vsel %vm1799_vm15, %v13191_v6, %v4993_v18  ;;  %v6600_v60 = vshll.u32 %v10887_v53, 16 }
 0x524   : > { %v5469_v42 = vsel %vm3671_vm13, %v5437_v3, %v5190_v47  ;;  %5289 = vrot.lane.b32.xlu0 %v5141_v26, %s11102_s25  ;;  %v5259_v47 = vrot.slane %v5257_v2, 1 }
 0x525   : > { %v5501_v25 = vsel %vm3704_vm5, %v5469_v42, %v13431_v11  ;;  %5172 = vrot.lane.b32.xlu1 %v5141_v26, %s11096_s21  ;;  %v6602_v32 = vrot.slane %v6600_v60, 1  ;;  %v6821_v42 = vrot.slane %v10887_v53, 1 }
 0x526   : > { %v5231_v23 = vpop.permute.xlu0 %5230  ;;  %v5533_v13 = vsel %vm3737_vm7, %v5501_v25, %v5274_v35  ;;  %v13502_v46 = vpop.permute.xlu1 %5113  ;;  %v5260_v33 = vsel %vm1222_vm4, %v5255_v34, %v5259_v47  ;;  %v6822_v25 = vrot.slane %v10888_v57, 1 }
 0x527   : > { %v5565_v44 = vsel %vm3770_vm10, %v5533_v13, %v13445_v36 }
 0x528   : > { %5170 = vrot.lane.b32.xlu0 %v4977_v4, %s11096_s21  ;;  %10608 = vmatprep.mubr.msk.bf16.mxu0 %vm15467_vm14, %v5565_v44  ;;  %v6823_v44 = vsel %vm1447_vm6, %v6821_v42, %v6822_v25  ;;  %vm15468_vm14 = vmmov %vm15464_vm1 }
 0x529   : > { %5287 = vrot.lane.b32.xlu1 %v4977_v4, %s11102_s25 }
 0x52a   : > { %v5112_v11 = vpop.permute.xlu0 %5111  ;;  %v5229_v16 = vpop.permute.xlu1 %5228 }
 0x52c   : > { %5324 = vrot.lane.b32.xlu0 %v5176_v40, %s11100_s16  ;;  %v5375_v40 = vsel %vm1865_vm2, %v5343_v0, %v13454_v56 }
 0x52d   : > { %5008 = vrot.lane.b32.xlu1 %v4977_v4, %s11091_s15  ;;  %v5407_v27 = vsel %vm1931_vm9, %v5375_v40, %v13435_v58  ;;  %v6598_v58 = vshrl.u32 %v10887_v53, 16 }
 0x52e   : > { %v5313_v45 = vpop.permute.xlu0 %5312  ;;  %v13513_v36 = vpop.permute.xlu1 %5195  ;;  %v5439_v28 = vsel %vm1997_vm0, %v5407_v27, %v13462_v52 }
 0x52f   : > { %v5471_v56 = vsel %vm3671_vm13, %v5439_v28, %v13447_v5  ;;  %v5409_v5 = vsel %vm1931_vm9, %v5377_v8, %v5112_v11  ;;  %v6603_v29 = vor.u32 %v6602_v32, %v6598_v58 }
 0x530   : > { %v5503_v19 = vsel %vm3704_vm5, %v5471_v56, %v5229_v16 }
 0x531   : > { %5291 = vrot.lane.b32.xlu1 %v5260_v33, %s11102_s25  ;;  %v6608_v1 = vsel %vm1222_vm4, %v6603_v29, %v6607_v43 }
 0x532   : > { %v13518_v20 = vpop.permute.xlu0 %5078  ;;  %v5077_v10 = vpop.permute.xlu1 %5076  ;;  %6789 = vrot.lane.b32.xlu0 %v6608_v1, %s11091_s15 }
 0x535   : > { %5326 = vrot.lane.b32.xlu1 %v5295_v22, %s11100_s16 }
 0x536   : > { %v5311_v35 = vpop.permute.xlu0 %5310  ;;  %v5161_v21 = vpop.permute.xlu1 %5160  ;;  %6869 = vrot.lane.b32.xlu0 %v6823_v44, %s11097_s30 }
 0x539   : > { %7055 = vrot.lane.b32.xlu1 %v10889_v54, %s11099_s14 }
 0x53a   : > { %v5194_v61 = vpop.permute.xlu0 %5193  ;;  %v4999_v6 = vpop.permute.xlu1 %4998 }
 0x53e   : > { %v5278_v30 = vpop.permute.xlu0 %5277  ;;  %v5276_v55 = vpop.permute.xlu1 %5275 }
 0x53f   : > { %v5535_v52 = vsel %vm3737_vm7, %v5503_v19, %v5276_v55 }
 0x540   : > { %v5567_v62 = vsel %vm3770_vm10, %v5535_v52, %v5311_v35 }
 0x541   : > { %10609 = vmatmul.mubr.msk.bf16.gmra.mrb[28].mxu0 %vm15464_vm1, %v5567_v62 }
 0x542   : > { %v5159_v18 = vpop.permute.xlu0 %5158  ;;  %v4997_v3 = vpop.permute.xlu1 %4996 }
 0x543   : > { %v5441_v26 = vsel %vm1997_vm0, %v5409_v5, %v5159_v18  ;;  %v5347_v16 = vsel %vm1799_vm15, %v13256_v41, %v4997_v3 }
 0x544   : > { %v5473_v17 = vsel %vm3671_vm13, %v5441_v26, %v5194_v61  ;;  %v5379_v63 = vsel %vm1865_vm2, %v5347_v16, %v5077_v10  ;;  %v5349_v61 = vsel %vm1799_vm15, %v13243_v51, %v4999_v6 }
 0x545   : > { %v5505_v13 = vsel %vm3704_vm5, %v5473_v17, %v5231_v23  ;;  %v5381_v54 = vsel %vm1865_vm2, %v5349_v61, %v13518_v20 }
 0x546   : > { %v5235_v15 = vpop.permute.xlu0 %5234  ;;  %v5537_v37 = vsel %vm3737_vm7, %v5505_v13, %v5278_v30  ;;  %v5118_v2 = vpop.permute.xlu1 %5117 }
 0x547   : > { %v5569_v4 = vsel %vm3770_vm10, %v5537_v37, %v5313_v45  ;;  %v5411_v45 = vsel %vm1931_vm9, %v5379_v63, %v13502_v46 }
 0x548   : > { %10612 = vmatprep.mubr.msk.bf16.mxu0 %vm15468_vm14, %v5569_v4  ;;  %v5443_v35 = vsel %vm1997_vm0, %v5411_v45, %v5161_v21  ;;  %vm15469_vm14 = vmmov %vm15464_vm1 }
 0x549   : > { %v5475_v28 = vsel %vm3671_vm13, %v5443_v35, %v13513_v36 }
 0x54a   : > { %v5116_v11 = vpop.permute.xlu0 %5115  ;;  %v5233_v34 = vpop.permute.xlu1 %5232 }
 0x54b   : > { %v5507_v53 = vsel %vm3704_vm5, %v5475_v28, %v5233_v34  ;;  %v5413_v21 = vsel %vm1931_vm9, %v5381_v54, %v5116_v11 }
 0x54e   : > { %v5317_v47 = vpop.permute.xlu0 %5316  ;;  %v5200_v23 = vpop.permute.xlu1 %5199 }
 0x552   : > { %v5083_v33 = vpop.permute.xlu0 %5082  ;;  %v5081_v7 = vpop.permute.xlu1 %5080 }
 0x556   : > { %v5315_v0 = vpop.permute.xlu0 %5314  ;;  %v5165_v22 = vpop.permute.xlu1 %5164 }
 0x55a   : > { %v5198_v40 = vpop.permute.xlu0 %5197  ;;  %v5003_v27 = vpop.permute.xlu1 %5002 }
 0x55b   : > { %v5353_v25 = vsel %vm1799_vm15, %v13315_v39, %v5003_v27 }
 0x55c   : > { %v5385_v37 = vsel %vm1865_vm2, %v5353_v25, %v5083_v33 }
 0x55e   : > { %v5282_v41 = vpop.permute.xlu0 %5281  ;;  %v5280_v57 = vpop.permute.xlu1 %5279 }
 0x55f   : > { %v5539_v10 = vsel %vm3737_vm7, %v5507_v53, %v5280_v57 }
 0x560   : > { %v5571_v46 = vsel %vm3770_vm10, %v5539_v10, %v5315_v0 }
 0x561   : > { %10613 = vmatmul.mubr.msk.bf16.gmra.mrb[32].mxu0 %vm15464_vm1, %v5571_v46 }
 0x562   : > { %v5163_v31 = vpop.permute.xlu0 %5162  ;;  %v5001_v51 = vpop.permute.xlu1 %5000 }
 0x563   : > { %v5445_v6 = vsel %vm1997_vm0, %v5413_v21, %v5163_v31  ;;  %v5351_v8 = vsel %vm1799_vm15, %v13327_v24, %v5001_v51 }
 0x564   : > { %v5477_v36 = vsel %vm3671_vm13, %v5445_v6, %v5198_v40  ;;  %v5383_v43 = vsel %vm1865_vm2, %v5351_v8, %v5081_v7 }
 0x565   : > { %v5509_v56 = vsel %vm3704_vm5, %v5477_v36, %v5235_v15  ;;  %v5415_v3 = vsel %vm1931_vm9, %v5383_v43, %v5118_v2 }
 0x566   : > { %v5239_v30 = vpop.permute.xlu0 %5238  ;;  %v5541_v19 = vsel %vm3737_vm7, %v5509_v56, %v5282_v41  ;;  %v5122_v55 = vpop.permute.xlu1 %5121  ;;  %v5447_v29 = vsel %vm1997_vm0, %v5415_v3, %v5165_v22 }
 0x567   : > { %v5573_v20 = vsel %vm3770_vm10, %v5541_v19, %v5317_v47  ;;  %v5479_v17 = vsel %vm3671_vm13, %v5447_v29, %v5200_v23 }
 0x568   : > { %10616 = vmatprep.mubr.msk.bf16.mxu0 %vm15469_vm14, %v5573_v20  ;;  %vm15470_vm14 = vmmov %vm15464_vm1 }
 0x56a   : > { %v5120_v58 = vpop.permute.xlu0 %5119  ;;  %v5237_v60 = vpop.permute.xlu1 %5236 }
 0x56b   : > { %v5511_v24 = vsel %vm3704_vm5, %v5479_v17, %v5237_v60  ;;  %v5417_v2 = vsel %vm1931_vm9, %v5385_v37, %v5120_v58 }
 0x56e   : > { %v5321_v50 = vpop.permute.xlu0 %5320  ;;  %v5204_v52 = vpop.permute.xlu1 %5203 }
 0x572   : > { %v5087_v62 = vpop.permute.xlu0 %5086  ;;  %v5085_v32 = vpop.permute.xlu1 %5084 }
 0x576   : > { %v5319_v5 = vpop.permute.xlu0 %5318  ;;  %v5169_v18 = vpop.permute.xlu1 %5168 }
 0x57a   : > { %v5202_v26 = vpop.permute.xlu0 %5201 }
 0x57b   : > { %v5007_v42 = vpop.permute.xlu1 %5006 }
 0x57c   : > { %v5357_v41 = vsel %vm1799_vm15, %v13380_v9, %v5007_v42 }
 0x57d   : > { %v5389_v54 = vsel %vm1865_vm2, %v5357_v41, %v5087_v62 }
 0x57e   : > { %v5286_v13 = vpop.permute.xlu0 %5285 }
 0x57f   : > { %v5284_v1 = vpop.permute.xlu1 %5283 }
 0x580   : > { %v5543_v15 = vsel %vm3737_vm7, %v5511_v24, %v5284_v1 }
 0x581   : > { %v5575_v4 = vsel %vm3770_vm10, %v5543_v15, %v5319_v5  ;;  %v15473_v15 = vld [vmem:[#allocation12_spill] sm:$0xff] }
 0x582   : > { %10617 = vmatmul.mubr.msk.bf16.gmra.mrb[36].mxu0 %vm15464_vm1, %v5575_v4  ;;  %v5167_v44 = vpop.permute.xlu0 %5166 }
 0x583   : > { %v5005_v11 = vpop.permute.xlu1 %5004  ;;  %v5449_v39 = vsel %vm1997_vm0, %v5417_v2, %v5167_v44  ;;  %v15474_v44 = vld [vmem:[#allocation13_spill] sm:$0xff] }
 0x584   : > { %v5481_v34 = vsel %vm3671_vm13, %v5449_v39, %v5202_v26  ;;  %v5355_v22 = vsel %vm1799_vm15, %v13388_v38, %v5005_v11 }
 0x585   : > { %v5513_v47 = vsel %vm3704_vm5, %v5481_v34, %v5239_v30  ;;  %v5387_v35 = vsel %vm1865_vm2, %v5355_v22, %v5085_v32  ;;  %v15475_v34 = vld [vmem:[#allocation14_spill] sm:$0xff] }
 0x586   : > { %v5243_v23 = vpop.permute.xlu0 %5242  ;;  %v5545_v16 = vsel %vm3737_vm7, %v5513_v47, %v5286_v13  ;;  %v5419_v28 = vsel %vm1931_vm9, %v5387_v35, %v5122_v55  ;;  %v15472_v13 = vld [vmem:[#allocation11_spill] sm:$0xff] }
 0x587   : > { %v5126_v7 = vpop.permute.xlu1 %5125  ;;  %v5577_v33 = vsel %vm3770_vm10, %v5545_v16, %v5321_v50  ;;  %v5451_v57 = vsel %vm1997_vm0, %v5419_v28, %v5169_v18 }
 0x588   : > { %10620 = vmatprep.mubr.msk.bf16.mxu0 %vm15470_vm14, %v5577_v33  ;;  %v5483_v46 = vsel %vm3671_vm13, %v5451_v57, %v5204_v52  ;;  %vm15471_vm14 = vmmov %vm15464_vm1 }
 0x58a   : > { %v5124_v63 = vpop.permute.xlu0 %5123 }
 0x58b   : > { %v5241_v0 = vpop.permute.xlu1 %5240  ;;  %v5421_v38 = vsel %vm1931_vm9, %v5389_v54, %v5124_v63  ;;  %v6310_v54 = vld [vmem:[#allocation2 + $0x18] sm:$0xf] }
 0x58c   : > { %v5515_v31 = vsel %vm3704_vm5, %v5483_v46, %v5241_v0 }
 0x58e   : > { %v5323_v45 = vpop.permute.xlu0 %5322 }
 0x58f   : > { %v5208_v40 = vpop.permute.xlu1 %5207 }
 0x592   : > { %v5206_v27 = vpop.permute.xlu0 %5205 }
 0x593   : > { %v5089_v61 = vpop.permute.xlu1 %5088 }
 0x596   : > { %v5290_v53 = vpop.permute.xlu0 %5289 }
 0x597   : > { %v5173_v10 = vpop.permute.xlu1 %5172 }
 0x59a   : > { %v5171_v21 = vpop.permute.xlu0 %5170 }
 0x59b   : > { %v5288_v51 = vpop.permute.xlu1 %5287  ;;  %v5453_v6 = vsel %vm1997_vm0, %v5421_v38, %v5171_v21 }
 0x59c   : > { %v5547_v36 = vsel %vm3737_vm7, %v5515_v31, %v5288_v51  ;;  %v5485_v9 = vsel %vm3671_vm13, %v5453_v6, %v5206_v27  ;;  %v6303_v6 = vld [vmem:[#allocation2 + $0xc] sm:$0xf] }
 0x59d   : > { %v5579_v56 = vsel %vm3770_vm10, %v5547_v36, %v5323_v45  ;;  %v5517_v30 = vsel %vm3704_vm5, %v5485_v9, %v5243_v23 }
 0x59e   : > { %10621 = vmatmul.mubr.msk.bf16.gmra.mrb[40].mxu0 %vm15464_vm1, %v5579_v56  ;;  %v5549_v19 = vsel %vm3737_vm7, %v5517_v30, %v5290_v53  ;;  %v5325_v55 = vpop.permute.xlu0 %5324 }
 0x59f   : > { %v5009_v20 = vpop.permute.xlu1 %5008  ;;  %v5581_v58 = vsel %vm3770_vm10, %v5549_v19, %v5325_v55  ;;  %v6314_v19 = vld [vmem:[#allocation2 + $0x20] sm:$0x1] }
 0x5a0   : > { %v5359_v60 = vsel %vm1799_vm15, %v13456_v48, %v5009_v20  ;;  %10624 = vmatprep.mubr.msk.bf16.mxu0 %vm15471_vm14, %v5581_v58  ;;  %v13624_v48 = vld [vmem:[#allocation5] ss:$0 sm:$0xff]  ;;  %vm15476_vm14 = vcmask 60416  }
 0x5a1   : > { %v5391_v50 = vsel %vm1865_vm2, %v5359_v60, %v5089_v61 }
 0x5a2   : > { %v5423_v52 = vsel %vm1931_vm9, %v5391_v50, %v5126_v7  ;;  %v6307_v50 = vld [vmem:[#allocation2 + $0x14] sm:$0x1] }
 0x5a3   : > { %v5455_v8 = vsel %vm1997_vm0, %v5423_v52, %v5173_v10  ;;  %v5292_v62 = vpop.permute.xlu1 %5291 }
 0x5a4   : > { %v5487_v32 = vsel %vm3671_vm13, %v5455_v8, %v5208_v40 }
 0x5a5   : > { %v5519_v43 = vsel %vm3704_vm5, %v5487_v32, %v13179_v12 }
 0x5a6   : > { %v5551_v5 = vsel %vm3737_vm7, %v5519_v43, %v5292_v62 }
 0x5a7   : > { %v5327_v18 = vpop.permute.xlu1 %5326 }
 0x5a8   : > { %v5583_v3 = vsel %vm3770_vm10, %v5551_v5, %v5327_v18 }
 0x5a9   : > { %10625 = vmatmul.mubr.msk.bf16.gmra.mrb[44].mxu0 %vm15464_vm1, %v5583_v3  ;;  %v10598_v26 = vpop.f32.mrb[16].mxu0  ;;  %vm15477_vm1 = vmmov %vm15476_vm14 }
 0x5aa   : > { %v5705_v29 = vadd.f32 %v10598_v26, %v13624_v48  ;;  %v5696_v42 = vpop.f32.mrb[17].mxu0 }
 0x5ab   : > { %v5697_v25 = vadd.f32 %v13624_v48, %v5696_v42  ;;  %v10599_v17 = vpop.f32.mrb[18].mxu0 }
 0x5ac   : > { %v5825_v24 = vadd.f32 %v5705_v29, %v15472_v13  ;;  %v5708_v12 = vadd.f32 %v10599_v17, %v13624_v48  ;;  %v5699_v1 = vpop.f32.mrb[19].mxu0  ;;  %v10906_v13 = vld [vmem:[%s15314_s7] sm:$0xff]  }
 0x5ad   : > { %v5823_v37 = vadd.f32 %v5697_v25, %v15473_v15  ;;  %v5700_v4 = vadd.f32 %v13624_v48, %v5699_v1  ;;  %10628 = vmatprep.subr.bf16.mxu1 %v10906_v13 }
 0x5ae   : > { %v13633_v2 = vmax.f32 %v5825_v24, 0.0  ;;  %v5826_v11 = vadd.f32 %v5708_v12, %v15474_v44  ;;  %10629 = vmatpush3.bf16.msra.mxu1 %v10906_v13  ;;  %v6317_v13 = vld [vmem:[#allocation2 + $0x24] sm:$0xf] }
 0x5af   : > { %v13636_v39 = vmax.f32 %v5823_v37, 0.0  ;;  %v5824_v47 = vadd.f32 %v5700_v4, %v15475_v34  ;;  %v10908_v34 = vld [vmem:[%s15314_s7 + $0x8] sm:$0xff]  }
 0x5b0   : > { %v10309_v23 = vpack.c.bf16 %v13633_v2, %v13633_v2  ;;  %v13641_v16 = vmax.f32 %v5826_v11, 0.0  ;;  %10630 = vmatprep.subr.bf16.mxu1 %v10908_v34 }
 0x5b1   : > { %v10307_v7 = vpack.c.bf16 %v13636_v39, %v13636_v39  ;;  %v13645_v33 = vmax.f32 %v5824_v47, 0.0 }
 0x5b2   : > { %v6001_v63 = vshrl.u32 %v10309_v23, 16  ;;  %v10310_v0 = vpack.c.bf16 %v13641_v16, %v13641_v16  ;;  %v6004_v35 = vshll.u32 %v10309_v23, 16  ;;  %10631 = vmatpush3.bf16.msra.mxu1 %v10908_v34 }
 0x5b3   : > { %v5984_v22 = vshrl.u32 %v10307_v7, 16  ;;  %v10308_v45 = vpack.c.bf16 %v13645_v33, %v13645_v33  ;;  %v5987_v28 = vshll.u32 %v10307_v7, 16 }
 0x5b4   : > { %v6003_v40 = vrot.slane %v6001_v63, 7  ;;  %v6009_v27 = vshrl.u32 %v10310_v0, 16  ;;  %v6012_v10 = vshll.u32 %v10310_v0, 16 }
 0x5b5   : > { %v5986_v61 = vrot.slane %v5984_v22, 7  ;;  %v5992_v41 = vshrl.u32 %v10308_v45, 16  ;;  %v5995_v21 = vshll.u32 %v10308_v45, 16 }
 0x5b6   : > { %v6006_v53 = vor.u32 %v6004_v35, %v6003_v40  ;;  %v6011_v57 = vrot.slane %v6009_v27, 7  ;;  %v6007_v31 = vrot.slane %v6003_v40, 4  ;;  %v15478_v27 = vld [vmem:[#allocation16_spill] sm:$0xff] }
 0x5b7   : > { %v5989_v46 = vor.u32 %v5987_v28, %v5986_v61  ;;  %v5994_v38 = vrot.slane %v5992_v41, 7  ;;  %v5990_v56 = vrot.slane %v5986_v61, 4 }
 0x5b8   : > { %v6311_v51 = vsel %vm12065_vm12, %v6006_v53, %v6310_v54  ;;  %v6014_v36 = vor.u32 %v6012_v10, %v6011_v57  ;;  %v6016_v9 = vrot.slane %v6011_v57, 4  ;;  %v15479_v57 = vld [vmem:[#allocation17_spill] sm:$0xff] }
 0x5b9   : > { %6312 = vst [vmem:[#allocation2 + $0x18] sm:$0xf] %v6311_v51  ;;  %v6304_v30 = vsel %vm12065_vm12, %v5989_v46, %v6303_v6  ;;  %v5997_v55 = vor.u32 %v5995_v21, %v5994_v38  ;;  %v5999_v20 = vrot.slane %v5994_v38, 4  ;;  %v15480_v38 = vld [vmem:[#allocation18_spill] sm:$0xff]  ;;  %v15481_v51 = vld [vmem:[#allocation19_spill] sm:$0xff] }
 0x5ba   : > { %6305 = vst [vmem:[#allocation2 + $0xc] sm:$0xf] %v6304_v30  ;;  %v6015_v58 = vsel %vm11333_vm11, %v6007_v31, %v6014_v36  ;;  %v6315_v60 = vsel %vm11302_vm3, %v6016_v9, %v6314_v19 }
 0x5bb   : > { %6313 = vst.msk [vmem:[#allocation2 + $0x1c] sm:$0xf] %vm15476_vm14, %v6015_v58  ;;  %6316 = vst [vmem:[#allocation2 + $0x20] sm:$0x1] %v6315_v60  ;;  %v5998_v52 = vsel %vm11333_vm11, %v5990_v56, %v5997_v55  ;;  %v6308_v8 = vsel %vm11302_vm3, %v5999_v20, %v6307_v50 }
 0x5bc   : > { %6306 = vst.msk [vmem:[#allocation2 + $0x10] sm:$0xf] %vm15477_vm1, %v5998_v52  ;;  %6309 = vst [vmem:[#allocation2 + $0x14] sm:$0x1] %v6308_v8 }
 0x5bd   : > { %vm15482_vm14 = vmmov %vm15477_vm1 }
 0x5c2   : > { %v10890_v62 = vld [vmem:[#allocation2 + $0x18] sm:$0xff]   ;;  %v10891_v32 = vld [vmem:[#allocation2 + $0x20] ss:$0 sps:$4 sm:$0x11]  }
 0x5c3   : > { %v10892_v43 = vld [vmem:[#allocation2 + $0xc] sm:$0xff]   ;;  %6908 = vrot.lane.b32.xlu1 %v10890_v62, %s11094_s22  ;;  %7025 = vrot.lane.b32.xlu0 %v10890_v62, %s11099_s14  ;;  %v6827_v5 = vrot.slane %v10890_v62, 1  ;;  %v10893_v18 = vld [vmem:[#allocation2 + $0x14] ss:$0 sps:$4 sm:$0x11]   ;;  %v6828_v3 = vrot.slane %v10891_v32, 1 }
 0x5c4   : > { %v6624_v26 = vshll.u32 %v10890_v62, 16  ;;  %v6824_v42 = vrot.slane %v10892_v43, 1  ;;  %v6825_v25 = vrot.slane %v10893_v18, 1  ;;  %v6622_v24 = vshrl.u32 %v10890_v62, 16 }
 0x5c5   : > { %v6829_v29 = vsel %vm1447_vm6, %v6827_v5, %v6828_v3  ;;  %v6629_v12 = vshll.u32 %v10891_v32, 16  ;;  %v6612_v37 = vshll.u32 %v10892_v43, 16  ;;  %v6610_v47 = vshrl.u32 %v10892_v43, 16  ;;  %v6324_v3 = vld [vmem:[#allocation2 + $0x30] sm:$0xf] }
 0x5c6   : > { %v6626_v17 = vrot.slane %v6624_v26, 1  ;;  %v6826_v1 = vsel %vm1447_vm6, %v6824_v42, %v6825_v25  ;;  %v6617_v23 = vshll.u32 %v10893_v18, 16 }
 0x5c7   : > { %6990 = vrot.lane.b32.xlu1 %v6829_v29, %s11101_s20  ;;  %6906 = vrot.lane.b32.xlu0 %v10892_v43, %s11094_s22  ;;  %v6631_v4 = vrot.slane %v6629_v12, 1  ;;  %v6614_v11 = vrot.slane %v6612_v37, 1  ;;  %v6328_v37 = vld [vmem:[#allocation2 + $0x38] sm:$0x1] }
 0x5c8   : > { %v6627_v15 = vor.u32 %v6626_v17, %v6622_v24  ;;  %v6619_v45 = vrot.slane %v6617_v23, 1 }
 0x5c9   : > { %v6615_v7 = vor.u32 %v6614_v11, %v6610_v47  ;;  %v6321_v47 = vld [vmem:[#allocation2 + $0x2c] sm:$0x1] }
 0x5ca   : > { %v6632_v44 = vsel %vm1222_vm4, %v6627_v15, %v6631_v4 }
 0x5cb   : > { %6871 = vrot.lane.b32.xlu1 %v6826_v1, %s11097_s30  ;;  %7107 = vrot.lane.b32.xlu0 %v6829_v29, %s11100_s16  ;;  %v6620_v53 = vsel %vm1222_vm4, %v6615_v7, %v6619_v45 }
 0x5cf   : > { %6955 = vrot.lane.b32.xlu1 %v6632_v44, %s11096_s21  ;;  %6873 = vrot.lane.b32.xlu0 %v6829_v29, %s11097_s30 }
 0x5d3   : > { %6793 = vrot.lane.b32.xlu1 %v6632_v44, %s11091_s15  ;;  %6988 = vrot.lane.b32.xlu0 %v6826_v1, %s11101_s20 }
 0x5d4   : > { %v10602_v63 = vpop.f32.mrb[20].mxu0 }
 0x5d5   : > { %v5721_v0 = vadd.f32 %v10602_v63, %v13624_v48  ;;  %v5712_v22 = vpop.f32.mrb[21].mxu0  ;;  %v10912_v63 = vld [vmem:[%s15314_s7 + $0x10] sm:$0xff]  }
 0x5d6   : > { %v5713_v40 = vadd.f32 %v13624_v48, %v5712_v22  ;;  %v10603_v35 = vpop.f32.mrb[22].mxu0  ;;  %10632 = vmatprep.subr.bf16.mxu1 %v10912_v63 }
 0x5d7   : > { %v5829_v61 = vadd.f32 %v5721_v0, %v15478_v27  ;;  %v5724_v28 = vadd.f32 %v10603_v35, %v13624_v48  ;;  %v5715_v41 = vpop.f32.mrb[23].mxu0  ;;  %6791 = vrot.lane.b32.xlu1 %v6620_v53, %s11091_s15  ;;  %7072 = vrot.lane.b32.xlu0 %v6632_v44, %s11102_s25  ;;  %v10913_v0 = vld [vmem:[%s15314_s7 + $0x18] sm:$0xff]  }
 0x5d8   : > { %v5827_v10 = vadd.f32 %v5713_v40, %v15479_v57  ;;  %v5716_v54 = vadd.f32 %v13624_v48, %v5715_v41  ;;  %10633 = vmatpush3.bf16.msra.mxu1 %v10912_v63 }
 0x5d9   : > { %v13693_v46 = vmax.f32 %v5829_v61, 0.0  ;;  %v5830_v21 = vadd.f32 %v5724_v28, %v15480_v38  ;;  %10634 = vmatprep.subr.bf16.mxu1 %v10913_v0 }
 0x5da   : > { %v13696_v31 = vmax.f32 %v5827_v10, 0.0  ;;  %v5828_v6 = vadd.f32 %v5716_v54, %v15481_v51 }
 0x5db   : > { %v10313_v36 = vpack.c.bf16 %v13693_v46, %v13693_v46  ;;  %v13701_v9 = vmax.f32 %v5830_v21, 0.0  ;;  %6953 = vrot.lane.b32.xlu0 %v6620_v53, %s11096_s21 }
 0x5dc   : > { %v10311_v56 = vpack.c.bf16 %v13696_v31, %v13696_v31  ;;  %v13705_v30 = vmax.f32 %v5828_v6, 0.0  ;;  %10635 = vmatpush3.bf16.msra.mxu1 %v10913_v0 }
 0x5dd   : > { %v6035_v19 = vshrl.u32 %v10313_v36, 16  ;;  %v10314_v55 = vpack.c.bf16 %v13701_v9, %v13701_v9  ;;  %v6038_v50 = vshll.u32 %v10313_v36, 16  ;;  %v15483_v36 = vld [vmem:[#allocation20_spill] sm:$0xff] }
 0x5de   : > { %v6018_v20 = vshrl.u32 %v10311_v56, 16  ;;  %v10312_v58 = vpack.c.bf16 %v13705_v30, %v13705_v30  ;;  %v6021_v62 = vshll.u32 %v10311_v56, 16 }
 0x5df   : > { %v6037_v60 = vrot.slane %v6035_v19, 7  ;;  %v6043_v52 = vshrl.u32 %v10314_v55, 16  ;;  %v6046_v18 = vshll.u32 %v10314_v55, 16 }
 0x5e0   : > { %v6020_v8 = vrot.slane %v6018_v20, 7  ;;  %v6026_v32 = vshrl.u32 %v10312_v58, 16  ;;  %v6029_v42 = vshll.u32 %v10312_v58, 16  ;;  %v15484_v20 = vld [vmem:[#allocation21_spill] sm:$0xff] }
 0x5e1   : > { %v6040_v43 = vor.u32 %v6038_v50, %v6037_v60  ;;  %v6045_v5 = vrot.slane %v6043_v52, 7  ;;  %v6041_v25 = vrot.slane %v6037_v60, 4 }
 0x5e2   : > { %v6023_v26 = vor.u32 %v6021_v62, %v6020_v8  ;;  %v6028_v29 = vrot.slane %v6026_v32, 7  ;;  %v6024_v1 = vrot.slane %v6020_v8, 4  ;;  %v15485_v62 = vld [vmem:[#allocation22_spill] sm:$0xff] }
 0x5e3   : > { %v6325_v17 = vsel %vm12065_vm12, %v6040_v43, %v6324_v3  ;;  %v6048_v24 = vor.u32 %v6046_v18, %v6045_v5  ;;  %v6050_v12 = vrot.slane %v6045_v5, 4  ;;  %v15486_v18 = vld [vmem:[#allocation23_spill] sm:$0xff] }
 0x5e4   : > { %6326 = vst [vmem:[#allocation2 + $0x30] sm:$0xf] %v6325_v17  ;;  %v6318_v15 = vsel %vm12065_vm12, %v6023_v26, %v6317_v13  ;;  %v6031_v4 = vor.u32 %v6029_v42, %v6028_v29  ;;  %v6033_v44 = vrot.slane %v6028_v29, 4 }
 0x5e5   : > { %6319 = vst [vmem:[#allocation2 + $0x24] sm:$0xf] %v6318_v15  ;;  %v6049_v11 = vsel %vm11333_vm11, %v6041_v25, %v6048_v24  ;;  %v6329_v34 = vsel %vm11302_vm3, %v6050_v12, %v6328_v37 }
 0x5e6   : > { %6327 = vst.msk [vmem:[#allocation2 + $0x34] sm:$0xf] %vm15482_vm14, %v6049_v11  ;;  %6330 = vst [vmem:[#allocation2 + $0x38] sm:$0x1] %v6329_v34  ;;  %v6032_v23 = vsel %vm11333_vm11, %v6024_v1, %v6031_v4  ;;  %v6322_v7 = vsel %vm11302_vm3, %v6033_v44, %v6321_v47 }
 0x5e7   : > { %6320 = vst.msk [vmem:[#allocation2 + $0x28] sm:$0xf] %vm15477_vm1, %v6032_v23  ;;  %6323 = vst [vmem:[#allocation2 + $0x2c] sm:$0x1] %v6322_v7 }
 0x5e8   : > { %vm15487_vm14 = vmmov %vm15477_vm1 }
 0x5ed   : > { %v10894_v22 = vld [vmem:[#allocation2 + $0x30] sm:$0xff]   ;;  %v10896_v45 = vld [vmem:[#allocation2 + $0x38] ss:$0 sps:$4 sm:$0x11]  }
 0x5ee   : > { %6912 = vrot.lane.b32.xlu1 %v10894_v22, %s11094_s22  ;;  %7029 = vrot.lane.b32.xlu0 %v10894_v22, %s11099_s14  ;;  %v10895_v40 = vld [vmem:[#allocation2 + $0x24] sm:$0xff]   ;;  %v6833_v35 = vrot.slane %v10894_v22, 1  ;;  %v6834_v27 = vrot.slane %v10896_v45, 1  ;;  %v10897_v61 = vld [vmem:[#allocation2 + $0x2c] ss:$0 sps:$4 sm:$0x11]  }
 0x5ef   : > { %v6648_v28 = vshll.u32 %v10894_v22, 16  ;;  %v6830_v10 = vrot.slane %v10895_v40, 1  ;;  %v6831_v51 = vrot.slane %v10897_v61, 1  ;;  %v6646_v50 = vshrl.u32 %v10894_v22, 16 }
 0x5f0   : > { %v6835_v21 = vsel %vm1447_vm6, %v6833_v35, %v6834_v27  ;;  %v6653_v52 = vshll.u32 %v10896_v45, 16  ;;  %v6636_v43 = vshll.u32 %v10895_v40, 16  ;;  %v6641_v12 = vshll.u32 %v10897_v61, 16 }
 0x5f1   : > { %v6650_v6 = vrot.slane %v6648_v28, 1  ;;  %v6832_v26 = vsel %vm1447_vm6, %v6830_v10, %v6831_v51  ;;  %v6634_v7 = vshrl.u32 %v10895_v40, 16 }
 0x5f2   : > { %7027 = vrot.lane.b32.xlu1 %v10895_v40, %s11099_s14  ;;  %6910 = vrot.lane.b32.xlu0 %v10895_v40, %s11094_s22  ;;  %v6655_v24 = vrot.slane %v6653_v52, 1  ;;  %v6638_v37 = vrot.slane %v6636_v43, 1  ;;  %v6643_v45 = vrot.slane %v6641_v12, 1  ;;  %v6335_v52 = vld [vmem:[#allocation2 + $0x44] sm:$0x1] }
 0x5f3   : > { %v6651_v29 = vor.u32 %v6650_v6, %v6646_v50 }
 0x5f4   : > { %v10606_v41 = vpop.f32.mrb[24].mxu0  ;;  %v6639_v28 = vor.u32 %v6638_v37, %v6634_v7 }
 0x5f5   : > { %v5737_v53 = vadd.f32 %v10606_v41, %v13624_v48  ;;  %v5728_v57 = vpop.f32.mrb[25].mxu0  ;;  %v6656_v11 = vsel %vm1222_vm4, %v6651_v29, %v6655_v24  ;;  %v10916_v41 = vld [vmem:[%s15314_s7 + $0x20] ss:$0 sps:$4 sm:$0xff]  }
 0x5f6   : > { %v5729_v54 = vadd.f32 %v13624_v48, %v5728_v57  ;;  %v10607_v38 = vpop.f32.mrb[26].mxu0  ;;  %6994 = vrot.lane.b32.xlu1 %v6835_v21, %s11101_s20  ;;  %7111 = vrot.lane.b32.xlu0 %v6835_v21, %s11100_s16  ;;  %v6338_v57 = vld [vmem:[#allocation2 + $0x48] sm:$0xf]  ;;  %v6644_v43 = vsel %vm1222_vm4, %v6639_v28, %v6643_v45 }
 0x5f7   : > { %v5833_v56 = vadd.f32 %v5737_v53, %v15483_v36  ;;  %v5740_v19 = vadd.f32 %v10607_v38, %v13624_v48  ;;  %v5731_v55 = vpop.f32.mrb[27].mxu0  ;;  %v7471_v36 = vsel %vm3879_vm8, %v10916_v41, 0  ;;  %10722 = vmatprep.subr.msk.bf16.mxu1 %vm3879_vm8, %v10916_v41  ;;  %v15490_v41 = vld [vmem:[#allocation26_spill] sm:$0xff] }
 0x5f8   : > { %v5831_v58 = vadd.f32 %v5729_v54, %v15484_v20  ;;  %v5732_v60 = vadd.f32 %v13624_v48, %v5731_v55  ;;  %v6342_v55 = vld [vmem:[#allocation2 + $0x50] sm:$0x1]  ;;  %10637 = vmatpush3.bf16.msra.mxu1 %v7471_v36 }
 0x5f9   : > { %v13745_v8 = vmax.f32 %v5833_v56, 0.0  ;;  %v5834_v32 = vadd.f32 %v5740_v19, %v15485_v62 }
 0x5fa   : > { %v13748_v5 = vmax.f32 %v5831_v58, 0.0  ;;  %v5832_v3 = vadd.f32 %v5732_v60, %v15486_v18  ;;  %6875 = vrot.lane.b32.xlu1 %v6832_v26, %s11097_s30  ;;  %6877 = vrot.lane.b32.xlu0 %v6835_v21, %s11097_s30  ;;  %v6331_v21 = vld [vmem:[#allocation2 + $0x3c] sm:$0xf] }
 0x5fb   : > { %v10317_v42 = vpack.c.bf16 %v13745_v8, %v13745_v8  ;;  %v13754_v25 = vmax.f32 %v5834_v32, 0.0 }
 0x5fc   : > { %v10315_v17 = vpack.c.bf16 %v13748_v5, %v13748_v5  ;;  %v13760_v13 = vmax.f32 %v5832_v3, 0.0 }
 0x5fd   : > { %v6069_v1 = vshrl.u32 %v10317_v42, 16  ;;  %v10318_v15 = vpack.c.bf16 %v13754_v25, %v13754_v25  ;;  %v6072_v47 = vshll.u32 %v10317_v42, 16 }
 0x5fe   : > { %v6052_v4 = vshrl.u32 %v10315_v17, 16  ;;  %v10316_v44 = vpack.c.bf16 %v13760_v13, %v13760_v13  ;;  %6959 = vrot.lane.b32.xlu1 %v6656_v11, %s11096_s21  ;;  %7109 = vrot.lane.b32.xlu0 %v6832_v26, %s11100_s16  ;;  %v6055_v0 = vshll.u32 %v10315_v17, 16 }
 0x5ff   : > { %v6071_v34 = vrot.slane %v6069_v1, 7  ;;  %v6077_v23 = vshrl.u32 %v10318_v15, 16  ;;  %v6080_v61 = vshll.u32 %v10318_v15, 16 }
 0x600   : > { %v6054_v63 = vrot.slane %v6052_v4, 7  ;;  %v6060_v22 = vshrl.u32 %v10316_v44, 16  ;;  %v6063_v38 = vshll.u32 %v10316_v44, 16 }
 0x601   : > { %v6074_v35 = vor.u32 %v6072_v47, %v6071_v34  ;;  %v6079_v27 = vrot.slane %v6077_v23, 7  ;;  %v6075_v53 = vrot.slane %v6071_v34, 4  ;;  %v15488_v23 = vld [vmem:[#allocation24_spill] sm:$0xff] }
 0x602   : > { %v6057_v10 = vor.u32 %v6055_v0, %v6054_v63  ;;  %v6062_v54 = vrot.slane %v6060_v22, 7  ;;  %6797 = vrot.lane.b32.xlu1 %v6656_v11, %s11091_s15  ;;  %6992 = vrot.lane.b32.xlu0 %v6832_v26, %s11101_s20  ;;  %v6058_v56 = vrot.slane %v6054_v63, 4  ;;  %v15489_v22 = vld [vmem:[#allocation25_spill] sm:$0xff] }
 0x603   : > { %v6339_v40 = vsel %vm12065_vm12, %v6074_v35, %v6338_v57  ;;  %v6082_v51 = vor.u32 %v6080_v61, %v6079_v27  ;;  %v6084_v6 = vrot.slane %v6079_v27, 4 }
 0x604   : > { %6340 = vst [vmem:[#allocation2 + $0x48] sm:$0xf] %v6339_v40  ;;  %v6332_v19 = vsel %vm12065_vm12, %v6057_v10, %v6331_v21  ;;  %v6065_v20 = vor.u32 %v6063_v38, %v6062_v54  ;;  %v6067_v58 = vrot.slane %v6062_v54, 4  ;;  %v15491_v54 = vld [vmem:[#allocation27_spill] sm:$0xff] }
 0x605   : > { %6333 = vst [vmem:[#allocation2 + $0x3c] sm:$0xf] %v6332_v19  ;;  %v6083_v60 = vsel %vm11333_vm11, %v6075_v53, %v6082_v51  ;;  %v6343_v50 = vsel %vm11302_vm3, %v6084_v6, %v6342_v55 }
 0x606   : > { %6341 = vst.msk [vmem:[#allocation2 + $0x4c] sm:$0xf] %vm15487_vm14, %v6083_v60  ;;  %6344 = vst [vmem:[#allocation2 + $0x50] sm:$0x1] %v6343_v50  ;;  %v6066_v62 = vsel %vm11333_vm11, %v6058_v56, %v6065_v20  ;;  %v6336_v32 = vsel %vm11302_vm3, %v6067_v58, %v6335_v52  ;;  %7074 = vrot.lane.b32.xlu1 %v6644_v43, %s11102_s25  ;;  %7076 = vrot.lane.b32.xlu0 %v6656_v11, %s11102_s25 }
 0x607   : > { %6334 = vst.msk [vmem:[#allocation2 + $0x40] sm:$0xf] %vm15477_vm1, %v6066_v62  ;;  %6337 = vst [vmem:[#allocation2 + $0x44] sm:$0x1] %v6336_v32 }
 0x608   : > { %vm15494_vm14 = vmmov %vm15477_vm1 }
 0x60a   : > { %6795 = vrot.lane.b32.xlu1 %v6644_v43, %s11091_s15  ;;  %6957 = vrot.lane.b32.xlu0 %v6644_v43, %s11096_s21 }
 0x60d   : > { %v10898_v18 = vld [vmem:[#allocation2 + $0x48] sm:$0xff]   ;;  %v10900_v3 = vld [vmem:[#allocation2 + $0x50] ss:$0 sps:$4 sm:$0x11]  }
 0x60e   : > { %6916 = vrot.lane.b32.xlu1 %v10898_v18, %s11094_s22  ;;  %7033 = vrot.lane.b32.xlu0 %v10898_v18, %s11099_s14  ;;  %v13797_v26 = vld [vmem:[#allocation2 + $0x3c] sm:$0xff]   ;;  %v6839_v29 = vrot.slane %v10898_v18, 1  ;;  %v6840_v42 = vrot.slane %v10900_v3, 1  ;;  %v10901_v17 = vld [vmem:[#allocation2 + $0x44] ss:$0 sps:$4 sm:$0x11]  }
 0x60f   : > { %v6672_v24 = vshll.u32 %v10898_v18, 16  ;;  %v6836_v37 = vrot.slane %v13797_v26, 1  ;;  %v6837_v34 = vrot.slane %v10901_v17, 1  ;;  %v6670_v27 = vshrl.u32 %v10898_v18, 16 }
 0x610   : > { %v6841_v11 = vsel %vm1447_vm6, %v6839_v29, %v6840_v42  ;;  %v6677_v61 = vshll.u32 %v10900_v3, 16  ;;  %v6660_v57 = vshll.u32 %v13797_v26, 16  ;;  %v6665_v58 = vshll.u32 %v10901_v17, 16 }
 0x611   : > { %v6674_v47 = vrot.slane %v6672_v24, 1  ;;  %v6838_v40 = vsel %vm1447_vm6, %v6836_v37, %v6837_v34  ;;  %v6658_v24 = vshrl.u32 %v13797_v26, 16  ;;  %v6352_v37 = vld [vmem:[#allocation2 + $0x60] sm:$0xf] }
 0x612   : > { %7031 = vrot.lane.b32.xlu1 %v13797_v26, %s11099_s14  ;;  %6914 = vrot.lane.b32.xlu0 %v13797_v26, %s11094_s22  ;;  %v6679_v19 = vrot.slane %v6677_v61, 1  ;;  %v6662_v62 = vrot.slane %v6660_v57, 1 }
 0x613   : > { %v6675_v21 = vor.u32 %v6674_v47, %v6670_v27 }
 0x614   : > { %v10610_v12 = vpop.f32.mrb[28].mxu0  ;;  %v6663_v34 = vor.u32 %v6662_v62, %v6658_v24  ;;  %v15495_v24 = vld [vmem:[#allocation28_spill] sm:$0xff] }
 0x615   : > { %v5753_v1 = vadd.f32 %v10610_v12, %v13624_v48  ;;  %v5744_v15 = vpop.f32.mrb[29].mxu0  ;;  %v6680_v52 = vsel %vm1222_vm4, %v6675_v21, %v6679_v19 }
 0x616   : > { %v5745_v4 = vadd.f32 %v13624_v48, %v5744_v15  ;;  %v10611_v44 = vpop.f32.mrb[30].mxu0  ;;  %6998 = vrot.lane.b32.xlu1 %v6841_v11, %s11101_s20  ;;  %7115 = vrot.lane.b32.xlu0 %v6841_v11, %s11100_s16  ;;  %v6667_v15 = vrot.slane %v6665_v58, 1 }
 0x617   : > { %v5837_v7 = vadd.f32 %v5753_v1, %v15488_v23  ;;  %v5756_v63 = vadd.f32 %v10611_v44, %v13624_v48  ;;  %v5747_v0 = vpop.f32.mrb[31].mxu0 }
 0x618   : > { %v5835_v45 = vadd.f32 %v5745_v4, %v15489_v22  ;;  %v5748_v35 = vadd.f32 %v13624_v48, %v5747_v0 }
 0x619   : > { %v13813_v28 = vmax.f32 %v5837_v7, 0.0  ;;  %v5838_v53 = vadd.f32 %v5756_v63, %v15490_v41  ;;  %v6345_v7 = vld [vmem:[#allocation2 + $0x54] sm:$0xf] }
 0x61a   : > { %v13817_v10 = vmax.f32 %v5835_v45, 0.0  ;;  %v5836_v38 = vadd.f32 %v5748_v35, %v15491_v54  ;;  %6879 = vrot.lane.b32.xlu1 %v6838_v40, %s11097_s30  ;;  %6881 = vrot.lane.b32.xlu0 %v6841_v11, %s11097_s30  ;;  %v6356_v45 = vld [vmem:[#allocation2 + $0x68] sm:$0x1] }
 0x61b   : > { %v10321_v51 = vpack.c.bf16 %v13813_v28, %v13813_v28  ;;  %v13823_v6 = vmax.f32 %v5838_v53, 0.0  ;;  %v6349_v53 = vld [vmem:[#allocation2 + $0x5c] sm:$0x1] }
 0x61c   : > { %v10319_v36 = vpack.c.bf16 %v13817_v10, %v13817_v10  ;;  %v13829_v56 = vmax.f32 %v5836_v38, 0.0  ;;  %v6668_v38 = vsel %vm1222_vm4, %v6663_v34, %v6667_v15 }
 0x61d   : > { %15492 = vst [vmem:[#allocation44_spill] sm:$0xff] %v13823_v6  ;;  %v6103_v55 = vshrl.u32 %v10321_v51, 16  ;;  %v10322_v20 = vpack.c.bf16 %v13823_v6, %v13823_v6  ;;  %v6106_v43 = vshll.u32 %v10321_v51, 16 }
 0x61e   : > { %15493 = vst [vmem:[#allocation45_spill] sm:$0xff] %v13829_v56  ;;  %v6086_v60 = vshrl.u32 %v10319_v36, 16  ;;  %v10320_v50 = vpack.c.bf16 %v13829_v56, %v13829_v56  ;;  %6963 = vrot.lane.b32.xlu1 %v6680_v52, %s11096_s21  ;;  %7113 = vrot.lane.b32.xlu0 %v6838_v40, %s11100_s16  ;;  %v6089_v29 = vshll.u32 %v10319_v36, 16 }
 0x61f   : > { %v6105_v32 = vrot.slane %v6103_v55, 7  ;;  %v6111_v18 = vshrl.u32 %v10322_v20, 16  ;;  %v6114_v1 = vshll.u32 %v10322_v20, 16 }
 0x620   : > { %v6088_v3 = vrot.slane %v6086_v60, 7  ;;  %v6094_v42 = vshrl.u32 %v10320_v50, 16  ;;  %v6097_v11 = vshll.u32 %v10320_v50, 16 }
 0x621   : > { %v6108_v17 = vor.u32 %v6106_v43, %v6105_v32  ;;  %v6113_v12 = vrot.slane %v6111_v18, 7  ;;  %v6109_v47 = vrot.slane %v6105_v32, 4 }
 0x622   : > { %v6091_v4 = vor.u32 %v6089_v29, %v6088_v3  ;;  %v6096_v44 = vrot.slane %v6094_v42, 7  ;;  %6801 = vrot.lane.b32.xlu1 %v6680_v52, %s11091_s15  ;;  %6996 = vrot.lane.b32.xlu0 %v6838_v40, %s11101_s20  ;;  %v6092_v26 = vrot.slane %v6088_v3, 4  ;;  %v13860_v40 = vpop.permute.xlu0 %6789 }
 0x623   : > { %v6353_v23 = vsel %vm12065_vm12, %v6108_v17, %v6352_v37  ;;  %v6116_v63 = vor.u32 %v6114_v1, %v6113_v12  ;;  %v6118_v0 = vrot.slane %v6113_v12, 4  ;;  %v15496_v37 = vld [vmem:[#allocation29_spill] sm:$0xff] }
 0x624   : > { %6354 = vst [vmem:[#allocation2 + $0x60] sm:$0xf] %v6353_v23  ;;  %v6346_v22 = vsel %vm12065_vm12, %v6091_v4, %v6345_v7  ;;  %v6099_v35 = vor.u32 %v6097_v11, %v6096_v44  ;;  %v6101_v27 = vrot.slane %v6096_v44, 4  ;;  %v15498_v23 = vld [vmem:[#allocation30_spill] sm:$0xff] }
 0x625   : > { %6347 = vst [vmem:[#allocation2 + $0x54] sm:$0xf] %v6346_v22  ;;  %v6117_v61 = vsel %vm11333_vm11, %v6109_v47, %v6116_v63  ;;  %v6357_v41 = vsel %vm11302_vm3, %v6118_v0, %v6356_v45  ;;  %v13887_v63 = vpop.permute.xlu1 %7055  ;;  %v15500_v22 = vld [vmem:[#allocation31_spill] sm:$0xff] }
 0x626   : > { %6355 = vst.msk [vmem:[#allocation2 + $0x64] sm:$0xf] %vm15494_vm14, %v6117_v61  ;;  %6358 = vst [vmem:[#allocation2 + $0x68] sm:$0x1] %v6357_v41  ;;  %v6100_v57 = vsel %vm11333_vm11, %v6092_v26, %v6099_v35  ;;  %v6350_v54 = vsel %vm11302_vm3, %v6101_v27, %v6349_v53  ;;  %7078 = vrot.lane.b32.xlu1 %v6668_v38, %s11102_s25  ;;  %7080 = vrot.lane.b32.xlu0 %v6680_v52, %s11102_s25  ;;  %v13866_v19 = vpop.permute.xlu0 %6869 }
 0x627   : > { %6348 = vst.msk [vmem:[#allocation2 + $0x58] sm:$0xf] %vm15477_vm1, %v6100_v57  ;;  %6351 = vst [vmem:[#allocation2 + $0x5c] sm:$0x1] %v6350_v54 }
 0x628   : > { %vm15503_vm14 = vmmov %vm15477_vm1 }
 0x62a   : > { %6799 = vrot.lane.b32.xlu1 %v6668_v38, %s11091_s15  ;;  %6961 = vrot.lane.b32.xlu0 %v6668_v38, %s11096_s21 }
 0x62d   : > { %v10902_v21 = vld [vmem:[#allocation2 + $0x60] sm:$0xff]   ;;  %v10904_v51 = vld [vmem:[#allocation2 + $0x68] ss:$0 sps:$4 sm:$0x11]  }
 0x62e   : > { %6920 = vrot.lane.b32.xlu1 %v10902_v21, %s11094_s22  ;;  %7037 = vrot.lane.b32.xlu0 %v10902_v21, %s11099_s14  ;;  %v13864_v36 = vld [vmem:[#allocation2 + $0x54] sm:$0xff]   ;;  %v6845_v55 = vrot.slane %v10902_v21, 1  ;;  %v6846_v20 = vrot.slane %v10904_v51, 1  ;;  %v10905_v58 = vld [vmem:[#allocation2 + $0x5c] ss:$0 sps:$4 sm:$0x11]  }
 0x62f   : > { %v6696_v60 = vshll.u32 %v10902_v21, 16  ;;  %v6842_v32 = vrot.slane %v13864_v36, 1  ;;  %v6843_v29 = vrot.slane %v10905_v58, 1  ;;  %v6694_v11 = vshrl.u32 %v10902_v21, 16 }
 0x630   : > { %v6847_v3 = vsel %vm1447_vm6, %v6845_v55, %v6846_v20  ;;  %v6701_v34 = vshll.u32 %v10904_v51, 16  ;;  %v6684_v0 = vshll.u32 %v13864_v36, 16  ;;  %v6689_v51 = vshll.u32 %v10905_v58, 16 }
 0x631   : > { %v6698_v42 = vrot.slane %v6696_v60, 1  ;;  %v6844_v35 = vsel %vm1447_vm6, %v6842_v32, %v6843_v29 }
 0x632   : > { %7035 = vrot.lane.b32.xlu1 %v13864_v36, %s11099_s14  ;;  %6918 = vrot.lane.b32.xlu0 %v13864_v36, %s11094_s22  ;;  %v6703_v54 = vrot.slane %v6701_v34, 1 }
 0x633   : > { %v6699_v27 = vor.u32 %v6698_v42, %v6694_v11  ;;  %v6682_v42 = vshrl.u32 %v13864_v36, 16 }
 0x634   : > { %v10614_v50 = vpop.f32.mrb[32].mxu0 }
 0x635   : > { %v5769_v52 = vadd.f32 %v10614_v50, %v13624_v48  ;;  %v5760_v62 = vpop.f32.mrb[33].mxu0  ;;  %v13880_v15 = vpop.permute.xlu0 %7025  ;;  %v6704_v60 = vsel %vm1222_vm4, %v6699_v27, %v6703_v54  ;;  %v6686_v50 = vrot.slane %v6684_v0, 1  ;;  %v6359_v0 = vld [vmem:[#allocation2 + $0x6c] sm:$0xf] }
 0x636   : > { %v5761_v43 = vadd.f32 %v13624_v48, %v5760_v62  ;;  %v10615_v18 = vpop.f32.mrb[34].mxu0  ;;  %7002 = vrot.lane.b32.xlu1 %v6847_v3, %s11101_s20  ;;  %7119 = vrot.lane.b32.xlu0 %v6847_v3, %s11100_s16 }
 0x637   : > { %v5841_v17 = vadd.f32 %v5769_v52, %v15495_v24  ;;  %v5772_v12 = vadd.f32 %v10615_v18, %v13624_v48  ;;  %v5763_v1 = vpop.f32.mrb[35].mxu0  ;;  %v6687_v34 = vor.u32 %v6686_v50, %v6682_v42 }
 0x638   : > { %v5839_v4 = vadd.f32 %v5761_v43, %v15496_v37  ;;  %v5764_v44 = vadd.f32 %v13624_v48, %v5763_v1  ;;  %v13913_v43 = vpop.permute.xlu1 %6908  ;;  %v6691_v1 = vrot.slane %v6689_v51, 1  ;;  %v6366_v37 = vld [vmem:[#allocation2 + $0x78] sm:$0xf] }
 0x639   : > { %v13884_v47 = vmax.f32 %v5841_v17, 0.0  ;;  %v5842_v7 = vadd.f32 %v5772_v12, %v15498_v23  ;;  %v13900_v41 = vpop.permute.xlu0 %6906 }
 0x63a   : > { %v13890_v26 = vmax.f32 %v5839_v4, 0.0  ;;  %v5840_v45 = vadd.f32 %v5764_v44, %v15500_v22  ;;  %6883 = vrot.lane.b32.xlu1 %v6844_v35, %s11097_s30  ;;  %6885 = vrot.lane.b32.xlu0 %v6847_v3, %s11097_s30 }
 0x63b   : > { %15497 = vst [vmem:[#allocation15_spill] sm:$0xff] %v13884_v47  ;;  %v10325_v48 = vpack.c.bf16 %v13884_v47, %v13884_v47  ;;  %v13896_v61 = vmax.f32 %v5842_v7, 0.0 }
 0x63c   : > { %15499 = vst [vmem:[#allocation10_spill] sm:$0xff] %v13890_v26  ;;  %v10323_v53 = vpack.c.bf16 %v13890_v26, %v13890_v26  ;;  %v13904_v57 = vmax.f32 %v5840_v45, 0.0 }
 0x63d   : > { %15501 = vst [vmem:[#allocation9_spill] sm:$0xff] %v13896_v61  ;;  %v6137_v38 = vshrl.u32 %v10325_v48, 16  ;;  %v10326_v21 = vpack.c.bf16 %v13896_v61, %v13896_v61  ;;  %v6140_v62 = vshll.u32 %v10325_v48, 16  ;;  %v13915_v18 = vpop.permute.xlu0 %7107 }
 0x63e   : > { %15502 = vst [vmem:[#allocation11_spill] sm:$0xff] %v13904_v57  ;;  %v6120_v55 = vshrl.u32 %v10323_v53, 16  ;;  %v10324_v20 = vpack.c.bf16 %v13904_v57, %v13904_v57  ;;  %6967 = vrot.lane.b32.xlu1 %v6704_v60, %s11096_s21  ;;  %7117 = vrot.lane.b32.xlu0 %v6844_v35, %s11100_s16  ;;  %v6123_v58 = vshll.u32 %v10323_v53, 16  ;;  %v6370_v53 = vld [vmem:[#allocation2 + $0x80] sm:$0x1] }
 0x63f   : > { %v6139_v52 = vrot.slane %v6137_v38, 7  ;;  %v6145_v32 = vshrl.u32 %v10326_v21, 16  ;;  %v6148_v12 = vshll.u32 %v10326_v21, 16 }
 0x640   : > { %v6122_v3 = vrot.slane %v6120_v55, 7  ;;  %v6128_v29 = vshrl.u32 %v10324_v20, 16  ;;  %v6131_v11 = vshll.u32 %v10324_v20, 16  ;;  %v6363_v55 = vld [vmem:[#allocation2 + $0x74] sm:$0x1]  ;;  %v13930_v20 = vpop.permute.xlu1 %6990 }
 0x641   : > { %v6142_v24 = vor.u32 %v6140_v62, %v6139_v52  ;;  %v6147_v17 = vrot.slane %v6145_v32, 7  ;;  %v6143_v23 = vrot.slane %v6139_v52, 4  ;;  %v13922_v36 = vpop.permute.xlu0 %6873  ;;  %v6692_v52 = vsel %vm1222_vm4, %v6687_v34, %v6691_v1  ;;  %v10991_v32 = vld [vmem:[#allocation2] sm:$0xff]  }
 0x642   : > { %v6125_v4 = vor.u32 %v6123_v58, %v6122_v3  ;;  %v6130_v44 = vrot.slane %v6128_v29, 7  ;;  %6805 = vrot.lane.b32.xlu1 %v6704_v60, %s11091_s15  ;;  %7000 = vrot.lane.b32.xlu0 %v6844_v35, %s11101_s20  ;;  %v6126_v27 = vrot.slane %v6122_v3, 4  ;;  %v7140_v3 = vsel %vm1799_vm15, %v10991_v32, %v13860_v40 }
 0x643   : > { %v6367_v7 = vsel %vm12065_vm12, %v6142_v24, %v6366_v37  ;;  %v6150_v22 = vor.u32 %v6148_v12, %v6147_v17  ;;  %v6152_v45 = vrot.slane %v6147_v17, 4  ;;  %v7172_v42 = vsel %vm1865_vm2, %v7140_v3, %v13866_v19 }
 0x644   : > { %6368 = vst [vmem:[#allocation2 + $0x78] sm:$0xf] %v6367_v7  ;;  %v6360_v48 = vsel %vm12065_vm12, %v6125_v4, %v6359_v0  ;;  %v6133_v54 = vor.u32 %v6131_v11, %v6130_v44  ;;  %v6135_v38 = vrot.slane %v6130_v44, 4  ;;  %v13943_v58 = vpop.permute.xlu1 %6871 }
 0x645   : > { %6361 = vst [vmem:[#allocation2 + $0x6c] sm:$0xf] %v6360_v48  ;;  %v6151_v21 = vsel %vm11333_vm11, %v6143_v23, %v6150_v22  ;;  %v6371_v51 = vsel %vm11302_vm3, %v6152_v45, %v6370_v53  ;;  %v6989_v62 = vpop.permute.xlu0 %6988  ;;  %v13970_v22 = vld [vmem:[#allocation5] ss:$0 sm:$0xff] }
 0x646   : > { %6369 = vst.msk [vmem:[#allocation2 + $0x7c] sm:$0xf] %vm15503_vm14, %v6151_v21  ;;  %6372 = vst [vmem:[#allocation2 + $0x80] sm:$0x1] %v6371_v51  ;;  %v6134_v35 = vsel %vm11333_vm11, %v6126_v27, %v6133_v54  ;;  %v6364_v50 = vsel %vm11302_vm3, %v6135_v38, %v6363_v55  ;;  %7082 = vrot.lane.b32.xlu1 %v6692_v52, %s11102_s25  ;;  %7084 = vrot.lane.b32.xlu0 %v6704_v60, %s11102_s25  ;;  %vm15504_vm14 = vcmask 588800  }
 0x647   : > { %6362 = vst.msk [vmem:[#allocation2 + $0x70] sm:$0xf] %vm15477_vm1, %v6134_v35  ;;  %6365 = vst [vmem:[#allocation2 + $0x74] sm:$0x1] %v6364_v50  ;;  %v7204_v60 = vsel %vm1931_vm9, %v7172_v42, %v13900_v41 }
 0x648   : > { %v13954_v1 = vpop.permute.xlu1 %6955 }
 0x649   : > { %v7073_v29 = vpop.permute.xlu0 %7072 }
 0x64a   : > { %6803 = vrot.lane.b32.xlu1 %v6692_v52, %s11091_s15  ;;  %6965 = vrot.lane.b32.xlu0 %v6692_v52, %s11096_s21  ;;  %v15506_v52 = vld [vmem:[#allocation33_spill] sm:$0xff] }
 0x64c   : > { %v13978_v51 = vpop.permute.xlu1 %6793 }
 0x64d   : > { %v10907_v24 = vld [vmem:[#allocation2 + $0x78] sm:$0xff]   ;;  %v10910_v17 = vld [vmem:[#allocation2 + $0x80] ss:$0 sps:$4 sm:$0x11]   ;;  %v6954_v40 = vpop.permute.xlu0 %6953 }
 0x64e   : > { %6924 = vrot.lane.b32.xlu1 %v10907_v24, %s11094_s22  ;;  %7041 = vrot.lane.b32.xlu0 %v10907_v24, %s11099_s14  ;;  %v7236_v12 = vsel %vm1997_vm0, %v7204_v60, %v6954_v40  ;;  %v13956_v37 = vld [vmem:[#allocation2 + $0x6c] sm:$0xff]   ;;  %v6851_v44 = vrot.slane %v10907_v24, 1  ;;  %v6852_v19 = vrot.slane %v10910_v17, 1  ;;  %v13961_v34 = vld [vmem:[#allocation2 + $0x74] ss:$0 sps:$4 sm:$0x11]  }
 0x64f   : > { %v7268_v4 = vsel %vm3671_vm13, %v7236_v12, %v6989_v62  ;;  %v6720_v41 = vshll.u32 %v10907_v24, 16  ;;  %v6848_v27 = vrot.slane %v13956_v37, 1  ;;  %v6849_v38 = vrot.slane %v13961_v34, 1  ;;  %v15508_v60 = vld [vmem:[#allocation34_spill] sm:$0xff] }
 0x650   : > { %v7300_v11 = vsel %vm3704_vm5, %v7268_v4, %v13880_v15  ;;  %v6853_v54 = vsel %vm1447_vm6, %v6851_v44, %v6852_v19  ;;  %v6718_v3 = vshrl.u32 %v10907_v24, 16  ;;  %v6708_v12 = vshll.u32 %v13956_v37, 16  ;;  %v15510_v44 = vld [vmem:[#allocation35_spill] sm:$0xff] }
 0x651   : > { %v7332_v23 = vsel %vm3737_vm7, %v7300_v11, %v7073_v29  ;;  %v6722_v21 = vrot.slane %v6720_v41, 1  ;;  %v6725_v29 = vshll.u32 %v10910_v17, 16  ;;  %v6850_v11 = vsel %vm1447_vm6, %v6848_v27, %v6849_v38 }
 0x652   : > { %7039 = vrot.lane.b32.xlu1 %v13956_v37, %s11099_s14  ;;  %6922 = vrot.lane.b32.xlu0 %v13956_v37, %s11094_s22  ;;  %v7364_v0 = vsel %vm3770_vm10, %v7332_v23, %v13915_v18  ;;  %v15505_v18 = vld [vmem:[#allocation32_spill] sm:$0xff] }
 0x653   : > { %10638 = vmatprep.mubr.msk.bf16.mxu1 %vm15504_vm14, %v7364_v0  ;;  %v6723_v41 = vor.u32 %v6722_v21, %v6718_v3  ;;  %v6727_v0 = vrot.slane %v6725_v29, 1  ;;  %vm15513_vm14 = vmmov %vm15477_vm1 }
 0x655   : > { %v10618_v7 = vpop.f32.mrb[36].mxu0  ;;  %v6728_v21 = vsel %vm1222_vm4, %v6723_v41, %v6727_v0 }
 0x656   : > { %v5785_v45 = vadd.f32 %v13970_v22, %v10618_v7  ;;  %v5776_v15 = vpop.f32.mrb[37].mxu0  ;;  %7006 = vrot.lane.b32.xlu1 %v6853_v54, %s11101_s20  ;;  %7123 = vrot.lane.b32.xlu0 %v6853_v54, %s11100_s16 }
 0x657   : > { %v5777_v48 = vadd.f32 %v13970_v22, %v5776_v15  ;;  %v10619_v53 = vpop.f32.mrb[38].mxu0  ;;  %v6792_v15 = vpop.permute.xlu1 %6791 }
 0x658   : > { %v5845_v55 = vadd.f32 %v5785_v45, %v15505_v18  ;;  %v5788_v35 = vadd.f32 %v13970_v22, %v10619_v53  ;;  %v5779_v50 = vpop.f32.mrb[39].mxu0 }
 0x659   : > { %v5843_v62 = vadd.f32 %v5777_v48, %v15506_v52  ;;  %v5780_v32 = vadd.f32 %v13970_v22, %v5779_v50  ;;  %v6710_v48 = vrot.slane %v6708_v12, 1  ;;  %v6706_v50 = vshrl.u32 %v13956_v37, 16 }
 0x65a   : > { %v13986_v42 = vmax.f32 %v5845_v55, 0.0  ;;  %v5846_v40 = vadd.f32 %v5788_v35, %v15508_v60  ;;  %6887 = vrot.lane.b32.xlu1 %v6850_v11, %s11097_s30  ;;  %6889 = vrot.lane.b32.xlu0 %v6853_v54, %s11097_s30  ;;  %v6713_v54 = vshll.u32 %v13961_v34, 16 }
 0x65b   : > { %v13990_v4 = vmax.f32 %v5843_v62, 0.0  ;;  %v5844_v19 = vadd.f32 %v5780_v32, %v15510_v44  ;;  %v6711_v34 = vor.u32 %v6710_v48, %v6706_v50  ;;  %v6380_v44 = vld [vmem:[#allocation2 + $0x90] sm:$0xf]  ;;  %v6377_v50 = vld [vmem:[#allocation2 + $0x8c] sm:$0x1] }
 0x65c   : > { %15507 = vst [vmem:[#allocation12_spill] sm:$0xff] %v13986_v42  ;;  %v10329_v23 = vpack.c.bf16 %v13986_v42, %v13986_v42  ;;  %v13996_v7 = vmax.f32 %v5846_v40, 0.0  ;;  %v6715_v0 = vrot.slane %v6713_v54, 1 }
 0x65d   : > { %15509 = vst [vmem:[#allocation13_spill] sm:$0xff] %v13990_v4  ;;  %v10327_v24 = vpack.c.bf16 %v13990_v4, %v13990_v4  ;;  %v14002_v17 = vmax.f32 %v5844_v19, 0.0 }
 0x65e   : > { %15511 = vst [vmem:[#allocation14_spill] sm:$0xff] %v13996_v7  ;;  %v6171_v45 = vshrl.u32 %v10329_v23, 16  ;;  %v10330_v27 = vpack.c.bf16 %v13996_v7, %v13996_v7  ;;  %v6174_v55 = vshll.u32 %v10329_v23, 16  ;;  %6971 = vrot.lane.b32.xlu1 %v6728_v21, %s11096_s21  ;;  %7121 = vrot.lane.b32.xlu0 %v6850_v11, %s11100_s16 }
 0x65f   : > { %15512 = vst [vmem:[#allocation16_spill] sm:$0xff] %v14002_v17  ;;  %v6154_v53 = vshrl.u32 %v10327_v24, 16  ;;  %v10328_v38 = vpack.c.bf16 %v14002_v17, %v14002_v17  ;;  %v6157_v62 = vshll.u32 %v10327_v24, 16 }
 0x660   : > { %v6173_v18 = vrot.slane %v6171_v45, 7  ;;  %v6179_v35 = vshrl.u32 %v10330_v27, 16  ;;  %v6182_v60 = vshll.u32 %v10330_v27, 16  ;;  %v14013_v40 = vpop.permute.xlu1 %6912  ;;  %v14015_v12 = vpop.permute.xlu0 %7029 }
 0x661   : > { %v6156_v52 = vrot.slane %v6154_v53, 7  ;;  %v6162_v32 = vshrl.u32 %v10328_v38, 16  ;;  %v6165_v23 = vshll.u32 %v10328_v38, 16  ;;  %v6373_v53 = vld [vmem:[#allocation2 + $0x84] sm:$0xf] }
 0x662   : > { %v6176_v3 = vor.u32 %v6174_v55, %v6173_v18  ;;  %v6181_v29 = vrot.slane %v6179_v35, 7  ;;  %v6177_v45 = vrot.slane %v6173_v18, 4  ;;  %6809 = vrot.lane.b32.xlu1 %v6728_v21, %s11091_s15  ;;  %7004 = vrot.lane.b32.xlu0 %v6850_v11, %s11101_s20  ;;  %v6384_v55 = vld [vmem:[#allocation2 + $0x98] sm:$0x1] }
 0x663   : > { %v6159_v19 = vor.u32 %v6157_v62, %v6156_v52  ;;  %v6164_v41 = vrot.slane %v6162_v32, 7  ;;  %v6160_v27 = vrot.slane %v6156_v52, 4 }
 0x664   : > { %v6381_v37 = vsel %vm12065_vm12, %v6176_v3, %v6380_v44  ;;  %v6184_v24 = vor.u32 %v6182_v60, %v6181_v29  ;;  %v6186_v17 = vrot.slane %v6181_v29, 4  ;;  %v7028_v62 = vpop.permute.xlu1 %7027  ;;  %v14027_v32 = vpop.permute.xlu0 %6910  ;;  %v6716_v3 = vsel %vm1222_vm4, %v6711_v34, %v6715_v0  ;;  %v10994_v34 = vld [vmem:[#allocation2 + $0x18] sm:$0xff]  }
 0x665   : > { %6382 = vst [vmem:[#allocation2 + $0x90] sm:$0xf] %v6381_v37  ;;  %v6374_v48 = vsel %vm12065_vm12, %v6159_v19, %v6373_v53  ;;  %v6167_v35 = vor.u32 %v6165_v23, %v6164_v41  ;;  %v6169_v38 = vrot.slane %v6164_v41, 4  ;;  %v7144_v41 = vsel %vm1799_vm15, %v10994_v34, %v13978_v51 }
 0x666   : > { %6375 = vst [vmem:[#allocation2 + $0x84] sm:$0xf] %v6374_v48  ;;  %v6185_v54 = vsel %vm11333_vm11, %v6177_v45, %v6184_v24  ;;  %v6385_v18 = vsel %vm11302_vm3, %v6186_v17, %v6384_v55  ;;  %7086 = vrot.lane.b32.xlu1 %v6716_v3, %s11102_s25  ;;  %7088 = vrot.lane.b32.xlu0 %v6728_v21, %s11102_s25  ;;  %v10993_v17 = vld [vmem:[#allocation2 + $0xc] sm:$0xff]  }
 0x667   : > { %6383 = vst.msk [vmem:[#allocation2 + $0x94] sm:$0xf] %vm15477_vm1, %v6185_v54  ;;  %6386 = vst [vmem:[#allocation2 + $0x98] sm:$0x1] %v6385_v18  ;;  %v6168_v11 = vsel %vm11333_vm11, %v6160_v27, %v6167_v35  ;;  %v6378_v52 = vsel %vm11302_vm3, %v6169_v38, %v6377_v50  ;;  %v7142_v29 = vsel %vm1799_vm15, %v10993_v17, %v6792_v15  ;;  %vm15522_vm1 = vcmask 588800  }
 0x668   : > { %6376 = vst.msk [vmem:[#allocation2 + $0x88] sm:$0xf] %vm15513_vm14, %v6168_v11  ;;  %6379 = vst [vmem:[#allocation2 + $0x8c] sm:$0x1] %v6378_v52  ;;  %v14039_v60 = vpop.permute.xlu1 %6994  ;;  %v14041_v44 = vpop.permute.xlu0 %7111  ;;  %v7174_v19 = vsel %vm1865_vm2, %v7142_v29, %v13943_v58  ;;  %v14067_v51 = vsel %vm1865_vm2, %v7144_v41, %v13922_v36 }
 0x669   : > { %v7206_v0 = vsel %vm1931_vm9, %v7174_v19, %v13913_v43 }
 0x66a   : > { %6807 = vrot.lane.b32.xlu1 %v6716_v3, %s11091_s15  ;;  %6969 = vrot.lane.b32.xlu0 %v6716_v3, %s11096_s21  ;;  %v7238_v43 = vsel %vm1997_vm0, %v7206_v0, %v13954_v1  ;;  %v15514_v3 = vld [vmem:[#allocation36_spill] sm:$0xff]  ;;  %v15515_v0 = vld [vmem:[#allocation37_spill] sm:$0xff] }
 0x66b   : > { %v7270_v41 = vsel %vm3671_vm13, %v7238_v43, %v13930_v20 }
 0x66c   : > { %v14049_v23 = vpop.permute.xlu1 %6875  ;;  %v14051_v21 = vpop.permute.xlu0 %6877 }
 0x66e   : > { %v14053_v15 = vld [vmem:[#allocation2 + $0x90] sm:$0xff]   ;;  %v10917_v58 = vld [vmem:[#allocation2 + $0x98] ss:$0 sps:$4 sm:$0x11]  }
 0x66f   : > { %v14057_v45 = vld [vmem:[#allocation2 + $0x84] sm:$0xff]   ;;  %6928 = vrot.lane.b32.xlu1 %v14053_v15, %s11094_s22  ;;  %7045 = vrot.lane.b32.xlu0 %v14053_v15, %s11099_s14  ;;  %v14063_v37 = vld [vmem:[#allocation2 + $0x8c] ss:$0 sps:$4 sm:$0x11]   ;;  %v6744_v24 = vshll.u32 %v14053_v15, 16  ;;  %v6857_v35 = vrot.slane %v14053_v15, 1 }
 0x670   : > { %v14073_v55 = vpop.permute.xlu1 %6959  ;;  %v6858_v38 = vrot.slane %v10917_v58, 1  ;;  %v7110_v50 = vpop.permute.xlu0 %7109  ;;  %v6854_v36 = vrot.slane %v14057_v45, 1  ;;  %v6742_v11 = vshrl.u32 %v14053_v15, 16  ;;  %v6855_v19 = vrot.slane %v14063_v37, 1 }
 0x671   : > { %v10622_v53 = vpop.f32.mrb[40].mxu0  ;;  %v6746_v52 = vrot.slane %v6744_v24, 1  ;;  %v6749_v34 = vshll.u32 %v10917_v58, 16  ;;  %v15519_v58 = vld [vmem:[#allocation39_spill] sm:$0xff] }
 0x672   : > { %v5801_v27 = vadd.f32 %v13970_v22, %v10622_v53  ;;  %v5792_v48 = vpop.f32.mrb[41].mxu0  ;;  %v6859_v43 = vsel %vm1447_vm6, %v6857_v35, %v6858_v38 }
 0x673   : > { %v5793_v54 = vadd.f32 %v13970_v22, %v5792_v48  ;;  %v10623_v18 = vpop.f32.mrb[42].mxu0  ;;  %7043 = vrot.lane.b32.xlu1 %v14057_v45, %s11099_s14  ;;  %6926 = vrot.lane.b32.xlu0 %v14057_v45, %s11094_s22  ;;  %v7302_v48 = vsel %vm3704_vm5, %v7270_v41, %v7028_v62  ;;  %v6747_v42 = vor.u32 %v6746_v52, %v6742_v11  ;;  %v6751_v52 = vrot.slane %v6749_v34, 1 }
 0x674   : > { %v5849_v17 = vadd.f32 %v5801_v27, %v15514_v3  ;;  %v5804_v1 = vadd.f32 %v13970_v22, %v10623_v18  ;;  %v5795_v29 = vpop.f32.mrb[43].mxu0  ;;  %v6732_v27 = vshll.u32 %v14057_v45, 16  ;;  %v15517_v3 = vld [vmem:[#allocation38_spill] sm:$0xff]  ;;  %v14095_v4 = vpop.permute.xlu1 %6797  ;;  %v14111_v11 = vsel %vm1447_vm6, %v6854_v36, %v6855_v19 }
 0x675   : > { %v5847_v53 = vadd.f32 %v5793_v54, %v15515_v0  ;;  %v5796_v24 = vadd.f32 %v13970_v22, %v5795_v29  ;;  %v14100_v20 = vpop.permute.xlu0 %6992 }
 0x676   : > { %v14092_v18 = vmax.f32 %v5849_v17, 0.0  ;;  %v5850_v7 = vadd.f32 %v5804_v1, %v15517_v3  ;;  %v14117_v35 = vrot.slane %v6732_v27, 1 }
 0x677   : > { %v14097_v57 = vmax.f32 %v5847_v53, 0.0  ;;  %v5848_v61 = vadd.f32 %v5796_v24, %v15519_v58  ;;  %7010 = vrot.lane.b32.xlu1 %v6859_v43, %s11101_s20  ;;  %7127 = vrot.lane.b32.xlu0 %v6859_v43, %s11100_s16  ;;  %v14123_v24 = vsel %vm1222_vm4, %v6747_v42, %v6751_v52 }
 0x678   : > { %15516 = vst [vmem:[#allocation17_spill] sm:$0xff] %v14092_v18  ;;  %v10333_v62 = vpack.c.bf16 %v14092_v18, %v14092_v18  ;;  %v14106_v17 = vmax.f32 %v5850_v7, 0.0  ;;  %v7075_v53 = vpop.permute.xlu1 %7074 }
 0x679   : > { %15518 = vst [vmem:[#allocation18_spill] sm:$0xff] %v14097_v57  ;;  %v10331_v1 = vpack.c.bf16 %v14097_v57, %v14097_v57  ;;  %v14115_v29 = vmax.f32 %v5848_v61, 0.0  ;;  %v7334_v61 = vsel %vm3737_vm7, %v7302_v48, %v7075_v53  ;;  %v14128_v27 = vpop.permute.xlu0 %7076  ;;  %v6394_v57 = vld [vmem:[#allocation2 + $0xa8] sm:$0xf] }
 0x67a   : > { %15520 = vst [vmem:[#allocation19_spill] sm:$0xff] %v14106_v17  ;;  %v6205_v41 = vshrl.u32 %v10333_v62, 16  ;;  %v6208_v7 = vshll.u32 %v10333_v62, 16  ;;  %v10334_v0 = vpack.c.bf16 %v14106_v17, %v14106_v17  ;;  %v7366_v62 = vsel %vm3770_vm10, %v7334_v61, %v7110_v50 }
 0x67b   : > { %15521 = vst [vmem:[#allocation20_spill] sm:$0xff] %v14115_v29  ;;  %v6188_v36 = vshrl.u32 %v10331_v1, 16  ;;  %v6191_v19 = vshll.u32 %v10331_v1, 16  ;;  %v10332_v34 = vpack.c.bf16 %v14115_v29, %v14115_v29  ;;  %6891 = vrot.lane.b32.xlu1 %v14111_v11, %s11097_s30  ;;  %6893 = vrot.lane.b32.xlu0 %v6859_v43, %s11097_s30 }
 0x67c   : > { %v6207_v3 = vrot.slane %v6205_v41, 7  ;;  %v6213_v58 = vshrl.u32 %v10334_v0, 16  ;;  %v6216_v38 = vshll.u32 %v10334_v0, 16  ;;  %v10626_v54 = vpop.f32.mrb[44].mxu0  ;;  %10639 = vmatmul.mubr.msk.bf16.vlgmr.msra.gmra.mrb[48].mxu1 %vm15522_vm1, %v7366_v62  ;;  %v14137_v61 = vpop.permute.xlu1 %6795  ;;  %v6387_v62 = vld [vmem:[#allocation2 + $0x9c] sm:$0xf]  ;;  %vm15526_vm1 = vmmov %vm15513_vm14 }
 0x67d   : > { %v6190_v42 = vrot.slane %v6188_v36, 7  ;;  %v6196_v52 = vshrl.u32 %v10332_v34, 16  ;;  %v6199_v1 = vshll.u32 %v10332_v34, 16  ;;  %v5817_v29 = vadd.f32 %v13970_v22, %v10626_v54  ;;  %v5808_v17 = vpop.f32.mrb[45].mxu0  ;;  %v15523_v36 = vld [vmem:[#allocation40_spill] sm:$0xff]  ;;  %v6958_v56 = vpop.permute.xlu0 %6957 }
 0x67e   : > { %v6210_v48 = vor.u32 %v6208_v7, %v6207_v3  ;;  %v6211_v41 = vrot.slane %v6207_v3, 4  ;;  %v6215_v53 = vrot.slane %v6213_v58, 7  ;;  %v5809_v0 = vadd.f32 %v13970_v22, %v5808_v17  ;;  %v10627_v50 = vpop.f32.mrb[46].mxu0  ;;  %v15524_v58 = vld [vmem:[#allocation41_spill] sm:$0xff] }
 0x67f   : > { %v6193_v18 = vor.u32 %v6191_v19, %v6190_v42  ;;  %v6194_v26 = vrot.slane %v6190_v42, 4  ;;  %v6198_v43 = vrot.slane %v6196_v52, 7  ;;  %v5853_v47 = vadd.f32 %v5817_v29, %v15523_v36  ;;  %v5811_v34 = vpop.f32.mrb[47].mxu0  ;;  %6975 = vrot.lane.b32.xlu1 %v14123_v24, %s11096_s21  ;;  %7125 = vrot.lane.b32.xlu0 %v14111_v11, %s11100_s16  ;;  %v6398_v29 = vld [vmem:[#allocation2 + $0xb0] sm:$0x1] }
 0x680   : > { %v6395_v54 = vsel %vm12065_vm12, %v6210_v48, %v6394_v57  ;;  %v6218_v7 = vor.u32 %v6216_v38, %v6215_v53  ;;  %v6220_v3 = vrot.slane %v6215_v53, 4  ;;  %v5851_v6 = vadd.f32 %v5809_v0, %v15524_v58  ;;  %v6391_v48 = vld [vmem:[#allocation2 + $0xa4] sm:$0x1]  ;;  %v14158_v36 = vpop.permute.xlu1 %6916 }
 0x681   : > { %6396 = vst [vmem:[#allocation2 + $0xa8] sm:$0xf] %v6395_v54  ;;  %v6388_v17 = vsel %vm12065_vm12, %v6193_v18, %v6387_v62  ;;  %v6201_v19 = vor.u32 %v6199_v1, %v6198_v43  ;;  %v6203_v42 = vrot.slane %v6198_v43, 4  ;;  %v14149_v52 = vmax.f32 %v5853_v47, 0.0  ;;  %v15527_v54 = vld [vmem:[#allocation42_spill] sm:$0xff] }
 0x682   : > { %6389 = vst [vmem:[#allocation2 + $0x9c] sm:$0xf] %v6388_v17  ;;  %v6219_v57 = vsel %vm11333_vm11, %v6211_v41, %v6218_v7  ;;  %v6399_v38 = vsel %vm11302_vm3, %v6220_v3, %v6398_v29  ;;  %v14155_v53 = vmax.f32 %v5851_v6, 0.0  ;;  %v5820_v0 = vadd.f32 %v13970_v22, %v10627_v50  ;;  %v14167_v41 = vpop.permute.xlu0 %7033 }
 0x683   : > { %6397 = vst.msk [vmem:[#allocation2 + $0xac] sm:$0xf] %vm15513_vm14, %v6219_v57  ;;  %6400 = vst [vmem:[#allocation2 + $0xb0] sm:$0x1] %v6399_v38  ;;  %v6202_v47 = vsel %vm11333_vm11, %v6194_v26, %v6201_v19  ;;  %v6392_v18 = vsel %vm11302_vm3, %v6203_v42, %v6391_v48  ;;  %v10337_v1 = vpack.c.bf16 %v14149_v52, %v14149_v52  ;;  %v15525_v6 = vshrl.u32 %v14057_v45, 16  ;;  %v15530_v19 = vld [vmem:[#allocation43_spill] sm:$0xff] }
 0x684   : > { %v7208_v43 = vsel %vm1931_vm9, %v14067_v51, %v14027_v32  ;;  %6390 = vst.msk [vmem:[#allocation2 + $0xa0] sm:$0xf] %vm15526_vm1, %v6202_v47  ;;  %6393 = vst [vmem:[#allocation2 + $0xa4] sm:$0x1] %v6392_v18  ;;  %v10335_v26 = vpack.c.bf16 %v14155_v53, %v14155_v53  ;;  %v5854_v62 = vadd.f32 %v5820_v0, %v15527_v54  ;;  %6813 = vrot.lane.b32.xlu1 %v14123_v24, %s11091_s15  ;;  %v14190_v57 = vpop.permute.xlu1 %7031  ;;  %v6401_v54 = vld [vmem:[#allocation2 + $0xb4] sm:$0xf] }
 0x685   : > { %v6735_v50 = vor.u32 %v14117_v35, %v15525_v6  ;;  %v5812_v7 = vadd.f32 %v13970_v22, %v5811_v34  ;;  %v6239_v3 = vshrl.u32 %v10337_v1, 16  ;;  %v7240_v35 = vsel %vm1997_vm0, %v7208_v43, %v6958_v56  ;;  %7008 = vrot.lane.b32.xlu0 %v14111_v11, %s11101_s20 }
 0x686   : > { %v15528_v32 = vshll.u32 %v14063_v37, 16  ;;  %v6242_v58 = vshll.u32 %v10337_v1, 16  ;;  %v6222_v17 = vshrl.u32 %v10335_v26, 16  ;;  %v14187_v29 = vmax.f32 %v5854_v62, 0.0  ;;  %v14194_v56 = vpop.permute.xlu0 %6914 }
 0x687   : > { %v5852_v42 = vadd.f32 %v5812_v7, %v15530_v19  ;;  %v6241_v22 = vrot.slane %v6239_v3, 7  ;;  %v6225_v34 = vshll.u32 %v10335_v26, 16  ;;  %v7272_v38 = vsel %vm3671_vm13, %v7240_v35, %v14100_v20  ;;  %v6408_v20 = vld [vmem:[#allocation2 + $0xc0] sm:$0xf]  ;;  %v10995_v35 = vld [vmem:[#allocation2 + $0x24] sm:$0xff]  }
 0x688   : > { %v6739_v51 = vrot.slane %v15528_v32, 1  ;;  %15529 = vst [vmem:[#allocation21_spill] sm:$0xff] %v14187_v29  ;;  %v6224_v48 = vrot.slane %v6222_v17, 7  ;;  %v10338_v37 = vpack.c.bf16 %v14187_v29, %v14187_v29  ;;  %v7304_v47 = vsel %vm3704_vm5, %v7272_v38, %v14015_v12  ;;  %v14208_v43 = vpop.permute.xlu1 %6998  ;;  %v6412_v38 = vld [vmem:[#allocation2 + $0xc8] sm:$0x1] }
 0x689   : > { %v14199_v0 = vmax.f32 %v5852_v42, 0.0  ;;  %v6244_v18 = vor.u32 %v6242_v58, %v6241_v22  ;;  %v7336_v1 = vsel %vm3737_vm7, %v7304_v47, %v14128_v27  ;;  %7092 = vrot.lane.b32.xlu0 %v14123_v24, %s11102_s25  ;;  %vm15532_vm14 = vcmask 588800  }
 0x68a   : > { %v6740_v11 = vsel %vm1222_vm4, %v6735_v50, %v6739_v51  ;;  %v6227_v6 = vor.u32 %v6225_v34, %v6224_v48  ;;  %v6247_v50 = vshrl.u32 %v10338_v37, 16  ;;  %v7368_v62 = vsel %vm3770_vm10, %v7336_v1, %v14041_v44  ;;  %v14216_v7 = vpop.permute.xlu0 %7115  ;;  %v14227_v42 = vld [vmem:[#allocation2 + $0xa8] sm:$0xff]   ;;  %v10921_v34 = vld [vmem:[#allocation2 + $0xb0] ss:$0 sps:$4 sm:$0x11]  }
 0x68b   : > { %15531 = vst [vmem:[#allocation22_spill] sm:$0xff] %v14199_v0  ;;  %7090 = vrot.lane.b32.xlu1 %v6740_v11, %s11102_s25  ;;  %v6409_v26 = vsel %vm12065_vm12, %v6244_v18, %v6408_v20  ;;  %v10336_v12 = vpack.c.bf16 %v14199_v0, %v14199_v0  ;;  %v6250_v3 = vshll.u32 %v10338_v37, 16  ;;  %10642 = vmatprep.mubr.msk.bf16.mxu1 %vm15532_vm14, %v7368_v62  ;;  %v6245_v44 = vrot.slane %v6241_v22, 4  ;;  %vm15533_vm14 = vmmov %vm15526_vm1 }
 0x68c   : > { %6410 = vst [vmem:[#allocation2 + $0xc0] sm:$0xf] %v6409_v26  ;;  %v6402_v24 = vsel %vm12065_vm12, %v6227_v6, %v6401_v54  ;;  %v6249_v27 = vrot.slane %v6247_v50, 7  ;;  %v7146_v32 = vsel %vm1799_vm15, %v10995_v35, %v14137_v61  ;;  %v14225_v19 = vpop.permute.xlu1 %6879  ;;  %v6405_v50 = vld [vmem:[#allocation2 + $0xbc] sm:$0x1]  ;;  %v6768_v35 = vshll.u32 %v14227_v42, 16 }
 0x68d   : > { %6403 = vst [vmem:[#allocation2 + $0xb4] sm:$0xf] %v6402_v24  ;;  %v6230_v51 = vshrl.u32 %v10336_v12, 16  ;;  %6973 = vrot.lane.b32.xlu0 %v6740_v11, %s11096_s21  ;;  %v6233_v47 = vshll.u32 %v10336_v12, 16  ;;  %v7178_v22 = vsel %vm1865_vm2, %v7146_v32, %v14049_v23  ;;  %v14244_v54 = vld [vmem:[#allocation2 + $0x9c] sm:$0xff]   ;;  %v6863_v12 = vrot.slane %v14227_v42, 1 }
 0x68e   : > { %v6252_v58 = vor.u32 %v6250_v3, %v6249_v27  ;;  %v6254_v17 = vrot.slane %v6249_v27, 4  ;;  %v14229_v18 = vpop.permute.xlu0 %6881  ;;  %v6864_v23 = vrot.slane %v10921_v34, 1  ;;  %v7210_v62 = vsel %vm1931_vm9, %v7178_v22, %v14013_v40  ;;  %v10922_v3 = vld [vmem:[#allocation2 + $0xa4] ss:$0 sps:$4 sm:$0x11]  }
 0x68f   : > { %6811 = vrot.lane.b32.xlu1 %v6740_v11, %s11091_s15  ;;  %v6232_v37 = vrot.slane %v6230_v51, 7  ;;  %v6228_v11 = vrot.slane %v6224_v48, 4  ;;  %v7242_v40 = vsel %vm1997_vm0, %v7210_v62, %v14073_v55  ;;  %v10996_v55 = vld [vmem:[#allocation2 + $0x30] sm:$0xff]  }
 0x690   : > { %v6253_v1 = vsel %vm11333_vm11, %v6245_v44, %v6252_v58  ;;  %v6413_v61 = vsel %vm11302_vm3, %v6254_v17, %v6412_v38  ;;  %v14242_v26 = vpop.permute.xlu1 %6963  ;;  %v6865_v44 = vsel %vm1447_vm6, %v6863_v12, %v6864_v23  ;;  %v6860_v58 = vrot.slane %v14244_v54, 1 }
 0x691   : > { %6411 = vst.msk [vmem:[#allocation2 + $0xc4] sm:$0xf] %vm15526_vm1, %v6253_v1  ;;  %6414 = vst [vmem:[#allocation2 + $0xc8] sm:$0x1] %v6413_v61  ;;  %v6235_v20 = vor.u32 %v6233_v47, %v6232_v37  ;;  %v6237_v6 = vrot.slane %v6232_v37, 4  ;;  %7049 = vrot.lane.b32.xlu0 %v14227_v42, %s11099_s14  ;;  %v6861_v17 = vrot.slane %v10922_v3, 1  ;;  %v7274_v37 = vsel %vm3671_vm13, %v7242_v40, %v14039_v60 }
 0x692   : > { %v7114_v27 = vpop.permute.xlu0 %7113  ;;  %v6770_v38 = vrot.slane %v6768_v35, 1  ;;  %v6766_v47 = vshrl.u32 %v14227_v42, 16  ;;  %v6773_v1 = vshll.u32 %v10921_v34, 16  ;;  %v7148_v61 = vsel %vm1799_vm15, %v10996_v55, %v14095_v4 }
 0x693   : > { %6932 = vrot.lane.b32.xlu1 %v14227_v42, %s11094_s22  ;;  %v6236_v48 = vsel %vm11333_vm11, %v6228_v11, %v6235_v20  ;;  %v6406_v24 = vsel %vm11302_vm3, %v6237_v6, %v6405_v50  ;;  %v7306_v22 = vsel %vm3704_vm5, %v7274_v37, %v14190_v57  ;;  %v6862_v50 = vsel %vm1447_vm6, %v6860_v58, %v6861_v17 }
 0x694   : > { %6404 = vst.msk [vmem:[#allocation2 + $0xb8] sm:$0xf] %vm15533_vm14, %v6236_v48  ;;  %6407 = vst [vmem:[#allocation2 + $0xbc] sm:$0x1] %v6406_v24  ;;  %v14261_v32 = vpop.permute.xlu1 %6801  ;;  %v6771_v12 = vor.u32 %v6770_v38, %v6766_v47  ;;  %v6756_v60 = vshll.u32 %v14244_v54, 16  ;;  %vm15534_vm1 = vcmask 588800   ;;  %v7180_v57 = vsel %vm1865_vm2, %v7148_v61, %v14051_v21 }
 0x695   : > { %6930 = vrot.lane.b32.xlu0 %v14244_v54, %s11094_s22  ;;  %v6775_v4 = vrot.slane %v6773_v1, 1  ;;  %v7212_v62 = vsel %vm1931_vm9, %v7180_v57, %v14194_v56  ;;  %v6761_v58 = vshll.u32 %v10922_v3, 16  ;;  %vm15535_vm14 = vmmov %vm15534_vm1 }
 0x696   : > { %v6997_v51 = vpop.permute.xlu0 %6996  ;;  %v6758_v35 = vrot.slane %v6756_v60, 1 }
 0x697   : > { %7047 = vrot.lane.b32.xlu1 %v14244_v54, %s11099_s14  ;;  %v6776_v24 = vsel %vm1222_vm4, %v6771_v12, %v6775_v4  ;;  %v6763_v3 = vrot.slane %v6761_v58, 1 }
 0x698   : > { %v7079_v11 = vpop.permute.xlu1 %7078 }
 0x699   : > { %7131 = vrot.lane.b32.xlu0 %v6865_v44, %s11100_s16  ;;  %v7338_v20 = vsel %vm3737_vm7, %v7306_v22, %v7079_v11 }
 0x69a   : > { %v7081_v6 = vpop.permute.xlu0 %7080  ;;  %v7370_v34 = vsel %vm3770_vm10, %v7338_v20, %v7114_v27  ;;  %v10923_v20 = vld [vmem:[#allocation2 + $0xc0] sm:$0xff]  }
 0x69b   : > { %7014 = vrot.lane.b32.xlu1 %v6865_v44, %s11101_s20  ;;  %10643 = vmatmul.mubr.msk.bf16.gmra.mrb[52].mxu1 %vm15534_vm1, %v7370_v34  ;;  %v14320_v60 = vld [vmem:[#allocation2 + $0xb4] sm:$0xff]   ;;  %v10926_v34 = vld [vmem:[#allocation2 + $0xbc] ss:$0 sps:$4 sm:$0x11]  }
 0x69c   : > { %v6800_v23 = vpop.permute.xlu1 %6799 }
 0x69d   : > { %6897 = vrot.lane.b32.xlu0 %v6865_v44, %s11097_s30  ;;  %v6754_v44 = vshrl.u32 %v14244_v54, 16 }
 0x69e   : > { %v6962_v48 = vpop.permute.xlu0 %6961 }
 0x69f   : > { %6895 = vrot.lane.b32.xlu1 %v6862_v50, %s11097_s30  ;;  %v7244_v40 = vsel %vm1997_vm0, %v7212_v62, %v6962_v48  ;;  %v6759_v37 = vor.u32 %v6758_v35, %v6754_v44  ;;  %v6985_v62 = vrot.slane %v10923_v20, 1  ;;  %v6867_v35 = vrot.slane %v10926_v34, 1 }
 0x6a0   : > { %v7276_v27 = vsel %vm3671_vm13, %v7244_v40, %v6997_v51  ;;  %v14293_v17 = vpop.permute.xlu1 %6920 }
 0x6a1   : > { %7129 = vrot.lane.b32.xlu0 %v6862_v50, %s11100_s16  ;;  %v7308_v21 = vsel %vm3704_vm5, %v7276_v27, %v14167_v41  ;;  %v6764_v41 = vsel %vm1222_vm4, %v6759_v37, %v6763_v3 }
 0x6a2   : > { %v14295_v56 = vpop.permute.xlu0 %7037  ;;  %v7340_v38 = vsel %vm3737_vm7, %v7308_v21, %v7081_v6  ;;  %v6780_v21 = vshll.u32 %v14320_v60, 16 }
 0x6a3   : > { %6979 = vrot.lane.b32.xlu1 %v6776_v24, %s11096_s21  ;;  %v7372_v51 = vsel %vm3770_vm10, %v7340_v38, %v14216_v7  ;;  %v10997_v7 = vld [vmem:[#allocation2 + $0x3c] sm:$0xff]  }
 0x6a4   : > { %10646 = vmatprep.mubr.msk.bf16.mxu1 %vm15535_vm14, %v7372_v51  ;;  %v7036_v47 = vpop.permute.xlu1 %7035  ;;  %v7150_v22 = vsel %vm1799_vm15, %v10997_v7, %v6800_v23  ;;  %v6942_v51 = vshrl.u32 %v10923_v20, 16  ;;  %v10998_v7 = vld [vmem:[#allocation2 + $0x48] sm:$0xff]   ;;  %vm15536_vm14 = vmmov %vm15534_vm1 }
 0x6a5   : > { %7012 = vrot.lane.b32.xlu0 %v6862_v50, %s11101_s20  ;;  %v10925_v50 = vld [vmem:[#allocation2 + $0xc8] ss:$0 sps:$4 sm:$0x11]   ;;  %v7182_v12 = vsel %vm1865_vm2, %v7150_v22, %v14225_v19  ;;  %v6866_v19 = vrot.slane %v14320_v60, 1  ;;  %v7152_v22 = vsel %vm1799_vm15, %v10998_v7, %v14261_v32 }
 0x6a6   : > { %v6919_v1 = vpop.permute.xlu0 %6918  ;;  %v7214_v57 = vsel %vm1931_vm9, %v7182_v12, %v14158_v36  ;;  %v6986_v48 = vrot.slane %v10925_v50, 1  ;;  %v6949_v3 = vshll.u32 %v10925_v50, 16  ;;  %v6785_v50 = vshll.u32 %v10926_v34, 16 }
 0x6a7   : > { %6817 = vrot.lane.b32.xlu1 %v6776_v24, %s11091_s15  ;;  %v7246_v40 = vsel %vm1997_vm0, %v7214_v57, %v14242_v26  ;;  %v6868_v38 = vsel %vm1447_vm6, %v6866_v19, %v6867_v35  ;;  %v10999_v19 = vld [vmem:[#allocation2 + $0xcc] sm:$0xff]   ;;  %v7184_v35 = vsel %vm1865_vm2, %v7152_v22, %v14229_v18 }
 0x6a8   : > { %v14306_v55 = vpop.permute.xlu1 %7002  ;;  %v6987_v36 = vsel %vm1447_vm6, %v6985_v62, %v6986_v48  ;;  %v7278_v37 = vsel %vm3671_vm13, %v7246_v40, %v14208_v43  ;;  %v6782_v48 = vrot.slane %v6780_v21, 1  ;;  %v7063_v32 = vshll.u32 %v10999_v19, 16 }
 0x6a9   : > { %7096 = vrot.lane.b32.xlu0 %v6776_v24, %s11102_s25  ;;  %v6944_v24 = vshll.u32 %v10923_v20, 16  ;;  %v7310_v26 = vsel %vm3704_vm5, %v7278_v37, %v7036_v47  ;;  %v6951_v47 = vrot.slane %v6949_v3, 1  ;;  %v6787_v34 = vrot.slane %v6785_v50, 1 }
 0x6aa   : > { %v14308_v61 = vpop.permute.xlu0 %7119 }
 0x6ab   : > { %7094 = vrot.lane.b32.xlu1 %v6764_v41, %s11102_s25  ;;  %v6946_v58 = vrot.slane %v6944_v24, 1  ;;  %v10927_v24 = vld [vmem:[#allocation2 + $0xd4] ss:$0 sps:$4 sm:$0x11]  }
 0x6ac   : > { %v14313_v11 = vpop.permute.xlu1 %6883 }
 0x6ad   : > { %6977 = vrot.lane.b32.xlu0 %v6764_v41, %s11096_s21  ;;  %v6947_v62 = vor.u32 %v6946_v58, %v6942_v51  ;;  %v7216_v58 = vsel %vm1931_vm9, %v7184_v35, %v6919_v1  ;;  %v7061_v51 = vshrl.u32 %v10999_v19, 16 }
 0x6ae   : > { %v14315_v6 = vpop.permute.xlu0 %6885 }
 0x6af   : > { %6815 = vrot.lane.b32.xlu1 %v6764_v41, %s11091_s15 }
 0x6b0   : > { %v14323_v4 = vpop.permute.xlu1 %6967 }
 0x6b1   : > { %7053 = vrot.lane.b32.xlu0 %v10923_v20, %s11099_s14 }
 0x6b2   : > { %v7118_v23 = vpop.permute.xlu0 %7117 }
 0x6b3   : > { %6936 = vrot.lane.b32.xlu1 %v10923_v20, %s11094_s22  ;;  %v6778_v20 = vshrl.u32 %v14320_v60, 16 }
 0x6b4   : > { %v14334_v27 = vpop.permute.xlu1 %6805 }
 0x6b5   : > { %6934 = vrot.lane.b32.xlu0 %v14320_v60, %s11094_s22  ;;  %v6783_v37 = vor.u32 %v6782_v48, %v6778_v20  ;;  %v7105_v20 = vrot.slane %v10927_v24, 1 }
 0x6b6   : > { %v7001_v44 = vpop.permute.xlu0 %7000 }
 0x6b7   : > { %7051 = vrot.lane.b32.xlu1 %v14320_v60, %s11099_s14  ;;  %v6788_v22 = vsel %vm1222_vm4, %v6783_v37, %v6787_v34 }
 0x6b8   : > { %v7083_v41 = vpop.permute.xlu1 %7082 }
 0x6b9   : > { %7133 = vrot.lane.b32.xlu0 %v6868_v38, %s11100_s16  ;;  %v7342_v12 = vsel %vm3737_vm7, %v7310_v26, %v7083_v41  ;;  %v7065_v26 = vrot.slane %v7063_v32, 1  ;;  %v7068_v41 = vshll.u32 %v10927_v24, 16 }
 0x6ba   : > { %v7085_v57 = vpop.permute.xlu0 %7084  ;;  %v7374_v43 = vsel %vm3770_vm10, %v7342_v12, %v7118_v23  ;;  %v6952_v23 = vsel %vm1222_vm4, %v6947_v62, %v6951_v47 }
 0x6bb   : > { %7018 = vrot.lane.b32.xlu1 %v6987_v36, %s11101_s20  ;;  %10647 = vmatmul.mubr.msk.bf16.gmra.mrb[56].mxu1 %vm15534_vm1, %v7374_v43  ;;  %v7066_v62 = vor.u32 %v7065_v26, %v7061_v51  ;;  %v7070_v48 = vrot.slane %v7068_v41, 1  ;;  %v11001_v41 = vld [vmem:[#allocation2 + $0x60] sm:$0xff]  }
 0x6bc   : > { %v6804_v40 = vpop.permute.xlu1 %6803 }
 0x6bd   : > { %7016 = vrot.lane.b32.xlu0 %v6868_v38, %s11101_s20  ;;  %v7071_v47 = vsel %vm1222_vm4, %v7066_v62, %v7070_v48 }
 0x6be   : > { %v6966_v21 = vpop.permute.xlu0 %6965 }
 0x6bf   : > { %6899 = vrot.lane.b32.xlu1 %v6868_v38, %s11097_s30  ;;  %v7248_v38 = vsel %vm1997_vm0, %v7216_v58, %v6966_v21 }
 0x6c0   : > { %v7280_v3 = vsel %vm3671_vm13, %v7248_v38, %v7001_v44  ;;  %v14362_v1 = vpop.permute.xlu1 %6924 }
 0x6c1   : > { %7100 = vrot.lane.b32.xlu0 %v6952_v23, %s11102_s25  ;;  %v7312_v18 = vsel %vm3704_vm5, %v7280_v3, %v14295_v56 }
 0x6c2   : > { %v7042_v7 = vpop.permute.xlu0 %7041  ;;  %v7344_v12 = vsel %vm3737_vm7, %v7312_v18, %v7085_v57  ;;  %v7104_v57 = vrot.slane %v10999_v19, 1 }
 0x6c3   : > { %6983 = vrot.lane.b32.xlu1 %v6952_v23, %s11096_s21  ;;  %v7376_v44 = vsel %vm3770_vm10, %v7344_v12, %v14308_v61  ;;  %v11000_v61 = vld [vmem:[#allocation2 + $0x54] sm:$0xff]  }
 0x6c4   : > { %10650 = vmatprep.mubr.msk.bf16.mxu1 %vm15536_vm14, %v7376_v44  ;;  %v7040_v43 = vpop.permute.xlu1 %7039  ;;  %v7154_v35 = vsel %vm1799_vm15, %v11000_v61, %v6804_v40  ;;  %v7106_v58 = vsel %vm1447_vm6, %v7104_v57, %v7105_v20  ;;  %vm15537_vm14 = vmmov %vm15534_vm1 }
 0x6c5   : > { %6981 = vrot.lane.b32.xlu0 %v6788_v22, %s11096_s21 }
 0x6c6   : > { %v6923_v56 = vpop.permute.xlu0 %6922 }
 0x6c7   : > { %7098 = vrot.lane.b32.xlu1 %v6788_v22, %s11102_s25 }
 0x6c8   : > { %v14374_v50 = vpop.permute.xlu1 %7006 }
 0x6c9   : > { %7135 = vrot.lane.b32.xlu0 %v6987_v36, %s11100_s16  ;;  %v7186_v36 = vsel %vm1865_vm2, %v7154_v35, %v14313_v11  ;;  %v7156_v11 = vsel %vm1799_vm15, %v11001_v41, %v14334_v27  ;;  %v10929_v27 = vld [vmem:[#allocation2 + $0x8] ss:$0 sps:$4 sm:$0x11]  }
 0x6ca   : > { %v7124_v32 = vpop.permute.xlu0 %7123  ;;  %v7218_v24 = vsel %vm1931_vm9, %v7186_v36, %v14293_v17  ;;  %v8384_v36 = vshll.u32 %v10929_v27, 16 }
 0x6cb   : > { %6819 = vrot.lane.b32.xlu1 %v6788_v22, %s11091_s15  ;;  %v7250_v38 = vsel %vm1997_vm0, %v7218_v24, %v14323_v4  ;;  %v7188_v4 = vsel %vm1865_vm2, %v7156_v11, %v14315_v6 }
 0x6cc   : > { %v6888_v21 = vpop.permute.xlu1 %6887  ;;  %v7282_v3 = vsel %vm3671_vm13, %v7250_v38, %v14306_v55  ;;  %v7220_v55 = vsel %vm1931_vm9, %v7188_v4, %v6923_v56  ;;  %v8386_v38 = vrot.slane %v8384_v36, 1 }
 0x6cd   : > { %v7314_v34 = vsel %vm3704_vm5, %v7282_v3, %v7040_v43  ;;  %v10928_v43 = vld [vmem:[#allocation2] sm:$0xff]  }
 0x6ce   : > { %v14379_v23 = vpop.permute.xlu0 %6889  ;;  %v8379_v6 = vshll.u32 %v10928_v43, 16 }
 0x6cf   : > { %7102 = vrot.lane.b32.xlu1 %v7071_v47, %s11102_s25  ;;  %v10930_v47 = vld [vmem:[#allocation2 + $0xcc] sm:$0xff]  }
 0x6d0   : > { %v6972_v19 = vpop.permute.xlu1 %6971  ;;  %v8381_v24 = vrot.slane %v8379_v6, 1 }
 0x6d2   : > { %v7122_v37 = vpop.permute.xlu0 %7121 }
 0x6d3   : > { %7137 = vrot.lane.b32.xlu1 %v7106_v58, %s11100_s16  ;;  %v8377_v58 = vshrl.u32 %v10928_v43, 16 }
 0x6d4   : > { %v6810_v51 = vpop.permute.xlu1 %6809 }
 0x6d5   : > { %v8382_v3 = vor.u32 %v8381_v24, %v8377_v58  ;;  %v11003_v58 = vld [vmem:[#allocation2 + $0x78] sm:$0xff]  }
 0x6d6   : > { %v7005_v40 = vpop.permute.xlu0 %7004  ;;  %v7160_v6 = vsel %vm1799_vm15, %v11003_v58, %v6810_v51 }
 0x6d7   : > { %8834 = vrot.lane.b32.xlu1 %v10930_v47, %s11099_s14 }
 0x6d8   : > { %v7087_v26 = vpop.permute.xlu1 %7086 }
 0x6d9   : > { %v7346_v18 = vsel %vm3737_vm7, %v7314_v34, %v7087_v26  ;;  %v8601_v34 = vrot.slane %v10929_v27, 1  ;;  %v8387_v26 = vsel %vm1222_vm4, %v8382_v3, %v8386_v38 }
 0x6da   : > { %v7089_v22 = vpop.permute.xlu0 %7088  ;;  %v7378_v17 = vsel %vm3770_vm10, %v7346_v18, %v7122_v37  ;;  %8568 = vrot.lane.b32.xlu0 %v8387_v26, %s11091_s15 }
 0x6db   : > { %10651 = vmatmul.mubr.msk.bf16.gmra.mrb[60].mxu1 %vm15534_vm1, %v7378_v17 }
 0x6dc   : > { %v6808_v12 = vpop.permute.xlu1 %6807 }
 0x6de   : > { %v6970_v44 = vpop.permute.xlu0 %6969 }
 0x6df   : > { %v7252_v62 = vsel %vm1997_vm0, %v7220_v55, %v6970_v44 }
 0x6e0   : > { %v7284_v48 = vsel %vm3671_vm13, %v7252_v62, %v7005_v40 }
 0x6e1   : > { %v7316_v57 = vsel %vm3704_vm5, %v7284_v48, %v7042_v7  ;;  %v14402_v20 = vpop.permute.xlu1 %6928  ;;  %v8600_v7 = vrot.slane %v10928_v43, 1 }
 0x6e2   : > { %v7046_v61 = vpop.permute.xlu0 %7045  ;;  %v7348_v35 = vsel %vm3737_vm7, %v7316_v57, %v7089_v22  ;;  %v11002_v22 = vld [vmem:[#allocation2 + $0x6c] sm:$0xff]  }
 0x6e3   : > { %v7380_v56 = vsel %vm3770_vm10, %v7348_v35, %v7124_v32  ;;  %v8602_v18 = vsel %vm1447_vm6, %v8600_v7, %v8601_v34  ;;  %v7158_v32 = vsel %vm1799_vm15, %v11002_v22, %v6808_v12 }
 0x6e4   : > { %10654 = vmatprep.mubr.msk.bf16.mxu1 %vm15537_vm14, %v7380_v56  ;;  %8648 = vrot.lane.b32.xlu0 %v8602_v18, %s11097_s30  ;;  %v7190_v55 = vsel %vm1865_vm2, %v7158_v32, %v6888_v21  ;;  %vm15538_vm14 = vmmov %vm15534_vm1 }
 0x6e5   : > { %v7044_v37 = vpop.permute.xlu1 %7043  ;;  %v7222_v62 = vsel %vm1931_vm9, %v7190_v55, %v14362_v1  ;;  %v7192_v1 = vsel %vm1865_vm2, %v7160_v6, %v14379_v23 }
 0x6e6   : > { %v6927_v40 = vpop.permute.xlu0 %6926  ;;  %v7254_v43 = vsel %vm1997_vm0, %v7222_v62, %v6972_v19 }
 0x6e7   : > { %v7286_v57 = vsel %vm3671_vm13, %v7254_v43, %v14374_v50  ;;  %v7224_v24 = vsel %vm1931_vm9, %v7192_v1, %v6927_v40 }
 0x6e8   : > { %v7318_v12 = vsel %vm3704_vm5, %v7286_v57, %v7044_v37 }
 0x6e9   : > { %v7011_v41 = vpop.permute.xlu1 %7010 }
 0x6ea   : > { %v7128_v11 = vpop.permute.xlu0 %7127 }
 0x6ed   : > { %v6892_v17 = vpop.permute.xlu1 %6891 }
 0x6ee   : > { %v6894_v4 = vpop.permute.xlu0 %6893 }
 0x6f1   : > { %v6976_v44 = vpop.permute.xlu1 %6975 }
 0x6f2   : > { %v7126_v48 = vpop.permute.xlu0 %7125 }
 0x6f6   : > { %v6814_v27 = vpop.permute.xlu1 %6813 }
 0x6f7   : > { %v7009_v47 = vpop.permute.xlu0 %7008 }
 0x6fb   : > { %v7093_v56 = vpop.permute.xlu0 %7092 }
 0x6fd   : > { %v7091_v35 = vpop.permute.xlu1 %7090 }
 0x6fe   : > { %v7350_v21 = vsel %vm3737_vm7, %v7318_v12, %v7091_v35 }
 0x6ff   : > { %v7382_v36 = vsel %vm3770_vm10, %v7350_v21, %v7126_v48  ;;  %v6974_v50 = vpop.permute.xlu0 %6973 }
 0x700   : > { %10655 = vmatmul.mubr.msk.bf16.gmra.mrb[64].mxu1 %vm15534_vm1, %v7382_v36  ;;  %v7256_v37 = vsel %vm1997_vm0, %v7224_v24, %v6974_v50 }
 0x701   : > { %v6812_v19 = vpop.permute.xlu1 %6811  ;;  %v7288_v38 = vsel %vm3671_vm13, %v7256_v37, %v7009_v47 }
 0x702   : > { %v7320_v51 = vsel %vm3704_vm5, %v7288_v38, %v7046_v61  ;;  %v7162_v40 = vsel %vm1799_vm15, %v14057_v45, %v6812_v19  ;;  %v7164_v45 = vsel %vm1799_vm15, %v14053_v15, %v6814_v27 }
 0x703   : > { %v7050_v7 = vpop.permute.xlu0 %7049  ;;  %v7352_v34 = vsel %vm3737_vm7, %v7320_v51, %v7093_v56  ;;  %v7194_v48 = vsel %vm1865_vm2, %v7162_v40, %v6892_v17 }
 0x704   : > { %v7384_v26 = vsel %vm3770_vm10, %v7352_v34, %v7128_v11  ;;  %v7226_v43 = vsel %vm1931_vm9, %v7194_v48, %v14402_v20  ;;  %v7196_v20 = vsel %vm1865_vm2, %v7164_v45, %v6894_v4 }
 0x705   : > { %v6933_v3 = vpop.permute.xlu1 %6932  ;;  %10658 = vmatprep.mubr.msk.bf16.mxu1 %vm15538_vm14, %v7384_v26  ;;  %v7258_v11 = vsel %vm1997_vm0, %v7226_v43, %v6976_v44  ;;  %vm15539_vm14 = vmmov %vm15534_vm1 }
 0x706   : > { %v7290_v35 = vsel %vm3671_vm13, %v7258_v11, %v7011_v41 }
 0x707   : > { %v6931_v23 = vpop.permute.xlu0 %6930 }
 0x708   : > { %v7228_v36 = vsel %vm1931_vm9, %v7196_v20, %v6931_v23 }
 0x709   : > { %v7048_v18 = vpop.permute.xlu1 %7047 }
 0x70a   : > { %v7322_v58 = vsel %vm3704_vm5, %v7290_v35, %v7048_v18 }
 0x70b   : > { %v7132_v32 = vpop.permute.xlu0 %7131 }
 0x70d   : > { %v7015_v22 = vpop.permute.xlu1 %7014 }
 0x70f   : > { %v6898_v62 = vpop.permute.xlu0 %6897 }
 0x711   : > { %v6896_v55 = vpop.permute.xlu1 %6895 }
 0x713   : > { %v7130_v47 = vpop.permute.xlu0 %7129 }
 0x715   : > { %v6980_v61 = vpop.permute.xlu1 %6979 }
 0x717   : > { %v7013_v12 = vpop.permute.xlu0 %7012 }
 0x719   : > { %v6818_v57 = vpop.permute.xlu1 %6817 }
 0x71b   : > { %v7097_v17 = vpop.permute.xlu0 %7096 }
 0x71d   : > { %v7095_v6 = vpop.permute.xlu1 %7094 }
 0x71e   : > { %v7354_v21 = vsel %vm3737_vm7, %v7322_v58, %v7095_v6 }
 0x71f   : > { %v7386_v56 = vsel %vm3770_vm10, %v7354_v21, %v7130_v47  ;;  %v6978_v1 = vpop.permute.xlu0 %6977 }
 0x720   : > { %10659 = vmatmul.mubr.msk.bf16.gmra.mrb[68].mxu1 %vm15534_vm1, %v7386_v56  ;;  %v7260_v41 = vsel %vm1997_vm0, %v7228_v36, %v6978_v1 }
 0x721   : > { %v6816_v44 = vpop.permute.xlu1 %6815  ;;  %v7292_v19 = vsel %vm3671_vm13, %v7260_v41, %v7013_v12 }
 0x722   : > { %v7324_v24 = vsel %vm3704_vm5, %v7292_v19, %v7050_v7  ;;  %v7166_v51 = vsel %vm1799_vm15, %v14244_v54, %v6816_v44 }
 0x723   : > { %v7054_v27 = vpop.permute.xlu0 %7053  ;;  %v7356_v50 = vsel %vm3737_vm7, %v7324_v24, %v7097_v17  ;;  %v7198_v18 = vsel %vm1865_vm2, %v7166_v51, %v6896_v55 }
 0x724   : > { %v7388_v37 = vsel %vm3770_vm10, %v7356_v50, %v7132_v32  ;;  %v7230_v7 = vsel %vm1931_vm9, %v7198_v18, %v6933_v3  ;;  %v7168_v32 = vsel %vm1799_vm15, %v14227_v42, %v6818_v57 }
 0x725   : > { %v6937_v15 = vpop.permute.xlu1 %6936  ;;  %10662 = vmatprep.mubr.msk.bf16.mxu1 %vm15539_vm14, %v7388_v37  ;;  %v7262_v48 = vsel %vm1997_vm0, %v7230_v7, %v6980_v61  ;;  %v7200_v54 = vsel %vm1865_vm2, %v7168_v32, %v6898_v62  ;;  %vm15540_vm14 = vmmov %vm15534_vm1 }
 0x726   : > { %v7294_v11 = vsel %vm3671_vm13, %v7262_v48, %v7015_v22 }
 0x727   : > { %v6935_v4 = vpop.permute.xlu0 %6934 }
 0x728   : > { %v7232_v55 = vsel %vm1931_vm9, %v7200_v54, %v6935_v4 }
 0x729   : > { %v7052_v38 = vpop.permute.xlu1 %7051 }
 0x72a   : > { %v7326_v12 = vsel %vm3704_vm5, %v7294_v11, %v7052_v38 }
 0x72b   : > { %v7134_v26 = vpop.permute.xlu0 %7133 }
 0x72d   : > { %v7019_v34 = vpop.permute.xlu1 %7018 }
 0x72f   : > { %v7017_v40 = vpop.permute.xlu0 %7016 }
 0x731   : > { %v6900_v23 = vpop.permute.xlu1 %6899 }
 0x733   : > { %v7101_v47 = vpop.permute.xlu0 %7100 }
 0x735   : > { %v6984_v43 = vpop.permute.xlu1 %6983 }
 0x737   : > { %v6982_v3 = vpop.permute.xlu0 %6981 }
 0x738   : > { %v7264_v6 = vsel %vm1997_vm0, %v7232_v55, %v6982_v3 }
 0x739   : > { %v7099_v35 = vpop.permute.xlu1 %7098  ;;  %v7296_v45 = vsel %vm3671_vm13, %v7264_v6, %v7017_v40 }
 0x73a   : > { %v7358_v58 = vsel %vm3737_vm7, %v7326_v12, %v7099_v35  ;;  %v7328_v22 = vsel %vm3704_vm5, %v7296_v45, %v7054_v27 }
 0x73b   : > { %v7390_v61 = vsel %vm3770_vm10, %v7358_v58, %v7134_v26  ;;  %v7360_v57 = vsel %vm3737_vm7, %v7328_v22, %v7101_v47  ;;  %v7136_v21 = vpop.permute.xlu0 %7135 }
 0x73c   : > { %10663 = vmatmul.mubr.msk.bf16.gmra.mrb[72].mxu1 %vm15534_vm1, %v7390_v61  ;;  %v7392_v56 = vsel %vm3770_vm10, %v7360_v57, %v7136_v21 }
 0x73d   : > { %v6820_v42 = vpop.permute.xlu1 %6819  ;;  %10666 = vmatprep.mubr.msk.bf16.mxu1 %vm15540_vm14, %v7392_v56  ;;  %v8082_v56 = vld [vmem:[#allocation2 + $0xc] sm:$0xf]  ;;  %vm15541_vm14 = vcmask 60416  }
 0x73e   : > { %v7170_v62 = vsel %vm1799_vm15, %v14320_v60, %v6820_v42  ;;  %v8089_v42 = vld [vmem:[#allocation2 + $0x18] sm:$0xf] }
 0x73f   : > { %v7202_v17 = vsel %vm1865_vm2, %v7170_v62, %v6900_v23 }
 0x740   : > { %v7234_v20 = vsel %vm1931_vm9, %v7202_v17, %v6937_v15  ;;  %v14488_v15 = vld [vmem:[%s15315_s8] ss:$0 sm:$0xff] }
 0x741   : > { %v7266_v44 = vsel %vm1997_vm0, %v7234_v20, %v6984_v43  ;;  %v7103_v36 = vpop.permute.xlu1 %7102 }
 0x742   : > { %v7298_v1 = vsel %vm3671_vm13, %v7266_v44, %v7019_v34 }
 0x743   : > { %v7330_v41 = vsel %vm3704_vm5, %v7298_v1, %v13887_v63 }
 0x744   : > { %v7362_v60 = vsel %vm3737_vm7, %v7330_v41, %v7103_v36  ;;  %v8093_v41 = vld [vmem:[#allocation2 + $0x20] sm:$0x1] }
 0x745   : > { %v7138_v19 = vpop.permute.xlu1 %7137 }
 0x746   : > { %v7394_v24 = vsel %vm3770_vm10, %v7362_v60, %v7138_v19 }
 0x747   : > { %10667 = vmatmul.mubr.msk.bf16.gmra.mrb[76].mxu1 %vm15534_vm1, %v7394_v24  ;;  %vm15542_vm1 = vmmov %vm15541_vm14 }
 0x74f   : > { %v10640_v27 = vpop.f32.mrb[48].mxu1 }
 0x750   : > { %v7516_v50 = vadd.f32 %v10640_v27, %v14488_v15  ;;  %v7507_v37 = vpop.f32.mrb[49].mxu1 }
 0x751   : > { %v7508_v38 = vadd.f32 %v14488_v15, %v7507_v37  ;;  %v10641_v4 = vpop.f32.mrb[50].mxu1 }
 0x752   : > { %v7636_v63 = vmax.f32 %v7516_v50, 0.0  ;;  %v7519_v51 = vadd.f32 %v10641_v4, %v14488_v15  ;;  %v7510_v34 = vpop.f32.mrb[51].mxu1  ;;  %v8086_v50 = vld [vmem:[#allocation2 + $0x14] sm:$0x1] }
 0x753   : > { %v7634_v26 = vmax.f32 %v7508_v38, 0.0  ;;  %v7511_v18 = vadd.f32 %v14488_v15, %v7510_v34 }
 0x754   : > { %v10341_v23 = vpack.c.bf16 %v7636_v63, %v7636_v63  ;;  %v7637_v7 = vmax.f32 %v7519_v51, 0.0 }
 0x755   : > { %v10339_v40 = vpack.c.bf16 %v7634_v26, %v7634_v26  ;;  %v7635_v48 = vmax.f32 %v7511_v18, 0.0 }
 0x756   : > { %v7780_v43 = vshrl.u32 %v10341_v23, 16  ;;  %v10342_v32 = vpack.c.bf16 %v7637_v7, %v7637_v7  ;;  %v7783_v54 = vshll.u32 %v10341_v23, 16 }
 0x757   : > { %v7763_v47 = vshrl.u32 %v10339_v40, 16  ;;  %v10340_v11 = vpack.c.bf16 %v7635_v48, %v7635_v48  ;;  %v7766_v58 = vshll.u32 %v10339_v40, 16 }
 0x758   : > { %v7782_v12 = vrot.slane %v7780_v43, 7  ;;  %v7788_v35 = vshrl.u32 %v10342_v32, 16  ;;  %v7791_v45 = vshll.u32 %v10342_v32, 16 }
 0x759   : > { %v7765_v55 = vrot.slane %v7763_v47, 7  ;;  %v7771_v3 = vshrl.u32 %v10340_v11, 16  ;;  %v7774_v57 = vshll.u32 %v10340_v11, 16 }
 0x75a   : > { %v7785_v6 = vor.u32 %v7783_v54, %v7782_v12  ;;  %v7790_v61 = vrot.slane %v7788_v35, 7  ;;  %v7786_v21 = vrot.slane %v7782_v12, 4 }
 0x75b   : > { %v7768_v22 = vor.u32 %v7766_v58, %v7765_v55  ;;  %v7773_v62 = vrot.slane %v7771_v3, 7  ;;  %v7769_v36 = vrot.slane %v7765_v55, 4 }
 0x75c   : > { %v8090_v17 = vsel %vm12065_vm12, %v7785_v6, %v8089_v42  ;;  %v7793_v20 = vor.u32 %v7791_v45, %v7790_v61  ;;  %v7795_v44 = vrot.slane %v7790_v61, 4 }
 0x75d   : > { %8091 = vst [vmem:[#allocation2 + $0x18] sm:$0xf] %v8090_v17  ;;  %v8083_v1 = vsel %vm12065_vm12, %v7768_v22, %v8082_v56  ;;  %v7776_v60 = vor.u32 %v7774_v57, %v7773_v62  ;;  %v7778_v19 = vrot.slane %v7773_v62, 4 }
 0x75e   : > { %8084 = vst [vmem:[#allocation2 + $0xc] sm:$0xf] %v8083_v1  ;;  %v7794_v24 = vsel %vm11333_vm11, %v7786_v21, %v7793_v20  ;;  %v8094_v27 = vsel %vm11302_vm3, %v7795_v44, %v8093_v41 }
 0x75f   : > { %8092 = vst.msk [vmem:[#allocation2 + $0x1c] sm:$0xf] %vm15541_vm14, %v7794_v24  ;;  %8095 = vst [vmem:[#allocation2 + $0x20] sm:$0x1] %v8094_v27  ;;  %v7777_v37 = vsel %vm11333_vm11, %v7769_v36, %v7776_v60  ;;  %v8087_v38 = vsel %vm11302_vm3, %v7778_v19, %v8086_v50 }
 0x760   : > { %8085 = vst.msk [vmem:[#allocation2 + $0x10] sm:$0xf] %vm15542_vm1, %v7777_v37  ;;  %8088 = vst [vmem:[#allocation2 + $0x14] sm:$0x1] %v8087_v38 }
 0x761   : > { %vm15543_vm14 = vmmov %vm15542_vm1 }
 0x766   : > { %v10931_v4 = vld [vmem:[#allocation2 + $0x18] sm:$0xff]   ;;  %v10932_v63 = vld [vmem:[#allocation2 + $0x20] ss:$0 sps:$4 sm:$0x11]  }
 0x767   : > { %v10933_v51 = vld [vmem:[#allocation2 + $0xc] sm:$0xff]   ;;  %8687 = vrot.lane.b32.xlu1 %v10931_v4, %s11094_s22  ;;  %8804 = vrot.lane.b32.xlu0 %v10931_v4, %s11099_s14  ;;  %v8606_v34 = vrot.slane %v10931_v4, 1  ;;  %v10934_v26 = vld [vmem:[#allocation2 + $0x14] ss:$0 sps:$4 sm:$0x11]   ;;  %v8607_v18 = vrot.slane %v10932_v63, 1 }
 0x768   : > { %v8403_v23 = vshll.u32 %v10931_v4, 16  ;;  %v8603_v40 = vrot.slane %v10933_v51, 1  ;;  %v8604_v48 = vrot.slane %v10934_v26, 1  ;;  %v8401_v32 = vshrl.u32 %v10931_v4, 16 }
 0x769   : > { %v8608_v7 = vsel %vm1447_vm6, %v8606_v34, %v8607_v18  ;;  %v8408_v47 = vshll.u32 %v10932_v63, 16  ;;  %v8391_v35 = vshll.u32 %v10933_v51, 16  ;;  %v8389_v1 = vshrl.u32 %v10933_v51, 16 }
 0x76a   : > { %v8405_v43 = vrot.slane %v8403_v23, 1  ;;  %v8605_v12 = vsel %vm1447_vm6, %v8603_v40, %v8604_v48  ;;  %v8396_v41 = vshll.u32 %v10934_v26, 16  ;;  %v8103_v26 = vld [vmem:[#allocation2 + $0x30] sm:$0xf] }
 0x76b   : > { %8769 = vrot.lane.b32.xlu1 %v8608_v7, %s11101_s20  ;;  %8685 = vrot.lane.b32.xlu0 %v10933_v51, %s11094_s22  ;;  %v8410_v61 = vrot.slane %v8408_v47, 1  ;;  %v8393_v17 = vrot.slane %v8391_v35, 1  ;;  %v8096_v35 = vld [vmem:[#allocation2 + $0x24] sm:$0xf] }
 0x76c   : > { %v8406_v54 = vor.u32 %v8405_v43, %v8401_v32  ;;  %v8398_v23 = vrot.slane %v8396_v41, 1 }
 0x76d   : > { %v8394_v50 = vor.u32 %v8393_v17, %v8389_v1  ;;  %v10951_v17 = vld [vmem:[%s15316_s9] sm:$0xff]  }
 0x76e   : > { %v10644_v11 = vpop.f32.mrb[52].mxu1  ;;  %v8411_v21 = vsel %vm1222_vm4, %v8406_v54, %v8410_v61  ;;  %10670 = vmatprep.subr.bf16.mxu0 %v10951_v17 }
 0x76f   : > { %v7532_v55 = vadd.f32 %v10644_v11, %v14488_v15  ;;  %v7523_v58 = vpop.f32.mrb[53].mxu1  ;;  %8650 = vrot.lane.b32.xlu1 %v8605_v12, %s11097_s30  ;;  %8886 = vrot.lane.b32.xlu0 %v8608_v7, %s11100_s16  ;;  %v8399_v47 = vsel %vm1222_vm4, %v8394_v50, %v8398_v23 }
 0x770   : > { %v7524_v3 = vadd.f32 %v14488_v15, %v7523_v58  ;;  %v10645_v6 = vpop.f32.mrb[54].mxu1  ;;  %10671 = vmatpush3.bf16.msra.mxu0 %v10951_v17 }
 0x771   : > { %v7640_v45 = vmax.f32 %v7532_v55, 0.0  ;;  %v7535_v42 = vadd.f32 %v10645_v6, %v14488_v15  ;;  %v7526_v22 = vpop.f32.mrb[55].mxu1  ;;  %v8107_v6 = vld [vmem:[#allocation2 + $0x38] sm:$0x1] }
 0x772   : > { %v7638_v62 = vmax.f32 %v7524_v3, 0.0  ;;  %v7527_v57 = vadd.f32 %v14488_v15, %v7526_v22 }
 0x773   : > { %v10345_v56 = vpack.c.bf16 %v7640_v45, %v7640_v45  ;;  %v7641_v20 = vmax.f32 %v7535_v42, 0.0  ;;  %8734 = vrot.lane.b32.xlu1 %v8411_v21, %s11096_s21  ;;  %8652 = vrot.lane.b32.xlu0 %v8608_v7, %s11097_s30 }
 0x774   : > { %v10343_v44 = vpack.c.bf16 %v7638_v62, %v7638_v62  ;;  %v7639_v36 = vmax.f32 %v7527_v57, 0.0  ;;  %v8100_v62 = vld [vmem:[#allocation2 + $0x2c] sm:$0x1] }
 0x775   : > { %v7814_v60 = vshrl.u32 %v10345_v56, 16  ;;  %v10346_v19 = vpack.c.bf16 %v7641_v20, %v7641_v20  ;;  %v7817_v38 = vshll.u32 %v10345_v56, 16  ;;  %v10952_v56 = vld [vmem:[%s15316_s9 + $0x8] sm:$0xff]  }
 0x776   : > { %v7797_v24 = vshrl.u32 %v10343_v44, 16  ;;  %v10344_v27 = vpack.c.bf16 %v7639_v36, %v7639_v36  ;;  %v7800_v34 = vshll.u32 %v10343_v44, 16  ;;  %10672 = vmatprep.subr.bf16.mxu0 %v10952_v56  ;;  %v10954_v36 = vld [vmem:[%s15316_s9 + $0x10] sm:$0xff]  }
 0x777   : > { %v7816_v37 = vrot.slane %v7814_v60, 7  ;;  %v7822_v4 = vshrl.u32 %v10346_v19, 16  ;;  %8572 = vrot.lane.b32.xlu1 %v8411_v21, %s11091_s15  ;;  %8767 = vrot.lane.b32.xlu0 %v8605_v12, %s11101_s20  ;;  %v7825_v51 = vshll.u32 %v10346_v19, 16 }
 0x778   : > { %v7799_v63 = vrot.slane %v7797_v24, 7  ;;  %v7805_v18 = vshrl.u32 %v10344_v27, 16  ;;  %v7808_v32 = vshll.u32 %v10344_v27, 16  ;;  %10673 = vmatpush3.bf16.msra.mxu0 %v10952_v56 }
 0x779   : > { %v7819_v7 = vor.u32 %v7817_v38, %v7816_v37  ;;  %v7824_v40 = vrot.slane %v7822_v4, 7  ;;  %v7820_v11 = vrot.slane %v7816_v37, 4  ;;  %10674 = vmatprep.subr.bf16.mxu0 %v10954_v36 }
 0x77a   : > { %v7802_v48 = vor.u32 %v7800_v34, %v7799_v63  ;;  %v7807_v43 = vrot.slane %v7805_v18, 7  ;;  %v7803_v58 = vrot.slane %v7799_v63, 4 }
 0x77b   : > { %v8104_v54 = vsel %vm12065_vm12, %v7819_v7, %v8103_v26  ;;  %v7827_v55 = vor.u32 %v7825_v51, %v7824_v40  ;;  %v7829_v12 = vrot.slane %v7824_v40, 4  ;;  %8570 = vrot.lane.b32.xlu1 %v8399_v47, %s11091_s15  ;;  %8851 = vrot.lane.b32.xlu0 %v8411_v21, %s11102_s25 }
 0x77c   : > { %8105 = vst [vmem:[#allocation2 + $0x30] sm:$0xf] %v8104_v54  ;;  %v8097_v3 = vsel %vm12065_vm12, %v7802_v48, %v8096_v35  ;;  %v7810_v61 = vor.u32 %v7808_v32, %v7807_v43  ;;  %v7812_v45 = vrot.slane %v7807_v43, 4  ;;  %10675 = vmatpush3.bf16.msra.mxu0 %v10954_v36 }
 0x77d   : > { %8098 = vst [vmem:[#allocation2 + $0x24] sm:$0xf] %v8097_v3  ;;  %v7828_v42 = vsel %vm11333_vm11, %v7820_v11, %v7827_v55  ;;  %v8108_v22 = vsel %vm11302_vm3, %v7829_v12, %v8107_v6 }
 0x77e   : > { %8106 = vst.msk [vmem:[#allocation2 + $0x34] sm:$0xf] %vm15543_vm14, %v7828_v42  ;;  %8109 = vst [vmem:[#allocation2 + $0x38] sm:$0x1] %v8108_v22  ;;  %v7811_v57 = vsel %vm11333_vm11, %v7803_v58, %v7810_v61  ;;  %v8101_v21 = vsel %vm11302_vm3, %v7812_v45, %v8100_v62 }
 0x77f   : > { %8099 = vst.msk [vmem:[#allocation2 + $0x28] sm:$0xf] %vm15542_vm1, %v7811_v57  ;;  %8102 = vst [vmem:[#allocation2 + $0x2c] sm:$0x1] %v8101_v21  ;;  %8732 = vrot.lane.b32.xlu0 %v8399_v47, %s11096_s21 }
 0x780   : > { %vm15544_vm14 = vmmov %vm15542_vm1 }
 0x785   : > { %v10935_v20 = vld [vmem:[#allocation2 + $0x30] sm:$0xff]   ;;  %v10937_v44 = vld [vmem:[#allocation2 + $0x38] ss:$0 sps:$4 sm:$0x11]  }
 0x786   : > { %8691 = vrot.lane.b32.xlu1 %v10935_v20, %s11094_s22  ;;  %8808 = vrot.lane.b32.xlu0 %v10935_v20, %s11099_s14  ;;  %v10936_v1 = vld [vmem:[#allocation2 + $0x24] sm:$0xff]   ;;  %v8612_v41 = vrot.slane %v10935_v20, 1  ;;  %v8613_v60 = vrot.slane %v10937_v44, 1  ;;  %v10938_v19 = vld [vmem:[#allocation2 + $0x2c] ss:$0 sps:$4 sm:$0x11]  }
 0x787   : > { %v8427_v24 = vshll.u32 %v10935_v20, 16  ;;  %v8609_v37 = vrot.slane %v10936_v1, 1  ;;  %v8610_v38 = vrot.slane %v10938_v19, 1  ;;  %v8425_v7 = vshrl.u32 %v10935_v20, 16 }
 0x788   : > { %v8614_v50 = vsel %vm1447_vm6, %v8612_v41, %v8613_v60  ;;  %v8432_v40 = vshll.u32 %v10937_v44, 16  ;;  %v8415_v43 = vshll.u32 %v10936_v1, 16  ;;  %v8420_v45 = vshll.u32 %v10938_v19, 16 }
 0x789   : > { %v8429_v4 = vrot.slane %v8427_v24, 1  ;;  %v8611_v11 = vsel %vm1447_vm6, %v8609_v37, %v8610_v38  ;;  %v8413_v41 = vshrl.u32 %v10936_v1, 16 }
 0x78a   : > { %8806 = vrot.lane.b32.xlu1 %v10936_v1, %s11099_s14  ;;  %8689 = vrot.lane.b32.xlu0 %v10936_v1, %s11094_s22  ;;  %v8434_v3 = vrot.slane %v8432_v40, 1  ;;  %v8417_v57 = vrot.slane %v8415_v43, 1  ;;  %v8422_v19 = vrot.slane %v8420_v45, 1  ;;  %v8121_v43 = vld [vmem:[#allocation2 + $0x50] sm:$0x1] }
 0x78b   : > { %v8430_v54 = vor.u32 %v8429_v4, %v8425_v7  ;;  %v8110_v7 = vld [vmem:[#allocation2 + $0x3c] sm:$0xf] }
 0x78d   : > { %v8435_v62 = vsel %vm1222_vm4, %v8430_v54, %v8434_v3 }
 0x78e   : > { %v10648_v27 = vpop.f32.mrb[56].mxu1  ;;  %8773 = vrot.lane.b32.xlu1 %v8614_v50, %s11101_s20  ;;  %8890 = vrot.lane.b32.xlu0 %v8614_v50, %s11100_s16 }
 0x78f   : > { %v7548_v63 = vadd.f32 %v10648_v27, %v14488_v15  ;;  %v7539_v34 = vpop.f32.mrb[57].mxu1 }
 0x790   : > { %v7540_v18 = vadd.f32 %v14488_v15, %v7539_v34  ;;  %v10649_v23 = vpop.f32.mrb[58].mxu1  ;;  %v10956_v34 = vld [vmem:[%s15316_s9 + $0x18] sm:$0xff]  }
 0x791   : > { %v7644_v51 = vmax.f32 %v7548_v63, 0.0  ;;  %v7551_v26 = vadd.f32 %v10649_v23, %v14488_v15  ;;  %v7542_v48 = vpop.f32.mrb[59].mxu1  ;;  %v8418_v63 = vor.u32 %v8417_v57, %v8413_v41  ;;  %10676 = vmatprep.subr.bf16.mxu0 %v10956_v34 }
 0x792   : > { %v7642_v32 = vmax.f32 %v7540_v18, 0.0  ;;  %v7543_v47 = vadd.f32 %v14488_v15, %v7542_v48  ;;  %8654 = vrot.lane.b32.xlu1 %v8611_v11, %s11097_s30  ;;  %8656 = vrot.lane.b32.xlu0 %v8614_v50, %s11097_s30  ;;  %v8117_v50 = vld [vmem:[#allocation2 + $0x48] sm:$0xf] }
 0x793   : > { %v10349_v35 = vpack.c.bf16 %v7644_v51, %v7644_v51  ;;  %v7645_v55 = vmax.f32 %v7551_v26, 0.0  ;;  %v10958_v51 = vld [vmem:[%s15316_s9 + $0x20] ss:$0 sps:$4 sm:$0xff]   ;;  %10677 = vmatpush3.bf16.msra.mxu0 %v10956_v34 }
 0x794   : > { %v10347_v12 = vpack.c.bf16 %v7642_v32, %v7642_v32  ;;  %v7643_v58 = vmax.f32 %v7543_v47, 0.0  ;;  %10723 = vmatprep.subr.msk.bf16.mxu0 %vm3879_vm8, %v10958_v51  ;;  %v9250_v3 = vsel %vm3879_vm8, %v10958_v51, 0  ;;  %vm15545_vm8 = vmmov %vm15542_vm1 }
 0x795   : > { %v7848_v6 = vshrl.u32 %v10349_v35, 16  ;;  %v10350_v61 = vpack.c.bf16 %v7645_v55, %v7645_v55  ;;  %v7851_v17 = vshll.u32 %v10349_v35, 16  ;;  %v8114_v35 = vld [vmem:[#allocation2 + $0x44] sm:$0x1] }
 0x796   : > { %v7831_v42 = vshrl.u32 %v10347_v12, 16  ;;  %v10348_v22 = vpack.c.bf16 %v7643_v58, %v7643_v58  ;;  %8738 = vrot.lane.b32.xlu1 %v8435_v62, %s11096_s21  ;;  %8888 = vrot.lane.b32.xlu0 %v8611_v11, %s11100_s16  ;;  %v7834_v44 = vshll.u32 %v10347_v12, 16  ;;  %v8423_v58 = vsel %vm1222_vm4, %v8418_v63, %v8422_v19 }
 0x797   : > { %v7850_v21 = vrot.slane %v7848_v6, 7  ;;  %v7856_v56 = vshrl.u32 %v10350_v61, 16  ;;  %v7859_v27 = vshll.u32 %v10350_v61, 16  ;;  %10679 = vmatpush3.bf16.msra.mxu0 %v9250_v3 }
 0x798   : > { %v7833_v20 = vrot.slane %v7831_v42, 7  ;;  %v7839_v36 = vshrl.u32 %v10348_v22, 16  ;;  %v7842_v4 = vshll.u32 %v10348_v22, 16 }
 0x799   : > { %v7853_v60 = vor.u32 %v7851_v17, %v7850_v21  ;;  %v7858_v24 = vrot.slane %v7856_v56, 7  ;;  %v7854_v18 = vrot.slane %v7850_v21, 4 }
 0x79a   : > { %v7836_v37 = vor.u32 %v7834_v44, %v7833_v20  ;;  %v7841_v38 = vrot.slane %v7839_v36, 7  ;;  %8576 = vrot.lane.b32.xlu1 %v8435_v62, %s11091_s15  ;;  %8771 = vrot.lane.b32.xlu0 %v8611_v11, %s11101_s20  ;;  %v7837_v26 = vrot.slane %v7833_v20, 4 }
 0x79b   : > { %v8118_v23 = vsel %vm12065_vm12, %v7853_v60, %v8117_v50  ;;  %v7861_v40 = vor.u32 %v7859_v27, %v7858_v24  ;;  %v7863_v1 = vrot.slane %v7858_v24, 4 }
 0x79c   : > { %8119 = vst [vmem:[#allocation2 + $0x48] sm:$0xf] %v8118_v23  ;;  %v8111_v48 = vsel %vm12065_vm12, %v7836_v37, %v8110_v7  ;;  %v7844_v32 = vor.u32 %v7842_v4, %v7841_v38  ;;  %v7846_v47 = vrot.slane %v7841_v38, 4 }
 0x79d   : > { %8112 = vst [vmem:[#allocation2 + $0x3c] sm:$0xf] %v8111_v48  ;;  %v7862_v54 = vsel %vm11333_vm11, %v7854_v18, %v7861_v40  ;;  %v8122_v11 = vsel %vm11302_vm3, %v7863_v1, %v8121_v43 }
 0x79e   : > { %8120 = vst.msk [vmem:[#allocation2 + $0x4c] sm:$0xf] %vm15544_vm14, %v7862_v54  ;;  %8123 = vst [vmem:[#allocation2 + $0x50] sm:$0x1] %v8122_v11  ;;  %v7845_v55 = vsel %vm11333_vm11, %v7837_v26, %v7844_v32  ;;  %v8115_v12 = vsel %vm11302_vm3, %v7846_v47, %v8114_v35  ;;  %8853 = vrot.lane.b32.xlu1 %v8423_v58, %s11102_s25  ;;  %8855 = vrot.lane.b32.xlu0 %v8435_v62, %s11102_s25 }
 0x79f   : > { %8113 = vst.msk [vmem:[#allocation2 + $0x40] sm:$0xf] %vm15542_vm1, %v7845_v55  ;;  %8116 = vst [vmem:[#allocation2 + $0x44] sm:$0x1] %v8115_v12 }
 0x7a0   : > { %vm15546_vm14 = vmmov %vm15542_vm1 }
 0x7a2   : > { %8574 = vrot.lane.b32.xlu1 %v8423_v58, %s11091_s15  ;;  %8736 = vrot.lane.b32.xlu0 %v8423_v58, %s11096_s21 }
 0x7a5   : > { %v10939_v6 = vld [vmem:[#allocation2 + $0x48] sm:$0xff]   ;;  %v10941_v61 = vld [vmem:[#allocation2 + $0x50] ss:$0 sps:$4 sm:$0x11]  }
 0x7a6   : > { %8695 = vrot.lane.b32.xlu1 %v10939_v6, %s11094_s22  ;;  %8812 = vrot.lane.b32.xlu0 %v10939_v6, %s11099_s14  ;;  %v10940_v45 = vld [vmem:[#allocation2 + $0x3c] sm:$0xff]   ;;  %v8618_v42 = vrot.slane %v10939_v6, 1  ;;  %v8619_v22 = vrot.slane %v10941_v61, 1  ;;  %v10942_v57 = vld [vmem:[#allocation2 + $0x44] ss:$0 sps:$4 sm:$0x11]  }
 0x7a7   : > { %v8451_v21 = vshll.u32 %v10939_v6, 16  ;;  %v8615_v56 = vrot.slane %v10940_v45, 1  ;;  %v8616_v20 = vrot.slane %v10942_v57, 1  ;;  %v8449_v27 = vshrl.u32 %v10939_v6, 16 }
 0x7a8   : > { %v8620_v17 = vsel %vm1447_vm6, %v8618_v42, %v8619_v22  ;;  %v8456_v19 = vshll.u32 %v10941_v61, 16  ;;  %v8439_v4 = vshll.u32 %v10940_v45, 16  ;;  %v8444_v32 = vshll.u32 %v10942_v57, 16 }
 0x7a9   : > { %v8453_v44 = vrot.slane %v8451_v21, 1  ;;  %v8617_v18 = vsel %vm1447_vm6, %v8615_v56, %v8616_v20  ;;  %v8437_v42 = vshrl.u32 %v10940_v45, 16 }
 0x7aa   : > { %8810 = vrot.lane.b32.xlu1 %v10940_v45, %s11099_s14  ;;  %8693 = vrot.lane.b32.xlu0 %v10940_v45, %s11094_s22  ;;  %v8458_v26 = vrot.slane %v8456_v19, 1  ;;  %v8441_v35 = vrot.slane %v8439_v4, 1  ;;  %v8446_v57 = vrot.slane %v8444_v32, 1 }
 0x7ab   : > { %v8454_v23 = vor.u32 %v8453_v44, %v8449_v27 }
 0x7ad   : > { %v8459_v11 = vsel %vm1222_vm4, %v8454_v23, %v8458_v26  ;;  %v8128_v23 = vld [vmem:[#allocation2 + $0x5c] sm:$0x1] }
 0x7ae   : > { %v10652_v62 = vpop.f32.mrb[60].mxu1  ;;  %8777 = vrot.lane.b32.xlu1 %v8620_v17, %s11101_s20  ;;  %8894 = vrot.lane.b32.xlu0 %v8620_v17, %s11100_s16 }
 0x7af   : > { %v7564_v36 = vadd.f32 %v10652_v62, %v14488_v15  ;;  %v7555_v41 = vpop.f32.mrb[61].mxu1 }
 0x7b0   : > { %v7556_v60 = vadd.f32 %v14488_v15, %v7555_v41  ;;  %v10653_v24 = vpop.f32.mrb[62].mxu1 }
 0x7b1   : > { %v7648_v50 = vmax.f32 %v7564_v36, 0.0  ;;  %v7567_v37 = vadd.f32 %v10653_v24, %v14488_v15  ;;  %v7558_v38 = vpop.f32.mrb[63].mxu1  ;;  %v8442_v36 = vor.u32 %v8441_v35, %v8437_v42  ;;  %v8124_v24 = vld [vmem:[#allocation2 + $0x54] sm:$0xf] }
 0x7b2   : > { %v7646_v63 = vmax.f32 %v7556_v60, 0.0  ;;  %v7559_v34 = vadd.f32 %v14488_v15, %v7558_v38  ;;  %8658 = vrot.lane.b32.xlu1 %v8617_v18, %s11097_s30  ;;  %8660 = vrot.lane.b32.xlu0 %v8620_v17, %s11097_s30  ;;  %v8131_v17 = vld [vmem:[#allocation2 + $0x60] sm:$0xf] }
 0x7b3   : > { %v10353_v7 = vpack.c.bf16 %v7648_v50, %v7648_v50  ;;  %v7649_v40 = vmax.f32 %v7567_v37, 0.0  ;;  %v8135_v37 = vld [vmem:[#allocation2 + $0x68] sm:$0x1] }
 0x7b4   : > { %v10351_v1 = vpack.c.bf16 %v7646_v63, %v7646_v63  ;;  %v7647_v51 = vmax.f32 %v7559_v34, 0.0 }
 0x7b5   : > { %v7882_v48 = vshrl.u32 %v10353_v7, 16  ;;  %v10354_v43 = vpack.c.bf16 %v7649_v40, %v7649_v40  ;;  %v7885_v12 = vshll.u32 %v10353_v7, 16  ;;  %v8447_v40 = vsel %vm1222_vm4, %v8442_v36, %v8446_v57 }
 0x7b6   : > { %v7865_v47 = vshrl.u32 %v10351_v1, 16  ;;  %v10352_v54 = vpack.c.bf16 %v7647_v51, %v7647_v51  ;;  %8742 = vrot.lane.b32.xlu1 %v8459_v11, %s11096_s21  ;;  %8892 = vrot.lane.b32.xlu0 %v8617_v18, %s11100_s16  ;;  %v7868_v6 = vshll.u32 %v10351_v1, 16 }
 0x7b7   : > { %v7884_v55 = vrot.slane %v7882_v48, 7  ;;  %v7890_v58 = vshrl.u32 %v10354_v43, 16  ;;  %v7893_v62 = vshll.u32 %v10354_v43, 16 }
 0x7b8   : > { %v7867_v3 = vrot.slane %v7865_v47, 7  ;;  %v7873_v61 = vshrl.u32 %v10352_v54, 16  ;;  %v7876_v44 = vshll.u32 %v10352_v54, 16  ;;  %v14644_v54 = vpop.permute.xlu0 %8568 }
 0x7b9   : > { %v7887_v22 = vor.u32 %v7885_v12, %v7884_v55  ;;  %v7892_v21 = vrot.slane %v7890_v58, 7  ;;  %v7888_v41 = vrot.slane %v7884_v55, 4 }
 0x7ba   : > { %v7870_v56 = vor.u32 %v7868_v6, %v7867_v3  ;;  %v7875_v20 = vrot.slane %v7873_v61, 7  ;;  %8580 = vrot.lane.b32.xlu1 %v8459_v11, %s11091_s15  ;;  %8775 = vrot.lane.b32.xlu0 %v8617_v18, %s11101_s20  ;;  %v7871_v45 = vrot.slane %v7867_v3, 4 }
 0x7bb   : > { %v8132_v60 = vsel %vm12065_vm12, %v7887_v22, %v8131_v17  ;;  %v7895_v27 = vor.u32 %v7893_v62, %v7892_v21  ;;  %v7897_v19 = vrot.slane %v7892_v21, 4 }
 0x7bc   : > { %8133 = vst [vmem:[#allocation2 + $0x60] sm:$0xf] %v8132_v60  ;;  %v8125_v50 = vsel %vm12065_vm12, %v7870_v56, %v8124_v24  ;;  %v7878_v38 = vor.u32 %v7876_v44, %v7875_v20  ;;  %v7880_v4 = vrot.slane %v7875_v20, 4 }
 0x7bd   : > { %8126 = vst [vmem:[#allocation2 + $0x54] sm:$0xf] %v8125_v50  ;;  %v7896_v63 = vsel %vm11333_vm11, %v7888_v41, %v7895_v27  ;;  %v8136_v34 = vsel %vm11302_vm3, %v7897_v19, %v8135_v37  ;;  %v14658_v27 = vpop.permute.xlu1 %8834  ;;  %v14660_v19 = vpop.permute.xlu0 %8648 }
 0x7be   : > { %8134 = vst.msk [vmem:[#allocation2 + $0x64] sm:$0xf] %vm15545_vm8, %v7896_v63  ;;  %8137 = vst [vmem:[#allocation2 + $0x68] sm:$0x1] %v8136_v34  ;;  %v7879_v18 = vsel %vm11333_vm11, %v7871_v45, %v7878_v38  ;;  %v8129_v7 = vsel %vm11302_vm3, %v7880_v4, %v8128_v23  ;;  %8857 = vrot.lane.b32.xlu1 %v8447_v40, %s11102_s25  ;;  %8859 = vrot.lane.b32.xlu0 %v8459_v11, %s11102_s25 }
 0x7bf   : > { %8127 = vst.msk [vmem:[#allocation2 + $0x58] sm:$0xf] %vm15546_vm14, %v7879_v18  ;;  %8130 = vst [vmem:[#allocation2 + $0x5c] sm:$0x1] %v8129_v7  ;;  %vm15548_vm14 = vcmask 588800  }
 0x7c0   : > { %vm15547_vm8 = vmmov %vm15542_vm1 }
 0x7c2   : > { %8578 = vrot.lane.b32.xlu1 %v8447_v40, %s11091_s15  ;;  %8740 = vrot.lane.b32.xlu0 %v8447_v40, %s11096_s21 }
 0x7c5   : > { %v10943_v1 = vld [vmem:[#allocation2 + $0x60] sm:$0xff]   ;;  %v10945_v51 = vld [vmem:[#allocation2 + $0x68] ss:$0 sps:$4 sm:$0x11]  }
 0x7c6   : > { %8699 = vrot.lane.b32.xlu1 %v10943_v1, %s11094_s22  ;;  %8816 = vrot.lane.b32.xlu0 %v10943_v1, %s11099_s14  ;;  %v14638_v26 = vld [vmem:[#allocation2 + $0x54] sm:$0xff]   ;;  %v8624_v48 = vrot.slane %v10943_v1, 1  ;;  %v8625_v43 = vrot.slane %v10945_v51, 1  ;;  %v10946_v32 = vld [vmem:[#allocation2 + $0x5c] ss:$0 sps:$4 sm:$0x11]  }
 0x7c7   : > { %v8475_v47 = vshll.u32 %v10943_v1, 16  ;;  %v8621_v55 = vrot.slane %v14638_v26, 1  ;;  %v8622_v12 = vrot.slane %v10946_v32, 1  ;;  %v8473_v22 = vshrl.u32 %v10943_v1, 16 }
 0x7c8   : > { %v8626_v35 = vsel %vm1447_vm6, %v8624_v48, %v8625_v43  ;;  %v8480_v21 = vshll.u32 %v10945_v51, 16  ;;  %v8463_v56 = vshll.u32 %v14638_v26, 16  ;;  %v8468_v63 = vshll.u32 %v10946_v32, 16 }
 0x7c9   : > { %v8477_v58 = vrot.slane %v8475_v47, 1  ;;  %v8623_v36 = vsel %vm1447_vm6, %v8621_v55, %v8622_v12 }
 0x7ca   : > { %8814 = vrot.lane.b32.xlu1 %v14638_v26, %s11099_s14  ;;  %8697 = vrot.lane.b32.xlu0 %v14638_v26, %s11094_s22  ;;  %v8482_v37 = vrot.slane %v8480_v21, 1  ;;  %v8465_v7 = vrot.slane %v8463_v56, 1 }
 0x7cb   : > { %v8478_v41 = vor.u32 %v8477_v58, %v8473_v22 }
 0x7cd   : > { %v8483_v18 = vsel %vm1222_vm4, %v8478_v41, %v8482_v37  ;;  %v8149_v41 = vld [vmem:[#allocation2 + $0x80] sm:$0x1]  ;;  %v8142_v37 = vld [vmem:[#allocation2 + $0x74] sm:$0x1] }
 0x7ce   : > { %8781 = vrot.lane.b32.xlu1 %v8626_v35, %s11101_s20  ;;  %8898 = vrot.lane.b32.xlu0 %v8626_v35, %s11100_s16 }
 0x7d2   : > { %8662 = vrot.lane.b32.xlu1 %v8623_v36, %s11097_s30  ;;  %8664 = vrot.lane.b32.xlu0 %v8626_v35, %s11097_s30 }
 0x7d3   : > { %v10656_v11 = vpop.f32.mrb[64].mxu1 }
 0x7d4   : > { %v7580_v3 = vadd.f32 %v10656_v11, %v14488_v15  ;;  %v7571_v6 = vpop.f32.mrb[65].mxu1  ;;  %v8461_v11 = vshrl.u32 %v14638_v26, 16 }
 0x7d5   : > { %v7572_v61 = vadd.f32 %v14488_v15, %v7571_v6  ;;  %v10657_v42 = vpop.f32.mrb[66].mxu1  ;;  %v8145_v6 = vld [vmem:[#allocation2 + $0x78] sm:$0xf] }
 0x7d6   : > { %v7652_v62 = vmax.f32 %v7580_v3, 0.0  ;;  %v7583_v57 = vadd.f32 %v10657_v42, %v14488_v15  ;;  %v7574_v17 = vpop.f32.mrb[67].mxu1  ;;  %8746 = vrot.lane.b32.xlu1 %v8483_v18, %s11096_s21  ;;  %8896 = vrot.lane.b32.xlu0 %v8623_v36, %s11100_s16  ;;  %v8470_v3 = vrot.slane %v8468_v63, 1  ;;  %v8466_v21 = vor.u32 %v8465_v7, %v8461_v11  ;;  %v11004_v11 = vld [vmem:[#allocation2] sm:$0xff]  }
 0x7d7   : > { %v7650_v20 = vmax.f32 %v7572_v61, 0.0  ;;  %v7575_v44 = vadd.f32 %v14488_v15, %v7574_v17  ;;  %v8138_v17 = vld [vmem:[#allocation2 + $0x6c] sm:$0xf] }
 0x7d8   : > { %v10357_v60 = vpack.c.bf16 %v7652_v62, %v7652_v62  ;;  %v7653_v24 = vmax.f32 %v7583_v57, 0.0 }
 0x7d9   : > { %v10355_v45 = vpack.c.bf16 %v7650_v20, %v7650_v20  ;;  %v7651_v50 = vmax.f32 %v7575_v44, 0.0  ;;  %v14666_v12 = vpop.permute.xlu1 %8687  ;;  %v14668_v58 = vpop.permute.xlu0 %8804 }
 0x7da   : > { %v7916_v38 = vshrl.u32 %v10357_v60, 16  ;;  %v10358_v4 = vpack.c.bf16 %v7653_v24, %v7653_v24  ;;  %v7919_v1 = vshll.u32 %v10357_v60, 16  ;;  %8584 = vrot.lane.b32.xlu1 %v8483_v18, %s11091_s15  ;;  %8779 = vrot.lane.b32.xlu0 %v8623_v36, %s11101_s20 }
 0x7db   : > { %v7899_v34 = vshrl.u32 %v10355_v45, 16  ;;  %v10356_v23 = vpack.c.bf16 %v7651_v50, %v7651_v50  ;;  %v7902_v43 = vshll.u32 %v10355_v45, 16 }
 0x7dc   : > { %v7918_v40 = vrot.slane %v7916_v38, 7  ;;  %v7924_v51 = vshrl.u32 %v10358_v4, 16  ;;  %v7927_v32 = vshll.u32 %v10358_v4, 16 }
 0x7dd   : > { %v7901_v48 = vrot.slane %v7899_v34, 7  ;;  %v7907_v47 = vshrl.u32 %v10356_v23, 16  ;;  %v7910_v22 = vshll.u32 %v10356_v23, 16  ;;  %v14680_v38 = vpop.permute.xlu1 %8769  ;;  %v8686_v4 = vpop.permute.xlu0 %8685  ;;  %v8471_v34 = vsel %vm1222_vm4, %v8466_v21, %v8470_v3 }
 0x7de   : > { %v7921_v35 = vor.u32 %v7919_v1, %v7918_v40  ;;  %v7926_v55 = vrot.slane %v7924_v51, 7  ;;  %v7922_v62 = vrot.slane %v7918_v40, 4  ;;  %8861 = vrot.lane.b32.xlu1 %v8471_v34, %s11102_s25  ;;  %8863 = vrot.lane.b32.xlu0 %v8483_v18, %s11102_s25 }
 0x7df   : > { %v7904_v61 = vor.u32 %v7902_v43, %v7901_v48  ;;  %v7909_v42 = vrot.slane %v7907_v47, 7  ;;  %v7905_v20 = vrot.slane %v7901_v48, 4 }
 0x7e0   : > { %v8146_v57 = vsel %vm12065_vm12, %v7921_v35, %v8145_v6  ;;  %v7929_v56 = vor.u32 %v7927_v32, %v7926_v55  ;;  %v7931_v26 = vrot.slane %v7926_v55, 4  ;;  %v8919_v35 = vsel %vm1799_vm15, %v11004_v11, %v14644_v54 }
 0x7e1   : > { %8147 = vst [vmem:[#allocation2 + $0x78] sm:$0xf] %v8146_v57  ;;  %v8139_v44 = vsel %vm12065_vm12, %v7904_v61, %v8138_v17  ;;  %v7912_v60 = vor.u32 %v7910_v22, %v7909_v42  ;;  %v7914_v24 = vrot.slane %v7909_v42, 4  ;;  %v14691_v23 = vpop.permute.xlu0 %8886  ;;  %v14693_v7 = vpop.permute.xlu1 %8650  ;;  %v8951_v6 = vsel %vm1865_vm2, %v8919_v35, %v14660_v19 }
 0x7e2   : > { %8140 = vst [vmem:[#allocation2 + $0x6c] sm:$0xf] %v8139_v44  ;;  %v7930_v45 = vsel %vm11333_vm11, %v7922_v62, %v7929_v56  ;;  %v8150_v50 = vsel %vm11302_vm3, %v7931_v26, %v8149_v41  ;;  %8582 = vrot.lane.b32.xlu1 %v8471_v34, %s11091_s15  ;;  %8744 = vrot.lane.b32.xlu0 %v8471_v34, %s11096_s21  ;;  %v14731_v34 = vld [vmem:[%s15315_s8] ss:$0 sm:$0xff] }
 0x7e3   : > { %8148 = vst.msk [vmem:[#allocation2 + $0x7c] sm:$0xf] %vm15542_vm1, %v7930_v45  ;;  %8151 = vst [vmem:[#allocation2 + $0x80] sm:$0x1] %v8150_v50  ;;  %v7913_v36 = vsel %vm11333_vm11, %v7905_v20, %v7912_v60  ;;  %v8143_v63 = vsel %vm11302_vm3, %v7914_v24, %v8142_v37  ;;  %v8983_v19 = vsel %vm1931_vm9, %v8951_v6, %v8686_v4 }
 0x7e4   : > { %8141 = vst.msk [vmem:[#allocation2 + $0x70] sm:$0xf] %vm15547_vm8, %v7913_v36  ;;  %8144 = vst [vmem:[#allocation2 + $0x74] sm:$0x1] %v8143_v63 }
 0x7e5   : > { %v14697_v40 = vpop.permute.xlu0 %8652  ;;  %v14701_v48 = vpop.permute.xlu1 %8734  ;;  %vm15549_vm8 = vmmov %vm15542_vm1 }
 0x7e9   : > { %v8768_v43 = vpop.permute.xlu0 %8767  ;;  %v14718_v57 = vpop.permute.xlu1 %8572 }
 0x7ea   : > { %v10947_v1 = vld [vmem:[#allocation2 + $0x78] sm:$0xff]   ;;  %v10949_v51 = vld [vmem:[#allocation2 + $0x80] ss:$0 sps:$4 sm:$0x11]  }
 0x7eb   : > { %8703 = vrot.lane.b32.xlu1 %v10947_v1, %s11094_s22  ;;  %8820 = vrot.lane.b32.xlu0 %v10947_v1, %s11099_s14  ;;  %v14703_v18 = vld [vmem:[#allocation2 + $0x6c] sm:$0xff]   ;;  %v14705_v47 = vld [vmem:[#allocation2 + $0x74] ss:$0 sps:$4 sm:$0x11]   ;;  %v8630_v55 = vrot.slane %v10947_v1, 1  ;;  %v8631_v32 = vrot.slane %v10949_v51, 1 }
 0x7ec   : > { %v8499_v3 = vshll.u32 %v10947_v1, 16  ;;  %v8627_v42 = vrot.slane %v14703_v18, 1  ;;  %v8628_v22 = vrot.slane %v14705_v47, 1  ;;  %v8497_v44 = vshrl.u32 %v10947_v1, 16 }
 0x7ed   : > { %v8852_v61 = vpop.permute.xlu0 %8851  ;;  %v8632_v54 = vsel %vm1447_vm6, %v8630_v55, %v8631_v32  ;;  %v8504_v41 = vshll.u32 %v10949_v51, 16  ;;  %v8487_v36 = vshll.u32 %v14703_v18, 16  ;;  %v8492_v55 = vshll.u32 %v14705_v47, 16 }
 0x7ee   : > { %v8501_v62 = vrot.slane %v8499_v3, 1  ;;  %v8629_v37 = vsel %vm1447_vm6, %v8627_v42, %v8628_v22  ;;  %v8571_v22 = vpop.permute.xlu1 %8570 }
 0x7ef   : > { %8818 = vrot.lane.b32.xlu1 %v14703_v18, %s11099_s14  ;;  %8701 = vrot.lane.b32.xlu0 %v14703_v18, %s11094_s22  ;;  %v8506_v42 = vrot.slane %v8504_v41, 1 }
 0x7f0   : > { %v8502_v51 = vor.u32 %v8501_v62, %v8497_v44 }
 0x7f1   : > { %v8733_v50 = vpop.permute.xlu0 %8732 }
 0x7f2   : > { %v9015_v1 = vsel %vm1997_vm0, %v8983_v19, %v8733_v50 }
 0x7f3   : > { %v10660_v21 = vpop.f32.mrb[68].mxu1  ;;  %8785 = vrot.lane.b32.xlu1 %v8632_v54, %s11101_s20  ;;  %8902 = vrot.lane.b32.xlu0 %v8632_v54, %s11100_s16 }
 0x7f4   : > { %v7596_v17 = vadd.f32 %v10660_v21, %v14488_v15  ;;  %v7587_v56 = vpop.f32.mrb[69].mxu1 }
 0x7f5   : > { %v7588_v26 = vadd.f32 %v14488_v15, %v7587_v56  ;;  %v10661_v20 = vpop.f32.mrb[70].mxu1  ;;  %v8489_v56 = vrot.slane %v8487_v36, 1 }
 0x7f6   : > { %v7656_v60 = vmax.f32 %v7596_v17, 0.0  ;;  %v7599_v24 = vadd.f32 %v10661_v20, %v14488_v15  ;;  %v7590_v45 = vpop.f32.mrb[71].mxu1  ;;  %v9047_v15 = vsel %vm3671_vm13, %v9015_v1, %v8768_v43 }
 0x7f7   : > { %v7654_v63 = vmax.f32 %v7588_v26, 0.0  ;;  %v7591_v4 = vadd.f32 %v14731_v34, %v7590_v45  ;;  %8666 = vrot.lane.b32.xlu1 %v8629_v37, %s11097_s30  ;;  %8668 = vrot.lane.b32.xlu0 %v8632_v54, %s11097_s30  ;;  %v9079_v6 = vsel %vm3704_vm5, %v9047_v15, %v14668_v58  ;;  %v8507_v26 = vsel %vm1222_vm4, %v8502_v51, %v8506_v42 }
 0x7f8   : > { %v10361_v11 = vpack.c.bf16 %v7656_v60, %v7656_v60  ;;  %v7657_v35 = vmax.f32 %v7599_v24, 0.0  ;;  %v9111_v62 = vsel %vm3737_vm7, %v9079_v6, %v8852_v61  ;;  %v8485_v61 = vshrl.u32 %v14703_v18, 16  ;;  %v14749_v36 = vpop.permute.xlu1 %8691 }
 0x7f9   : > { %v10359_v32 = vpack.c.bf16 %v7654_v63, %v7654_v63  ;;  %v7655_v3 = vmax.f32 %v7591_v4, 0.0  ;;  %v9143_v54 = vsel %vm3770_vm10, %v9111_v62, %v14691_v23  ;;  %v14751_v23 = vpop.permute.xlu0 %8808  ;;  %v8494_v63 = vrot.slane %v8492_v55, 1  ;;  %v8159_v4 = vld [vmem:[#allocation2 + $0x90] sm:$0xf] }
 0x7fa   : > { %v7950_v21 = vshrl.u32 %v10361_v11, 16  ;;  %v10362_v17 = vpack.c.bf16 %v7657_v35, %v7657_v35  ;;  %v7953_v20 = vshll.u32 %v10361_v11, 16  ;;  %10680 = vmatprep.mubr.msk.bf16.mxu0 %vm15548_vm14, %v9143_v54  ;;  %v8490_v35 = vor.u32 %v8489_v56, %v8485_v61  ;;  %v8156_v54 = vld [vmem:[#allocation2 + $0x8c] sm:$0x1] }
 0x7fb   : > { %v7933_v19 = vshrl.u32 %v10359_v32, 16  ;;  %v10360_v43 = vpack.c.bf16 %v7655_v3, %v7655_v3  ;;  %8750 = vrot.lane.b32.xlu1 %v8507_v26, %s11096_s21  ;;  %8900 = vrot.lane.b32.xlu0 %v8629_v37, %s11100_s16  ;;  %v7936_v41 = vshll.u32 %v10359_v32, 16  ;;  %v8152_v3 = vld [vmem:[#allocation2 + $0x84] sm:$0xf] }
 0x7fc   : > { %v7952_v47 = vrot.slane %v7950_v21, 7  ;;  %v7958_v44 = vshrl.u32 %v10362_v17, 16  ;;  %v7961_v50 = vshll.u32 %v10362_v17, 16  ;;  %v8163_v17 = vld [vmem:[#allocation2 + $0x98] sm:$0x1] }
 0x7fd   : > { %v7935_v58 = vrot.slane %v7933_v19, 7  ;;  %v7941_v60 = vshrl.u32 %v10360_v43, 16  ;;  %v7944_v11 = vshll.u32 %v10360_v43, 16 }
 0x7fe   : > { %v7955_v24 = vor.u32 %v7953_v20, %v7952_v47  ;;  %v7960_v45 = vrot.slane %v7958_v44, 7  ;;  %v7956_v15 = vrot.slane %v7952_v47, 4  ;;  %v8807_v47 = vpop.permute.xlu1 %8806  ;;  %v14763_v20 = vpop.permute.xlu0 %8689 }
 0x7ff   : > { %v7938_v1 = vor.u32 %v7936_v41, %v7935_v58  ;;  %v7943_v51 = vrot.slane %v7941_v60, 7  ;;  %8588 = vrot.lane.b32.xlu1 %v8507_v26, %s11091_s15  ;;  %8783 = vrot.lane.b32.xlu0 %v8629_v37, %s11101_s20  ;;  %v7939_v21 = vrot.slane %v7935_v58, 4  ;;  %v8495_v58 = vsel %vm1222_vm4, %v8490_v35, %v8494_v63  ;;  %v11006_v41 = vld [vmem:[#allocation2 + $0xc] sm:$0xff]  }
 0x800   : > { %v8160_v32 = vsel %vm12065_vm12, %v7955_v24, %v8159_v4  ;;  %v7963_v6 = vor.u32 %v7961_v50, %v7960_v45  ;;  %v7965_v42 = vrot.slane %v7960_v45, 4  ;;  %v8921_v60 = vsel %vm1799_vm15, %v11006_v41, %v8571_v22 }
 0x801   : > { %8161 = vst [vmem:[#allocation2 + $0x90] sm:$0xf] %v8160_v32  ;;  %v8153_v55 = vsel %vm12065_vm12, %v7938_v1, %v8152_v3  ;;  %v7946_v62 = vor.u32 %v7944_v11, %v7943_v51  ;;  %v7948_v19 = vrot.slane %v7943_v51, 4  ;;  %v8953_v45 = vsel %vm1865_vm2, %v8921_v60, %v14693_v7  ;;  %v11007_v7 = vld [vmem:[#allocation2 + $0x18] sm:$0xff]  }
 0x802   : > { %8154 = vst [vmem:[#allocation2 + $0x84] sm:$0xf] %v8153_v55  ;;  %v7964_v56 = vsel %vm11333_vm11, %v7956_v15, %v7963_v6  ;;  %v8164_v43 = vsel %vm11302_vm3, %v7965_v42, %v8163_v17  ;;  %v14775_v61 = vpop.permute.xlu1 %8773  ;;  %v14777_v24 = vpop.permute.xlu0 %8890  ;;  %v8985_v22 = vsel %vm1931_vm9, %v8953_v45, %v14666_v12  ;;  %v8923_v1 = vsel %vm1799_vm15, %v11007_v7, %v14718_v57 }
 0x803   : > { %8162 = vst.msk [vmem:[#allocation2 + $0x94] sm:$0xf] %vm15542_vm1, %v7964_v56  ;;  %8165 = vst [vmem:[#allocation2 + $0x98] sm:$0x1] %v8164_v43  ;;  %v7947_v37 = vsel %vm11333_vm11, %v7939_v21, %v7946_v62  ;;  %v8157_v44 = vsel %vm11302_vm3, %v7948_v19, %v8156_v54  ;;  %8865 = vrot.lane.b32.xlu1 %v8495_v58, %s11102_s25  ;;  %8867 = vrot.lane.b32.xlu0 %v8507_v26, %s11102_s25 }
 0x804   : > { %8155 = vst.msk [vmem:[#allocation2 + $0x88] sm:$0xf] %vm15549_vm8, %v7947_v37  ;;  %8158 = vst [vmem:[#allocation2 + $0x8c] sm:$0x1] %v8157_v44  ;;  %v9017_v12 = vsel %vm1997_vm0, %v8985_v22, %v14701_v48  ;;  %v14811_v57 = vsel %vm1865_vm2, %v8923_v1, %v14697_v40 }
 0x805   : > { %v9049_v21 = vsel %vm3671_vm13, %v9017_v12, %v14680_v38  ;;  %vm15551_vm8 = vmmov %vm15542_vm1 }
 0x806   : > { %v14785_v50 = vpop.permute.xlu1 %8654  ;;  %v14787_v63 = vpop.permute.xlu0 %8656  ;;  %v9081_v1 = vsel %vm3704_vm5, %v9049_v21, %v8807_v47 }
 0x807   : > { %8586 = vrot.lane.b32.xlu1 %v8495_v58, %s11091_s15  ;;  %8748 = vrot.lane.b32.xlu0 %v8495_v58, %s11096_s21 }
 0x80a   : > { %v14789_v4 = vld [vmem:[#allocation2 + $0x90] sm:$0xff]   ;;  %v10957_v26 = vld [vmem:[#allocation2 + $0x98] ss:$0 sps:$4 sm:$0x11]   ;;  %v14802_v35 = vpop.permute.xlu1 %8738  ;;  %v8889_v15 = vpop.permute.xlu0 %8888 }
 0x80b   : > { %8707 = vrot.lane.b32.xlu1 %v14789_v4, %s11094_s22  ;;  %8824 = vrot.lane.b32.xlu0 %v14789_v4, %s11099_s14  ;;  %v14799_v51 = vld [vmem:[#allocation2 + $0x84] sm:$0xff]   ;;  %v8523_v11 = vshll.u32 %v14789_v4, 16  ;;  %v14804_v32 = vld [vmem:[#allocation2 + $0x8c] ss:$0 sps:$4 sm:$0x11]   ;;  %v8636_v6 = vrot.slane %v14789_v4, 1 }
 0x80c   : > { %v8637_v42 = vrot.slane %v10957_v26, 1  ;;  %v8633_v19 = vrot.slane %v14799_v51, 1  ;;  %v8521_v38 = vshrl.u32 %v14789_v4, 16  ;;  %v8634_v44 = vrot.slane %v14804_v32, 1 }
 0x80d   : > { %v8525_v56 = vrot.slane %v8523_v11, 1  ;;  %v8528_v58 = vshll.u32 %v10957_v26, 16  ;;  %v8511_v7 = vshll.u32 %v14799_v51, 16 }
 0x80e   : > { %v14822_v37 = vpop.permute.xlu1 %8576  ;;  %v14826_v45 = vpop.permute.xlu0 %8771  ;;  %v8638_v22 = vsel %vm1447_vm6, %v8636_v6, %v8637_v42  ;;  %v14836_v42 = vsel %vm1447_vm6, %v8633_v19, %v8634_v44 }
 0x80f   : > { %v10664_v3 = vpop.f32.mrb[72].mxu1  ;;  %8822 = vrot.lane.b32.xlu1 %v14799_v51, %s11099_s14  ;;  %8705 = vrot.lane.b32.xlu0 %v14799_v51, %s11094_s22  ;;  %v8530_v47 = vrot.slane %v8528_v58, 1  ;;  %v8513_v29 = vrot.slane %v8511_v7, 1 }
 0x810   : > { %v7612_v48 = vadd.f32 %v14731_v34, %v10664_v3  ;;  %v7603_v55 = vpop.f32.mrb[73].mxu1 }
 0x811   : > { %v7604_v17 = vadd.f32 %v14731_v34, %v7603_v55  ;;  %v10665_v62 = vpop.f32.mrb[74].mxu1  ;;  %v8526_v55 = vor.u32 %v8525_v56, %v8521_v38 }
 0x812   : > { %v7660_v43 = vmax.f32 %v7612_v48, 0.0  ;;  %v7615_v40 = vadd.f32 %v14731_v34, %v10665_v62  ;;  %v7606_v54 = vpop.f32.mrb[75].mxu1  ;;  %v8854_v6 = vpop.permute.xlu1 %8853 }
 0x813   : > { %v7658_v41 = vmax.f32 %v7604_v17, 0.0  ;;  %v7607_v60 = vadd.f32 %v14731_v34, %v7606_v54  ;;  %8789 = vrot.lane.b32.xlu1 %v8638_v22, %s11101_s20  ;;  %8906 = vrot.lane.b32.xlu0 %v8638_v22, %s11100_s16  ;;  %v14839_v0 = vpop.permute.xlu0 %8855  ;;  %v14847_v58 = vsel %vm1222_vm4, %v8526_v55, %v8530_v47  ;;  %v8166_v47 = vld [vmem:[#allocation2 + $0x9c] sm:$0xf] }
 0x814   : > { %v10365_v12 = vpack.c.bf16 %v7660_v43, %v7660_v43  ;;  %v7661_v11 = vmax.f32 %v7615_v40, 0.0  ;;  %v9113_v40 = vsel %vm3737_vm7, %v9081_v1, %v8854_v6  ;;  %v8173_v6 = vld [vmem:[#allocation2 + $0xa8] sm:$0xf] }
 0x815   : > { %v10363_v26 = vpack.c.bf16 %v7658_v41, %v7658_v41  ;;  %v7659_v48 = vmax.f32 %v7607_v60, 0.0  ;;  %v9145_v38 = vsel %vm3770_vm10, %v9113_v40, %v8889_v15 }
 0x816   : > { %v7984_v62 = vshrl.u32 %v10365_v12, 16  ;;  %v10366_v54 = vpack.c.bf16 %v7661_v11, %v7661_v11  ;;  %v7987_v41 = vshll.u32 %v10365_v12, 16  ;;  %10681 = vmatmul.mubr.msk.bf16.vlgmr.msra.gmra.mrb[48].mxu0 %vm15548_vm14, %v9145_v38 }
 0x817   : > { %v7967_v21 = vshrl.u32 %v10363_v26, 16  ;;  %v10364_v43 = vpack.c.bf16 %v7659_v48, %v7659_v48  ;;  %8670 = vrot.lane.b32.xlu1 %v14836_v42, %s11097_s30  ;;  %8672 = vrot.lane.b32.xlu0 %v8638_v22, %s11097_s30  ;;  %v7970_v56 = vshll.u32 %v10363_v26, 16 }
 0x818   : > { %v7986_v3 = vrot.slane %v7984_v62, 7  ;;  %v7992_v60 = vshrl.u32 %v10366_v54, 16  ;;  %v7995_v11 = vshll.u32 %v10366_v54, 16  ;;  %v14849_v62 = vpop.permute.xlu1 %8574 }
 0x819   : > { %v7969_v19 = vrot.slane %v7967_v21, 7  ;;  %v7975_v44 = vshrl.u32 %v10364_v43, 16  ;;  %v7978_v12 = vshll.u32 %v10364_v43, 16  ;;  %v8737_v21 = vpop.permute.xlu0 %8736  ;;  %v8177_v43 = vld [vmem:[#allocation2 + $0xb0] sm:$0x1] }
 0x81a   : > { %v7989_v1 = vor.u32 %v7987_v41, %v7986_v3  ;;  %v7994_v7 = vrot.slane %v7992_v60, 7  ;;  %v10668_v48 = vpop.f32.mrb[76].mxu1  ;;  %v7990_v15 = vrot.slane %v7986_v3, 4 }
 0x81b   : > { %v7972_v40 = vor.u32 %v7970_v56, %v7969_v19  ;;  %v7977_v17 = vrot.slane %v7975_v44, 7  ;;  %v7628_v22 = vadd.f32 %v14731_v34, %v10668_v48  ;;  %v7619_v26 = vpop.f32.mrb[77].mxu1  ;;  %v7973_v55 = vrot.slane %v7969_v19, 4  ;;  %8754 = vrot.lane.b32.xlu1 %v14847_v58, %s11096_s21  ;;  %8904 = vrot.lane.b32.xlu0 %v14836_v42, %s11100_s16 }
 0x81c   : > { %v8174_v38 = vsel %vm12065_vm12, %v7989_v1, %v8173_v6  ;;  %v7997_v41 = vor.u32 %v7995_v11, %v7994_v7  ;;  %v7999_v60 = vrot.slane %v7994_v7, 4  ;;  %v10669_v54 = vpop.f32.mrb[78].mxu1  ;;  %v8987_v19 = vsel %vm1931_vm9, %v14811_v57, %v14763_v20  ;;  %v8170_v6 = vld [vmem:[#allocation2 + $0xa4] sm:$0x1] }
 0x81d   : > { %8175 = vst [vmem:[#allocation2 + $0xa8] sm:$0xf] %v8174_v38  ;;  %v8167_v3 = vsel %vm12065_vm12, %v7972_v40, %v8166_v47  ;;  %v7980_v56 = vor.u32 %v7978_v12, %v7977_v17  ;;  %v7982_v44 = vrot.slane %v7977_v17, 4  ;;  %v7664_v48 = vmax.f32 %v7628_v22, 0.0  ;;  %v7622_v1 = vpop.f32.mrb[79].mxu1  ;;  %v14868_v40 = vpop.permute.xlu1 %8695 }
 0x81e   : > { %8168 = vst [vmem:[#allocation2 + $0x9c] sm:$0xf] %v8167_v3  ;;  %v7998_v7 = vsel %vm11333_vm11, %v7990_v15, %v7997_v41  ;;  %v8178_v11 = vsel %vm11302_vm3, %v7999_v60, %v8177_v43  ;;  %v7620_v38 = vadd.f32 %v14731_v34, %v7619_v26  ;;  %v14875_v12 = vpop.permute.xlu0 %8812  ;;  %v15550_v15 = vshrl.u32 %v14799_v51, 16 }
 0x81f   : > { %8176 = vst.msk [vmem:[#allocation2 + $0xac] sm:$0xf] %vm15542_vm1, %v7998_v7  ;;  %8179 = vst [vmem:[#allocation2 + $0xb0] sm:$0x1] %v8178_v11  ;;  %v7981_v17 = vsel %vm11333_vm11, %v7973_v55, %v7980_v56  ;;  %v8171_v20 = vsel %vm11302_vm3, %v7982_v44, %v8170_v6  ;;  %v10369_v57 = vpack.c.bf16 %v7664_v48, %v7664_v48  ;;  %8592 = vrot.lane.b32.xlu1 %v14847_v58, %s11091_s15  ;;  %v8187_v6 = vld [vmem:[#allocation2 + $0xc0] sm:$0xf] }
 0x820   : > { %v8514_v22 = vor.u32 %v8513_v29, %v15550_v15  ;;  %8169 = vst.msk [vmem:[#allocation2 + $0xa0] sm:$0xf] %vm15551_vm8, %v7981_v17  ;;  %8172 = vst [vmem:[#allocation2 + $0xa4] sm:$0x1] %v8171_v20  ;;  %v7662_v26 = vmax.f32 %v7620_v38, 0.0  ;;  %v9019_v47 = vsel %vm1997_vm0, %v8987_v19, %v8737_v21  ;;  %v7631_v41 = vadd.f32 %v14731_v34, %v10669_v54 }
 0x821   : > { %v7623_v60 = vadd.f32 %v14731_v34, %v7622_v1  ;;  %8787 = vrot.lane.b32.xlu0 %v14836_v42, %s11101_s20  ;;  %v8018_v55 = vshrl.u32 %v10369_v57, 16  ;;  %v9051_v29 = vsel %vm3671_vm13, %v9019_v47, %v14826_v45  ;;  %v15552_v3 = vshll.u32 %v14804_v32, 16  ;;  %v14893_v34 = vpop.permute.xlu1 %8810 }
 0x822   : > { %v10367_v56 = vpack.c.bf16 %v7662_v26, %v7662_v26  ;;  %v9083_v21 = vsel %vm3704_vm5, %v9051_v29, %v14751_v23  ;;  %v7665_v54 = vmax.f32 %v7631_v41, 0.0  ;;  %v8021_v1 = vshll.u32 %v10369_v57, 16  ;;  %v14897_v19 = vpop.permute.xlu0 %8693  ;;  %v11008_v26 = vld [vmem:[#allocation2 + $0x24] sm:$0xff]  }
 0x823   : > { %v8518_v43 = vrot.slane %v15552_v3, 1  ;;  %v7663_v44 = vmax.f32 %v7623_v60, 0.0  ;;  %v8020_v48 = vrot.slane %v8018_v55, 7  ;;  %v9115_v42 = vsel %vm3737_vm7, %v9083_v21, %v14839_v0 }
 0x824   : > { %v8001_v7 = vshrl.u32 %v10367_v56, 16  ;;  %v10370_v32 = vpack.c.bf16 %v7665_v54, %v7665_v54  ;;  %v9147_v38 = vsel %vm3770_vm10, %v9115_v42, %v14777_v24  ;;  %v8004_v20 = vshll.u32 %v10367_v56, 16  ;;  %v8180_v56 = vld [vmem:[#allocation2 + $0xb4] sm:$0xf] }
 0x825   : > { %v8519_v45 = vsel %vm1222_vm4, %v8514_v22, %v8518_v43  ;;  %v10368_v11 = vpack.c.bf16 %v7663_v44, %v7663_v44  ;;  %8871 = vrot.lane.b32.xlu0 %v14847_v58, %s11102_s25  ;;  %v8023_v23 = vor.u32 %v8021_v1, %v8020_v48  ;;  %10684 = vmatprep.mubr.msk.bf16.mxu0 %vm15548_vm14, %v9147_v38  ;;  %v14906_v15 = vpop.permute.xlu1 %8777  ;;  %v8024_v3 = vrot.slane %v8020_v48, 4  ;;  %v8184_v38 = vld [vmem:[#allocation2 + $0xbc] sm:$0x1] }
 0x826   : > { %8869 = vrot.lane.b32.xlu1 %v8519_v45, %s11102_s25  ;;  %v8003_v17 = vrot.slane %v8001_v7, 7  ;;  %v8026_v0 = vshrl.u32 %v10370_v32, 16  ;;  %v8925_v58 = vsel %vm1799_vm15, %v11008_v26, %v14849_v62  ;;  %v8029_v47 = vshll.u32 %v10370_v32, 16  ;;  %v14912_v41 = vpop.permute.xlu0 %8894  ;;  %v14920_v42 = vld [vmem:[#allocation2 + $0xa8] sm:$0xff]  }
 0x827   : > { %v8009_v57 = vshrl.u32 %v10368_v11, 16  ;;  %v8188_v22 = vsel %vm12065_vm12, %v8023_v23, %v8187_v6  ;;  %v8012_v29 = vshll.u32 %v10368_v11, 16  ;;  %v8957_v7 = vsel %vm1865_vm2, %v8925_v58, %v14785_v50  ;;  %v8191_v32 = vld [vmem:[#allocation2 + $0xc8] sm:$0x1]  ;;  %v14942_v59 = vld [vmem:[#allocation2 + $0x9c] sm:$0xff]  }
 0x828   : > { %8189 = vst [vmem:[#allocation2 + $0xc0] sm:$0xf] %v8188_v22  ;;  %v8006_v24 = vor.u32 %v8004_v20, %v8003_v17  ;;  %v8028_v60 = vrot.slane %v8026_v0, 7  ;;  %v8007_v43 = vrot.slane %v8003_v17, 4  ;;  %v8989_v0 = vsel %vm1931_vm9, %v8957_v7, %v14749_v36 }
 0x829   : > { %v8011_v55 = vrot.slane %v8009_v57, 7  ;;  %8752 = vrot.lane.b32.xlu0 %v8519_v45, %s11096_s21  ;;  %v14918_v1 = vpop.permute.xlu1 %8658  ;;  %v10962_v48 = vld [vmem:[#allocation2 + $0xb0] ss:$0 sps:$4 sm:$0x11]   ;;  %v8642_v22 = vrot.slane %v14920_v42, 1  ;;  %v8547_v58 = vshll.u32 %v14920_v42, 16  ;;  %v9021_v49 = vsel %vm1997_vm0, %v8989_v0, %v14802_v35 }
 0x82a   : > { %8590 = vrot.lane.b32.xlu1 %v8519_v45, %s11091_s15  ;;  %v8181_v21 = vsel %vm12065_vm12, %v8006_v24, %v8180_v56  ;;  %v8031_v54 = vor.u32 %v8029_v47, %v8028_v60  ;;  %v8033_v62 = vrot.slane %v8028_v60, 4  ;;  %v14924_v45 = vpop.permute.xlu0 %8660  ;;  %vm15553_vm12 = vmmov %vm15542_vm1  ;;  %v10963_v20 = vld [vmem:[#allocation2 + $0xa4] ss:$0 sps:$4 sm:$0x11]   ;;  %v8643_v26 = vrot.slane %v10962_v48, 1  ;;  %v11009_v35 = vld [vmem:[#allocation2 + $0x30] sm:$0xff]  }
 0x82b   : > { %v8014_v44 = vor.u32 %v8012_v29, %v8011_v55  ;;  %8182 = vst [vmem:[#allocation2 + $0xb4] sm:$0xf] %v8181_v21  ;;  %v8016_v11 = vrot.slane %v8011_v55, 4  ;;  %v8639_v60 = vrot.slane %v14942_v59, 1  ;;  %v8640_v55 = vrot.slane %v10963_v20, 1 }
 0x82c   : > { %v8032_v14 = vsel %vm11333_vm11, %v8024_v3, %v8031_v54  ;;  %v8192_v23 = vsel %vm11302_vm3, %v8033_v62, %v8191_v32  ;;  %v8644_v36 = vsel %vm1447_vm6, %v8642_v22, %v8643_v26  ;;  %v8549_v29 = vrot.slane %v8547_v58, 1 }
 0x82d   : > { %v8015_v6 = vsel %vm11333_vm11, %v8007_v43, %v8014_v44  ;;  %8828 = vrot.lane.b32.xlu0 %v14920_v42, %s11099_s14  ;;  %8190 = vst.msk [vmem:[#allocation2 + $0xc4] sm:$0xf] %vm15553_vm12, %v8032_v14  ;;  %8193 = vst [vmem:[#allocation2 + $0xc8] sm:$0x1] %v8192_v23  ;;  %v8185_v50 = vsel %vm11302_vm3, %v8016_v11, %v8184_v38  ;;  %v14940_v17 = vpop.permute.xlu1 %8742  ;;  %v9053_v3 = vsel %vm3671_vm13, %v9021_v49, %v14775_v61 }
 0x82e   : > { %8711 = vrot.lane.b32.xlu1 %v14920_v42, %s11094_s22  ;;  %8183 = vst.msk [vmem:[#allocation2 + $0xb8] sm:$0xf] %vm15542_vm1, %v8015_v6  ;;  %8186 = vst [vmem:[#allocation2 + $0xbc] sm:$0x1] %v8185_v50  ;;  %v8893_v57 = vpop.permute.xlu0 %8892  ;;  %v8545_v43 = vshrl.u32 %v14920_v42, 16  ;;  %v8552_v56 = vshll.u32 %v10962_v48, 16  ;;  %v8927_v21 = vsel %vm1799_vm15, %v11009_v35, %v14822_v37  ;;  %v9085_v54 = vsel %vm3704_vm5, %v9053_v3, %v14893_v34 }
 0x82f   : > { %v8641_v32 = vsel %vm1447_vm6, %v8639_v60, %v8640_v55  ;;  %v8535_v14 = vshll.u32 %v14942_v59, 16  ;;  %vm15554_vm3 = vmmov %vm15548_vm14  ;;  %v8959_v34 = vsel %vm1865_vm2, %v8927_v21, %v14787_v63  ;;  %v8533_v22 = vshrl.u32 %v14942_v59, 16 }
 0x830   : > { %v8550_v11 = vor.u32 %v8549_v29, %v8545_v43  ;;  %v8554_v37 = vrot.slane %v8552_v56, 1  ;;  %v8991_v23 = vsel %vm1931_vm9, %v8959_v34, %v14897_v19  ;;  %v8540_v26 = vshll.u32 %v10963_v20, 16  ;;  %vm15555_vm11 = vmmov %vm15554_vm3 }
 0x831   : > { %8709 = vrot.lane.b32.xlu0 %v14942_v59, %s11094_s22  ;;  %v14954_v47 = vpop.permute.xlu1 %8580  ;;  %v8537_v50 = vrot.slane %v8535_v14, 1  ;;  %vm15556_vm8 = vmmov %vm15554_vm3 }
 0x832   : > { %8826 = vrot.lane.b32.xlu1 %v14942_v59, %s11099_s14  ;;  %v8776_v24 = vpop.permute.xlu0 %8775  ;;  %v8555_v38 = vsel %vm1222_vm4, %v8550_v11, %v8554_v37  ;;  %v8542_v20 = vrot.slane %v8540_v26, 1  ;;  %vm15557_vm14 = vmmov %vm15554_vm3 }
 0x833   : > { %vm15560_vm12 = vmmov %vm15554_vm3 }
 0x834   : > { %v10964_v35 = vld [vmem:[#allocation2 + $0xc0] sm:$0xff]   ;;  %v10966_v21 = vld [vmem:[#allocation2 + $0xc8] ss:$0 sps:$4 sm:$0x11]   ;;  %vm15561_vm1 = vmmov %vm15554_vm3 }
 0x835   : > { %8910 = vrot.lane.b32.xlu0 %v8644_v36, %s11100_s16  ;;  %v8858_v62 = vpop.permute.xlu1 %8857  ;;  %v8764_v11 = vrot.slane %v10964_v35, 1  ;;  %v8765_v14 = vrot.slane %v10966_v21, 1  ;;  %v8721_v26 = vshrl.u32 %v10964_v35, 16 }
 0x836   : > { %8793 = vrot.lane.b32.xlu1 %v8644_v36, %s11101_s20  ;;  %v9117_v44 = vsel %vm3737_vm7, %v9085_v54, %v8858_v62  ;;  %v8860_v7 = vpop.permute.xlu0 %8859  ;;  %v15010_v62 = vld [vmem:[#allocation2 + $0xb4] sm:$0xff]  }
 0x837   : > { %v9149_v61 = vsel %vm3770_vm10, %v9117_v44, %v8893_v57  ;;  %v10967_v44 = vld [vmem:[#allocation2 + $0xbc] ss:$0 sps:$4 sm:$0x11]   ;;  %v8645_v34 = vrot.slane %v15010_v62, 1 }
 0x838   : > { %10685 = vmatmul.mubr.msk.bf16.gmra.mrb[52].mxu0 %vm15554_vm3, %v9149_v61 }
 0x839   : > { %8676 = vrot.lane.b32.xlu0 %v8644_v36, %s11097_s30  ;;  %v8579_v48 = vpop.permute.xlu1 %8578  ;;  %v8538_v36 = vor.u32 %v8537_v50, %v8533_v22  ;;  %v8766_v50 = vsel %vm1447_vm6, %v8764_v11, %v8765_v14  ;;  %v11012_v11 = vld [vmem:[#allocation2 + $0xcc] sm:$0xff]  }
 0x83a   : > { %8674 = vrot.lane.b32.xlu1 %v8641_v32, %s11097_s30  ;;  %v8741_v6 = vpop.permute.xlu0 %8740 }
 0x83b   : > { %v9023_v0 = vsel %vm1997_vm0, %v8991_v23, %v8741_v6  ;;  %v8723_v23 = vshll.u32 %v10964_v35, 16 }
 0x83c   : > { %v9055_v57 = vsel %vm3671_vm13, %v9023_v0, %v8776_v24 }
 0x83d   : > { %8908 = vrot.lane.b32.xlu0 %v8641_v32, %s11100_s16  ;;  %v9087_v63 = vsel %vm3704_vm5, %v9055_v57, %v14875_v12  ;;  %v14986_v58 = vpop.permute.xlu1 %8699  ;;  %v8543_v12 = vsel %vm1222_vm4, %v8538_v36, %v8542_v20  ;;  %v8725_v0 = vrot.slane %v8723_v23, 1  ;;  %v8559_v57 = vshll.u32 %v15010_v62, 16  ;;  %v11011_v36 = vld [vmem:[#allocation2 + $0x48] sm:$0xff]  }
 0x83e   : > { %8758 = vrot.lane.b32.xlu1 %v8555_v38, %s11096_s21  ;;  %v14988_v19 = vpop.permute.xlu0 %8816  ;;  %v9119_v49 = vsel %vm3737_vm7, %v9087_v63, %v8860_v7  ;;  %v8728_v63 = vshll.u32 %v10966_v21, 16  ;;  %v8557_v21 = vshrl.u32 %v15010_v62, 16 }
 0x83f   : > { %v9151_v24 = vsel %vm3770_vm10, %v9119_v49, %v14912_v41  ;;  %v11010_v41 = vld [vmem:[#allocation2 + $0x3c] sm:$0xff]  }
 0x840   : > { %10688 = vmatprep.mubr.msk.bf16.mxu0 %vm15555_vm11, %v9151_v24  ;;  %v8929_v43 = vsel %vm1799_vm15, %v11010_v41, %v8579_v48  ;;  %v8646_v48 = vrot.slane %v10967_v44, 1  ;;  %v8931_v24 = vsel %vm1799_vm15, %v11011_v36, %v14954_v47  ;;  %v8726_v41 = vor.u32 %v8725_v0, %v8721_v26  ;;  %vm15563_vm11 = vmmov %vm15561_vm1 }
 0x841   : > { %8791 = vrot.lane.b32.xlu0 %v8641_v32, %s11101_s20  ;;  %v8815_v60 = vpop.permute.xlu1 %8814  ;;  %v8961_v7 = vsel %vm1865_vm2, %v8929_v43, %v14918_v1  ;;  %v8561_v43 = vrot.slane %v8559_v57, 1  ;;  %v8842_v47 = vshll.u32 %v11012_v11, 16  ;;  %v8963_v14 = vsel %vm1865_vm2, %v8931_v24, %v14924_v45 }
 0x842   : > { %8596 = vrot.lane.b32.xlu1 %v8555_v38, %s11091_s15  ;;  %v8698_v55 = vpop.permute.xlu0 %8697  ;;  %v8993_v61 = vsel %vm1931_vm9, %v8961_v7, %v14868_v40  ;;  %v8647_v40 = vsel %vm1447_vm6, %v8645_v34, %v8646_v48  ;;  %v8564_v7 = vshll.u32 %v10967_v44, 16 }
 0x843   : > { %v9025_v1 = vsel %vm1997_vm0, %v8993_v61, %v14940_v17  ;;  %v8995_v34 = vsel %vm1931_vm9, %v8963_v14, %v8698_v55  ;;  %v8844_v57 = vrot.slane %v8842_v47, 1 }
 0x844   : > { %v9057_v22 = vsel %vm3671_vm13, %v9025_v1, %v14906_v15  ;;  %v8562_v1 = vor.u32 %v8561_v43, %v8557_v21  ;;  %v8566_v0 = vrot.slane %v8564_v7, 1 }
 0x845   : > { %8875 = vrot.lane.b32.xlu0 %v8555_v38, %s11102_s25  ;;  %v14999_v29 = vpop.permute.xlu1 %8781  ;;  %v9089_v17 = vsel %vm3704_vm5, %v9057_v22, %v8815_v60  ;;  %v8730_v60 = vrot.slane %v8728_v63, 1 }
 0x846   : > { %8873 = vrot.lane.b32.xlu1 %v8543_v12, %s11102_s25  ;;  %v15001_v3 = vpop.permute.xlu0 %8898  ;;  %v8567_v63 = vsel %vm1222_vm4, %v8562_v1, %v8566_v0 }
 0x847   : > { %v8731_v23 = vsel %vm1222_vm4, %v8726_v41, %v8730_v60  ;;  %v11013_v60 = vld [vmem:[#allocation2 + $0x54] sm:$0xff]  }
 0x849   : > { %8756 = vrot.lane.b32.xlu0 %v8543_v12, %s11096_s21  ;;  %v15006_v56 = vpop.permute.xlu1 %8662 }
 0x84a   : > { %8594 = vrot.lane.b32.xlu1 %v8543_v12, %s11091_s15  ;;  %v15008_v54 = vpop.permute.xlu0 %8664 }
 0x84d   : > { %8832 = vrot.lane.b32.xlu0 %v10964_v35, %s11099_s14  ;;  %v15016_v32 = vpop.permute.xlu1 %8746 }
 0x84e   : > { %8715 = vrot.lane.b32.xlu1 %v10964_v35, %s11094_s22  ;;  %v8897_v37 = vpop.permute.xlu0 %8896  ;;  %v10968_v35 = vld [vmem:[#allocation2 + $0xd4] ss:$0 sps:$4 sm:$0x11]  }
 0x84f   : > { %v8847_v22 = vshll.u32 %v10968_v35, 16  ;;  %v8884_v41 = vrot.slane %v10968_v35, 1 }
 0x851   : > { %8713 = vrot.lane.b32.xlu0 %v15010_v62, %s11094_s22  ;;  %v15027_v6 = vpop.permute.xlu1 %8584  ;;  %v8849_v36 = vrot.slane %v8847_v22, 1 }
 0x852   : > { %8830 = vrot.lane.b32.xlu1 %v15010_v62, %s11099_s14  ;;  %v8780_v38 = vpop.permute.xlu0 %8779 }
 0x855   : > { %8912 = vrot.lane.b32.xlu0 %v8647_v40, %s11100_s16  ;;  %v8862_v49 = vpop.permute.xlu1 %8861 }
 0x856   : > { %8797 = vrot.lane.b32.xlu1 %v8766_v50, %s11101_s20  ;;  %v9121_v20 = vsel %vm3737_vm7, %v9089_v17, %v8862_v49  ;;  %v8864_v12 = vpop.permute.xlu0 %8863 }
 0x857   : > { %v9153_v15 = vsel %vm3770_vm10, %v9121_v20, %v8897_v37 }
 0x858   : > { %10689 = vmatmul.mubr.msk.bf16.gmra.mrb[56].mxu0 %vm15556_vm8, %v9153_v15  ;;  %vm15564_vm8 = vmmov %vm15561_vm1 }
 0x859   : > { %8795 = vrot.lane.b32.xlu0 %v8647_v40, %s11101_s20  ;;  %v8583_v61 = vpop.permute.xlu1 %8582 }
 0x85a   : > { %8678 = vrot.lane.b32.xlu1 %v8647_v40, %s11097_s30  ;;  %v8745_v48 = vpop.permute.xlu0 %8744  ;;  %v8840_v40 = vshrl.u32 %v11012_v11, 16 }
 0x85b   : > { %v9027_v37 = vsel %vm1997_vm0, %v8995_v34, %v8745_v48 }
 0x85c   : > { %v9059_v44 = vsel %vm3671_vm13, %v9027_v37, %v8780_v38  ;;  %v8845_v49 = vor.u32 %v8844_v57, %v8840_v40  ;;  %v11014_v40 = vld [vmem:[#allocation2 + $0x60] sm:$0xff]  }
 0x85d   : > { %8879 = vrot.lane.b32.xlu0 %v8731_v23, %s11102_s25  ;;  %v9091_v45 = vsel %vm3704_vm5, %v9059_v44, %v14988_v19  ;;  %v15055_v55 = vpop.permute.xlu1 %8703 }
 0x85e   : > { %8762 = vrot.lane.b32.xlu1 %v8731_v23, %s11096_s21  ;;  %v8821_v26 = vpop.permute.xlu0 %8820  ;;  %v9123_v17 = vsel %vm3737_vm7, %v9091_v45, %v8864_v12  ;;  %v8850_v20 = vsel %vm1222_vm4, %v8845_v49, %v8849_v36  ;;  %v8883_v12 = vrot.slane %v11012_v11, 1  ;;  %vm15558_vm4 = vmmov %vm15554_vm3 }
 0x85f   : > { %v9155_v38 = vsel %vm3770_vm10, %v9123_v17, %v15001_v3  ;;  %v8933_v3 = vsel %vm1799_vm15, %v11013_v60, %v8583_v61 }
 0x860   : > { %10692 = vmatprep.mubr.msk.bf16.mxu0 %vm15557_vm14, %v9155_v38  ;;  %v8885_v21 = vsel %vm1447_vm6, %v8883_v12, %v8884_v41  ;;  %v8965_v14 = vsel %vm1865_vm2, %v8933_v3, %v15006_v56  ;;  %v8935_v56 = vsel %vm1799_vm15, %v11014_v40, %v15027_v6  ;;  %vm15559_vm6 = vmmov %vm15554_vm3 }
 0x861   : > { %8760 = vrot.lane.b32.xlu0 %v8567_v63, %s11096_s21  ;;  %v8819_v24 = vpop.permute.xlu1 %8818  ;;  %v8997_v35 = vsel %vm1931_vm9, %v8965_v14, %v14986_v58  ;;  %vm15562_vm3 = vmmov %vm15561_vm1  ;;  %s10210_s21 = sshll.u32 %s15615_s18, 7 }
 0x862   : > { %8877 = vrot.lane.b32.xlu1 %v8567_v63, %s11102_s25  ;;  %v8702_v19 = vpop.permute.xlu0 %8701  ;;  %v9029_v34 = vsel %vm1997_vm0, %v8997_v35, %v15016_v32  ;;  %v8967_v32 = vsel %vm1865_vm2, %v8935_v56, %v15008_v54  ;;  %vm15565_vm14 = vmmov %vm15561_vm1 }
 0x863   : > { %v9061_v61 = vsel %vm3671_vm13, %v9029_v34, %v14999_v29  ;;  %v8999_v29 = vsel %vm1931_vm9, %v8967_v32, %v8702_v19 }
 0x864   : > { %v9093_v1 = vsel %vm3704_vm5, %v9061_v61, %v8819_v24 }
 0x865   : > { %8914 = vrot.lane.b32.xlu0 %v8766_v50, %s11100_s16  ;;  %v8786_v43 = vpop.permute.xlu1 %8785 }
 0x866   : > { %8598 = vrot.lane.b32.xlu1 %v8567_v63, %s11091_s15  ;;  %v8903_v15 = vpop.permute.xlu0 %8902 }
 0x869   : > { %v8667_v7 = vpop.permute.xlu1 %8666 }
 0x86a   : > { %8881 = vrot.lane.b32.xlu1 %v8850_v20, %s11102_s25  ;;  %v8669_v47 = vpop.permute.xlu0 %8668 }
 0x86d   : > { %v8751_v50 = vpop.permute.xlu1 %8750 }
 0x86e   : > { %8916 = vrot.lane.b32.xlu1 %v8885_v21, %s11100_s16  ;;  %v8901_v11 = vpop.permute.xlu0 %8900  ;;  %s15181_s16 = scalar_lea.vmem %s15318_s11, %s10210_s21 }
 0x871   : > { %v8589_v48 = vpop.permute.xlu1 %8588 }
 0x872   : > { %v8784_v23 = vpop.permute.xlu0 %8783 }
 0x875   : > { %v8866_v37 = vpop.permute.xlu1 %8865 }
 0x876   : > { %v9125_v44 = vsel %vm3737_vm7, %v9093_v1, %v8866_v37  ;;  %v8868_v0 = vpop.permute.xlu0 %8867  ;;  %v11015_v1 = vld [vmem:[#allocation2 + $0x78] sm:$0xff]  }
 0x877   : > { %v9157_v58 = vsel %vm3770_vm10, %v9125_v44, %v8901_v11 }
 0x878   : > { %10693 = vmatmul.mubr.msk.bf16.gmra.mrb[60].mxu0 %vm15558_vm4, %v9157_v58 }
 0x879   : > { %v8587_v57 = vpop.permute.xlu1 %8586 }
 0x87a   : > { %v8749_v22 = vpop.permute.xlu0 %8748  ;;  %v8937_v19 = vsel %vm1799_vm15, %v14703_v18, %v8587_v57  ;;  %v8939_v18 = vsel %vm1799_vm15, %v11015_v1, %v8589_v48 }
 0x87b   : > { %v9031_v45 = vsel %vm1997_vm0, %v8999_v29, %v8749_v22  ;;  %v8969_v3 = vsel %vm1865_vm2, %v8937_v19, %v8667_v7 }
 0x87c   : > { %v9063_v63 = vsel %vm3671_vm13, %v9031_v45, %v8784_v23  ;;  %v9001_v21 = vsel %vm1931_vm9, %v8969_v3, %v15055_v55  ;;  %v8971_v55 = vsel %vm1865_vm2, %v8939_v18, %v8669_v47 }
 0x87d   : > { %v9095_v6 = vsel %vm3704_vm5, %v9063_v63, %v8821_v26  ;;  %v8708_v17 = vpop.permute.xlu1 %8707 }
 0x87e   : > { %v8825_v38 = vpop.permute.xlu0 %8824  ;;  %v9127_v49 = vsel %vm3737_vm7, %v9095_v6, %v8868_v0 }
 0x87f   : > { %v9159_v36 = vsel %vm3770_vm10, %v9127_v49, %v8903_v15  ;;  %v9033_v15 = vsel %vm1997_vm0, %v9001_v21, %v8751_v50 }
 0x880   : > { %10696 = vmatprep.mubr.msk.bf16.mxu0 %vm15559_vm6, %v9159_v36  ;;  %v9065_v34 = vsel %vm3671_vm13, %v9033_v15, %v8786_v43 }
 0x881   : > { %v8823_v24 = vpop.permute.xlu1 %8822 }
 0x882   : > { %v8706_v54 = vpop.permute.xlu0 %8705  ;;  %v9097_v23 = vsel %vm3704_vm5, %v9065_v34, %v8823_v24 }
 0x883   : > { %v9003_v56 = vsel %vm1931_vm9, %v8971_v55, %v8706_v54 }
 0x885   : > { %v8790_v20 = vpop.permute.xlu1 %8789 }
 0x886   : > { %v8907_v12 = vpop.permute.xlu0 %8906 }
 0x889   : > { %v8671_v41 = vpop.permute.xlu1 %8670 }
 0x88a   : > { %v8673_v60 = vpop.permute.xlu0 %8672 }
 0x88d   : > { %v8755_v26 = vpop.permute.xlu1 %8754 }
 0x88e   : > { %v8905_v14 = vpop.permute.xlu0 %8904 }
 0x891   : > { %v8593_v35 = vpop.permute.xlu1 %8592 }
 0x893   : > { %v8788_v11 = vpop.permute.xlu0 %8787 }
 0x897   : > { %v8872_v7 = vpop.permute.xlu0 %8871 }
 0x898   : > { %v8870_v61 = vpop.permute.xlu1 %8869 }
 0x899   : > { %v9129_v37 = vsel %vm3737_vm7, %v9097_v23, %v8870_v61 }
 0x89a   : > { %v9161_v40 = vsel %vm3770_vm10, %v9129_v37, %v8905_v14 }
 0x89b   : > { %10697 = vmatmul.mubr.msk.bf16.gmra.mrb[64].mxu0 %vm15560_vm12, %v9161_v40  ;;  %v8753_v44 = vpop.permute.xlu0 %8752 }
 0x89c   : > { %v8591_v50 = vpop.permute.xlu1 %8590  ;;  %v9035_v43 = vsel %vm1997_vm0, %v9003_v56, %v8753_v44 }
 0x89d   : > { %v9067_v0 = vsel %vm3671_vm13, %v9035_v43, %v8788_v11  ;;  %v8941_v6 = vsel %vm1799_vm15, %v14799_v51, %v8591_v50  ;;  %v8943_v51 = vsel %vm1799_vm15, %v14789_v4, %v8593_v35 }
 0x89e   : > { %v9099_v58 = vsel %vm3704_vm5, %v9067_v0, %v8825_v38  ;;  %v8973_v24 = vsel %vm1865_vm2, %v8941_v6, %v8671_v41 }
 0x89f   : > { %v8829_v32 = vpop.permute.xlu0 %8828  ;;  %v9131_v57 = vsel %vm3737_vm7, %v9099_v58, %v8872_v7  ;;  %v9005_v54 = vsel %vm1931_vm9, %v8973_v24, %v8708_v17  ;;  %v8975_v17 = vsel %vm1865_vm2, %v8943_v51, %v8673_v60 }
 0x8a0   : > { %v8712_v48 = vpop.permute.xlu1 %8711  ;;  %v9163_v29 = vsel %vm3770_vm10, %v9131_v57, %v8907_v12  ;;  %v9037_v3 = vsel %vm1997_vm0, %v9005_v54, %v8755_v26 }
 0x8a1   : > { %10700 = vmatprep.mubr.msk.bf16.mxu0 %vm15561_vm1, %v9163_v29  ;;  %v9069_v14 = vsel %vm3671_vm13, %v9037_v3, %v8790_v20 }
 0x8a3   : > { %v8710_v47 = vpop.permute.xlu0 %8709 }
 0x8a4   : > { %v8827_v22 = vpop.permute.xlu1 %8826  ;;  %v9007_v61 = vsel %vm1931_vm9, %v8975_v17, %v8710_v47 }
 0x8a5   : > { %v9101_v15 = vsel %vm3704_vm5, %v9069_v14, %v8827_v22 }
 0x8a7   : > { %v8911_v63 = vpop.permute.xlu0 %8910 }
 0x8a8   : > { %v8794_v45 = vpop.permute.xlu1 %8793 }
 0x8ab   : > { %v8677_v36 = vpop.permute.xlu0 %8676 }
 0x8ac   : > { %v8675_v49 = vpop.permute.xlu1 %8674 }
 0x8af   : > { %v8909_v19 = vpop.permute.xlu0 %8908 }
 0x8b0   : > { %v8759_v38 = vpop.permute.xlu1 %8758 }
 0x8b3   : > { %v8792_v21 = vpop.permute.xlu0 %8791 }
 0x8b4   : > { %v8597_v12 = vpop.permute.xlu1 %8596 }
 0x8b5   : > { %v8947_v22 = vsel %vm1799_vm15, %v14920_v42, %v8597_v12 }
 0x8b7   : > { %v8876_v23 = vpop.permute.xlu0 %8875 }
 0x8b8   : > { %v8874_v11 = vpop.permute.xlu1 %8873 }
 0x8b9   : > { %v9133_v34 = vsel %vm3737_vm7, %v9101_v15, %v8874_v11 }
 0x8ba   : > { %v9165_v41 = vsel %vm3770_vm10, %v9133_v34, %v8909_v19 }
 0x8bb   : > { %10701 = vmatmul.mubr.msk.bf16.gmra.mrb[68].mxu0 %vm15562_vm3, %v9165_v41  ;;  %v8757_v1 = vpop.permute.xlu0 %8756 }
 0x8bc   : > { %v8595_v26 = vpop.permute.xlu1 %8594  ;;  %v9039_v20 = vsel %vm1997_vm0, %v9007_v61, %v8757_v1  ;;  %v15168_v61 = vld [vmem:[%s15317_s10] ss:$0 sm:$0xff] }
 0x8bd   : > { %v9071_v18 = vsel %vm3671_vm13, %v9039_v20, %v8792_v21  ;;  %v8945_v50 = vsel %vm1799_vm15, %v14942_v59, %v8595_v26  ;;  %v8979_v59 = vsel %vm1865_vm2, %v8947_v22, %v8677_v36 }
 0x8be   : > { %v9103_v37 = vsel %vm3704_vm5, %v9071_v18, %v8829_v32  ;;  %v8977_v43 = vsel %vm1865_vm2, %v8945_v50, %v8675_v49 }
 0x8bf   : > { %v8833_v35 = vpop.permute.xlu0 %8832  ;;  %v9135_v7 = vsel %vm3737_vm7, %v9103_v37, %v8876_v23  ;;  %v9009_v58 = vsel %vm1931_vm9, %v8977_v43, %v8712_v48 }
 0x8c0   : > { %v8716_v4 = vpop.permute.xlu1 %8715  ;;  %v9167_v40 = vsel %vm3770_vm10, %v9135_v7, %v8911_v63  ;;  %v9041_v57 = vsel %vm1997_vm0, %v9009_v58, %v8759_v38 }
 0x8c1   : > { %10704 = vmatprep.mubr.msk.bf16.mxu0 %vm15563_vm11, %v9167_v40  ;;  %v9073_v63 = vsel %vm3671_vm13, %v9041_v57, %v8794_v45 }
 0x8c3   : > { %v8714_v60 = vpop.permute.xlu0 %8713 }
 0x8c4   : > { %v8831_v55 = vpop.permute.xlu1 %8830  ;;  %v9011_v49 = vsel %vm1931_vm9, %v8979_v59, %v8714_v60 }
 0x8c5   : > { %v9105_v6 = vsel %vm3704_vm5, %v9073_v63, %v8831_v55 }
 0x8c7   : > { %v8913_v44 = vpop.permute.xlu0 %8912 }
 0x8c8   : > { %v8798_v56 = vpop.permute.xlu1 %8797 }
 0x8cb   : > { %v8796_v32 = vpop.permute.xlu0 %8795 }
 0x8cc   : > { %v8679_v0 = vpop.permute.xlu1 %8678 }
 0x8cf   : > { %v8880_v47 = vpop.permute.xlu0 %8879 }
 0x8d0   : > { %v8763_v29 = vpop.permute.xlu1 %8762 }
 0x8d3   : > { %v8761_v48 = vpop.permute.xlu0 %8760 }
 0x8d4   : > { %v8878_v24 = vpop.permute.xlu1 %8877  ;;  %v9043_v19 = vsel %vm1997_vm0, %v9011_v49, %v8761_v48 }
 0x8d5   : > { %v9137_v54 = vsel %vm3737_vm7, %v9105_v6, %v8878_v24  ;;  %v9075_v3 = vsel %vm3671_vm13, %v9043_v19, %v8796_v32 }
 0x8d6   : > { %v9169_v38 = vsel %vm3770_vm10, %v9137_v54, %v8913_v44  ;;  %v9107_v45 = vsel %vm3704_vm5, %v9075_v3, %v8833_v35 }
 0x8d7   : > { %10705 = vmatmul.mubr.msk.bf16.gmra.mrb[72].mxu0 %vm15564_vm8, %v9169_v38  ;;  %v9139_v12 = vsel %vm3737_vm7, %v9107_v45, %v8880_v47  ;;  %v8915_v21 = vpop.permute.xlu0 %8914 }
 0x8d8   : > { %v8599_v42 = vpop.permute.xlu1 %8598  ;;  %v9171_v15 = vsel %vm3770_vm10, %v9139_v12, %v8915_v21 }
 0x8d9   : > { %v8949_v36 = vsel %vm1799_vm15, %v15010_v62, %v8599_v42  ;;  %10708 = vmatprep.mubr.msk.bf16.mxu0 %vm15565_vm14, %v9171_v15  ;;  %vm15566_vm15 = vmmov %vm15561_vm1 }
 0x8da   : > { %v8981_v14 = vsel %vm1865_vm2, %v8949_v36, %v8679_v0 }
 0x8db   : > { %v9013_v11 = vsel %vm1931_vm9, %v8981_v14, %v8716_v4 }
 0x8dc   : > { %v9045_v51 = vsel %vm1997_vm0, %v9013_v11, %v8763_v29  ;;  %v8882_v34 = vpop.permute.xlu1 %8881  ;;  %vm15567_vm0 = vcmask 60416  }
 0x8dd   : > { %v9077_v23 = vsel %vm3671_vm13, %v9045_v51, %v8798_v56  ;;  %vm15568_vm2 = vmmov %vm15567_vm0 }
 0x8de   : > { %v9109_v62 = vsel %vm3704_vm5, %v9077_v23, %v14658_v27  ;;  %vm15569_vm9 = vmmov %vm15567_vm0 }
 0x8df   : > { %v9141_v41 = vsel %vm3737_vm7, %v9109_v62, %v8882_v34  ;;  %vm15570_vm5 = vmmov %vm15567_vm0 }
 0x8e0   : > { %v8917_v17 = vpop.permute.xlu1 %8916  ;;  %vm15571_vm13 = vmmov %vm15567_vm0 }
 0x8e1   : > { %v9173_v26 = vsel %vm3770_vm10, %v9141_v41, %v8917_v17  ;;  %vm15572_vm7 = vmmov %vm15567_vm0 }
 0x8e2   : > { %10709 = vmatmul.mubr.msk.bf16.gmra.mrb[76].mxu0 %vm15566_vm15, %v9173_v26  ;;  %vm15573_vm10 = vmmov %vm15567_vm0 }
 0x8e3   : > { %vm15574_vm4 = vmmov %vm15567_vm0 }
 0x8e4   : > { %vm15575_vm6 = vmmov %vm15567_vm0 }
 0x8e5   : > { %vm15576_vm12 = vmmov %vm15567_vm0 }
 0x8e6   : > { %vm15577_vm1 = vmmov %vm15567_vm0 }
 0x8e7   : > { %vm15578_vm3 = vmmov %vm15567_vm0 }
 0x8e8   : > { %vm15581_vm11 = vmmov %vm15567_vm0 }
 0x8e9   : > { %v10682_v1 = vpop.f32.mrb[48].mxu0  ;;  %vm15582_vm8 = vmmov %vm15567_vm0 }
 0x8ea   : > { %v9295_v20 = vadd.f32 %v10682_v1, %v15168_v61  ;;  %v9286_v18 = vpop.f32.mrb[49].mxu0  ;;  %vm15583_vm14 = vmmov %vm15567_vm0 }
 0x8eb   : > { %v9287_v37 = vadd.f32 %v15168_v61, %v9286_v18  ;;  %v10683_v4 = vpop.f32.mrb[50].mxu0  ;;  %vm15584_vm15 = vmmov %vm15567_vm0 }
 0x8ec   : > { %v9415_v27 = vadd.f32 %v9295_v20, %v13633_v2  ;;  %v9298_v35 = vadd.f32 %v10683_v4, %v15168_v61  ;;  %v9289_v7 = vpop.f32.mrb[51].mxu0 }
 0x8ed   : > { %v9413_v40 = vadd.f32 %v9287_v37, %v13636_v39  ;;  %v9290_v55 = vadd.f32 %v15168_v61, %v9289_v7 }
 0x8ee   : > { %v9447_v60 = vmax.f32 %v9415_v27, 0.0  ;;  %v9416_v50 = vadd.f32 %v9298_v35, %v13641_v16 }
 0x8ef   : > { %v9445_v2 = vmax.f32 %v9413_v40, 0.0  ;;  %v9414_v56 = vadd.f32 %v9290_v55, %v13645_v33 }
 0x8f0   : > { %v10373_v44 = vpack.c.bf16 %v9447_v60, %v9447_v60  ;;  %v9448_v43 = vmax.f32 %v9416_v50, 0.0 }
 0x8f1   : > { %v10371_v39 = vpack.c.bf16 %v9445_v2, %v9445_v2  ;;  %v9446_v0 = vmax.f32 %v9414_v56, 0.0  ;;  %v15579_v2 = vld [vmem:[#allocation44_spill] sm:$0xff] }
 0x8f2   : > { %9607 = vst.msk [vmem:[%s15181_s16 + $0x8] sm:$0xf] %vm15567_vm0, %v10373_v44  ;;  %v10374_v58 = vpack.c.bf16 %v9448_v43, %v9448_v43  ;;  %v15580_v43 = vld [vmem:[#allocation45_spill] sm:$0xff] }
 0x8f3   : > { %9605 = vst.msk [vmem:[%s15181_s16] sm:$0xf] %vm15568_vm2, %v10371_v39  ;;  %v10372_v16 = vpack.c.bf16 %v9446_v0, %v9446_v0  ;;  %vm15589_vm2 = vmmov %vm15567_vm0 }
 0x8f4   : > { %9608 = vst.msk [vmem:[%s15181_s16 + $0xc] sm:$0xf] %vm15569_vm9, %v10374_v58  ;;  %vm15590_vm9 = vmmov %vm15567_vm0 }
 0x8f5   : > { %9606 = vst.msk [vmem:[%s15181_s16 + $0x4] sm:$0xf] %vm15570_vm5, %v10372_v16  ;;  %vm15591_vm5 = vmmov %vm15567_vm0 }
 0x90b   : > { %v10686_v32 = vpop.f32.mrb[52].mxu0 }
 0x90c   : > { %v9311_v57 = vadd.f32 %v10686_v32, %v15168_v61  ;;  %v9302_v29 = vpop.f32.mrb[53].mxu0 }
 0x90d   : > { %v9303_v33 = vadd.f32 %v15168_v61, %v9302_v29  ;;  %v10687_v22 = vpop.f32.mrb[54].mxu0 }
 0x90e   : > { %v9419_v47 = vadd.f32 %v9311_v57, %v13693_v46  ;;  %v9314_v63 = vadd.f32 %v10687_v22, %v15168_v61  ;;  %v9305_v6 = vpop.f32.mrb[55].mxu0 }
 0x90f   : > { %v9417_v59 = vadd.f32 %v9303_v33, %v13696_v31  ;;  %v9306_v24 = vadd.f32 %v15168_v61, %v9305_v6 }
 0x910   : > { %v9451_v49 = vmax.f32 %v9419_v47, 0.0  ;;  %v9420_v54 = vadd.f32 %v9314_v63, %v13701_v9  ;;  %v15585_v63 = vld [vmem:[#allocation15_spill] sm:$0xff] }
 0x911   : > { %v9449_v48 = vmax.f32 %v9417_v59, 0.0  ;;  %v9418_v19 = vadd.f32 %v9306_v24, %v13705_v30 }
 0x912   : > { %v10377_v38 = vpack.c.bf16 %v9451_v49, %v9451_v49  ;;  %v9452_v3 = vmax.f32 %v9420_v54, 0.0  ;;  %v15586_v49 = vld [vmem:[#allocation10_spill] sm:$0xff] }
 0x913   : > { %v10375_v42 = vpack.c.bf16 %v9449_v48, %v9449_v48  ;;  %v9450_v45 = vmax.f32 %v9418_v19, 0.0 }
 0x914   : > { %9611 = vst.msk [vmem:[%s15181_s16 + $0x18] sm:$0xf] %vm15571_vm13, %v10377_v38  ;;  %v10378_v46 = vpack.c.bf16 %v9452_v3, %v9452_v3  ;;  %v15587_v38 = vld [vmem:[#allocation9_spill] sm:$0xff]  ;;  %vm15596_vm13 = vmmov %vm15567_vm0 }
 0x915   : > { %9609 = vst.msk [vmem:[%s15181_s16 + $0x10] sm:$0xf] %vm15572_vm7, %v10375_v42  ;;  %v10376_v36 = vpack.c.bf16 %v9450_v45, %v9450_v45  ;;  %v15588_v45 = vld [vmem:[#allocation11_spill] sm:$0xff]  ;;  %vm15597_vm7 = vmmov %vm15567_vm0 }
 0x916   : > { %9612 = vst.msk [vmem:[%s15181_s16 + $0x1c] sm:$0xf] %vm15573_vm10, %v10378_v46  ;;  %vm15598_vm10 = vmmov %vm15567_vm0 }
 0x917   : > { %9610 = vst.msk [vmem:[%s15181_s16 + $0x14] sm:$0xf] %vm15574_vm4, %v10376_v36  ;;  %vm15599_vm4 = vmmov %vm15567_vm0 }
 0x92b   : > { %v10690_v31 = vpop.f32.mrb[56].mxu0 }
 0x92c   : > { %v9327_v9 = vadd.f32 %v10690_v31, %v15168_v61  ;;  %v9318_v12 = vpop.f32.mrb[57].mxu0 }
 0x92d   : > { %v9319_v30 = vadd.f32 %v15168_v61, %v9318_v12  ;;  %v10691_v21 = vpop.f32.mrb[58].mxu0 }
 0x92e   : > { %v9423_v14 = vadd.f32 %v9327_v9, %v13745_v8  ;;  %v9330_v15 = vadd.f32 %v10691_v21, %v15168_v61  ;;  %v9321_v11 = vpop.f32.mrb[59].mxu0 }
 0x92f   : > { %v9421_v51 = vadd.f32 %v9319_v30, %v13748_v5  ;;  %v9322_v34 = vadd.f32 %v15168_v61, %v9321_v11 }
 0x930   : > { %v9455_v23 = vmax.f32 %v9423_v14, 0.0  ;;  %v9424_v62 = vadd.f32 %v9330_v15, %v13754_v25 }
 0x931   : > { %v9453_v41 = vmax.f32 %v9421_v51, 0.0  ;;  %v9422_v17 = vadd.f32 %v9322_v34, %v13760_v13 }
 0x932   : > { %v10381_v26 = vpack.c.bf16 %v9455_v23, %v9455_v23  ;;  %v9456_v1 = vmax.f32 %v9424_v62, 0.0  ;;  %v15592_v23 = vld [vmem:[#allocation12_spill] sm:$0xff] }
 0x933   : > { %v10379_v20 = vpack.c.bf16 %v9453_v41, %v9453_v41  ;;  %v9454_v18 = vmax.f32 %v9422_v17, 0.0 }
 0x934   : > { %9615 = vst.msk [vmem:[%s15181_s16 + $0x28] sm:$0xf] %vm15575_vm6, %v10381_v26  ;;  %v10382_v8 = vpack.c.bf16 %v9456_v1, %v9456_v1  ;;  %v15593_v26 = vld [vmem:[#allocation13_spill] sm:$0xff]  ;;  %vm15604_vm6 = vmmov %vm15567_vm0 }
 0x935   : > { %9613 = vst.msk [vmem:[%s15181_s16 + $0x20] sm:$0xf] %vm15576_vm12, %v10379_v20  ;;  %v10380_v37 = vpack.c.bf16 %v9454_v18, %v9454_v18  ;;  %vm15605_vm12 = vmmov %vm15567_vm0 }
 0x936   : > { %9616 = vst.msk [vmem:[%s15181_s16 + $0x2c] sm:$0xf] %vm15577_vm1, %v10382_v8  ;;  %v15594_v8 = vld [vmem:[#allocation14_spill] sm:$0xff]  ;;  %vm15606_vm1 = vmmov %vm15567_vm0 }
 0x937   : > { %9614 = vst.msk [vmem:[%s15181_s16 + $0x24] sm:$0xf] %vm15578_vm3, %v10380_v37  ;;  %vm15607_vm3 = vmmov %vm15567_vm0 }
 0x94b   : > { %v10694_v5 = vpop.f32.mrb[60].mxu0 }
 0x94c   : > { %v9343_v25 = vadd.f32 %v10694_v5, %v15168_v61  ;;  %v9334_v4 = vpop.f32.mrb[61].mxu0 }
 0x94d   : > { %v9335_v13 = vadd.f32 %v15168_v61, %v9334_v4  ;;  %v10695_v27 = vpop.f32.mrb[62].mxu0 }
 0x94e   : > { %v9427_v35 = vadd.f32 %v9343_v25, %v13813_v28  ;;  %v9346_v7 = vadd.f32 %v10695_v27, %v15168_v61  ;;  %v9337_v40 = vpop.f32.mrb[63].mxu0  ;;  %v15595_v25 = vld [vmem:[#allocation16_spill] sm:$0xff] }
 0x94f   : > { %v9425_v55 = vadd.f32 %v9335_v13, %v13817_v10  ;;  %v9338_v60 = vadd.f32 %v15168_v61, %v9337_v40 }
 0x950   : > { %v9459_v50 = vmax.f32 %v9427_v35, 0.0  ;;  %v9428_v56 = vadd.f32 %v9346_v7, %v15579_v2 }
 0x951   : > { %v9457_v44 = vmax.f32 %v9425_v55, 0.0  ;;  %v9426_v39 = vadd.f32 %v9338_v60, %v15580_v43  ;;  %v15600_v43 = vld [vmem:[#allocation17_spill] sm:$0xff] }
 0x952   : > { %v10385_v0 = vpack.c.bf16 %v9459_v50, %v9459_v50  ;;  %v9460_v58 = vmax.f32 %v9428_v56, 0.0 }
 0x953   : > { %v10383_v16 = vpack.c.bf16 %v9457_v44, %v9457_v44  ;;  %v9458_v32 = vmax.f32 %v9426_v39, 0.0 }
 0x954   : > { %9619 = vst.msk [vmem:[%s15181_s16 + $0x38] sm:$0xf] %vm15581_vm11, %v10385_v0  ;;  %v10386_v28 = vpack.c.bf16 %v9460_v58, %v9460_v58  ;;  %vm15610_vm11 = vmmov %vm15567_vm0 }
 0x955   : > { %9617 = vst.msk [vmem:[%s15181_s16 + $0x30] sm:$0xf] %vm15582_vm8, %v10383_v16  ;;  %v10384_v57 = vpack.c.bf16 %v9458_v32, %v9458_v32  ;;  %v15601_v16 = vld [vmem:[#allocation18_spill] sm:$0xff]  ;;  %vm15611_vm8 = vmmov %vm15567_vm0 }
 0x956   : > { %9620 = vst.msk [vmem:[%s15181_s16 + $0x3c] sm:$0xf] %vm15583_vm14, %v10386_v28  ;;  %vm15612_vm14 = vmmov %vm15567_vm0 }
 0x957   : > { %9618 = vst.msk [vmem:[%s15181_s16 + $0x34] sm:$0xf] %vm15584_vm15, %v10384_v57  ;;  %vm15613_vm15 = vmmov %vm15567_vm0 }
 0x96e   : > { %v10698_v10 = vpop.f32.mrb[64].mxu0 }
 0x96f   : > { %v9359_v29 = vadd.f32 %v10698_v10, %v15168_v61  ;;  %v9350_v33 = vpop.f32.mrb[65].mxu0  ;;  %v15602_v10 = vld [vmem:[#allocation19_spill] sm:$0xff] }
 0x970   : > { %v9351_v22 = vadd.f32 %v15168_v61, %v9350_v33  ;;  %v10699_v47 = vpop.f32.mrb[66].mxu0 }
 0x971   : > { %v9431_v6 = vadd.f32 %v9359_v29, %v15585_v63  ;;  %v9362_v59 = vadd.f32 %v10699_v47, %v15168_v61  ;;  %v9353_v24 = vpop.f32.mrb[67].mxu0 }
 0x972   : > { %v9429_v54 = vadd.f32 %v9351_v22, %v15586_v49  ;;  %v9354_v48 = vadd.f32 %v15168_v61, %v9353_v24  ;;  %v15603_v22 = vld [vmem:[#allocation20_spill] sm:$0xff] }
 0x973   : > { %v9463_v19 = vmax.f32 %v9431_v6, 0.0  ;;  %v9432_v3 = vadd.f32 %v9362_v59, %v15587_v38 }
 0x974   : > { %v9461_v42 = vmax.f32 %v9429_v54, 0.0  ;;  %v9430_v46 = vadd.f32 %v9354_v48, %v15588_v45 }
 0x975   : > { %v10389_v36 = vpack.c.bf16 %v9463_v19, %v9463_v19  ;;  %v9464_v31 = vmax.f32 %v9432_v3, 0.0 }
 0x976   : > { %v10387_v9 = vpack.c.bf16 %v9461_v42, %v9461_v42  ;;  %v9462_v12 = vmax.f32 %v9430_v46, 0.0 }
 0x977   : > { %9623 = vst.msk [vmem:[%s15181_s16 + $0x48] sm:$0xf] %vm15567_vm0, %v10389_v36  ;;  %v10390_v30 = vpack.c.bf16 %v9464_v31, %v9464_v31 }
 0x978   : > { %9621 = vst.msk [vmem:[%s15181_s16 + $0x40] sm:$0xf] %vm15589_vm2, %v10387_v9  ;;  %v10388_v21 = vpack.c.bf16 %v9462_v12, %v9462_v12 }
 0x979   : > { %9624 = vst.msk [vmem:[%s15181_s16 + $0x4c] sm:$0xf] %vm15590_vm9, %v10390_v30  ;;  %v15608_v30 = vld [vmem:[#allocation21_spill] sm:$0xff] }
 0x97a   : > { %9622 = vst.msk [vmem:[%s15181_s16 + $0x44] sm:$0xf] %vm15591_vm5, %v10388_v21 }
 0x98e   : > { %v10702_v14 = vpop.f32.mrb[68].mxu0 }
 0x98f   : > { %v9375_v15 = vadd.f32 %v10702_v14, %v15168_v61  ;;  %v9366_v11 = vpop.f32.mrb[69].mxu0 }
 0x990   : > { %v9367_v51 = vadd.f32 %v15168_v61, %v9366_v11  ;;  %v10703_v34 = vpop.f32.mrb[70].mxu0 }
 0x991   : > { %v9435_v62 = vadd.f32 %v9375_v15, %v15592_v23  ;;  %v9378_v41 = vadd.f32 %v10703_v34, %v15168_v61  ;;  %v9369_v17 = vpop.f32.mrb[71].mxu0  ;;  %v15609_v15 = vld [vmem:[#allocation22_spill] sm:$0xff] }
 0x992   : > { %v9433_v1 = vadd.f32 %v9367_v51, %v15593_v26  ;;  %v9370_v20 = vadd.f32 %v15168_v61, %v9369_v17 }
 0x993   : > { %v9467_v18 = vmax.f32 %v9435_v62, 0.0  ;;  %v9436_v37 = vadd.f32 %v9378_v41, %v15594_v8 }
 0x994   : > { %v9465_v5 = vmax.f32 %v9433_v1, 0.0  ;;  %v9434_v4 = vadd.f32 %v9370_v20, %v15595_v25 }
 0x995   : > { %v10393_v13 = vpack.c.bf16 %v9467_v18, %v9467_v18  ;;  %v9468_v27 = vmax.f32 %v9436_v37, 0.0 }
 0x996   : > { %v10391_v35 = vpack.c.bf16 %v9465_v5, %v9465_v5  ;;  %v9466_v7 = vmax.f32 %v9434_v4, 0.0 }
 0x997   : > { %9627 = vst.msk [vmem:[%s15181_s16 + $0x58] sm:$0xf] %vm15596_vm13, %v10393_v13  ;;  %v10394_v40 = vpack.c.bf16 %v9468_v27, %v9468_v27 }
 0x998   : > { %9625 = vst.msk [vmem:[%s15181_s16 + $0x50] sm:$0xf] %vm15597_vm7, %v10391_v35  ;;  %v10392_v55 = vpack.c.bf16 %v9466_v7, %v9466_v7 }
 0x999   : > { %9628 = vst.msk [vmem:[%s15181_s16 + $0x5c] sm:$0xf] %vm15598_vm10, %v10394_v40 }
 0x99a   : > { %9626 = vst.msk [vmem:[%s15181_s16 + $0x54] sm:$0xf] %vm15599_vm4, %v10392_v55 }
 0x9aa   : > { %v10706_v60 = vpop.f32.mrb[72].mxu0 }
 0x9ab   : > { %v9391_v50 = vadd.f32 %v10706_v60, %v15168_v61  ;;  %v9382_v2 = vpop.f32.mrb[73].mxu0 }
 0x9ac   : > { %v9383_v56 = vadd.f32 %v15168_v61, %v9382_v2  ;;  %v10707_v44 = vpop.f32.mrb[74].mxu0 }
 0x9ad   : > { %v9439_v39 = vadd.f32 %v9391_v50, %v15600_v43  ;;  %v9394_v0 = vadd.f32 %v10707_v44, %v15168_v61  ;;  %v9385_v58 = vpop.f32.mrb[75].mxu0 }
 0x9ae   : > { %v9437_v32 = vadd.f32 %v9383_v56, %v15601_v16  ;;  %v9386_v28 = vadd.f32 %v15168_v61, %v9385_v58 }
 0x9af   : > { %v9471_v57 = vmax.f32 %v9439_v39, 0.0  ;;  %v9440_v29 = vadd.f32 %v9394_v0, %v15602_v10 }
 0x9b0   : > { %v9469_v33 = vmax.f32 %v9437_v32, 0.0  ;;  %v9438_v47 = vadd.f32 %v9386_v28, %v15603_v22 }
 0x9b1   : > { %v10397_v63 = vpack.c.bf16 %v9471_v57, %v9471_v57  ;;  %v9472_v6 = vmax.f32 %v9440_v29, 0.0 }
 0x9b2   : > { %v10395_v59 = vpack.c.bf16 %v9469_v33, %v9469_v33  ;;  %v9470_v24 = vmax.f32 %v9438_v47, 0.0 }
 0x9b3   : > { %9631 = vst.msk [vmem:[%s15181_s16 + $0x68] sm:$0xf] %vm15604_vm6, %v10397_v63  ;;  %v10398_v49 = vpack.c.bf16 %v9472_v6, %v9472_v6 }
 0x9b4   : > { %9629 = vst.msk [vmem:[%s15181_s16 + $0x60] sm:$0xf] %vm15605_vm12, %v10395_v59  ;;  %v10396_v54 = vpack.c.bf16 %v9470_v24, %v9470_v24 }
 0x9b5   : > { %9632 = vst.msk [vmem:[%s15181_s16 + $0x6c] sm:$0xf] %vm15606_vm1, %v10398_v49  ;;  %v10710_v48 = vpop.f32.mrb[76].mxu0 }
 0x9b6   : > { %9630 = vst.msk [vmem:[%s15181_s16 + $0x64] sm:$0xf] %vm15607_vm3, %v10396_v54  ;;  %v9407_v19 = vadd.f32 %v10710_v48, %v15168_v61  ;;  %v9398_v38 = vpop.f32.mrb[77].mxu0 }
 0x9b7   : > { %v9399_v3 = vadd.f32 %v15168_v61, %v9398_v38  ;;  %v10711_v42 = vpop.f32.mrb[78].mxu0 }
 0x9b8   : > { %v9443_v45 = vadd.f32 %v9407_v19, %v14149_v52  ;;  %v9410_v46 = vadd.f32 %v10711_v42, %v15168_v61  ;;  %v9401_v36 = vpop.f32.mrb[79].mxu0 }
 0x9b9   : > { %v9441_v31 = vadd.f32 %v9399_v3, %v14155_v53  ;;  %v9402_v9 = vadd.f32 %v15168_v61, %v9401_v36 }
 0x9ba   : > { %v9475_v12 = vmax.f32 %v9443_v45, 0.0  ;;  %v9444_v21 = vadd.f32 %v9410_v46, %v15608_v30 }
 0x9bb   : > { %v9473_v14 = vmax.f32 %v9441_v31, 0.0  ;;  %v9442_v11 = vadd.f32 %v9402_v9, %v15609_v15 }
 0x9bc   : > { %v10401_v51 = vpack.c.bf16 %v9475_v12, %v9475_v12  ;;  %v9476_v34 = vmax.f32 %v9444_v21, 0.0 }
 0x9bd   : > { %v10399_v23 = vpack.c.bf16 %v9473_v14, %v9473_v14  ;;  %v9474_v62 = vmax.f32 %v9442_v11, 0.0 }
 0x9be   : > { %9635 = vst.msk [vmem:[%s15181_s16 + $0x78] sm:$0xf] %vm15610_vm11, %v10401_v51  ;;  %v10402_v52 = vpack.c.bf16 %v9476_v34, %v9476_v34 }
 0x9bf   : > { %9633 = vst.msk [vmem:[%s15181_s16 + $0x70] sm:$0xf] %vm15611_vm8, %v10399_v23  ;;  %v10400_v41 = vpack.c.bf16 %v9474_v62, %v9474_v62 }
 0x9c0   : > { %9636 = vst.msk [vmem:[%s15181_s16 + $0x7c] sm:$0xf] %vm15612_vm14, %v10402_v52 }
 0x9c1   : > { %9634 = vst.msk [vmem:[%s15181_s16 + $0x74] sm:$0xf] %vm15613_vm15, %v10400_v41 }
 0x9c2 PF: > { %s23_s17 = sadd.s32 1, %s11086_s17  }
 0x9c3   : > { %p20_p9 = scmp.ge.s32.totalorder %s23_s17, 4  }
 0x9c5   :  { %22 = sbr.rel (!%p20_p9) target bundleno = 2 (0x2), region = 104 }
 0x9cc   :  { %9658 = vsyncpa [#allocation4], 1 }
 0x9cd   :  { %9660 = vsyncpa [#allocation4 + $0x1], 1 }
 0x9ce   :  { %9661 = vsyncpa [#allocation6], 1 }

</bundles_post_ra>
